<compile_context>
chip_gen: v5e
topology: v5e:2x2
jax: 0.10.0
libtpu: 0.0.40
codegen_flags: <defaults>
</compile_context>

<pallas_src>
import functools

import jax
import jax.numpy as jnp
from jax.experimental import pallas as pl
from jax.experimental.pallas import tpu as pltpu

_BN_EPS = 1e-5
_TILE_N = 128          # point-axis tile (multiple of 8, keeps VMEM use small)


# ------------------------------ Pallas kernel -------------------------------

def _stnkd_kernel(x_ref,
                  w1_ref, s1_ref, b1_ref,
                  w2_ref, s2_ref, b2_ref,
                  w3_ref, s3_ref, b3_ref,
                  fw1_ref, fs1_ref, fb1_ref,
                  fw2_ref, fs2_ref, fb2_ref,
                  fw3_ref, fb3_ref,
                  o_ref,
                  max_acc):
    nt = pl.program_id(1)

    # -------- fused conv1 -> conv2 -> conv3 (pointwise) + folded BN + relu ---
    x = x_ref[0]                                            # (tile_n, k) bf16
    h = jnp.dot(x, w1_ref[...], preferred_element_type=jnp.float32)
    h = jnp.maximum(h * s1_ref[...] + b1_ref[...], 0.0)
    h = jnp.dot(h.astype(jnp.bfloat16), w2_ref[...],
                preferred_element_type=jnp.float32)
    h = jnp.maximum(h * s2_ref[...] + b2_ref[...], 0.0)
    h = jnp.dot(h.astype(jnp.bfloat16), w3_ref[...],
                preferred_element_type=jnp.float32)
    h = jnp.maximum(h * s3_ref[...] + b3_ref[...], 0.0)     # (tile_n, 1024)

    # -------- running max over the point axis (fused, no HBM round trip) ----
    @pl.when(nt == 0)
    def _():
        max_acc[...] = jnp.full_like(max_acc, -jnp.inf)

    max_acc[...] = jnp.maximum(max_acc[...],
                               jnp.max(h, axis=0, keepdims=True))

    # -------- FC head on the last point tile (identity folded into fb3) -----
    @pl.when(nt == pl.num_programs(1) - 1)
    def _():
        g = max_acc[...].astype(jnp.bfloat16)                # (1, 1024)
        f = jnp.dot(g, fw1_ref[...], preferred_element_type=jnp.float32)
        f = jnp.maximum(f * fs1_ref[...] + fb1_ref[...], 0.0)
        f = jnp.dot(f.astype(jnp.bfloat16), fw2_ref[...],
                    preferred_element_type=jnp.float32)
        f = jnp.maximum(f * fs2_ref[...] + fb2_ref[...], 0.0)
        f = jnp.dot(f.astype(jnp.bfloat16), fw3_ref[...],
                    preferred_element_type=jnp.float32)
        o_ref[0] = f + fb3_ref[...]                          # (1, k*k)


# --------------------------------- wrapper -----------------------------------

@functools.partial(jax.jit, static_argnames=("k",))
def stnkd_forward(x, params, *, k=64):
    """x: (B, k, N) float32 (torch NCW).  Returns (B, k, k) float32."""
    B, kc, N = x.shape
    assert kc == k
    kk = k * k
    p = params

    x_t = jnp.transpose(x, (0, 2, 1))                        # (B, N, k)
    tile_n = min(_TILE_N, N)
    n_pad = (-N) % tile_n
    if n_pad:
        # Pad the point axis by duplicating the last point: the point-axis max
        # (the only reduction over points) is unchanged by duplicates.
        x_t = jnp.concatenate(
            [x_t, jnp.broadcast_to(x_t[:, -1:, :], (B, n_pad, k))], axis=1)
    n_tiles = x_t.shape[1] // tile_n
    x_bf = x_t.astype(jnp.bfloat16)

    def const(shape):
        return pl.BlockSpec(shape, lambda b, nt: (0, 0))

    out = pl.pallas_call(
        _stnkd_kernel,
        out_shape=jax.ShapeDtypeStruct((B, 1, kk), jnp.float32),
        grid_spec=pltpu.PrefetchScalarGridSpec(
            num_scalar_prefetch=0,
            grid=(B, n_tiles),
            in_specs=[
                pl.BlockSpec((1, tile_n, k), lambda b, nt: (b, nt, 0)),
                const((k, 64)),     const((1, 64)),   const((1, 64)),
                const((64, 128)),   const((1, 128)),  const((1, 128)),
                const((128, 1024)), const((1, 1024)), const((1, 1024)),
                const((1024, 512)), const((1, 512)),  const((1, 512)),
                const((512, 256)),  const((1, 256)),  const((1, 256)),
                const((256, kk)),   const((1, kk)),
            ],
            out_specs=pl.BlockSpec((1, 1, kk), lambda b, nt: (b, 0, 0)),
            scratch_shapes=[pltpu.VMEM((1, 1024), jnp.float32)],
        ),
        compiler_params=pltpu.CompilerParams(
            dimension_semantics=("parallel", "arbitrary")),
    )(x_bf,
      p["w1"], p["s1"], p["b1"],
      p["w2"], p["s2"], p["b2"],
      p["w3"], p["s3"], p["b3"],
      p["fw1"], p["fs1"], p["fb1"],
      p["fw2"], p["fs2"], p["fb2"],
      p["fw3"], p["fb3"])
    return out.reshape(B, k, k)


# ------------------------------- parameters ----------------------------------

def make_params(key, k=64):
    keys = iter(jax.random.split(key, 40))

    def w(shape, s=0.05):
        return (s * jax.random.normal(next(keys), shape,
                                      dtype=jnp.float32)).astype(jnp.bfloat16)

    def bn(c):
        gamma = 1.0 + 0.05 * jax.random.normal(next(keys), (c,), jnp.float32)
        beta = 0.05 * jax.random.normal(next(keys), (c,), jnp.float32)
        mean = 0.05 * jax.random.normal(next(keys), (c,), jnp.float32)
        var = 1.0 + 0.1 * jnp.abs(jax.random.normal(next(keys), (c,), jnp.float32))
        return gamma, beta, mean, var

    def conv_bn(cin, cout):
        weight = w((cin, cout))
        cbias = 0.05 * jax.random.normal(next(keys), (cout,), jnp.float32)
        gamma, beta, mean, var = bn(cout)
        scale = gamma * jax.lax.rsqrt(var + _BN_EPS)
        bias = beta + (cbias - mean) * scale
        return weight, scale.reshape(1, cout), bias.reshape(1, cout)

    p = {}
    p["w1"], p["s1"], p["b1"] = conv_bn(k, 64)          # conv1 + bn1
    p["w2"], p["s2"], p["b2"] = conv_bn(64, 128)        # conv2 + bn2
    p["w3"], p["s3"], p["b3"] = conv_bn(128, 1024)      # conv3 + bn3
    p["fw1"], p["fs1"], p["fb1"] = conv_bn(1024, 512)   # fc1 + bn4
    p["fw2"], p["fs2"], p["fb2"] = conv_bn(512, 256)    # fc2 + bn5
    p["fw3"] = w((256, k * k))                          # fc3
    fc3_bias = 0.05 * jax.random.normal(next(keys), (k * k,), jnp.float32)
    iden = jnp.eye(k, dtype=jnp.float32).reshape(k * k)
    p["fb3"] = (fc3_bias + iden).reshape(1, k * k)      # identity folded (exact)
    return p


# ------------------------------ pure-JAX reference ---------------------------

def stnkd_reference(x, p, k=64):
    B, _, N = x.shape
    x_t = jnp.transpose(x, (0, 2, 1)).reshape(B * N, k)

    def dot(a, wgt):
        return jnp.dot(a.astype(jnp.bfloat16), wgt,
                       preferred_element_type=jnp.float32)

    h = jnp.maximum(dot(x_t, p["w1"]) * p["s1"] + p["b1"], 0.0)
    h = jnp.maximum(dot(h, p["w2"]) * p["s2"] + p["b2"], 0.0)
    h = jnp.maximum(dot(h, p["w3"]) * p["s3"] + p["b3"], 0.0)
    g = jnp.max(h.reshape(B, N, 1024), axis=1)               # (B, 1024)
    f = jnp.maximum(dot(g, p["fw1"]) * p["fs1"] + p["fb1"], 0.0)
    f = jnp.maximum(dot(f, p["fw2"]) * p["fs2"] + p["fb2"], 0.0)
    f = dot(f, p["fw3"]) + p["fb3"]
    return f.reshape(B, k, k)


if __name__ == "__main__":
    key = jax.random.PRNGKey(0)
    kx, kp = jax.random.split(key)
    B, K, N = 2, 64, 256
    x = jax.random.normal(kx, (B, K, N), dtype=jnp.float32)
    params = make_params(kp, k=K)

    trans = stnkd_forward(x, params, k=K)
    jax.block_until_ready(trans)

    assert trans.shape == (B, K, K) and trans.dtype == jnp.float32
    assert bool(jnp.all(jnp.isfinite(trans)))

    ref = stnkd_reference(x, params, k=K)
    max_err = float(jnp.max(jnp.abs(trans - ref)))
    assert max_err < 2e-2, f"max abs error vs reference: {max_err}"

    print("KERNEL_OK")
</pallas_src>

<mosaic_0001>
module attributes {stable_mosaic.version = 11 : i64} {
  func.func @_stnkd_kernel(%arg0: i32, %arg1: i32, %arg2: memref<1x128x64xbf16, #tpu.memory_space<vmem>>, %arg3: memref<64x64xbf16, #tpu.memory_space<vmem>>, %arg4: memref<1x64xf32, #tpu.memory_space<vmem>>, %arg5: memref<1x64xf32, #tpu.memory_space<vmem>>, %arg6: memref<64x128xbf16, #tpu.memory_space<vmem>>, %arg7: memref<1x128xf32, #tpu.memory_space<vmem>>, %arg8: memref<1x128xf32, #tpu.memory_space<vmem>>, %arg9: memref<128x1024xbf16, #tpu.memory_space<vmem>>, %arg10: memref<1x1024xf32, #tpu.memory_space<vmem>>, %arg11: memref<1x1024xf32, #tpu.memory_space<vmem>>, %arg12: memref<1024x512xbf16, #tpu.memory_space<vmem>>, %arg13: memref<1x512xf32, #tpu.memory_space<vmem>>, %arg14: memref<1x512xf32, #tpu.memory_space<vmem>>, %arg15: memref<512x256xbf16, #tpu.memory_space<vmem>>, %arg16: memref<1x256xf32, #tpu.memory_space<vmem>>, %arg17: memref<1x256xf32, #tpu.memory_space<vmem>>, %arg18: memref<256x4096xbf16, #tpu.memory_space<vmem>>, %arg19: memref<1x4096xf32, #tpu.memory_space<vmem>>, %arg20: memref<1x1x4096xf32, #tpu.memory_space<vmem>>, %arg21: memref<1x1024xf32, #tpu.memory_space<vmem>>) attributes {dimension_semantics = [#tpu.dimension_semantics<parallel>, #tpu.dimension_semantics<arbitrary>], iteration_bounds = array<i64: 2, 2>, scalar_prefetch = 0 : i64, scratch_operands = 1 : i64, tpu.core_type = #tpu.core_type<tc>, window_params = [{transform_indices = @transform_0, window_bounds = array<i64: 1, 128, 64>}, {pipeline_mode = #tpu.pipeline_mode<synchronous>, transform_indices = @transform_1, window_bounds = array<i64: 64, 64>}, {pipeline_mode = #tpu.pipeline_mode<synchronous>, transform_indices = @transform_2, window_bounds = array<i64: 1, 64>}, {pipeline_mode = #tpu.pipeline_mode<synchronous>, transform_indices = @transform_3, window_bounds = array<i64: 1, 64>}, {pipeline_mode = #tpu.pipeline_mode<synchronous>, transform_indices = @transform_4, window_bounds = array<i64: 64, 128>}, {pipeline_mode = #tpu.pipeline_mode<synchronous>, transform_indices = @transform_5, window_bounds = array<i64: 1, 128>}, {pipeline_mode = #tpu.pipeline_mode<synchronous>, transform_indices = @transform_6, window_bounds = array<i64: 1, 128>}, {pipeline_mode = #tpu.pipeline_mode<synchronous>, transform_indices = @transform_7, window_bounds = array<i64: 128, 1024>}, {pipeline_mode = #tpu.pipeline_mode<synchronous>, transform_indices = @transform_8, window_bounds = array<i64: 1, 1024>}, {pipeline_mode = #tpu.pipeline_mode<synchronous>, transform_indices = @transform_9, window_bounds = array<i64: 1, 1024>}, {pipeline_mode = #tpu.pipeline_mode<synchronous>, transform_indices = @transform_10, window_bounds = array<i64: 1024, 512>}, {pipeline_mode = #tpu.pipeline_mode<synchronous>, transform_indices = @transform_11, window_bounds = array<i64: 1, 512>}, {pipeline_mode = #tpu.pipeline_mode<synchronous>, transform_indices = @transform_12, window_bounds = array<i64: 1, 512>}, {pipeline_mode = #tpu.pipeline_mode<synchronous>, transform_indices = @transform_13, window_bounds = array<i64: 512, 256>}, {pipeline_mode = #tpu.pipeline_mode<synchronous>, transform_indices = @transform_14, window_bounds = array<i64: 1, 256>}, {pipeline_mode = #tpu.pipeline_mode<synchronous>, transform_indices = @transform_15, window_bounds = array<i64: 1, 256>}, {pipeline_mode = #tpu.pipeline_mode<synchronous>, transform_indices = @transform_16, window_bounds = array<i64: 256, 4096>}, {pipeline_mode = #tpu.pipeline_mode<synchronous>, transform_indices = @transform_17, window_bounds = array<i64: 1, 4096>}, {transform_indices = @transform_18, window_bounds = array<i64: 1, 1, 4096>}]} {
    %c0 = arith.constant 0 : index
    %c0_0 = arith.constant 0 : index
    %c0_1 = arith.constant 0 : index
    %0 = vector.load %arg2[%c0, %c0_0, %c0_1] : memref<1x128x64xbf16, #tpu.memory_space<vmem>>, vector<1x128x64xbf16>
    %1 = vector.shape_cast %0 : vector<1x128x64xbf16> to vector<128x64xbf16>
    %c0_2 = arith.constant 0 : index
    %c0_3 = arith.constant 0 : index
    %2 = vector.load %arg3[%c0_2, %c0_3] : memref<64x64xbf16, #tpu.memory_space<vmem>>, vector<64x64xbf16>
    %cst = arith.constant dense<0.000000e+00> : vector<128x64xf32>
    %3 = tpu.matmul %1, %2, %cst {dimension_numbers = #tpu.dot_dimension_numbers<[1], [0], [0], [1], [0, 0, 1, 1], [], []>} : vector<128x64xbf16>, vector<64x64xbf16>, vector<128x64xf32> -> vector<128x64xf32>
    %c0_4 = arith.constant 0 : index
    %c0_5 = arith.constant 0 : index
    %4 = vector.load %arg4[%c0_4, %c0_5] : memref<1x64xf32, #tpu.memory_space<vmem>>, vector<1x64xf32>
    %5 = vector.broadcast %4 : vector<1x64xf32> to vector<128x64xf32>
    %6 = arith.mulf %3, %5 : vector<128x64xf32>
    %c0_6 = arith.constant 0 : index
    %c0_7 = arith.constant 0 : index
    %7 = vector.load %arg5[%c0_6, %c0_7] : memref<1x64xf32, #tpu.memory_space<vmem>>, vector<1x64xf32>
    %8 = vector.broadcast %7 : vector<1x64xf32> to vector<128x64xf32>
    %9 = arith.addf %6, %8 : vector<128x64xf32>
    %cst_8 = arith.constant 0.000000e+00 : f32
    %10 = vector.broadcast %cst_8 : f32 to vector<128x64xf32>
    %11 = arith.maximumf %9, %10 : vector<128x64xf32>
    %12 = arith.truncf %11 : vector<128x64xf32> to vector<128x64xbf16>
    %c0_9 = arith.constant 0 : index
    %c0_10 = arith.constant 0 : index
    %13 = vector.load %arg6[%c0_9, %c0_10] : memref<64x128xbf16, #tpu.memory_space<vmem>>, vector<64x128xbf16>
    %cst_11 = arith.constant dense<0.000000e+00> : vector<128x128xf32>
    %14 = tpu.matmul %12, %13, %cst_11 {dimension_numbers = #tpu.dot_dimension_numbers<[1], [0], [0], [1], [0, 0, 1, 1], [], []>} : vector<128x64xbf16>, vector<64x128xbf16>, vector<128x128xf32> -> vector<128x128xf32>
    %c0_12 = arith.constant 0 : index
    %c0_13 = arith.constant 0 : index
    %15 = vector.load %arg7[%c0_12, %c0_13] : memref<1x128xf32, #tpu.memory_space<vmem>>, vector<1x128xf32>
    %16 = vector.broadcast %15 : vector<1x128xf32> to vector<128x128xf32>
    %17 = arith.mulf %14, %16 : vector<128x128xf32>
    %c0_14 = arith.constant 0 : index
    %c0_15 = arith.constant 0 : index
    %18 = vector.load %arg8[%c0_14, %c0_15] : memref<1x128xf32, #tpu.memory_space<vmem>>, vector<1x128xf32>
    %19 = vector.broadcast %18 : vector<1x128xf32> to vector<128x128xf32>
    %20 = arith.addf %17, %19 : vector<128x128xf32>
    %cst_16 = arith.constant 0.000000e+00 : f32
    %21 = vector.broadcast %cst_16 : f32 to vector<128x128xf32>
    %22 = arith.maximumf %20, %21 : vector<128x128xf32>
    %23 = arith.truncf %22 : vector<128x128xf32> to vector<128x128xbf16>
    %c0_17 = arith.constant 0 : index
    %c0_18 = arith.constant 0 : index
    %24 = vector.load %arg9[%c0_17, %c0_18] : memref<128x1024xbf16, #tpu.memory_space<vmem>>, vector<128x1024xbf16>
    %cst_19 = arith.constant dense<0.000000e+00> : vector<128x1024xf32>
    %25 = tpu.matmul %23, %24, %cst_19 {dimension_numbers = #tpu.dot_dimension_numbers<[1], [0], [0], [1], [0, 0, 1, 1], [], []>} : vector<128x128xbf16>, vector<128x1024xbf16>, vector<128x1024xf32> -> vector<128x1024xf32>
    %c0_20 = arith.constant 0 : index
    %c0_21 = arith.constant 0 : index
    %26 = vector.load %arg10[%c0_20, %c0_21] : memref<1x1024xf32, #tpu.memory_space<vmem>>, vector<1x1024xf32>
    %27 = vector.broadcast %26 : vector<1x1024xf32> to vector<128x1024xf32>
    %28 = arith.mulf %25, %27 : vector<128x1024xf32>
    %c0_22 = arith.constant 0 : index
    %c0_23 = arith.constant 0 : index
    %29 = vector.load %arg11[%c0_22, %c0_23] : memref<1x1024xf32, #tpu.memory_space<vmem>>, vector<1x1024xf32>
    %30 = vector.broadcast %29 : vector<1x1024xf32> to vector<128x1024xf32>
    %31 = arith.addf %28, %30 : vector<128x1024xf32>
    %cst_24 = arith.constant 0.000000e+00 : f32
    %32 = vector.broadcast %cst_24 : f32 to vector<128x1024xf32>
    %33 = arith.maximumf %31, %32 : vector<128x1024xf32>
    %c0_i32 = arith.constant 0 : i32
    %34 = arith.cmpi eq, %arg1, %c0_i32 : i32
    %35 = arith.extui %34 : i1 to i32
    %c0_i32_25 = arith.constant 0 : i32
    %36 = arith.cmpi ne, %35, %c0_i32_25 : i32
    scf.if %36 {
      %cst_32 = arith.constant 0xFF800000 : f32
      %45 = vector.broadcast %cst_32 : f32 to vector<1x1024xf32>
      %c0_33 = arith.constant 0 : index
      %c0_34 = arith.constant 0 : index
      %46 = vector.load %arg21[%c0_33, %c0_34] : memref<1x1024xf32, #tpu.memory_space<vmem>>, vector<1x1024xf32>
      tpu.vector_store %arg21[%c0_33, %c0_34], %45 {strides = array<i32>} : memref<1x1024xf32, #tpu.memory_space<vmem>>, vector<1x1024xf32>,
    } else {
    }
    %c0_26 = arith.constant 0 : index
    %c0_27 = arith.constant 0 : index
    %37 = vector.load %arg21[%c0_26, %c0_27] : memref<1x1024xf32, #tpu.memory_space<vmem>>, vector<1x1024xf32>
    %cst_28 = arith.constant dense<0xFF800000> : vector<1024xf32>
    %38 = vector.multi_reduction <maximumf>, %33, %cst_28 [0] : vector<128x1024xf32> to vector<1024xf32>
    %39 = vector.shape_cast %38 : vector<1024xf32> to vector<1x1024xf32>
    %40 = arith.maximumf %37, %39 : vector<1x1024xf32>
    %c0_29 = arith.constant 0 : index
    %c0_30 = arith.constant 0 : index
    %41 = vector.load %arg21[%c0_29, %c0_30] : memref<1x1024xf32, #tpu.memory_space<vmem>>, vector<1x1024xf32>
    tpu.vector_store %arg21[%c0_29, %c0_30], %40 {strides = array<i32>} : memref<1x1024xf32, #tpu.memory_space<vmem>>, vector<1x1024xf32>,
    %c1_i32 = arith.constant 1 : i32
    %42 = arith.cmpi eq, %arg1, %c1_i32 : i32
    %43 = arith.extui %42 : i1 to i32
    %c0_i32_31 = arith.constant 0 : i32
    %44 = arith.cmpi ne, %43, %c0_i32_31 : i32
    scf.if %44 {
      %c0_32 = arith.constant 0 : index
      %c0_33 = arith.constant 0 : index
      %45 = vector.load %arg21[%c0_32, %c0_33] : memref<1x1024xf32, #tpu.memory_space<vmem>>, vector<1x1024xf32>
      %46 = arith.truncf %45 : vector<1x1024xf32> to vector<1x1024xbf16>
      %c0_34 = arith.constant 0 : index
      %c0_35 = arith.constant 0 : index
      %47 = vector.load %arg12[%c0_34, %c0_35] : memref<1024x512xbf16, #tpu.memory_space<vmem>>, vector<1024x512xbf16>
      %cst_36 = arith.constant dense<0.000000e+00> : vector<1x512xf32>
      %48 = tpu.matmul %46, %47, %cst_36 {dimension_numbers = #tpu.dot_dimension_numbers<[1], [0], [0], [1], [0, 0, 1, 1], [], []>} : vector<1x1024xbf16>, vector<1024x512xbf16>, vector<1x512xf32> -> vector<1x512xf32>
      %c0_37 = arith.constant 0 : index
      %c0_38 = arith.constant 0 : index
      %49 = vector.load %arg13[%c0_37, %c0_38] : memref<1x512xf32, #tpu.memory_space<vmem>>, vector<1x512xf32>
      %50 = arith.mulf %48, %49 : vector<1x512xf32>
      %c0_39 = arith.constant 0 : index
      %c0_40 = arith.constant 0 : index
      %51 = vector.load %arg14[%c0_39, %c0_40] : memref<1x512xf32, #tpu.memory_space<vmem>>, vector<1x512xf32>
      %52 = arith.addf %50, %51 : vector<1x512xf32>
      %cst_41 = arith.constant 0.000000e+00 : f32
      %53 = vector.broadcast %cst_41 : f32 to vector<1x512xf32>
      %54 = arith.maximumf %52, %53 : vector<1x512xf32>
      %55 = arith.truncf %54 : vector<1x512xf32> to vector<1x512xbf16>
      %c0_42 = arith.constant 0 : index
      %c0_43 = arith.constant 0 : index
      %56 = vector.load %arg15[%c0_42, %c0_43] : memref<512x256xbf16, #tpu.memory_space<vmem>>, vector<512x256xbf16>
      %cst_44 = arith.constant dense<0.000000e+00> : vector<1x256xf32>
      %57 = tpu.matmul %55, %56, %cst_44 {dimension_numbers = #tpu.dot_dimension_numbers<[1], [0], [0], [1], [0, 0, 1, 1], [], []>} : vector<1x512xbf16>, vector<512x256xbf16>, vector<1x256xf32> -> vector<1x256xf32>
      %c0_45 = arith.constant 0 : index
      %c0_46 = arith.constant 0 : index
      %58 = vector.load %arg16[%c0_45, %c0_46] : memref<1x256xf32, #tpu.memory_space<vmem>>, vector<1x256xf32>
      %59 = arith.mulf %57, %58 : vector<1x256xf32>
      %c0_47 = arith.constant 0 : index
      %c0_48 = arith.constant 0 : index
      %60 = vector.load %arg17[%c0_47, %c0_48] : memref<1x256xf32, #tpu.memory_space<vmem>>, vector<1x256xf32>
      %61 = arith.addf %59, %60 : vector<1x256xf32>
      %cst_49 = arith.constant 0.000000e+00 : f32
      %62 = vector.broadcast %cst_49 : f32 to vector<1x256xf32>
      %63 = arith.maximumf %61, %62 : vector<1x256xf32>
      %64 = arith.truncf %63 : vector<1x256xf32> to vector<1x256xbf16>
      %c0_50 = arith.constant 0 : index
      %c0_51 = arith.constant 0 : index
      %65 = vector.load %arg18[%c0_50, %c0_51] : memref<256x4096xbf16, #tpu.memory_space<vmem>>, vector<256x4096xbf16>
      %cst_52 = arith.constant dense<0.000000e+00> : vector<1x4096xf32>
      %66 = tpu.matmul %64, %65, %cst_52 {dimension_numbers = #tpu.dot_dimension_numbers<[1], [0], [0], [1], [0, 0, 1, 1], [], []>} : vector<1x256xbf16>, vector<256x4096xbf16>, vector<1x4096xf32> -> vector<1x4096xf32>
      %c0_53 = arith.constant 0 : index
      %c0_54 = arith.constant 0 : index
      %67 = vector.load %arg19[%c0_53, %c0_54] : memref<1x4096xf32, #tpu.memory_space<vmem>>, vector<1x4096xf32>
      %68 = arith.addf %66, %67 : vector<1x4096xf32>
      %c0_55 = arith.constant 0 : index
      %c0_56 = arith.constant 0 : index
      %c0_57 = arith.constant 0 : index
      %69 = vector.load %arg20[%c0_55, %c0_56, %c0_57] : memref<1x1x4096xf32, #tpu.memory_space<vmem>>, vector<1x1x4096xf32>
      %70 = vector.shape_cast %69 : vector<1x1x4096xf32> to vector<1x4096xf32>
      %71 = vector.shape_cast %68 : vector<1x4096xf32> to vector<1x1x4096xf32>
      tpu.vector_store %arg20[%c0_55, %c0_56, %c0_57], %71 {strides = array<i32>} : memref<1x1x4096xf32, #tpu.memory_space<vmem>>, vector<1x1x4096xf32>,
    } else {
    }
    return
  }
  func.func @transform_0(%arg0: i32, %arg1: i32) -> (i32, i32, i32) {
    %c0_i32 = arith.constant 0 : i32
    %c0_i32_0 = arith.constant 0 : i32
    return %arg0, %arg1, %c0_i32 : i32, i32, i32
  }
  func.func @transform_1(%arg0: i32, %arg1: i32) -> (i32, i32) {
    %c0_i32 = arith.constant 0 : i32
    %c0_i32_0 = arith.constant 0 : i32
    %c0_i32_1 = arith.constant 0 : i32
    return %c0_i32, %c0_i32_0 : i32, i32
  }
  func.func @transform_2(%arg0: i32, %arg1: i32) -> (i32, i32) {
    %c0_i32 = arith.constant 0 : i32
    %c0_i32_0 = arith.constant 0 : i32
    %c0_i32_1 = arith.constant 0 : i32
    return %c0_i32, %c0_i32_0 : i32, i32
  }
  func.func @transform_3(%arg0: i32, %arg1: i32) -> (i32, i32) {
    %c0_i32 = arith.constant 0 : i32
    %c0_i32_0 = arith.constant 0 : i32
    %c0_i32_1 = arith.constant 0 : i32
    return %c0_i32, %c0_i32_0 : i32, i32
  }
  func.func @transform_4(%arg0: i32, %arg1: i32) -> (i32, i32) {
    %c0_i32 = arith.constant 0 : i32
    %c0_i32_0 = arith.constant 0 : i32
    %c0_i32_1 = arith.constant 0 : i32
    return %c0_i32, %c0_i32_0 : i32, i32
  }
  func.func @transform_5(%arg0: i32, %arg1: i32) -> (i32, i32) {
    %c0_i32 = arith.constant 0 : i32
    %c0_i32_0 = arith.constant 0 : i32
    %c0_i32_1 = arith.constant 0 : i32
    return %c0_i32, %c0_i32_0 : i32, i32
  }
  func.func @transform_6(%arg0: i32, %arg1: i32) -> (i32, i32) {
    %c0_i32 = arith.constant 0 : i32
    %c0_i32_0 = arith.constant 0 : i32
    %c0_i32_1 = arith.constant 0 : i32
    return %c0_i32, %c0_i32_0 : i32, i32
  }
  func.func @transform_7(%arg0: i32, %arg1: i32) -> (i32, i32) {
    %c0_i32 = arith.constant 0 : i32
    %c0_i32_0 = arith.constant 0 : i32
    %c0_i32_1 = arith.constant 0 : i32
    return %c0_i32, %c0_i32_0 : i32, i32
  }
  func.func @transform_8(%arg0: i32, %arg1: i32) -> (i32, i32) {
    %c0_i32 = arith.constant 0 : i32
    %c0_i32_0 = arith.constant 0 : i32
    %c0_i32_1 = arith.constant 0 : i32
    return %c0_i32, %c0_i32_0 : i32, i32
  }
  func.func @transform_9(%arg0: i32, %arg1: i32) -> (i32, i32) {
    %c0_i32 = arith.constant 0 : i32
    %c0_i32_0 = arith.constant 0 : i32
    %c0_i32_1 = arith.constant 0 : i32
    return %c0_i32, %c0_i32_0 : i32, i32
  }
  func.func @transform_10(%arg0: i32, %arg1: i32) -> (i32, i32) {
    %c0_i32 = arith.constant 0 : i32
    %c0_i32_0 = arith.constant 0 : i32
    %c0_i32_1 = arith.constant 0 : i32
    return %c0_i32, %c0_i32_0 : i32, i32
  }
  func.func @transform_11(%arg0: i32, %arg1: i32) -> (i32, i32) {
    %c0_i32 = arith.constant 0 : i32
    %c0_i32_0 = arith.constant 0 : i32
    %c0_i32_1 = arith.constant 0 : i32
    return %c0_i32, %c0_i32_0 : i32, i32
  }
  func.func @transform_12(%arg0: i32, %arg1: i32) -> (i32, i32) {
    %c0_i32 = arith.constant 0 : i32
    %c0_i32_0 = arith.constant 0 : i32
    %c0_i32_1 = arith.constant 0 : i32
    return %c0_i32, %c0_i32_0 : i32, i32
  }
  func.func @transform_13(%arg0: i32, %arg1: i32) -> (i32, i32) {
    %c0_i32 = arith.constant 0 : i32
    %c0_i32_0 = arith.constant 0 : i32
    %c0_i32_1 = arith.constant 0 : i32
    return %c0_i32, %c0_i32_0 : i32, i32
  }
  func.func @transform_14(%arg0: i32, %arg1: i32) -> (i32, i32) {
    %c0_i32 = arith.constant 0 : i32
    %c0_i32_0 = arith.constant 0 : i32
    %c0_i32_1 = arith.constant 0 : i32
    return %c0_i32, %c0_i32_0 : i32, i32
  }
  func.func @transform_15(%arg0: i32, %arg1: i32) -> (i32, i32) {
    %c0_i32 = arith.constant 0 : i32
    %c0_i32_0 = arith.constant 0 : i32
    %c0_i32_1 = arith.constant 0 : i32
    return %c0_i32, %c0_i32_0 : i32, i32
  }
  func.func @transform_16(%arg0: i32, %arg1: i32) -> (i32, i32) {
    %c0_i32 = arith.constant 0 : i32
    %c0_i32_0 = arith.constant 0 : i32
    %c0_i32_1 = arith.constant 0 : i32
    return %c0_i32, %c0_i32_0 : i32, i32
  }
  func.func @transform_17(%arg0: i32, %arg1: i32) -> (i32, i32) {
    %c0_i32 = arith.constant 0 : i32
    %c0_i32_0 = arith.constant 0 : i32
    %c0_i32_1 = arith.constant 0 : i32
    return %c0_i32, %c0_i32_0 : i32, i32
  }
  func.func @transform_18(%arg0: i32, %arg1: i32) -> (i32, i32, i32) {
    %c0_i32 = arith.constant 0 : i32
    %c0_i32_0 = arith.constant 0 : i32
    %c0_i32_1 = arith.constant 0 : i32
    return %arg0, %c0_i32, %c0_i32_0 : i32, i32, i32
  }
}

</mosaic_0001>

<bundles_post_ra>
// kernel: stnkd_forward.1
= control target key start
LH: loop header
LB: loop body
LE: loop exit
PB: predicated region body
PF: predicated region fallthrough
CT: control target
= control target key end

     0   :  { %s16755_s0 = inlined_call_operand.vmem [shape: bf16[2,256,64], index: 0, kind: input, shape index: {}]   ;;  %s16756_s1 = inlined_call_operand.hbm [shape: bf16[64,64], index: 1, kind: input, shape index: {}]   ;;  %s16757_s2 = inlined_call_operand.hbm [shape: f32[1,64], index: 2, kind: input, shape index: {}]   ;;  %s16758_s3 = inlined_call_operand.hbm [shape: f32[1,64], index: 3, kind: input, shape index: {}]   ;;  %s16759_s4 = inlined_call_operand.hbm [shape: bf16[64,128], index: 4, kind: input, shape index: {}]   ;;  %s16760_s5 = inlined_call_operand.hbm [shape: f32[1,128], index: 5, kind: input, shape index: {}]   ;;  %s16761_s6 = inlined_call_operand.hbm [shape: f32[1,128], index: 6, kind: input, shape index: {}]   ;;  %s16762_s7 = inlined_call_operand.hbm [shape: bf16[128,1024], index: 7, kind: input, shape index: {}]   ;;  %s16763_s8 = inlined_call_operand.hbm [shape: f32[1,1024], index: 8, kind: input, shape index: {}]   ;;  %s16764_s9 = inlined_call_operand.hbm [shape: f32[1,1024], index: 9, kind: input, shape index: {}]   ;;  %s16765_s10 = inlined_call_operand.hbm [shape: bf16[1024,512], index: 10, kind: input, shape index: {}]   ;;  %s16766_s11 = inlined_call_operand.hbm [shape: f32[1,512], index: 11, kind: input, shape index: {}]   ;;  %s16767_s12 = inlined_call_operand.hbm [shape: f32[1,512], index: 12, kind: input, shape index: {}]   ;;  %s16768_s13 = inlined_call_operand.hbm [shape: bf16[512,256], index: 13, kind: input, shape index: {}]   ;;  %s16769_s14 = inlined_call_operand.hbm [shape: f32[1,256], index: 14, kind: input, shape index: {}]   ;;  %s16770_s15 = inlined_call_operand.hbm [shape: f32[1,256], index: 15, kind: input, shape index: {}]   ;;  %s16771_s16 = inlined_call_operand.hbm [shape: bf16[256,4096], index: 16, kind: input, shape index: {}]   ;;  %s16772_s17 = inlined_call_operand.hbm [shape: f32[1,4096], index: 17, kind: input, shape index: {}]   ;;  %s16773_s18 = inlined_call_operand.vmem [shape: f32[2,1,4096], index: 18, kind: output, shape index: {}]  }
   0x1   :  { %16860 = sst [smem:[#allocation121_spill]] %s16755_s0 }
   0x2   :  { %16861 = sst [smem:[#allocation122_spill]] %s16756_s1 }
   0x3   :  { %16862 = sst [smem:[#allocation123_spill]] %s16757_s2 }
   0x4   :  { %16863 = sst [smem:[#allocation124_spill]] %s16758_s3 }
   0x5   :  { %16864 = sst [smem:[#allocation125_spill]] %s16759_s4 }
   0x6   :  { %16865 = sst [smem:[#allocation126_spill]] %s16760_s5 }
   0x7   :  { %16866 = sst [smem:[#allocation127_spill]] %s16761_s6 }
   0x8   :  { %16867 = sst [smem:[#allocation128_spill]] %s16773_s18 }
   0x9   :  { %23 = vsyncpa [#allocation4], 0 }
   0xa   :  { %24 = vsyncpa [#allocation6], 0 }
   0xb   :  { %25 = vsyncpa [#allocation9], 0 }
   0xc   :  { %26 = vsyncpa [#allocation12], 0 }
   0xd   :  { %27 = vsyncpa [#allocation15], 0 }
   0xe   :  { %28 = vsyncpa [#allocation18], 0 }
   0xf   :  { %29 = vsyncpa [#allocation21], 0 }
  0x10   :  { %30 = vsyncpa [#allocation24], 0 }
  0x11   :  { %31 = vsyncpa [#allocation27], 0  ;;  %s15064_s27 = smov 0   ;;  %s15066_s28 = smov 0  }
  0x12   :  { %s15068_s29 = smov 0   ;;  %s15070_s30 = smov 0  }
  0x13   :  { %s15072_s0 = smov 0  }
  0x14 LB: > { %16868 = sst [smem:[#allocation38_spill]] %s14924_s27  ;;  %s9492_s22 = sadd.s32 4294967295, %s14940_s0   ;;  %s14940_s0 = sphi %s15072_s0, %s37_s0   ;;  %s14936_s30 = sphi %s15070_s30, %s17177_s30   ;;  %s14932_s29 = sphi %s15068_s29, %s17176_s29   ;;  %s14928_s28 = sphi %s15066_s28, %s17175_s28   ;;  %s14924_s27 = sphi %s15064_s27, %s17174_s27  }
  0x15   : > { %16869 = sst [smem:[#allocation39_spill]] %s14928_s28  ;;  %p9494_p0 = scmp.ge.s32.totalorder %s14940_s0, 1 }
  0x16   : > { %16870 = sst [smem:[#allocation40_spill]] %s14940_s0  ;;  %p465_p1 = scmp.lt.s32.totalorder %s14940_s0, 5 }
  0x17   : > { %s16871_s20 = sld [smem:[#allocation123_spill]]  ;;  %p15095_p2 = scmp.eq.s32.totalorder %s9492_s22, 0 }
  0x18   : > { %p15099_p3 = pnand %p9494_p0, %p465_p1  ;;  %s14942_s24 = smov [#allocation5]  }
  0x19   : > { %s16872_s2 = scalar_select %p15095_p2, 1, 0 }
  0x1a   : > { %s16874_s23 = scalar_select %p15099_p3, 1, 0 }
  0x1b   : > { %16873 = sst [smem:[#allocation41_spill]] %s16872_s2  ;;  %s493_s25 = sshll.u32 %s14942_s24, 4  ;;  %s494_s25 = int_to_ptr.vmem [resolvable:$true] %s493_s25 }
  0x1c   : > { %16875 = sst [smem:[#allocation42_spill]] %s16874_s23  ;;  %p14199_p4 = pneg %p15099_p3 }
  0x1d   : > { %s491_s21 = sshll.u32 %s16871_s20, 4  ;;  %s16876_s4 = sld [smem:[#allocation125_spill]]  ;;  %s492_s21 = int_to_ptr.hbm [resolvable:$true] %s491_s21 }
  0x1e   : > { %p15110_p5 = pnand %p15095_p2, %p14199_p4  ;;  %s14943_s22 = smov [#allocation8]  }
  0x1f   : > { %s516_s0 = sshll.u32 %s14943_s22, 4  ;;  %s16878_s6 = sld [smem:[#allocation127_spill]]  ;;  %s517_s0 = int_to_ptr.vmem [resolvable:$true] %s516_s0 }
  0x20   : > { %14205 = dma.hbm_to_vmem [thread:$0]  (!%p15110_p5), %s492_s21, 16, %s494_s25, [#allocation6]  }
  0x21   : > { %s16780_s26 = smov 64   ;;  %s14945_s19 = smov 4  }
  0x22   : > { %s567_s18 = sshll.u32 %s16763_s8, 4  ;;  %s590_s24 = sshll.u32 %s16765_s10, 4  ;;  %s568_s18 = int_to_ptr.hbm [resolvable:$true] %s567_s18  ;;  %s591_s24 = int_to_ptr.hbm [resolvable:$true] %s590_s24 }
  0x23   : > { %s514_s1 = sshll.u32 %s16876_s4, 4  ;;  %s14946_s4 = smov [#allocation11]   ;;  %s515_s1 = int_to_ptr.hbm [resolvable:$true] %s514_s1 }
  0x24   : > { %14211 = dma.hbm_to_vmem [thread:$0]  (!%p15110_p5), %s515_s1, 512, %s517_s0, [#allocation9], %s16780_s26, %s16780_s26, %s14945_s19  }
  0x25   : > { %s541_s28 = sshll.u32 %s16878_s6, 4  ;;  %s543_s27 = sshll.u32 %s14946_s4, 4  ;;  %s542_s28 = int_to_ptr.hbm [resolvable:$true] %s541_s28  ;;  %s544_s27 = int_to_ptr.vmem [resolvable:$true] %s543_s27 }
  0x26   : > { %14217 = dma.hbm_to_vmem [thread:$0]  (!%p15110_p5), %s542_s28, 16, %s544_s27, [#allocation12]  }
  0x27   : > { %s14947_s6 = smov [#allocation14]   ;;  %s14948_s4 = smov [#allocation17]  }
  0x28   : > { %s569_s23 = sshll.u32 %s14947_s6, 4  ;;  %s592_s0 = sshll.u32 %s14948_s4, 4  ;;  %s570_s23 = int_to_ptr.vmem [resolvable:$true] %s569_s23  ;;  %s593_s0 = int_to_ptr.vmem [resolvable:$true] %s592_s0 }
  0x29   : > { %14223 = dma.hbm_to_vmem [thread:$0]  (!%p15110_p5), %s568_s18, 128, %s570_s23, [#allocation15]  }
  0x2a   : > { %s14949_s2 = smov 256   ;;  %s14950_s1 = smov 16  }
  0x2b   : > { %14229 = dma.hbm_to_vmem [thread:$0]  (!%p15110_p5), %s591_s24, 32768, %s593_s0, [#allocation18], %s14949_s2, %s14949_s2, %s14950_s1  }
  0x2c   : > { %s617_s22 = sshll.u32 %s16767_s12, 4  ;;  %s14951_s21 = smov [#allocation20]   ;;  %s618_s22 = int_to_ptr.hbm [resolvable:$true] %s617_s22 }
  0x2d   : > { %s619_s6 = sshll.u32 %s14951_s21, 4  ;;  %s643_s23 = sshll.u32 %s16769_s14, 4  ;;  %s620_s6 = int_to_ptr.vmem [resolvable:$true] %s619_s6  ;;  %s644_s23 = int_to_ptr.hbm [resolvable:$true] %s643_s23 }
  0x2e   : > { %14235 = dma.hbm_to_vmem [thread:$0]  (!%p15110_p5), %s618_s22, 64, %s620_s6, [#allocation21]  }
  0x2f   : > { %s14952_s18 = smov [#allocation23]   ;;  %s666_s2 = sshll.u32 %s16771_s16, 4  ;;  %s667_s2 = int_to_ptr.hbm [resolvable:$true] %s666_s2 }
  0x30   : > { %s645_s24 = sshll.u32 %s14952_s18, 4  ;;  %s14953_s1 = smov [#allocation26]   ;;  %s646_s24 = int_to_ptr.vmem [resolvable:$true] %s645_s24 }
  0x31   : > { %14241 = dma.hbm_to_vmem [thread:$0]  (!%p15110_p5), %s644_s23, 32, %s646_s24, [#allocation24]  }
  0x32   : > { %s668_s27 = sshll.u32 %s14953_s1, 4  ;;  %s14954_s26 = smov 2048   ;;  %s669_s27 = int_to_ptr.vmem [resolvable:$true] %s668_s27 }
  0x33   : > { %s16781_s28 = smov 128   ;;  %s46_s22 = sadd.s32 1, %s14932_s29 }
  0x34   : > { %14247 = dma.hbm_to_vmem [thread:$0]  (!%p15110_p5), %s667_s2, 65536, %s669_s27, [#allocation27], %s14954_s26, %s14954_s26, %s16781_s28  }
  0x35   : > { %p47_p6 = scmp.ge.s32.totalorder %s46_s22, 2  ;;  %s49_s21 = sadd.s32 1, %s14936_s30 }
  0x36   : > { %s16879_s18 = sld [smem:[#allocation122_spill]]  ;;  %s14956_s23 = smov [#allocation3]  }
  0x37   : > { %s17179_s22 = smov (%p47_p6, %s46_s22), 0  ;;  %s17181_s21 = smov (!%p47_p6, %s49_s21), %s14936_s30 }
  0x38   : > { %s478_s24 = sshll.u32 %s14956_s23, 4  ;;  %p51_p7 = scmp.ge.s32.totalorder %s17181_s21, 2  ;;  %s479_s24 = int_to_ptr.vmem [resolvable:$true] %s478_s24 }
  0x39   : > { %s16880_s0 = smov 64   ;;  %s16881_s3 = sld [smem:[#allocation124_spill]] }
  0x3a   : > { %s17183_s21 = smov (%p51_p7, %s17181_s21), 0  ;;  %s14957_s26 = smov [#allocation7]  }
  0x3b   : > { %s505_s6 = sshll.u32 %s14957_s26, 4  ;;  %s16882_s5 = sld [smem:[#allocation126_spill]]  ;;  %s506_s6 = int_to_ptr.vmem [resolvable:$true] %s505_s6 }
  0x3c   : > { %s476_s4 = sshll.u32 %s16879_s18, 4  ;;  %s14958_s28 = smov [#allocation10]   ;;  %s477_s4 = int_to_ptr.hbm [resolvable:$true] %s476_s4 }
  0x3d   : > { %14202 = dma.hbm_to_vmem [thread:$0]  (!%p15110_p5), %s477_s4, 512, %s479_s24, [#allocation4], %s16880_s0, %s16880_s0, %s14945_s19  }
  0x3e   : > { %s531_s19 = sshll.u32 %s14958_s28, 4  ;;  %s552_s0 = sshll.u32 %s16762_s7, 4  ;;  %s532_s19 = int_to_ptr.vmem [resolvable:$true] %s531_s19  ;;  %s553_s0 = int_to_ptr.hbm [resolvable:$true] %s552_s0 }
  0x3f   : > { %s503_s27 = sshll.u32 %s16881_s3, 4  ;;  %s14959_s2 = smov [#allocation13]   ;;  %s504_s27 = int_to_ptr.hbm [resolvable:$true] %s503_s27 }
  0x40   : > { %14208 = dma.hbm_to_vmem [thread:$0]  (!%p15110_p5), %s504_s27, 16, %s506_s6, [#allocation6]  }
  0x41   : > { %s529_s23 = sshll.u32 %s16882_s5, 4  ;;  %s554_s1 = sshll.u32 %s14959_s2, 4  ;;  %s530_s23 = int_to_ptr.hbm [resolvable:$true] %s529_s23  ;;  %s555_s1 = int_to_ptr.vmem [resolvable:$true] %s554_s1 }
  0x42   : > { %14214 = dma.hbm_to_vmem [thread:$0]  (!%p15110_p5), %s530_s23, 16, %s532_s19, [#allocation9]  }
  0x43   : > { %s579_s18 = sshll.u32 %s16764_s9, 4  ;;  %s14960_s27 = smov 512   ;;  %s580_s18 = int_to_ptr.hbm [resolvable:$true] %s579_s18 }
  0x44   : > { %s14961_s6 = smov 32   ;;  %s14962_s28 = smov [#allocation16]  }
  0x45   : > { %14220 = dma.hbm_to_vmem [thread:$0]  (!%p15110_p5), %s553_s0, 8192, %s555_s1, [#allocation12], %s14960_s27, %s14960_s27, %s14961_s6  }
  0x46   : > { %s581_s4 = sshll.u32 %s14962_s28, 4  ;;  %s605_s23 = sshll.u32 %s16766_s11, 4  ;;  %s582_s4 = int_to_ptr.vmem [resolvable:$true] %s581_s4  ;;  %s606_s23 = int_to_ptr.hbm [resolvable:$true] %s605_s23 }
  0x47   : > { %14226 = dma.hbm_to_vmem [thread:$0]  (!%p15110_p5), %s580_s18, 128, %s582_s4, [#allocation15]  }
  0x48   : > { %s628_s26 = sshll.u32 %s16768_s13, 4  ;;  %s14963_s25 = smov [#allocation19]   ;;  %s629_s26 = int_to_ptr.hbm [resolvable:$true] %s628_s26 }
  0x49   : > { %s607_s5 = sshll.u32 %s14963_s25, 4  ;;  %s14964_s0 = smov [#allocation22]   ;;  %s608_s5 = int_to_ptr.vmem [resolvable:$true] %s607_s5 }
  0x4a   : > { %14232 = dma.hbm_to_vmem [thread:$0]  (!%p15110_p5), %s606_s23, 64, %s608_s5, [#allocation18]  }
  0x4b   : > { %s630_s3 = sshll.u32 %s14964_s0, 4  ;;  %s655_s6 = sshll.u32 %s16770_s15, 4  ;;  %s631_s3 = int_to_ptr.vmem [resolvable:$true] %s630_s3  ;;  %s656_s6 = int_to_ptr.hbm [resolvable:$true] %s655_s6 }
  0x4c   : > { %s14965_s18 = smov 8   ;;  %s16883_s28 = smov 128  }
  0x4d   : > { %14238 = dma.hbm_to_vmem [thread:$0]  (!%p15110_p5), %s629_s26, 8192, %s631_s3, [#allocation21], %s16883_s28, %s16883_s28, %s14965_s18  }
  0x4e   : > { %s14966_s4 = smov [#allocation25]   ;;  %s681_s5 = sshll.u32 %s16772_s17, 4  ;;  %s682_s5 = int_to_ptr.hbm [resolvable:$true] %s681_s5 }
  0x4f   : > { %s657_s24 = sshll.u32 %s14966_s4, 4  ;;  %s14967_s23 = smov [#allocation28]   ;;  %s658_s24 = int_to_ptr.vmem [resolvable:$true] %s657_s24 }
  0x50   : > { %14244 = dma.hbm_to_vmem [thread:$0]  (!%p15110_p5), %s656_s6, 32, %s658_s24, [#allocation24]  }
  0x51   : > { %s683_s25 = sshll.u32 %s14967_s23, 4  ;;  %709 = sbr.rel (%p15099_p3) target bundleno = 2049 (0x801), region = 92  ;;  %s684_s25 = int_to_ptr.vmem [resolvable:$true] %s683_s25 }
  0x52   : > { %14250 = dma.hbm_to_vmem [thread:$0]  (!%p15110_p5), %s682_s5, 512, %s684_s25, [#allocation27]  }
  0x56   : > { %14887 = dma.done.wait (%p15095_p2), [#allocation4], 512  }
  0x57   : > { %14889 = vsyncadd (%p15095_p2), [#allocation4], 4294966784 }
  0x58   : > { %14891 = dma.done.wait (%p15095_p2), [#allocation6], 32  }
  0x59   : > { %14893 = vsyncadd (%p15095_p2), [#allocation6], 4294967264 }
  0x5a   : > { %14895 = dma.done.wait (%p15095_p2), [#allocation9], 528  }
  0x5b   : > { %14897 = vsyncadd (%p15095_p2), [#allocation9], 4294966768 }
  0x5c   : > { %14899 = dma.done.wait (%p15095_p2), [#allocation12], 8208  }
  0x5d   : > { %14901 = vsyncadd (%p15095_p2), [#allocation12], 4294959088 }
  0x5e   : > { %14903 = dma.done.wait (%p15095_p2), [#allocation15], 256  }
  0x5f   : > { %14905 = vsyncadd (%p15095_p2), [#allocation15], 4294967040 }
  0x60   : > { %14907 = dma.done.wait (%p15095_p2), [#allocation18], 32832  }
  0x61   : > { %14909 = vsyncadd (%p15095_p2), [#allocation18], 4294934464 }
  0x62   : > { %14911 = dma.done.wait (%p15095_p2), [#allocation21], 8256  }
  0x63   : > { %14913 = vsyncadd (%p15095_p2), [#allocation21], 4294959040 }
  0x64   : > { %14915 = dma.done.wait (%p15095_p2), [#allocation24], 64  }
  0x65   : > { %14917 = vsyncadd (%p15095_p2), [#allocation24], 4294967232 }
  0x66   : > { %14919 = dma.done.wait (%p15095_p2), [#allocation27], 66048  }
  0x67   : > { %14921 = vsyncadd (%p15095_p2), [#allocation27], 4294901248  ;;  %s16886_s20 = sld [smem:[#allocation38_spill]]  ;;  %v13214_v0 = vld [vmem:[#allocation3 + $0x18] sm:$0xff]  ;;  %v13213_v1 = vld [vmem:[#allocation3 + $0x10] sm:$0xff]  ;;  %vm950_vm0 = vcmask 523264  }
  0x68   : > { %s16887_s3 = sld [smem:[#allocation39_spill]]  ;;  %979 = vmatpush.bf16.msra.mxu0 %v13214_v0  ;;  %14115 = vmatpush.bf16.msra.mxu2 %v13214_v0  ;;  %v13212_v2 = vld [vmem:[#allocation3 + $0x8] sm:$0xff]  ;;  %v13211_v3 = vld [vmem:[#allocation3] sm:$0xff]  ;;  %v13217_v13 = vld [vmem:[#allocation8 + $0x10] sm:$0xff] }
  0x69   : > { %s16888_s28 = sld [smem:[#allocation128_spill]]  ;;  %v13218_v12 = vld [vmem:[#allocation8 + $0x18] sm:$0xff]  ;;  %v13216_v14 = vld [vmem:[#allocation8 + $0x8] sm:$0xff]  ;;  %v13215_v15 = vld [vmem:[#allocation8] sm:$0xff] }
  0x6a   : > { %s16889_s23 = sld [smem:[#allocation121_spill]]  ;;  %1148 = vmatpush.bf16.msra.mxu1 %v13218_v12  ;;  %14119 = vmatpush.bf16.msra.mxu3 %v13218_v12  ;;  %v15266_v17 = vld [vmem:[#allocation5] ss:$0 sm:$0xff]  ;;  %v15269_v19 = vld [vmem:[#allocation7] ss:$0 sm:$0xff] }
  0x6b   : > { %v9849_v12 = vld [vmem:[#allocation13 + $0x1c8] sm:$0xf] }
  0x6c   : > { %980 = vmatpush.bf16.msra.mxu0 %v13213_v1  ;;  %14116 = vmatpush.bf16.msra.mxu2 %v13213_v1  ;;  %v9841_v1 = vld [vmem:[#allocation13 + $0x1c0] sm:$0xf] }
  0x6d   : > { %s9531_s1 = sshll.u32 %s16886_s20, 4  ;;  %p9871_p10 = scmp.ne.s32.totalorder %s16886_s20, 0 }
  0x6e   : > { %p848_p8 = scmp.lt.s32.totalorder %s16887_s3, 1  ;;  %p850_p9 = scmp.lt.s32.totalorder %s9531_s1, 31  ;;  %1149 = vmatpush.bf16.msra.mxu1 %v13217_v13  ;;  %14120 = vmatpush.bf16.msra.mxu3 %v13217_v13  ;;  %v13280_v13 = vld [vmem:[#allocation13 + $0x1e4] sm:$0xf0] }
  0x70   : > { %s17185_s3 = smov (!%p848_p8, %s16887_s3), 1  ;;  %s17187_s1 = smov (!%p850_p9, %s9531_s1), 31  ;;  %981 = vmatpush.bf16.msra.mxu0 %v13212_v2  ;;  %14117 = vmatpush.bf16.msra.mxu2 %v13212_v2  ;;  %v13279_v2 = vld [vmem:[#allocation13 + $0x1dc] sm:$0xf0] }
  0x71   : > { %s9532_s27 = sshll.u32 %s17185_s3, 5 }
  0x72   : > { %s15253_s4 = scalar_lea.vmem %s16888_s28, %s9532_s27  ;;  %s853_s24 = sadd.s32 %s9532_s27, %s17187_s1  ;;  %1150 = vmatpush.bf16.msra.mxu1 %v13216_v14  ;;  %14121 = vmatpush.bf16.msra.mxu3 %v13216_v14  ;;  %v13276_v14 = vld [vmem:[#allocation13 + $0x1cc] sm:$0xf] }
  0x73   : > { %s9533_s19 = sshll.u32 %s853_s24, 2 }
  0x74   : > { %s855_s25 = scalar_lea.vmem %s16889_s23, %s9533_s19  ;;  %982 = vmatpush.bf16.msra.mxu0 %v13211_v3  ;;  %14118 = vmatpush.bf16.msra.mxu2 %v13211_v3  ;;  %v13275_v3 = vld [vmem:[#allocation13 + $0x1c4] sm:$0xf] }
  0x75   : > { %v13203_v4 = vld [vmem:[%s855_s25] sm:$0xff]  ;;  %v13204_v5 = vld [vmem:[%s855_s25 + $0x8] sm:$0xff]  ;;  %v13205_v6 = vld [vmem:[%s855_s25 + $0x10] sm:$0xff] }
  0x76   : > { %v13208_v7 = vld [vmem:[%s855_s25 + $0x28] sm:$0xff]  ;;  %v13206_v8 = vld [vmem:[%s855_s25 + $0x18] sm:$0xff]  ;;  %v13209_v9 = vld [vmem:[%s855_s25 + $0x30] sm:$0xff]  ;;  %1151 = vmatpush.bf16.msra.mxu1 %v13215_v15  ;;  %14122 = vmatpush.bf16.msra.mxu3 %v13215_v15 }
  0x77   : > { %9583 = vmatmul.msk.bf16.vlgmr.msra.gmra.mxu0 %vm950_vm0, %v13203_v4  ;;  %9588 = vmatmul.msk.bf16.vlgmr.msra.gmra.mxu2 %vm950_vm0, %v13208_v7  ;;  %v13207_v10 = vld [vmem:[%s855_s25 + $0x20] sm:$0xff]  ;;  %v13210_v11 = vld [vmem:[%s855_s25 + $0x38] sm:$0xff]  ;;  %v9809_v7 = vld [vmem:[#allocation13 + $0x180] sm:$0xf] }
  0x87   : > { %9584 = vmatmul.msk.bf16.gmra.mxu0 %vm950_vm0, %v13204_v5  ;;  %9589 = vmatmul.msk.bf16.gmra.mxu2 %vm950_vm0, %v13209_v9  ;;  %v9842_v5 = vor.u32 %v13279_v2, %v9841_v1 }
  0x89   : > { %1641 = vmatpush.bf16.msrb.mxu2 %v9842_v5 }
  0x97   : > { %9585 = vmatmul.msk.bf16.gmra.mxu0 %vm950_vm0, %v13205_v6  ;;  %9590 = vmatmul.msk.bf16.gmra.mxu2 %vm950_vm0, %v13210_v11  ;;  %v9843_v6 = vld [vmem:[#allocation13 + $0x1e0] sm:$0xf0] }
  0x98   : > { %v9846_v11 = vor.u32 %v13275_v3, %v9843_v6  ;;  %v13243_v6 = vld [vmem:[#allocation13 + $0xc4] sm:$0xf] }
  0x9a   : > { %1690 = vmatpush.bf16.msrb.mxu3 %v9846_v11  ;;  %v13244_v11 = vld [vmem:[#allocation13 + $0xcc] sm:$0xf] }
  0xa7   : > { %9586 = vmatmul.msk.bf16.gmra.mxu0 %vm950_vm0, %v13206_v8  ;;  %v13271_v8 = vld [vmem:[#allocation13 + $0x19c] sm:$0xf0] }
  0xa8   : > { %v9810_v15 = vor.u32 %v13271_v8, %v9809_v7  ;;  %v9715_v7 = vld [vmem:[#allocation13 + $0xe0] sm:$0xf0] }
  0xa9   : > { %v9718_v8 = vor.u32 %v13243_v6, %v9715_v7  ;;  %v13277_v6 = vld [vmem:[#allocation13 + $0x1d4] sm:$0xf] }
  0xaa   : > { %1642 = vmatpush.bf16.msrb.mxu2 %v9810_v15  ;;  %v9859_v7 = vld [vmem:[#allocation13 + $0x1f0] sm:$0xf0] }
  0xb7   : > { %9587 = vmatmul.msk.bf16.gmra.mxu0 %vm950_vm0, %v13207_v10 }
  0xf4   : > { %v984_v16 = vpop.f32.mrf.mxu0 }
  0xf5   : > { %v1028_v18 = vmul.f32 %v15266_v17, %v984_v16  ;;  %v9850_v16 = vor.u32 %v13280_v13, %v9849_v12 }
  0xf7   : > { %v1048_v21 = vadd.f32 %v15269_v19, %v1028_v18  ;;  %v9851_v18 = vld [vmem:[#allocation13 + $0x1e8] sm:$0xf0]  ;;  %1739 = vmatpush.bf16.msrb.mxu0 %v9850_v16 }
  0xf9   : > { %v1064_v24 = vmax.f32 %v1048_v21, 0.0  ;;  %v9811_v21 = vld [vmem:[#allocation13 + $0x1a0] sm:$0xf0] }
  0xfa   : > { %v1009_v53 = vpop.f32.mrf.mxu2 }
  0xfb   : > { %v1038_v9 = vmul.f32 %v15266_v17, %v1009_v53 }
  0xfc   : > { %v986_v20 = vpop.f32.mrf.mxu0 }
  0xfd   : > { %v1029_v22 = vmul.f32 %v15266_v17, %v986_v20  ;;  %v13267_v20 = vld [vmem:[#allocation13 + $0x184] sm:$0xf] }
  0xff   : > { %v1049_v23 = vadd.f32 %v15269_v19, %v1029_v22  ;;  %v9854_v22 = vor.u32 %v13276_v14, %v9851_v18  ;;  %v9723_v14 = vld [vmem:[#allocation13 + $0xe8] sm:$0xf0]  ;;  %v9681_v18 = vld [vmem:[#allocation13 + $0x80] sm:$0xf] }
 0x100   : > { %v9726_v16 = vor.u32 %v13244_v11, %v9723_v14 }
 0x101   : > { %v1065_v25 = vmax.f32 %v1049_v23, 0.0  ;;  %v9814_v23 = vor.u32 %v13267_v20, %v9811_v21  ;;  %1788 = vmatpush.bf16.msrb.mxu1 %v9854_v22  ;;  %v13239_v20 = vld [vmem:[#allocation13 + $0x9c] sm:$0xf0]  ;;  %v13235_v21 = vld [vmem:[#allocation13 + $0x84] sm:$0xf] }
 0x102   : > { %v1011_v58 = vpop.f32.mrf.mxu2  ;;  %v9682_v22 = vor.u32 %v13239_v20, %v9681_v18  ;;  %v9867_v18 = vld [vmem:[#allocation13 + $0x1f8] sm:$0xf0] }
 0x103   : > { %v1080_v26 = vpack.c.bf16 %v1065_v25, %v1064_v24  ;;  %v1039_v10 = vmul.f32 %v15266_v17, %v1011_v58  ;;  %v1058_v24 = vadd.f32 %v15269_v19, %v1038_v9  ;;  %1691 = vmatpush.bf16.msrb.mxu3 %v9814_v23  ;;  %v9721_v9 = vld [vmem:[#allocation13 + $0xc8] sm:$0xf]  ;;  %v9683_v23 = vld [vmem:[#allocation13 + $0xa0] sm:$0xf0] }
 0x104   : > { %v989_v27 = vpop.f32.mrf.mxu0 }
 0x105   : > { %9607 = vmatmul.msk.bf16.vlgmr.msra.gmra.mxu1 %vm950_vm0, %v1080_v26  ;;  %v1030_v28 = vmul.f32 %v15266_v17, %v989_v27  ;;  %v1059_v25 = vadd.f32 %v15269_v19, %v1039_v10  ;;  %v1074_v26 = vmax.f32 %v1058_v24, 0.0  ;;  %v13248_v10 = vld [vmem:[#allocation13 + $0xe4] sm:$0xf0] }
 0x106   : > { %v9722_v13 = vor.u32 %v13248_v10, %v9721_v9  ;;  %v9689_v24 = vld [vmem:[#allocation13 + $0x88] sm:$0xf] }
 0x107   : > { %v1050_v30 = vadd.f32 %v15269_v19, %v1030_v28  ;;  %v1075_v27 = vmax.f32 %v1059_v25, 0.0  ;;  %v13240_v25 = vld [vmem:[#allocation13 + $0xa4] sm:$0xf0] }
 0x109   : > { %v1066_v33 = vmax.f32 %v1050_v30, 0.0  ;;  %v9777_v30 = vld [vmem:[#allocation13 + $0x140] sm:$0xf] }
 0x10a   : > { %v1014_v4 = vpop.f32.mrf.mxu2 }
 0x10c   : > { %v991_v29 = vpop.f32.mrf.mxu0 }
 0x10d   : > { %v1031_v31 = vmul.f32 %v15266_v17, %v991_v29  ;;  %v1085_v29 = vpack.c.bf16 %v1075_v27, %v1074_v26 }
 0x10f   : > { %v1051_v32 = vadd.f32 %v15269_v19, %v1031_v31  ;;  %v13263_v31 = vld [vmem:[#allocation13 + $0x15c] sm:$0xf0] }
 0x111   : > { %v1067_v34 = vmax.f32 %v1051_v32, 0.0  ;;  %v13268_v32 = vld [vmem:[#allocation13 + $0x18c] sm:$0xf] }
 0x112   : > { %v1016_v28 = vpop.f32.mrf.mxu2 }
 0x113   : > { %v1081_v35 = vpack.c.bf16 %v1067_v34, %v1066_v33  ;;  %v9778_v33 = vor.u32 %v13263_v31, %v9777_v30  ;;  %v9819_v34 = vld [vmem:[#allocation13 + $0x1a8] sm:$0xf0] }
 0x114   : > { %v994_v36 = vpop.f32.mrf.mxu0  ;;  %v13236_v30 = vld [vmem:[#allocation13 + $0x8c] sm:$0xf] }
 0x115   : > { %9608 = vmatmul.msk.bf16.gmra.mxu1 %vm950_vm0, %v1081_v35  ;;  %v1032_v37 = vmul.f32 %v15266_v17, %v994_v36  ;;  %v9817_v35 = vld [vmem:[#allocation13 + $0x188] sm:$0xf]  ;;  %1643 = vmatpush.bf16.msrb.mxu2 %v9778_v33  ;;  %v9691_v31 = vld [vmem:[#allocation13 + $0xa8] sm:$0xf0]  ;;  %v9649_v33 = vld [vmem:[#allocation13 + $0x40] sm:$0xf] }
 0x116   : > { %v13272_v36 = vld [vmem:[#allocation13 + $0x1a4] sm:$0xf0] }
 0x117   : > { %v1052_v39 = vadd.f32 %v15269_v19, %v1032_v37  ;;  %v1040_v37 = vmul.f32 %v15266_v17, %v1014_v4 }
 0x119   : > { %v1068_v42 = vmax.f32 %v1052_v39, 0.0  ;;  %v9822_v39 = vor.u32 %v13268_v32, %v9819_v34  ;;  %v1060_v58 = vadd.f32 %v15269_v19, %v1040_v37  ;;  %v9694_v32 = vor.u32 %v13236_v30, %v9691_v31  ;;  %v13231_v34 = vld [vmem:[#allocation13 + $0x5c] sm:$0xf0]  ;;  %v9651_v37 = vld [vmem:[#allocation13 + $0x60] sm:$0xf0] }
 0x11a   : > { %v1019_v53 = vpop.f32.mrf.mxu2 }
 0x11b   : > { %1789 = vmatpush.bf16.msrb.mxu1 %v9822_v39  ;;  %v1076_v4 = vmax.f32 %v1060_v58, 0.0  ;;  %v1042_v26 = vmul.f32 %v15266_v17, %v1019_v53  ;;  %v13232_v39 = vld [vmem:[#allocation13 + $0x64] sm:$0xf0] }
 0x11c   : > { %v996_v38 = vpop.f32.mrf.mxu0 }
 0x11d   : > { %v1033_v40 = vmul.f32 %v15266_v17, %v996_v38  ;;  %v1041_v38 = vmul.f32 %v15266_v17, %v1016_v28  ;;  %v9686_v28 = vor.u32 %v13235_v21, %v9683_v23  ;;  %v9793_v23 = vld [vmem:[#allocation13 + $0x150] sm:$0xf] }
 0x11f   : > { %v1053_v41 = vadd.f32 %v15269_v19, %v1033_v40  ;;  %v9818_v40 = vor.u32 %v13272_v36, %v9817_v35  ;;  %v13227_v35 = vld [vmem:[#allocation13 + $0x44] sm:$0xf]  ;;  %v9650_v36 = vor.u32 %v13231_v34, %v9649_v33 }
 0x121   : > { %v1069_v43 = vmax.f32 %v1053_v41, 0.0  ;;  %v13259_v41 = vld [vmem:[#allocation13 + $0x144] sm:$0xf]  ;;  %1740 = vmatpush.bf16.msrb.mxu0 %v9818_v40  ;;  %v1062_v40 = vadd.f32 %v15269_v19, %v1042_v26  ;;  %v13269_v26 = vld [vmem:[#allocation13 + $0x194] sm:$0xf] }
 0x122   : > { %v1021_v15 = vpop.f32.mrf.mxu2 }
 0x123   : > { %v1082_v44 = vpack.c.bf16 %v1069_v43, %v1068_v42  ;;  %v9779_v42 = vld [vmem:[#allocation13 + $0x160] sm:$0xf0]  ;;  %v9745_v43 = vld [vmem:[#allocation13 + $0x100] sm:$0xf]  ;;  %v1043_v27 = vmul.f32 %v15266_v17, %v1021_v15  ;;  %v1078_v53 = vmax.f32 %v1062_v40, 0.0 }
 0x124   : > { %v999_v45 = vpop.f32.mrf.mxu0 }
 0x125   : > { %9609 = vmatmul.msk.bf16.gmra.mxu1 %vm950_vm0, %v1082_v44  ;;  %v1034_v46 = vmul.f32 %v15266_v17, %v999_v45  ;;  %v9782_v44 = vor.u32 %v13259_v41, %v9779_v42  ;;  %v13255_v45 = vld [vmem:[#allocation13 + $0x11c] sm:$0xf0]  ;;  %v9654_v41 = vor.u32 %v13227_v35, %v9651_v37  ;;  %v13282_v37 = vld [vmem:[#allocation13 + $0x1f4] sm:$0xf0] }
 0x127   : > { %v1054_v48 = vadd.f32 %v15269_v19, %v1034_v46  ;;  %v9785_v46 = vld [vmem:[#allocation13 + $0x148] sm:$0xf]  ;;  %1692 = vmatpush.bf16.msrb.mxu3 %v9782_v44  ;;  %v9659_v44 = vld [vmem:[#allocation13 + $0x68] sm:$0xf0] }
 0x129   : > { %v1070_v51 = vmax.f32 %v1054_v48, 0.0  ;;  %v9746_v48 = vor.u32 %v13255_v45, %v9745_v43  ;;  %v13228_v43 = vld [vmem:[#allocation13 + $0x4c] sm:$0xf] }
 0x12a   : > { %v9662_v45 = vor.u32 %v13228_v43, %v9659_v44 }
 0x12b   : > { %1644 = vmatpush.bf16.msrb.mxu2 %v9746_v48  ;;  %v13219_v48 = vld [vmem:[#allocation13 + $0x4] sm:$0xf] }
 0x12c   : > { %v1001_v47 = vpop.f32.mrf.mxu0 }
 0x12d   : > { %v1035_v49 = vmul.f32 %v15266_v17, %v1001_v47  ;;  %v13264_v47 = vld [vmem:[#allocation13 + $0x164] sm:$0xf0] }
 0x12f   : > { %v1055_v50 = vadd.f32 %v15269_v19, %v1035_v49  ;;  %v9786_v49 = vor.u32 %v13264_v47, %v9785_v46  ;;  %v9617_v46 = vld [vmem:[#allocation13] sm:$0xf] }
 0x130   : > { %v13223_v47 = vld [vmem:[#allocation13 + $0x1c] sm:$0xf0] }
 0x131   : > { %v1071_v52 = vmax.f32 %v1055_v50, 0.0  ;;  %v13260_v50 = vld [vmem:[#allocation13 + $0x14c] sm:$0xf]  ;;  %1741 = vmatpush.bf16.msrb.mxu0 %v9786_v49  ;;  %v9618_v49 = vor.u32 %v13223_v47, %v9617_v46  ;;  %v9761_v47 = vld [vmem:[#allocation13 + $0x110] sm:$0xf] }
 0x133   : > { %v1083_v54 = vpack.c.bf16 %v1071_v52, %v1070_v51  ;;  %v9787_v51 = vld [vmem:[#allocation13 + $0x168] sm:$0xf0]  ;;  %v13251_v52 = vld [vmem:[#allocation13 + $0x104] sm:$0xf] }
 0x134   : > { %v1004_v55 = vpop.f32.mrf.mxu0 }
 0x135   : > { %9610 = vmatmul.msk.bf16.gmra.mxu1 %vm950_vm0, %v1083_v54  ;;  %v1036_v56 = vmul.f32 %v15266_v17, %v1004_v55  ;;  %v9790_v54 = vor.u32 %v13260_v50, %v9787_v51  ;;  %v9747_v55 = vld [vmem:[#allocation13 + $0x120] sm:$0xf0]  ;;  %v9625_v51 = vld [vmem:[#allocation13 + $0x8] sm:$0xf] }
 0x136   : > { %v9619_v50 = vld [vmem:[#allocation13 + $0x20] sm:$0xf0] }
 0x137   : > { %v1056_v59 = vadd.f32 %v15269_v19, %v1036_v56  ;;  %v9753_v56 = vld [vmem:[#allocation13 + $0x108] sm:$0xf]  ;;  %1790 = vmatpush.bf16.msrb.mxu1 %v9790_v54 }
 0x139   : > { %v1072_v62 = vmax.f32 %v1056_v59, 0.0  ;;  %v1061_v59 = vadd.f32 %v15269_v19, %v1041_v38  ;;  %v9657_v38 = vld [vmem:[#allocation13 + $0x48] sm:$0xf] }
 0x13a   : > { %v9658_v42 = vor.u32 %v13232_v39, %v9657_v38  ;;  %v13270_v38 = vld [vmem:[#allocation13 + $0x19c] sm:$0xf] }
 0x13b   : > { %v1077_v5 = vmax.f32 %v1061_v59, 0.0 }
 0x13c   : > { %v1006_v57 = vpop.f32.mrf.mxu0 }
 0x13d   : > { %v1037_v60 = vmul.f32 %v15266_v17, %v1006_v57  ;;  %v13256_v57 = vld [vmem:[#allocation13 + $0x124] sm:$0xf0]  ;;  %v1086_v12 = vpack.c.bf16 %v1077_v5, %v1076_v4  ;;  %v1063_v17 = vadd.f32 %v15269_v19, %v1043_v27  ;;  %v13273_v4 = vld [vmem:[#allocation13 + $0x1ac] sm:$0xf0]  ;;  %v9827_v27 = vld [vmem:[#allocation13 + $0x1b0] sm:$0xf0] }
 0x13e   : > { %v9754_v1 = vor.u32 %v13256_v57, %v9753_v56  ;;  %v13220_v56 = vld [vmem:[#allocation13 + $0xc] sm:$0xf] }
 0x13f   : > { %v1057_v61 = vadd.f32 %v15269_v19, %v1037_v60  ;;  %v9750_v60 = vor.u32 %v13251_v52, %v9747_v55  ;;  %v13224_v52 = vld [vmem:[#allocation13 + $0x24] sm:$0xf0]  ;;  %v1079_v54 = vmax.f32 %v1063_v17, 0.0  ;;  %v9622_v55 = vor.u32 %v13219_v48, %v9619_v50  ;;  %v9627_v57 = vld [vmem:[#allocation13 + $0x28] sm:$0xf0] }
 0x140   : > { %1742 = vmatpush.bf16.msrb.mxu0 %v9754_v1  ;;  %v9626_v19 = vor.u32 %v13224_v52, %v9625_v51  ;;  %v9630_v58 = vor.u32 %v13220_v56, %v9627_v57  ;;  %v9835_v17 = vld [vmem:[#allocation13 + $0x1b8] sm:$0xf0]  ;;  %v13257_v48 = vld [vmem:[#allocation13 + $0x12c] sm:$0xf0]  ;;  %v9795_v51 = vld [vmem:[#allocation13 + $0x170] sm:$0xf0] }
 0x141   : > { %v1073_v63 = vmax.f32 %v1057_v61, 0.0  ;;  %v13252_v61 = vld [vmem:[#allocation13 + $0x10c] sm:$0xf]  ;;  %1693 = vmatpush.bf16.msrb.mxu3 %v9750_v60  ;;  %v1087_v59 = vpack.c.bf16 %v1079_v54, %v1078_v53  ;;  %v9857_v60 = vld [vmem:[#allocation13 + $0x1d0] sm:$0xf]  ;;  %v9762_v50 = vor.u32 %v13257_v48, %v9761_v47 }
 0x142   : > { %v9833_v52 = vld [vmem:[#allocation13 + $0x198] sm:$0xf]  ;;  %v13262_v57 = vld [vmem:[#allocation13 + $0x15c] sm:$0xf]  ;;  %v9665_v47 = vld [vmem:[#allocation13 + $0x50] sm:$0xf] }
 0x143   : > { %v1084_v0 = vpack.c.bf16 %v1073_v63, %v1072_v62  ;;  %v9755_v62 = vld [vmem:[#allocation13 + $0x128] sm:$0xf0]  ;;  %v9713_v63 = vld [vmem:[#allocation13 + $0xc0] sm:$0xf]  ;;  %v13274_v53 = vld [vmem:[#allocation13 + $0x1b4] sm:$0xf0] }
 0x144   : > { %v9758_v2 = vor.u32 %v13252_v61, %v9755_v62  ;;  %1743 = vmatpush.bf16.msrb.mxu0 %v9722_v13  ;;  %v13281_v61 = vld [vmem:[#allocation13 + $0x1ec] sm:$0xf0]  ;;  %v15341_v56 = vor.u32 %v13274_v53, %v9833_v52  ;;  %v9737_v52 = vld [vmem:[#allocation13 + $0xd8] sm:$0xf] }
 0x145   : > { %9611 = vmatmul.msk.bf16.vlgmr.msra.gmra.mxu3 %vm950_vm0, %v1084_v0  ;;  %v13247_v0 = vld [vmem:[#allocation13 + $0xdc] sm:$0xf0]  ;;  %v9858_v62 = vor.u32 %v13281_v61, %v9857_v60  ;;  %v13233_v48 = vld [vmem:[#allocation13 + $0x6c] sm:$0xf0] }
 0x146   : > { %v9714_v3 = vor.u32 %v13247_v0, %v9713_v63  ;;  %1791 = vmatpush.bf16.msrb.mxu1 %v9758_v2  ;;  %1694 = vmatpush.bf16.msrb.mxu3 %v9718_v8  ;;  %v15310_v0 = vld [vmem:[#allocation10] ss:$0 sm:$0xff]  ;;  %v15313_v2 = vld [vmem:[#allocation11] ss:$0 sm:$0xff]  ;;  %v9862_v8 = vor.u32 %v13277_v6, %v9859_v7  ;;  %v13249_v6 = vld [vmem:[#allocation13 + $0xec] sm:$0xf0] }
 0x147   : > { %v13253_v7 = vld [vmem:[#allocation13 + $0x114] sm:$0xf] }
 0x148   : > { %1645 = vmatpush.bf16.msrb.mxu2 %v9714_v3  ;;  %v9825_v3 = vld [vmem:[#allocation13 + $0x190] sm:$0xf] }
 0x149   : > { %v9826_v5 = vor.u32 %v13273_v4, %v9825_v3 }
 0x14a   : > { %1792 = vmatpush.bf16.msrb.mxu1 %v9726_v16  ;;  %1695 = vmatpush.bf16.msrb.mxu3 %v9686_v28  ;;  %v13278_v16 = vld [vmem:[#allocation13 + $0x1dc] sm:$0xf]  ;;  %v9830_v28 = vor.u32 %v13269_v26, %v9827_v27  ;;  %v13241_v26 = vld [vmem:[#allocation13 + $0xac] sm:$0xf0] }
 0x14b   : > { %v9870_v21 = vor.u32 %v13278_v16, %v9867_v18  ;;  %v13254_v18 = vld [vmem:[#allocation13 + $0x11c] sm:$0xf] }
 0x14c   : > { %1646 = vmatpush.bf16.msrb.mxu2 %v9682_v22 }
 0x14e   : > { %1793 = vmatpush.bf16.msrb.mxu1 %v9694_v32  ;;  %1696 = vmatpush.bf16.msrb.mxu3 %v9654_v41  ;;  %v9838_v41 = vor.u32 %v13270_v38, %v9835_v17 }
 0x150   : > { %1647 = vmatpush.bf16.msrb.mxu2 %v9650_v36  ;;  %v9865_v36 = vld [vmem:[#allocation13 + $0x1d8] sm:$0xf] }
 0x151   : > { %v15330_v40 = vor.u32 %v13282_v37, %v9865_v36 }
 0x152   : > { %1794 = vmatpush.bf16.msrb.mxu1 %v9662_v45  ;;  %1697 = vmatpush.bf16.msrb.mxu3 %v9622_v55 }
 0x154   : > { %1648 = vmatpush.bf16.msrb.mxu2 %v9618_v49  ;;  %v13261_v49 = vld [vmem:[#allocation13 + $0x154] sm:$0xf] }
 0x155   : > { %9612 = vmatmul.msk.bf16.gmra.mxu3 %vm950_vm0, %v1085_v29  ;;  %v9690_v29 = vor.u32 %v13240_v25, %v9689_v24  ;;  %v13265_v24 = vld [vmem:[#allocation13 + $0x16c] sm:$0xf0] }
 0x156   : > { %1795 = vmatpush.bf16.msrb.mxu1 %v9630_v58  ;;  %1886 = vmatpush.bf16.msra.mxu3 %v9862_v8  ;;  %v9794_v25 = vor.u32 %v13265_v24, %v9793_v23  ;;  %v9803_v58 = vld [vmem:[#allocation13 + $0x178] sm:$0xf0] }
 0x157   : > { %1744 = vmatpush.bf16.msrb.mxu0 %v9690_v29 }
 0x158   : > { %1837 = vmatpush.bf16.msra.mxu2 %v9858_v62 }
 0x15a   : > { %1984 = vmatpush.bf16.msra.mxu1 %v9870_v21  ;;  %1887 = vmatpush.bf16.msra.mxu3 %v9830_v28  ;;  %v13245_v28 = vld [vmem:[#allocation13 + $0xd4] sm:$0xf] }
 0x15b   : > { %1745 = vmatpush.bf16.msrb.mxu0 %v9658_v42 }
 0x15c   : > { %1838 = vmatpush.bf16.msra.mxu2 %v9826_v5  ;;  %v9729_v5 = vld [vmem:[#allocation13 + $0xd0] sm:$0xf] }
 0x15d   : > { %v9730_v8 = vor.u32 %v13249_v6, %v9729_v5  ;;  %v9633_v6 = vld [vmem:[#allocation13 + $0x10] sm:$0xf] }
 0x15e   : > { %1985 = vmatpush.bf16.msra.mxu1 %v9838_v41 }
 0x15f   : > { %1746 = vmatpush.bf16.msrb.mxu0 %v9626_v19  ;;  %v9798_v19 = vor.u32 %v13261_v49, %v9795_v51  ;;  %v9666_v49 = vor.u32 %v13233_v48, %v9665_v47  ;;  %v9699_v51 = vld [vmem:[#allocation13 + $0xb0] sm:$0xf0] }
 0x160   : > { %1839 = vmatpush.bf16.msra.mxu2 %v9794_v25  ;;  %v9697_v25 = vld [vmem:[#allocation13 + $0x90] sm:$0xf] }
 0x161   : > { %1888 = vmatpush.bf16.msra.mxu3 %v9798_v19  ;;  %v9698_v27 = vor.u32 %v13241_v26, %v9697_v25  ;;  %v9707_v19 = vld [vmem:[#allocation13 + $0xb8] sm:$0xf0]  ;;  %v9673_v25 = vld [vmem:[#allocation13 + $0x58] sm:$0xf] }
 0x162   : > { %v13234_v26 = vld [vmem:[#allocation13 + $0x74] sm:$0xf0] }
 0x163   : > { %1935 = vmatpush.bf16.msra.mxu0 %v15330_v40 }
 0x164   : > { %1840 = vmatpush.bf16.msra.mxu2 %v9762_v50  ;;  %v13237_v50 = vld [vmem:[#allocation13 + $0x94] sm:$0xf] }
 0x165   : > { %9613 = vmatmul.msk.bf16.gmra.mxu3 %vm950_vm0, %v1086_v12  ;;  %v9702_v53 = vor.u32 %v13237_v50, %v9699_v51 }
 0x167   : > { %1936 = vmatpush.bf16.msra.mxu0 %v15341_v56 }
 0x168   : > { %1841 = vmatpush.bf16.msra.mxu2 %v9730_v8  ;;  %v13229_v8 = vld [vmem:[#allocation13 + $0x54] sm:$0xf] }
 0x16c   : > { %1842 = vmatpush.bf16.msra.mxu2 %v9698_v27 }
 0x170   : > { %1843 = vmatpush.bf16.msra.mxu2 %v9666_v49 }
 0x175   : > { %9614 = vmatmul.msk.bf16.gmra.mxu3 %vm950_vm0, %v1087_v59  ;;  %v9806_v59 = vor.u32 %v13262_v57, %v9803_v58 }
 0x177   : > { %1986 = vmatpush.bf16.msra.mxu1 %v9806_v59 }
 0x182   : > { %v1153_v63 = vpop.f32.mrf.mxu1 }
 0x183   : > { %v1197_v1 = vmul.f32 %v15310_v0, %v1153_v63 }
 0x185   : > { %v1217_v10 = vadd.f32 %v15313_v2, %v1197_v1 }
 0x187   : > { %v1233_v13 = vmax.f32 %v1217_v10, 0.0  ;;  %v9801_v10 = vld [vmem:[#allocation13 + $0x158] sm:$0xf] }
 0x18a   : > { %v1155_v9 = vpop.f32.mrf.mxu1 }
 0x18b   : > { %v1198_v11 = vmul.f32 %v15310_v0, %v1155_v9  ;;  %v9763_v9 = vld [vmem:[#allocation13 + $0x130] sm:$0xf0] }
 0x18d   : > { %v1218_v12 = vadd.f32 %v15313_v2, %v1198_v11  ;;  %v13266_v11 = vld [vmem:[#allocation13 + $0x174] sm:$0xf0] }
 0x18e   : > { %v15354_v16 = vor.u32 %v13266_v11, %v9801_v10  ;;  %v9667_v10 = vld [vmem:[#allocation13 + $0x70] sm:$0xf0]  ;;  %v9705_v11 = vld [vmem:[#allocation13 + $0x98] sm:$0xf] }
 0x18f   : > { %v1234_v14 = vmax.f32 %v1218_v12, 0.0 }
 0x190   : > { %1937 = vmatpush.bf16.msra.mxu0 %v15354_v16 }
 0x191   : > { %v15318_v15 = vpack.c.bf16 %v1234_v14, %v1233_v13  ;;  %v9766_v14 = vor.u32 %v13253_v7, %v9763_v9  ;;  %v13225_v7 = vld [vmem:[#allocation13 + $0x2c] sm:$0xf0] }
 0x192   : > { %v1158_v20 = vpop.f32.mrf.mxu1  ;;  %v9634_v9 = vor.u32 %v13225_v7, %v9633_v6 }
 0x193   : > { %1649 = vmatmul.bf16.vlgmr.msrb.gmra.mxu2 %v15318_v15  ;;  %1698 = vmatmul.bf16.vlgmr.msrb.gmra.mxu3 %v15318_v15  ;;  %v1199_v22 = vmul.f32 %v15310_v0, %v1158_v20  ;;  %v9771_v20 = vld [vmem:[#allocation13 + $0x138] sm:$0xf0] }
 0x194   : > { %1747 = vmatmul.bf16.vlgmr.msrb.gmra.mxu0 %v15318_v15  ;;  %1796 = vmatmul.bf16.vlgmr.msrb.gmra.mxu1 %v15318_v15  ;;  %v9774_v21 = vor.u32 %v13254_v18, %v9771_v20  ;;  %v13230_v18 = vld [vmem:[#allocation13 + $0x5c] sm:$0xf] }
 0x195   : > { %v1219_v30 = vadd.f32 %v15313_v2, %v1199_v22  ;;  %1889 = vmatpush.bf16.msra.mxu3 %v9766_v14  ;;  %v9675_v20 = vld [vmem:[#allocation13 + $0x78] sm:$0xf0]  ;;  %1844 = vmatpush.bf16.msra.mxu2 %v9634_v9 }
 0x196   : > { %1987 = vmatpush.bf16.msra.mxu1 %v9774_v21 }
 0x197   : > { %v1235_v33 = vmax.f32 %v1219_v30, 0.0  ;;  %v9769_v30 = vld [vmem:[#allocation13 + $0x118] sm:$0xf] }
 0x199   : > { %14123 = vmatpush.bf16.msrb.mxu2 %v15330_v40  ;;  %v13226_v40 = vld [vmem:[#allocation13 + $0x34] sm:$0xf0] }
 0x19a   : > { %v1160_v29 = vpop.f32.mrf.mxu1 }
 0x19b   : > { %v1200_v31 = vmul.f32 %v15310_v0, %v1160_v29  ;;  %v9731_v29 = vld [vmem:[#allocation13 + $0xf0] sm:$0xf0] }
 0x19d   : > { %v1220_v32 = vadd.f32 %v15313_v2, %v1200_v31  ;;  %v9734_v31 = vor.u32 %v13245_v28, %v9731_v29  ;;  %v9674_v29 = vor.u32 %v13234_v26, %v9673_v25  ;;  %14124 = vmatpush.bf16.msrb.mxu2 %v15341_v56 }
 0x19f   : > { %v1236_v34 = vmax.f32 %v1220_v32, 0.0  ;;  %v13258_v32 = vld [vmem:[#allocation13 + $0x134] sm:$0xf0]  ;;  %1890 = vmatpush.bf16.msra.mxu3 %v9734_v31  ;;  %v13221_v31 = vld [vmem:[#allocation13 + $0x14] sm:$0xf] }
 0x1a0   : > { %v15364_v37 = vor.u32 %v13258_v32, %v9769_v30  ;;  %v9635_v32 = vld [vmem:[#allocation13 + $0x30] sm:$0xf0] }
 0x1a1   : > { %v15328_v35 = vpack.c.bf16 %v1236_v34, %v1235_v33  ;;  %v13246_v33 = vld [vmem:[#allocation13 + $0xdc] sm:$0xf]  ;;  %14125 = vmatpush.bf16.msrb.mxu2 %v15354_v16 }
 0x1a2   : > { %v1163_v39 = vpop.f32.mrf.mxu1  ;;  %v9739_v34 = vld [vmem:[#allocation13 + $0xf8] sm:$0xf0]  ;;  %1938 = vmatpush.bf16.msra.mxu0 %v15364_v37 }
 0x1a3   : > { %1654 = vmatmul.bf16.gmra.mxu2 %v15328_v35  ;;  %1703 = vmatmul.bf16.gmra.mxu3 %v15328_v35  ;;  %v1201_v42 = vmul.f32 %v15310_v0, %v1163_v39  ;;  %v9742_v38 = vor.u32 %v13246_v33, %v9739_v34  ;;  %v9641_v33 = vld [vmem:[#allocation13 + $0x18] sm:$0xf] }
 0x1a4   : > { %1752 = vmatmul.bf16.gmra.mxu0 %v15328_v35  ;;  %1801 = vmatmul.bf16.gmra.mxu1 %v15328_v35 }
 0x1a5   : > { %v1221_v44 = vadd.f32 %v15313_v2, %v1201_v42  ;;  %1988 = vmatpush.bf16.msra.mxu1 %v9742_v38  ;;  %1891 = vmatpush.bf16.msra.mxu3 %v9702_v53  ;;  %v9638_v38 = vor.u32 %v13221_v31, %v9635_v32 }
 0x1a6   : > { %14126 = vmatpush.bf16.msrb.mxu2 %v15364_v37  ;;  %v15414_v37 = vld [vmem:[#allocation14] sm:$0xff] }
 0x1a7   : > { %v1237_v54 = vmax.f32 %v1221_v44, 0.0 }
 0x1aa   : > { %v1165_v43 = vpop.f32.mrf.mxu1 }
 0x1ab   : > { %v1202_v45 = vmul.f32 %v15310_v0, %v1165_v43 }
 0x1ad   : > { %v1222_v46 = vadd.f32 %v15313_v2, %v1202_v45 }
 0x1af   : > { %v1238_v55 = vmax.f32 %v1222_v46, 0.0 }
 0x1b1   : > { %v15343_v60 = vpack.c.bf16 %v1238_v55, %v1237_v54  ;;  %v13250_v54 = vld [vmem:[#allocation13 + $0xf4] sm:$0xf0]  ;;  %v13238_v55 = vld [vmem:[#allocation13 + $0x9c] sm:$0xf] }
 0x1b2   : > { %v1168_v61 = vpop.f32.mrf.mxu1  ;;  %v15377_v58 = vor.u32 %v13250_v54, %v9737_v52  ;;  %v9710_v59 = vor.u32 %v13238_v55, %v9707_v19  ;;  %v15422_v52 = vperm.slane %v15414_v37, 3 }
 0x1b3   : > { %1659 = vmatmul.bf16.gmra.mxu2 %v15343_v60  ;;  %1708 = vmatmul.bf16.gmra.mxu3 %v15343_v60  ;;  %v1203_v62 = vmul.f32 %v15310_v0, %v1168_v61 }
 0x1b4   : > { %1757 = vmatmul.bf16.gmra.mxu0 %v15343_v60  ;;  %1806 = vmatmul.bf16.gmra.mxu1 %v15343_v60 }
 0x1b5   : > { %v1223_v1 = vadd.f32 %v15313_v2, %v1203_v62  ;;  %1939 = vmatpush.bf16.msra.mxu0 %v15377_v58  ;;  %1989 = vmatpush.bf16.msra.mxu1 %v9710_v59  ;;  %v15433_v59 = vperm.slane %v15414_v37, 0 }
 0x1b6   : > { %14127 = vmatpush.bf16.msrb.mxu2 %v15377_v58 }
 0x1b7   : > { %v1239_v12 = vmax.f32 %v1223_v1, 0.0 }
 0x1ba   : > { %v1170_v63 = vpop.f32.mrf.mxu1 }
 0x1bb   : > { %v1204_v3 = vmul.f32 %v15310_v0, %v1170_v63 }
 0x1bd   : > { %v1224_v4 = vadd.f32 %v15313_v2, %v1204_v3 }
 0x1bf   : > { %v1240_v13 = vmax.f32 %v1224_v4, 0.0 }
 0x1c1   : > { %v15356_v22 = vpack.c.bf16 %v1240_v13, %v1239_v12  ;;  %v13242_v12 = vld [vmem:[#allocation13 + $0xb4] sm:$0xf0]  ;;  %v9670_v13 = vor.u32 %v13229_v8, %v9667_v10 }
 0x1c2   : > { %v9706_v14 = vor.u32 %v13242_v12, %v9705_v11 }
 0x1c3   : > { %1664 = vmatmul.bf16.gmra.mxu2 %v15356_v22  ;;  %1713 = vmatmul.bf16.gmra.mxu3 %v15356_v22 }
 0x1c4   : > { %1762 = vmatmul.bf16.gmra.mxu0 %v15356_v22  ;;  %1811 = vmatmul.bf16.gmra.mxu1 %v15356_v22 }
 0x1c5   : > { %1892 = vmatpush.bf16.msra.mxu3 %v9670_v13  ;;  %1940 = vmatpush.bf16.msra.mxu0 %v9706_v14 }
 0x1c6   : > { %14128 = vmatpush.bf16.msrb.mxu2 %v9706_v14 }
 0x1c8   : > { %v1173_v23 = vpop.f32.mrf.mxu3 }
 0x1c9   : > { %v1205_v24 = vmul.f32 %v15310_v0, %v1173_v23  ;;  %v9678_v23 = vor.u32 %v13230_v18, %v9675_v20  ;;  %1941 = vmatpush.bf16.msra.mxu0 %v9674_v29  ;;  %1893 = vmatpush.bf16.msra.mxu3 %v9638_v38 }
 0x1ca   : > { %14129 = vmatpush.bf16.msrb.mxu2 %v9674_v29 }
 0x1cb   : > { %v1225_v39 = vadd.f32 %v15313_v2, %v1205_v24  ;;  %1990 = vmatpush.bf16.msra.mxu1 %v9678_v23 }
 0x1cd   : > { %v1241_v42 = vmax.f32 %v1225_v39, 0.0  ;;  %v13222_v39 = vld [vmem:[#allocation13 + $0x1c] sm:$0xf] }
 0x1d0   : > { %v1175_v36 = vpop.f32.mrf.mxu3 }
 0x1d1   : > { %v1206_v17 = vmul.f32 %v15310_v0, %v1175_v36 }
 0x1d3   : > { %v1226_v41 = vadd.f32 %v15313_v2, %v1206_v17  ;;  %v9642_v17 = vor.u32 %v13226_v40, %v9641_v33 }
 0x1d5   : > { %v1242_v43 = vmax.f32 %v1226_v41, 0.0  ;;  %v9643_v41 = vld [vmem:[#allocation13 + $0x38] sm:$0xf0]  ;;  %1942 = vmatpush.bf16.msra.mxu0 %v9642_v17  ;;  %14130 = vmatpush.bf16.msrb.mxu2 %v9642_v17 }
 0x1d7   : > { %v15370_v44 = vpack.c.bf16 %v1242_v43, %v1241_v42  ;;  %v9646_v43 = vor.u32 %v13222_v39, %v9643_v41 }
 0x1d8   : > { %v1178_v45 = vpop.f32.mrf.mxu3 }
 0x1d9   : > { %1669 = vmatmul.bf16.gmra.mxu2 %v15370_v44  ;;  %1718 = vmatmul.bf16.gmra.mxu3 %v15370_v44  ;;  %v1207_v46 = vmul.f32 %v15310_v0, %v1178_v45 }
 0x1da   : > { %1767 = vmatmul.bf16.gmra.mxu0 %v15370_v44  ;;  %1816 = vmatmul.bf16.gmra.mxu1 %v15370_v44 }
 0x1db   : > { %v1227_v61 = vadd.f32 %v15313_v2, %v1207_v46  ;;  %1991 = vmatpush.bf16.msra.mxu1 %v9646_v43 }
 0x1dd   : > { %v1243_v1 = vmax.f32 %v1227_v61, 0.0  ;;  %v15436_v61 = vperm.slane %v15414_v37, 1 }
 0x1e0   : > { %v1180_v57 = vpop.f32.mrf.mxu3 }
 0x1e1   : > { %v1208_v62 = vmul.f32 %v15310_v0, %v1180_v57 }
 0x1e3   : > { %v1228_v63 = vadd.f32 %v15313_v2, %v1208_v62 }
 0x1e5   : > { %v1244_v3 = vmax.f32 %v1228_v63, 0.0 }
 0x1e7   : > { %v15383_v4 = vpack.c.bf16 %v1244_v3, %v1243_v1 }
 0x1e8   : > { %v1183_v5 = vpop.f32.mrf.mxu3 }
 0x1e9   : > { %1674 = vmatmul.bf16.gmra.mxu2 %v15383_v4  ;;  %1723 = vmatmul.bf16.gmra.mxu3 %v15383_v4  ;;  %v1209_v21 = vmul.f32 %v15310_v0, %v1183_v5 }
 0x1ea   : > { %1772 = vmatmul.bf16.gmra.mxu0 %v15383_v4  ;;  %1821 = vmatmul.bf16.gmra.mxu1 %v15383_v4 }
 0x1eb   : > { %v1229_v27 = vadd.f32 %v15313_v2, %v1209_v21 }
 0x1ed   : > { %v1245_v34 = vmax.f32 %v1229_v27, 0.0 }
 0x1f0   : > { %v1185_v24 = vpop.f32.mrf.mxu3 }
 0x1f1   : > { %v1210_v28 = vmul.f32 %v15310_v0, %v1185_v24 }
 0x1f3   : > { %v1230_v30 = vadd.f32 %v15313_v2, %v1210_v28 }
 0x1f5   : > { %v1246_v36 = vmax.f32 %v1230_v30, 0.0 }
 0x1f7   : > { %v15395_v42 = vpack.c.bf16 %v1246_v36, %v1245_v34 }
 0x1f8   : > { %v1188_v45 = vpop.f32.mrf.mxu3 }
 0x1f9   : > { %1679 = vmatmul.bf16.gmra.mxu2 %v15395_v42  ;;  %1728 = vmatmul.bf16.gmra.mxu3 %v15395_v42  ;;  %v1211_v56 = vmul.f32 %v15310_v0, %v1188_v45 }
 0x1fa   : > { %1777 = vmatmul.bf16.gmra.mxu0 %v15395_v42  ;;  %1826 = vmatmul.bf16.gmra.mxu1 %v15395_v42 }
 0x1fb   : > { %v1231_v16 = vadd.f32 %v15313_v2, %v1211_v56 }
 0x1fd   : > { %v1247_v49 = vmax.f32 %v1231_v16, 0.0 }
 0x200   : > { %v1190_v46 = vpop.f32.mrf.mxu3 }
 0x201   : > { %v1212_v47 = vmul.f32 %v15310_v0, %v1190_v46  ;;  %v15416_v0 = vld [vmem:[#allocation16] sm:$0xff] }
 0x202   : > { %v15425_v53 = vperm.slane %v15416_v0, 2  ;;  %v15428_v54 = vperm.slane %v15416_v0, 3  ;;  %v15445_v1 = vperm.slane %v15416_v0, 0  ;;  %v15448_v3 = vperm.slane %v15416_v0, 1 }
 0x203   : > { %v1232_v48 = vadd.f32 %v15313_v2, %v1212_v47  ;;  %v15419_v2 = vperm.slane %v15414_v37, 2 }
 0x205   : > { %v1248_v50 = vmax.f32 %v1232_v48, 0.0 }
 0x207   : > { %v15408_v51 = vpack.c.bf16 %v1248_v50, %v1247_v49 }
 0x209   : > { %1684 = vmatmul.bf16.gmra.mxu2 %v15408_v51  ;;  %1733 = vmatmul.bf16.gmra.mxu3 %v15408_v51 }
 0x20a   : > { %1782 = vmatmul.bf16.gmra.mxu0 %v15408_v51  ;;  %1831 = vmatmul.bf16.gmra.mxu1 %v15408_v51 }
 0x211   : > { %v1748_v55 = vpop.f32.mrf.mxu0  ;;  %v1797_v19 = vpop.f32.mrf.mxu1 }
 0x212   : > { %v2053_v57 = vmul.f32 %v15419_v2, %v1748_v55  ;;  %v2054_v58 = vmul.f32 %v15422_v52, %v1797_v19 }
 0x214   : > { %v15439_v62 = vadd.f32 %v15425_v53, %v2053_v57  ;;  %v15442_v63 = vadd.f32 %v15428_v54, %v2054_v58 }
 0x216   : > { %v1650_v7 = vpop.f32.mrf.mxu2  ;;  %v1699_v8 = vpop.f32.mrf.mxu3 }
 0x217   : > { %v2051_v9 = vmul.f32 %v15433_v59, %v1650_v7  ;;  %v2052_v10 = vmul.f32 %v15436_v61, %v1699_v8 }
 0x219   : > { %v15455_v11 = vadd.f32 %v15445_v1, %v2051_v9  ;;  %v15458_v12 = vadd.f32 %v15448_v3, %v2052_v10  ;;  %v1750_v13 = vpop.f32.mrf.mxu0  ;;  %v1799_v14 = vpop.f32.mrf.mxu1  ;;  %1845 = vmatmul.bf16.vlgmr.msra.gmra.mxu2 %v15318_v15  ;;  %1894 = vmatmul.bf16.vlgmr.msra.gmra.mxu3 %v15318_v15 }
 0x21a   : > { %v2061_v18 = vmul.f32 %v15419_v2, %v1750_v13  ;;  %v2062_v20 = vmul.f32 %v15422_v52, %v1799_v14  ;;  %1943 = vmatmul.bf16.vlgmr.msra.gmra.mxu0 %v15318_v15  ;;  %1992 = vmatmul.bf16.vlgmr.msra.gmra.mxu1 %v15318_v15 }
 0x21c   : > { %v15469_v24 = vadd.f32 %v15425_v53, %v2061_v18  ;;  %v15472_v25 = vadd.f32 %v15428_v54, %v2062_v20 }
 0x21e   : > { %v1652_v28 = vpop.f32.mrf.mxu2  ;;  %v1701_v29 = vpop.f32.mrf.mxu3 }
 0x21f   : > { %v2059_v30 = vmul.f32 %v15433_v59, %v1652_v28  ;;  %v2060_v15 = vmul.f32 %v15436_v61, %v1701_v29 }
 0x221   : > { %v15479_v31 = vadd.f32 %v15445_v1, %v2059_v30  ;;  %v15482_v32 = vadd.f32 %v15448_v3, %v2060_v15  ;;  %v1753_v33 = vpop.f32.mrf.mxu0  ;;  %v1802_v34 = vpop.f32.mrf.mxu1 }
 0x222   : > { %v2069_v36 = vmul.f32 %v15419_v2, %v1753_v33  ;;  %v2070_v38 = vmul.f32 %v15422_v52, %v1802_v34 }
 0x224   : > { %v15489_v17 = vadd.f32 %v15425_v53, %v2069_v36  ;;  %v15492_v41 = vadd.f32 %v15428_v54, %v2070_v38 }
 0x226   : > { %v1655_v56 = vpop.f32.mrf.mxu2  ;;  %v1704_v46 = vpop.f32.mrf.mxu3 }
 0x227   : > { %v2067_v16 = vmul.f32 %v15433_v59, %v1655_v56  ;;  %v2068_v47 = vmul.f32 %v15436_v61, %v1704_v46 }
 0x229   : > { %v15499_v48 = vadd.f32 %v15445_v1, %v2067_v16  ;;  %v15502_v49 = vadd.f32 %v15448_v3, %v2068_v47  ;;  %v1755_v50 = vpop.f32.mrf.mxu0  ;;  %v1804_v55 = vpop.f32.mrf.mxu1  ;;  %1850 = vmatmul.bf16.gmra.mxu2 %v15328_v35  ;;  %1899 = vmatmul.bf16.gmra.mxu3 %v15328_v35 }
 0x22a   : > { %v2077_v19 = vmul.f32 %v15419_v2, %v1755_v50  ;;  %v2078_v57 = vmul.f32 %v15422_v52, %v1804_v55  ;;  %1948 = vmatmul.bf16.gmra.mxu0 %v15328_v35  ;;  %1997 = vmatmul.bf16.gmra.mxu1 %v15328_v35 }
 0x22c   : > { %v15513_v8 = vadd.f32 %v15425_v53, %v2077_v19  ;;  %v15516_v9 = vadd.f32 %v15428_v54, %v2078_v57 }
 0x22e   : > { %v1657_v14 = vpop.f32.mrf.mxu2  ;;  %v1706_v18 = vpop.f32.mrf.mxu3 }
 0x22f   : > { %v2075_v20 = vmul.f32 %v15433_v59, %v1657_v14  ;;  %v2076_v35 = vmul.f32 %v15436_v61, %v1706_v18 }
 0x231   : > { %v15523_v28 = vadd.f32 %v15445_v1, %v2075_v20  ;;  %v15526_v29 = vadd.f32 %v15448_v3, %v2076_v35  ;;  %v1758_v30 = vpop.f32.mrf.mxu0  ;;  %v1807_v15 = vpop.f32.mrf.mxu1 }
 0x232   : > { %v2085_v33 = vmul.f32 %v15419_v2, %v1758_v30  ;;  %v2086_v34 = vmul.f32 %v15422_v52, %v1807_v15 }
 0x234   : > { %v15533_v56 = vadd.f32 %v15425_v53, %v2085_v33  ;;  %v15536_v46 = vadd.f32 %v15428_v54, %v2086_v34 }
 0x236   : > { %v1660_v50 = vpop.f32.mrf.mxu2  ;;  %v1709_v55 = vpop.f32.mrf.mxu3 }
 0x237   : > { %v2083_v19 = vmul.f32 %v15433_v59, %v1660_v50  ;;  %v2084_v57 = vmul.f32 %v15436_v61, %v1709_v55 }
 0x239   : > { %v15543_v14 = vadd.f32 %v15445_v1, %v2083_v19  ;;  %v15546_v18 = vadd.f32 %v15448_v3, %v2084_v57  ;;  %v1760_v20 = vpop.f32.mrf.mxu0  ;;  %v1809_v35 = vpop.f32.mrf.mxu1  ;;  %1855 = vmatmul.bf16.gmra.mxu2 %v15343_v60  ;;  %1904 = vmatmul.bf16.gmra.mxu3 %v15343_v60 }
 0x23a   : > { %v2093_v30 = vmul.f32 %v15419_v2, %v1760_v20  ;;  %v2094_v15 = vmul.f32 %v15422_v52, %v1809_v35  ;;  %1953 = vmatmul.bf16.gmra.mxu0 %v15343_v60  ;;  %2002 = vmatmul.bf16.gmra.mxu1 %v15343_v60 }
 0x23c   : > { %v15557_v50 = vadd.f32 %v15425_v53, %v2093_v30  ;;  %v15560_v55 = vadd.f32 %v15428_v54, %v2094_v15 }
 0x23e   : > { %16890 = vst [vmem:[#allocation43_spill] sm:$0xff] %v15557_v50  ;;  %v1662_v20 = vpop.f32.mrf.mxu2  ;;  %v1711_v35 = vpop.f32.mrf.mxu3 }
 0x23f   : > { %16891 = vst [vmem:[#allocation44_spill] sm:$0xff] %v15560_v55  ;;  %v2091_v47 = vmul.f32 %v15433_v59, %v1662_v20  ;;  %v2092_v60 = vmul.f32 %v15436_v61, %v1711_v35 }
 0x241   : > { %v15567_v16 = vadd.f32 %v15445_v1, %v2091_v47  ;;  %v15570_v34 = vadd.f32 %v15448_v3, %v2092_v60  ;;  %v1763_v30 = vpop.f32.mrf.mxu0  ;;  %v1812_v33 = vpop.f32.mrf.mxu1 }
 0x242   : > { %v2101_v15 = vmul.f32 %v15419_v2, %v1763_v30  ;;  %v2102_v19 = vmul.f32 %v15422_v52, %v1812_v33 }
 0x244   : > { %v15577_v20 = vadd.f32 %v15425_v53, %v2101_v15  ;;  %v15580_v35 = vadd.f32 %v15428_v54, %v2102_v19 }
 0x246   : > { %16892 = vst [vmem:[#allocation45_spill] sm:$0xff] %v15577_v20  ;;  %v1665_v10 = vpop.f32.mrf.mxu2  ;;  %v1714_v38 = vpop.f32.mrf.mxu3 }
 0x247   : > { %16893 = vst [vmem:[#allocation46_spill] sm:$0xff] %v15580_v35  ;;  %v2099_v30 = vmul.f32 %v15433_v59, %v1665_v10  ;;  %v2100_v33 = vmul.f32 %v15436_v61, %v1714_v38 }
 0x249   : > { %v15587_v57 = vadd.f32 %v15445_v1, %v2099_v30  ;;  %v15590_v13 = vadd.f32 %v15448_v3, %v2100_v33  ;;  %v1765_v15 = vpop.f32.mrf.mxu0  ;;  %v1814_v36 = vpop.f32.mrf.mxu1  ;;  %1860 = vmatmul.bf16.gmra.mxu2 %v15356_v22  ;;  %1909 = vmatmul.bf16.gmra.mxu3 %v15356_v22 }
 0x24a   : > { %v2109_v19 = vmul.f32 %v15419_v2, %v1765_v15  ;;  %v2110_v60 = vmul.f32 %v15422_v52, %v1814_v36  ;;  %1958 = vmatmul.bf16.gmra.mxu0 %v15356_v22  ;;  %2007 = vmatmul.bf16.gmra.mxu1 %v15356_v22 }
 0x24b   : > { %16894 = vst [vmem:[#allocation47_spill] sm:$0xff] %v15587_v57 }
 0x24c   : > { %16895 = vst [vmem:[#allocation48_spill] sm:$0xff] %v15590_v13  ;;  %v15601_v30 = vadd.f32 %v15425_v53, %v2109_v19  ;;  %v15604_v33 = vadd.f32 %v15428_v54, %v2110_v60 }
 0x24e   : > { %16896 = vst [vmem:[#allocation49_spill] sm:$0xff] %v15601_v30  ;;  %v1667_v45 = vpop.f32.mrf.mxu2  ;;  %v1716_v36 = vpop.f32.mrf.mxu3 }
 0x24f   : > { %16897 = vst [vmem:[#allocation50_spill] sm:$0xff] %v15604_v33  ;;  %v2107_v43 = vmul.f32 %v15433_v59, %v1667_v45  ;;  %v2108_v22 = vmul.f32 %v15436_v61, %v1716_v36 }
 0x251   : > { %v15611_v10 = vadd.f32 %v15445_v1, %v2107_v43  ;;  %v15614_v38 = vadd.f32 %v15448_v3, %v2108_v22 }
 0x253   : > { %16898 = vst [vmem:[#allocation51_spill] sm:$0xff] %v15611_v10 }
 0x254   : > { %16899 = vst [vmem:[#allocation52_spill] sm:$0xff] %v15614_v38 }
 0x257   : > { %v1768_v7 = vpop.f32.mrf.mxu0  ;;  %v1817_v47 = vpop.f32.mrf.mxu1 }
 0x258   : > { %v2117_v15 = vmul.f32 %v15419_v2, %v1768_v7  ;;  %v2118_v58 = vmul.f32 %v15422_v52, %v1817_v47 }
 0x259   : > { %1865 = vmatmul.bf16.gmra.mxu2 %v15370_v44  ;;  %1914 = vmatmul.bf16.gmra.mxu3 %v15370_v44 }
 0x25a   : > { %v15623_v43 = vadd.f32 %v15425_v53, %v2117_v15  ;;  %v15626_v45 = vadd.f32 %v15428_v54, %v2118_v58  ;;  %1963 = vmatmul.bf16.gmra.mxu0 %v15370_v44  ;;  %2012 = vmatmul.bf16.gmra.mxu1 %v15370_v44 }
 0x25c   : > { %16900 = vst [vmem:[#allocation53_spill] sm:$0xff] %v15623_v43  ;;  %v1670_v22 = vpop.f32.mrf.mxu2  ;;  %v1719_v47 = vpop.f32.mrf.mxu3 }
 0x25d   : > { %16901 = vst [vmem:[#allocation54_spill] sm:$0xff] %v15626_v45  ;;  %v2115_v60 = vmul.f32 %v15433_v59, %v1670_v22  ;;  %v2116_v19 = vmul.f32 %v15436_v61, %v1719_v47 }
 0x25f   : > { %v15635_v15 = vadd.f32 %v15445_v1, %v2115_v60  ;;  %v15638_v58 = vadd.f32 %v15448_v3, %v2116_v19  ;;  %v1770_v6 = vpop.f32.mrf.mxu0  ;;  %v1819_v27 = vpop.f32.mrf.mxu1 }
 0x260   : > { %v2125_v44 = vmul.f32 %v15419_v2, %v1770_v6  ;;  %v2126_v36 = vmul.f32 %v15422_v52, %v1819_v27 }
 0x261   : > { %16902 = vst [vmem:[#allocation55_spill] sm:$0xff] %v15635_v15 }
 0x262   : > { %16903 = vst [vmem:[#allocation56_spill] sm:$0xff] %v15638_v58  ;;  %v15645_v22 = vadd.f32 %v15425_v53, %v2125_v44  ;;  %v15648_v47 = vadd.f32 %v15428_v54, %v2126_v36 }
 0x264   : > { %16904 = vst [vmem:[#allocation57_spill] sm:$0xff] %v15645_v22  ;;  %v1672_v26 = vpop.f32.mrf.mxu2  ;;  %v1721_v23 = vpop.f32.mrf.mxu3 }
 0x265   : > { %16905 = vst [vmem:[#allocation58_spill] sm:$0xff] %v15648_v47  ;;  %v2123_v6 = vmul.f32 %v15433_v59, %v1672_v26  ;;  %v2124_v27 = vmul.f32 %v15436_v61, %v1721_v23 }
 0x267   : > { %v15655_v7 = vadd.f32 %v15445_v1, %v2123_v6  ;;  %v15658_v5 = vadd.f32 %v15448_v3, %v2124_v27  ;;  %v1773_v44 = vpop.f32.mrf.mxu0  ;;  %v1822_v39 = vpop.f32.mrf.mxu1 }
 0x268   : > { %v2133_v36 = vmul.f32 %v15419_v2, %v1773_v44  ;;  %v2134_v60 = vmul.f32 %v15422_v52, %v1822_v39 }
 0x269   : > { %16906 = vst [vmem:[#allocation59_spill] sm:$0xff] %v15655_v7  ;;  %1870 = vmatmul.bf16.gmra.mxu2 %v15383_v4  ;;  %1919 = vmatmul.bf16.gmra.mxu3 %v15383_v4 }
 0x26a   : > { %16907 = vst [vmem:[#allocation60_spill] sm:$0xff] %v15658_v5  ;;  %v15667_v23 = vadd.f32 %v15425_v53, %v2133_v36  ;;  %v15670_v26 = vadd.f32 %v15428_v54, %v2134_v60  ;;  %1968 = vmatmul.bf16.gmra.mxu0 %v15383_v4  ;;  %2017 = vmatmul.bf16.gmra.mxu1 %v15383_v4 }
 0x26c   : > { %16908 = vst [vmem:[#allocation61_spill] sm:$0xff] %v15667_v23  ;;  %v1675_v27 = vpop.f32.mrf.mxu2  ;;  %v1724_v44 = vpop.f32.mrf.mxu3 }
 0x26d   : > { %16909 = vst [vmem:[#allocation62_spill] sm:$0xff] %v15670_v26  ;;  %v2131_v21 = vmul.f32 %v15433_v59, %v1675_v27  ;;  %v2132_v19 = vmul.f32 %v15436_v61, %v1724_v44 }
 0x26f   : > { %v15679_v36 = vadd.f32 %v15445_v1, %v2131_v21  ;;  %v15682_v60 = vadd.f32 %v15448_v3, %v2132_v19  ;;  %v1775_v40 = vpop.f32.mrf.mxu0  ;;  %v1824_v47 = vpop.f32.mrf.mxu1 }
 0x270   : > { %v2141_v4 = vmul.f32 %v15419_v2, %v1775_v40  ;;  %v2142_v39 = vmul.f32 %v15422_v52, %v1824_v47 }
 0x271   : > { %16910 = vst [vmem:[#allocation63_spill] sm:$0xff] %v15679_v36 }
 0x272   : > { %16911 = vst [vmem:[#allocation64_spill] sm:$0xff] %v15682_v60  ;;  %v15689_v27 = vadd.f32 %v15425_v53, %v2141_v4  ;;  %v15692_v44 = vadd.f32 %v15428_v54, %v2142_v39 }
 0x274   : > { %16912 = vst [vmem:[#allocation65_spill] sm:$0xff] %v15689_v27  ;;  %v1677_v23 = vpop.f32.mrf.mxu2  ;;  %v1726_v22 = vpop.f32.mrf.mxu3 }
 0x275   : > { %16913 = vst [vmem:[#allocation66_spill] sm:$0xff] %v15692_v44  ;;  %v2139_v40 = vmul.f32 %v15433_v59, %v1677_v23  ;;  %v2140_v47 = vmul.f32 %v15436_v61, %v1726_v22 }
 0x277   : > { %v15699_v6 = vadd.f32 %v15445_v1, %v2139_v40  ;;  %v15702_v26 = vadd.f32 %v15448_v3, %v2140_v47  ;;  %v1778_v4 = vpop.f32.mrf.mxu0  ;;  %v1827_v60 = vpop.f32.mrf.mxu1 }
 0x278   : > { %v2149_v39 = vmul.f32 %v15419_v2, %v1778_v4  ;;  %v2150_v21 = vmul.f32 %v15422_v52, %v1827_v60 }
 0x279   : > { %16914 = vst [vmem:[#allocation67_spill] sm:$0xff] %v15699_v6  ;;  %1875 = vmatmul.bf16.gmra.mxu2 %v15395_v42  ;;  %1924 = vmatmul.bf16.gmra.mxu3 %v15395_v42 }
 0x27a   : > { %16915 = vst [vmem:[#allocation68_spill] sm:$0xff] %v15702_v26  ;;  %v15711_v22 = vadd.f32 %v15425_v53, %v2149_v39  ;;  %v15714_v23 = vadd.f32 %v15428_v54, %v2150_v21  ;;  %1973 = vmatmul.bf16.gmra.mxu0 %v15395_v42  ;;  %2022 = vmatmul.bf16.gmra.mxu1 %v15395_v42 }
 0x27c   : > { %16916 = vst [vmem:[#allocation69_spill] sm:$0xff] %v15711_v22  ;;  %v1680_v47 = vpop.f32.mrf.mxu2  ;;  %v1729_v4 = vpop.f32.mrf.mxu3 }
 0x27d   : > { %16917 = vst [vmem:[#allocation70_spill] sm:$0xff] %v15714_v23  ;;  %v2147_v44 = vmul.f32 %v15433_v59, %v1680_v47  ;;  %v2148_v19 = vmul.f32 %v15436_v61, %v1729_v4 }
 0x27f   : > { %v15723_v39 = vadd.f32 %v15445_v1, %v2147_v44  ;;  %v15726_v21 = vadd.f32 %v15448_v3, %v2148_v19  ;;  %v1780_v27 = vpop.f32.mrf.mxu0  ;;  %v1829_v26 = vpop.f32.mrf.mxu1 }
 0x280   : > { %v2157_v42 = vmul.f32 %v15419_v2, %v1780_v27  ;;  %v2158_v60 = vmul.f32 %v15422_v52, %v1829_v26 }
 0x281   : > { %16918 = vst [vmem:[#allocation71_spill] sm:$0xff] %v15723_v39 }
 0x282   : > { %16919 = vst [vmem:[#allocation72_spill] sm:$0xff] %v15726_v21  ;;  %v15733_v47 = vadd.f32 %v15425_v53, %v2157_v42  ;;  %v15736_v4 = vadd.f32 %v15428_v54, %v2158_v60 }
 0x284   : > { %16920 = vst [vmem:[#allocation73_spill] sm:$0xff] %v15733_v47  ;;  %v1682_v22 = vpop.f32.mrf.mxu2  ;;  %v1731_v6 = vpop.f32.mrf.mxu3 }
 0x285   : > { %16921 = vst [vmem:[#allocation74_spill] sm:$0xff] %v15736_v4  ;;  %v2155_v27 = vmul.f32 %v15433_v59, %v1682_v22  ;;  %v2156_v26 = vmul.f32 %v15436_v61, %v1731_v6 }
 0x287   : > { %v15743_v40 = vadd.f32 %v15445_v1, %v2155_v27  ;;  %v15746_v23 = vadd.f32 %v15448_v3, %v2156_v26  ;;  %v1783_v42 = vpop.f32.mrf.mxu0  ;;  %v1832_v21 = vpop.f32.mrf.mxu1 }
 0x288   : > { %v2165_v60 = vmul.f32 %v15419_v2, %v1783_v42  ;;  %v2166_v44 = vmul.f32 %v15422_v52, %v1832_v21 }
 0x289   : > { %16922 = vst [vmem:[#allocation75_spill] sm:$0xff] %v15743_v40  ;;  %1880 = vmatmul.bf16.gmra.mxu2 %v15408_v51  ;;  %1929 = vmatmul.bf16.gmra.mxu3 %v15408_v51 }
 0x28a   : > { %16923 = vst [vmem:[#allocation76_spill] sm:$0xff] %v15746_v23  ;;  %v15755_v6 = vadd.f32 %v15425_v53, %v2165_v60  ;;  %v15758_v22 = vadd.f32 %v15428_v54, %v2166_v44  ;;  %2027 = vmatmul.bf16.gmra.mxu1 %v15408_v51 }
 0x28c   : > { %16924 = vst [vmem:[#allocation77_spill] sm:$0xff] %v15755_v6  ;;  %v1685_v26 = vpop.f32.mrf.mxu2  ;;  %v1734_v42 = vpop.f32.mrf.mxu3 }
 0x28d   : > { %16925 = vst [vmem:[#allocation78_spill] sm:$0xff] %v15758_v22  ;;  %v2163_v4 = vmul.f32 %v15433_v59, %v1685_v26  ;;  %v2164_v19 = vmul.f32 %v15436_v61, %v1734_v42 }
 0x28f   : > { %v15766_v47 = vadd.f32 %v15445_v1, %v2163_v4  ;;  %v15769_v60 = vadd.f32 %v15448_v3, %v2164_v19  ;;  %v1785_v44 = vpop.f32.mrf.mxu0  ;;  %v1834_v23 = vpop.f32.mrf.mxu1 }
 0x290   : > { %v2173_v40 = vmul.f32 %v15419_v2, %v1785_v44  ;;  %v2174_v27 = vmul.f32 %v15422_v52, %v1834_v23  ;;  %v15784_v2 = vperm.slane %v15414_v37, 6  ;;  %v15787_v52 = vperm.slane %v15414_v37, 7 }
 0x291   : > { %16926 = vst [vmem:[#allocation79_spill] sm:$0xff] %v15766_v47 }
 0x292   : > { %16927 = vst [vmem:[#allocation80_spill] sm:$0xff] %v15769_v60  ;;  %v15776_v26 = vadd.f32 %v15425_v53, %v2173_v40  ;;  %v15779_v42 = vadd.f32 %v15428_v54, %v2174_v27  ;;  %v15792_v40 = vperm.slane %v15416_v0, 6  ;;  %v15795_v54 = vperm.slane %v15416_v0, 7 }
 0x294   : > { %16928 = vst [vmem:[#allocation81_spill] sm:$0xff] %v15776_v26  ;;  %v1687_v6 = vpop.f32.mrf.mxu2  ;;  %v1736_v39 = vpop.f32.mrf.mxu3 }
 0x295   : > { %16929 = vst [vmem:[#allocation82_spill] sm:$0xff] %v15779_v42  ;;  %v2171_v23 = vmul.f32 %v15433_v59, %v1687_v6  ;;  %v2172_v53 = vmul.f32 %v15436_v61, %v1736_v39  ;;  %v15809_v6 = vperm.slane %v15414_v37, 4 }
 0x297   : > { %v15798_v27 = vadd.f32 %v15445_v1, %v2171_v23  ;;  %v15801_v44 = vadd.f32 %v15448_v3, %v2172_v53  ;;  %v1944_v19 = vpop.f32.mrf.mxu0  ;;  %v1993_v4 = vpop.f32.mrf.mxu1  ;;  %v15812_v1 = vperm.slane %v15414_v37, 5 }
 0x298   : > { %v2057_v22 = vmul.f32 %v15784_v2, %v1944_v19  ;;  %v2058_v59 = vmul.f32 %v15787_v52, %v1993_v4  ;;  %v15821_v4 = vperm.slane %v15416_v0, 4  ;;  %v15824_v19 = vperm.slane %v15416_v0, 5 }
 0x299   : > { %16930 = vst [vmem:[#allocation83_spill] sm:$0xff] %v15798_v27  ;;  %1978 = vmatmul.bf16.vlgmr.msrb.gmra.mxu2 %v15408_v51 }
 0x29a   : > { %16931 = vst [vmem:[#allocation84_spill] sm:$0xff] %v15801_v44  ;;  %v15815_v3 = vadd.f32 %v15792_v40, %v2057_v22  ;;  %v15818_v23 = vadd.f32 %v15795_v54, %v2058_v59 }
 0x29c   : > { %v1846_v39 = vpop.f32.mrf.mxu2  ;;  %v1895_v61 = vpop.f32.mrf.mxu3 }
 0x29d   : > { %v2055_v37 = vmul.f32 %v15809_v6, %v1846_v39  ;;  %v2056_v22 = vmul.f32 %v15812_v1, %v1895_v61 }
 0x29f   : > { %v15831_v21 = vadd.f32 %v15821_v4, %v2055_v37  ;;  %v15834_v59 = vadd.f32 %v15824_v19, %v2056_v22  ;;  %v1946_v42 = vpop.f32.mrf.mxu0  ;;  %v1995_v26 = vpop.f32.mrf.mxu1 }
 0x2a0   : > { %v2065_v0 = vmul.f32 %v15784_v2, %v1946_v42  ;;  %v2066_v51 = vmul.f32 %v15787_v52, %v1995_v26 }
 0x2a2   : > { %v15841_v39 = vadd.f32 %v15792_v40, %v2065_v0  ;;  %v15844_v61 = vadd.f32 %v15795_v54, %v2066_v51 }
 0x2a4   : > { %v1848_v27 = vpop.f32.mrf.mxu2  ;;  %v1897_v60 = vpop.f32.mrf.mxu3 }
 0x2a5   : > { %v2063_v42 = vmul.f32 %v15809_v6, %v1848_v27  ;;  %v2064_v26 = vmul.f32 %v15812_v1, %v1897_v60 }
 0x2a7   : > { %v15851_v53 = vadd.f32 %v15821_v4, %v2063_v42  ;;  %v15854_v44 = vadd.f32 %v15824_v19, %v2064_v26  ;;  %v1949_v0 = vpop.f32.mrf.mxu0  ;;  %v1998_v47 = vpop.f32.mrf.mxu1 }
 0x2a8   : > { %v2073_v51 = vmul.f32 %v15784_v2, %v1949_v0  ;;  %v2074_v37 = vmul.f32 %v15787_v52, %v1998_v47 }
 0x2aa   : > { %v15861_v27 = vadd.f32 %v15792_v40, %v2073_v51  ;;  %v15864_v60 = vadd.f32 %v15795_v54, %v2074_v37 }
 0x2ac   : > { %v1851_v5 = vpop.f32.mrf.mxu2  ;;  %v1900_v7 = vpop.f32.mrf.mxu3 }
 0x2ad   : > { %v2071_v0 = vmul.f32 %v15809_v6, %v1851_v5  ;;  %v2072_v47 = vmul.f32 %v15812_v1, %v1900_v7 }
 0x2af   : > { %v15871_v22 = vadd.f32 %v15821_v4, %v2071_v0  ;;  %v15874_v36 = vadd.f32 %v15824_v19, %v2072_v47  ;;  %v1951_v51 = vpop.f32.mrf.mxu0  ;;  %v2000_v45 = vpop.f32.mrf.mxu1 }
 0x2b0   : > { %v2081_v37 = vmul.f32 %v15784_v2, %v1951_v51  ;;  %v2082_v42 = vmul.f32 %v15787_v52, %v2000_v45 }
 0x2b2   : > { %v15881_v5 = vadd.f32 %v15792_v40, %v2081_v37  ;;  %v15884_v7 = vadd.f32 %v15795_v54, %v2082_v42 }
 0x2b4   : > { %v1853_v58 = vpop.f32.mrf.mxu2  ;;  %v1902_v15 = vpop.f32.mrf.mxu3 }
 0x2b5   : > { %v2079_v51 = vmul.f32 %v15809_v6, %v1853_v58  ;;  %v2080_v45 = vmul.f32 %v15812_v1, %v1902_v15 }
 0x2b7   : > { %v15891_v26 = vadd.f32 %v15821_v4, %v2079_v51  ;;  %v15894_v43 = vadd.f32 %v15824_v19, %v2080_v45  ;;  %v1954_v37 = vpop.f32.mrf.mxu0  ;;  %v2003_v33 = vpop.f32.mrf.mxu1 }
 0x2b8   : > { %v2089_v42 = vmul.f32 %v15784_v2, %v1954_v37  ;;  %v2090_v0 = vmul.f32 %v15787_v52, %v2003_v33 }
 0x2ba   : > { %v15901_v58 = vadd.f32 %v15792_v40, %v2089_v42  ;;  %v15904_v15 = vadd.f32 %v15795_v54, %v2090_v0 }
 0x2bc   : > { %v1856_v38 = vpop.f32.mrf.mxu2  ;;  %v1905_v10 = vpop.f32.mrf.mxu3 }
 0x2bd   : > { %v2087_v37 = vmul.f32 %v15809_v6, %v1856_v38  ;;  %v2088_v33 = vmul.f32 %v15812_v1, %v1905_v10 }
 0x2bf   : > { %v15911_v47 = vadd.f32 %v15821_v4, %v2087_v37  ;;  %v15914_v30 = vadd.f32 %v15824_v19, %v2088_v33  ;;  %v1956_v42 = vpop.f32.mrf.mxu0  ;;  %v2005_v35 = vpop.f32.mrf.mxu1 }
 0x2c0   : > { %v2097_v0 = vmul.f32 %v15784_v2, %v1956_v42  ;;  %v2098_v51 = vmul.f32 %v15787_v52, %v2005_v35 }
 0x2c2   : > { %v15921_v38 = vadd.f32 %v15792_v40, %v2097_v0  ;;  %v15924_v10 = vadd.f32 %v15795_v54, %v2098_v51 }
 0x2c4   : > { %16932 = vst [vmem:[#allocation85_spill] sm:$0xff] %v15921_v38  ;;  %v1858_v13 = vpop.f32.mrf.mxu2  ;;  %v1907_v57 = vpop.f32.mrf.mxu3 }
 0x2c5   : > { %16933 = vst [vmem:[#allocation86_spill] sm:$0xff] %v15924_v10  ;;  %v2095_v42 = vmul.f32 %v15809_v6, %v1858_v13  ;;  %v2096_v35 = vmul.f32 %v15812_v1, %v1907_v57 }
 0x2c7   : > { %v15931_v45 = vadd.f32 %v15821_v4, %v2095_v42  ;;  %v15934_v20 = vadd.f32 %v15824_v19, %v2096_v35  ;;  %v1959_v0 = vpop.f32.mrf.mxu0  ;;  %v2008_v55 = vpop.f32.mrf.mxu1 }
 0x2c8   : > { %v2105_v51 = vmul.f32 %v15784_v2, %v1959_v0  ;;  %v2106_v37 = vmul.f32 %v15787_v52, %v2008_v55 }
 0x2c9   : > { %16934 = vst [vmem:[#allocation87_spill] sm:$0xff] %v15931_v45 }
 0x2ca   : > { %16935 = vst [vmem:[#allocation88_spill] sm:$0xff] %v15934_v20  ;;  %v15941_v13 = vadd.f32 %v15792_v40, %v2105_v51  ;;  %v15944_v57 = vadd.f32 %v15795_v54, %v2106_v37 }
 0x2cc   : > { %16936 = vst [vmem:[#allocation89_spill] sm:$0xff] %v15941_v13  ;;  %v1861_v38 = vpop.f32.mrf.mxu2  ;;  %v1910_v50 = vpop.f32.mrf.mxu3 }
 0x2cd   : > { %16937 = vst [vmem:[#allocation90_spill] sm:$0xff] %v15944_v57  ;;  %v2103_v0 = vmul.f32 %v15809_v6, %v1861_v38  ;;  %v2104_v55 = vmul.f32 %v15812_v1, %v1910_v50 }
 0x2cf   : > { %v15951_v33 = vadd.f32 %v15821_v4, %v2103_v0  ;;  %v15954_v10 = vadd.f32 %v15824_v19, %v2104_v55  ;;  %v1961_v51 = vpop.f32.mrf.mxu0  ;;  %v2010_v20 = vpop.f32.mrf.mxu1 }
 0x2d0   : > { %v2113_v37 = vmul.f32 %v15784_v2, %v1961_v51  ;;  %v2114_v42 = vmul.f32 %v15787_v52, %v2010_v20 }
 0x2d1   : > { %16938 = vst [vmem:[#allocation91_spill] sm:$0xff] %v15951_v33 }
 0x2d2   : > { %16939 = vst [vmem:[#allocation92_spill] sm:$0xff] %v15954_v10  ;;  %v15961_v38 = vadd.f32 %v15792_v40, %v2113_v37  ;;  %v15964_v50 = vadd.f32 %v15795_v54, %v2114_v42 }
 0x2d4   : > { %16940 = vst [vmem:[#allocation93_spill] sm:$0xff] %v15961_v38  ;;  %v1863_v13 = vpop.f32.mrf.mxu2  ;;  %v1912_v45 = vpop.f32.mrf.mxu3 }
 0x2d5   : > { %16941 = vst [vmem:[#allocation94_spill] sm:$0xff] %v15964_v50  ;;  %v2111_v51 = vmul.f32 %v15809_v6, %v1863_v13  ;;  %v2112_v20 = vmul.f32 %v15812_v1, %v1912_v45 }
 0x2d7   : > { %v15971_v35 = vadd.f32 %v15821_v4, %v2111_v51  ;;  %v15974_v57 = vadd.f32 %v15824_v19, %v2112_v20  ;;  %v1964_v37 = vpop.f32.mrf.mxu0  ;;  %v2013_v10 = vpop.f32.mrf.mxu1 }
 0x2d8   : > { %v2121_v42 = vmul.f32 %v15784_v2, %v1964_v37  ;;  %v2122_v0 = vmul.f32 %v15787_v52, %v2013_v10 }
 0x2d9   : > { %16942 = vst [vmem:[#allocation95_spill] sm:$0xff] %v15971_v35 }
 0x2da   : > { %16943 = vst [vmem:[#allocation96_spill] sm:$0xff] %v15974_v57  ;;  %v15981_v13 = vadd.f32 %v15792_v40, %v2121_v42  ;;  %v15984_v45 = vadd.f32 %v15795_v54, %v2122_v0 }
 0x2dc   : > { %16944 = vst [vmem:[#allocation97_spill] sm:$0xff] %v15981_v13  ;;  %v1866_v38 = vpop.f32.mrf.mxu2  ;;  %v1915_v33 = vpop.f32.mrf.mxu3 }
 0x2dd   : > { %16945 = vst [vmem:[#allocation98_spill] sm:$0xff] %v15984_v45  ;;  %v2119_v37 = vmul.f32 %v15809_v6, %v1866_v38  ;;  %v2120_v10 = vmul.f32 %v15812_v1, %v1915_v33 }
 0x2df   : > { %v15991_v55 = vadd.f32 %v15821_v4, %v2119_v37  ;;  %v15994_v50 = vadd.f32 %v15824_v19, %v2120_v10  ;;  %v1966_v42 = vpop.f32.mrf.mxu0  ;;  %v2015_v57 = vpop.f32.mrf.mxu1 }
 0x2e0   : > { %v2129_v0 = vmul.f32 %v15784_v2, %v1966_v42  ;;  %v2130_v51 = vmul.f32 %v15787_v52, %v2015_v57 }
 0x2e1   : > { %16946 = vst [vmem:[#allocation99_spill] sm:$0xff] %v15991_v55 }
 0x2e2   : > { %16947 = vst [vmem:[#allocation100_spill] sm:$0xff] %v15994_v50  ;;  %v16001_v38 = vadd.f32 %v15792_v40, %v2129_v0  ;;  %v16004_v33 = vadd.f32 %v15795_v54, %v2130_v51 }
 0x2e4   : > { %16948 = vst [vmem:[#allocation101_spill] sm:$0xff] %v16001_v38  ;;  %v1868_v13 = vpop.f32.mrf.mxu2  ;;  %v1917_v35 = vpop.f32.mrf.mxu3 }
 0x2e5   : > { %16949 = vst [vmem:[#allocation102_spill] sm:$0xff] %v16004_v33  ;;  %v2127_v42 = vmul.f32 %v15809_v6, %v1868_v13  ;;  %v2128_v57 = vmul.f32 %v15812_v1, %v1917_v35 }
 0x2e7   : > { %v16011_v20 = vadd.f32 %v15821_v4, %v2127_v42  ;;  %v16014_v45 = vadd.f32 %v15824_v19, %v2128_v57  ;;  %v1969_v0 = vpop.f32.mrf.mxu0  ;;  %v2018_v50 = vpop.f32.mrf.mxu1 }
 0x2e8   : > { %v2137_v51 = vmul.f32 %v15784_v2, %v1969_v0  ;;  %v2138_v37 = vmul.f32 %v15787_v52, %v2018_v50 }
 0x2e9   : > { %16950 = vst [vmem:[#allocation103_spill] sm:$0xff] %v16011_v20 }
 0x2ea   : > { %16951 = vst [vmem:[#allocation104_spill] sm:$0xff] %v16014_v45  ;;  %v16021_v13 = vadd.f32 %v15792_v40, %v2137_v51  ;;  %v16024_v35 = vadd.f32 %v15795_v54, %v2138_v37 }
 0x2ec   : > { %16952 = vst [vmem:[#allocation105_spill] sm:$0xff] %v16021_v13  ;;  %v1871_v38 = vpop.f32.mrf.mxu2  ;;  %v1920_v55 = vpop.f32.mrf.mxu3 }
 0x2ed   : > { %16953 = vst [vmem:[#allocation106_spill] sm:$0xff] %v16024_v35  ;;  %v2135_v0 = vmul.f32 %v15809_v6, %v1871_v38  ;;  %v2136_v50 = vmul.f32 %v15812_v1, %v1920_v55 }
 0x2ef   : > { %v16031_v10 = vadd.f32 %v15821_v4, %v2135_v0  ;;  %v16034_v33 = vadd.f32 %v15824_v19, %v2136_v50  ;;  %v1971_v51 = vpop.f32.mrf.mxu0  ;;  %v2020_v45 = vpop.f32.mrf.mxu1 }
 0x2f0   : > { %v2145_v37 = vmul.f32 %v15784_v2, %v1971_v51  ;;  %v2146_v42 = vmul.f32 %v15787_v52, %v2020_v45 }
 0x2f1   : > { %16954 = vst [vmem:[#allocation107_spill] sm:$0xff] %v16031_v10 }
 0x2f2   : > { %16955 = vst [vmem:[#allocation108_spill] sm:$0xff] %v16034_v33  ;;  %v16041_v38 = vadd.f32 %v15792_v40, %v2145_v37  ;;  %v16044_v55 = vadd.f32 %v15795_v54, %v2146_v42 }
 0x2f4   : > { %16956 = vst [vmem:[#allocation109_spill] sm:$0xff] %v16041_v38  ;;  %v1873_v13 = vpop.f32.mrf.mxu2  ;;  %v1922_v20 = vpop.f32.mrf.mxu3 }
 0x2f5   : > { %16957 = vst [vmem:[#allocation110_spill] sm:$0xff] %v16044_v55  ;;  %v2143_v51 = vmul.f32 %v15809_v6, %v1873_v13  ;;  %v2144_v45 = vmul.f32 %v15812_v1, %v1922_v20 }
 0x2f7   : > { %v16051_v57 = vadd.f32 %v15821_v4, %v2143_v51  ;;  %v16054_v35 = vadd.f32 %v15824_v19, %v2144_v45  ;;  %v1974_v37 = vpop.f32.mrf.mxu0  ;;  %v2023_v33 = vpop.f32.mrf.mxu1 }
 0x2f8   : > { %v2153_v42 = vmul.f32 %v15784_v2, %v1974_v37  ;;  %v2154_v0 = vmul.f32 %v15787_v52, %v2023_v33 }
 0x2f9   : > { %16958 = vst [vmem:[#allocation111_spill] sm:$0xff] %v16051_v57 }
 0x2fa   : > { %16959 = vst [vmem:[#allocation112_spill] sm:$0xff] %v16054_v35  ;;  %v16061_v13 = vadd.f32 %v15792_v40, %v2153_v42  ;;  %v16064_v20 = vadd.f32 %v15795_v54, %v2154_v0 }
 0x2fc   : > { %16960 = vst [vmem:[#allocation113_spill] sm:$0xff] %v16061_v13  ;;  %v1876_v38 = vpop.f32.mrf.mxu2  ;;  %v1925_v10 = vpop.f32.mrf.mxu3 }
 0x2fd   : > { %16961 = vst [vmem:[#allocation114_spill] sm:$0xff] %v16064_v20  ;;  %v2151_v37 = vmul.f32 %v15809_v6, %v1876_v38  ;;  %v2152_v33 = vmul.f32 %v15812_v1, %v1925_v10 }
 0x2ff   : > { %v16071_v50 = vadd.f32 %v15821_v4, %v2151_v37  ;;  %v16074_v55 = vadd.f32 %v15824_v19, %v2152_v33  ;;  %v1976_v42 = vpop.f32.mrf.mxu0  ;;  %v2025_v35 = vpop.f32.mrf.mxu1 }
 0x300   : > { %v2161_v0 = vmul.f32 %v15784_v2, %v1976_v42  ;;  %v2162_v51 = vmul.f32 %v15787_v52, %v2025_v35 }
 0x301   : > { %16962 = vst [vmem:[#allocation115_spill] sm:$0xff] %v16074_v55 }
 0x302   : > { %v16081_v38 = vadd.f32 %v15792_v40, %v2161_v0  ;;  %v16084_v10 = vadd.f32 %v15795_v54, %v2162_v51 }
 0x304   : > { %16963 = vst [vmem:[#allocation116_spill] sm:$0xff] %v16081_v38  ;;  %v1878_v13 = vpop.f32.mrf.mxu2  ;;  %v1927_v57 = vpop.f32.mrf.mxu3 }
 0x305   : > { %16964 = vst [vmem:[#allocation117_spill] sm:$0xff] %v16084_v10  ;;  %v2159_v42 = vmul.f32 %v15809_v6, %v1878_v13  ;;  %v2160_v35 = vmul.f32 %v15812_v1, %v1927_v57 }
 0x307   : > { %v16091_v45 = vadd.f32 %v15821_v4, %v2159_v42  ;;  %v16094_v20 = vadd.f32 %v15824_v19, %v2160_v35  ;;  %v2028_v0 = vpop.f32.mrf.mxu1 }
 0x308   : > { %v2170_v51 = vmul.f32 %v15787_v52, %v2028_v0 }
 0x309   : > { %16965 = vst [vmem:[#allocation118_spill] sm:$0xff] %v16091_v45 }
 0x30a   : > { %16966 = vst [vmem:[#allocation119_spill] sm:$0xff] %v16094_v20  ;;  %v16100_v33 = vadd.f32 %v15795_v54, %v2170_v51 }
 0x30c   : > { %16967 = vst [vmem:[#allocation120_spill] sm:$0xff] %v16100_v33  ;;  %v1881_v10 = vpop.f32.mrf.mxu2  ;;  %v1930_v57 = vpop.f32.mrf.mxu3 }
 0x30d   : > { %v2167_v42 = vmul.f32 %v15809_v6, %v1881_v10  ;;  %v2168_v38 = vmul.f32 %v15812_v1, %v1930_v57 }
 0x30f   : > { %v16106_v35 = vadd.f32 %v15821_v4, %v2167_v42  ;;  %v16109_v0 = vadd.f32 %v15824_v19, %v2168_v38  ;;  %v2030_v55 = vpop.f32.mrf.mxu1 }
 0x310   : > { %v2178_v37 = vmul.f32 %v15787_v52, %v2030_v55 }
 0x311   : > { %v2441_v51 = vmax.f32 %v16106_v35, 0.0 }
 0x312   : > { %v16115_v13 = vadd.f32 %v15795_v54, %v2178_v37 }
 0x314   : > { %v1883_v33 = vpop.f32.mrf.mxu2  ;;  %v1932_v57 = vpop.f32.mrf.mxu3 }
 0x315   : > { %v2175_v42 = vmul.f32 %v15809_v6, %v1883_v33  ;;  %v2176_v45 = vmul.f32 %v15812_v1, %v1932_v57 }
 0x317   : > { %v16121_v38 = vadd.f32 %v15821_v4, %v2175_v42  ;;  %v16124_v52 = vadd.f32 %v15824_v19, %v2176_v45 }
 0x31c   : > { %v1979_v54 = vpop.f32.mrf.mxu2 }
 0x31d   : > { %v2169_v37 = vmul.f32 %v15784_v2, %v1979_v54 }
 0x31f   : > { %v16130_v10 = vadd.f32 %v15792_v40, %v2169_v37 }
 0x321   : > { %v2443_v6 = vmax.f32 %v16130_v10, 0.0 }
 0x323   : > { %2456 = sbr.rel (%p9871_p10) target bundleno = 810 (0x32a), region = 164 }
 0x324   : > { %v1981_v33 = vpop.f32.mrf.mxu2 }
 0x325   : > { %v2177_v1 = vmul.f32 %v15784_v2, %v1981_v33 }
 0x327   : > { %v16135_v4 = vadd.f32 %v15792_v40, %v2177_v1 }
 0x328   : > { %v14968_v45 = vmov -inf  }
 0x329   : > { %2457 = vst [vmem:[#allocation2] sm:$0xff] %v14968_v45 }
 0x32a PF: > { %v16968_v57 = vmax.f32 %v15479_v31, 0.0  ;;  %v16969_v42 = vmax.f32 %v15455_v11, 0.0  ;;  %v16970_v37 = vmax.f32 %v15482_v32, 0.0  ;;  %v16971_v2 = vmax.f32 %v15458_v12, 0.0  ;;  %v17166_v35 = vld [vmem:[#allocation82_spill] sm:$0xff]  ;;  %s17172_s0 = sld [smem:[#allocation38_spill]] }
 0x32b   : > { %v16972_v40 = vmax.f32 %v15469_v24, 0.0  ;;  %v16973_v1 = vmax.f32 %v15439_v62, 0.0  ;;  %v16974_v20 = vmax.f32 %v15472_v25, 0.0  ;;  %v16975_v45 = vmax.f32 %v15442_v63, 0.0 }
 0x32c   : > { %v2459_v54 = vmax.f32 %v16969_v42, %v16968_v57  ;;  %v2480_v33 = vmax.f32 %v16971_v2, %v16970_v37  ;;  %v16976_v31 = vmax.f32 %v15851_v53, 0.0  ;;  %v16977_v11 = vmax.f32 %v15831_v21, 0.0 }
 0x32d   : > { %v2501_v19 = vmax.f32 %v16973_v1, %v16972_v40  ;;  %v2522_v55 = vmax.f32 %v16975_v45, %v16974_v20  ;;  %v16978_v32 = vmax.f32 %v15854_v44, 0.0  ;;  %v16979_v12 = vmax.f32 %v15834_v59, 0.0 }
 0x32e   : > { %v2543_v57 = vmax.f32 %v16977_v11, %v16976_v31  ;;  %v16980_v24 = vmax.f32 %v15841_v39, 0.0  ;;  %v16981_v62 = vmax.f32 %v15815_v3, 0.0  ;;  %v16982_v25 = vmax.f32 %v15844_v61, 0.0 }
 0x32f   : > { %v2564_v42 = vmax.f32 %v16979_v12, %v16978_v32  ;;  %v16983_v63 = vmax.f32 %v15818_v23, 0.0  ;;  %v16984_v53 = vmax.f32 %v15499_v48, 0.0  ;;  %v16985_v21 = vmax.f32 %v15502_v49, 0.0 }
 0x330   : > { %v2585_v37 = vmax.f32 %v16981_v62, %v16980_v24  ;;  %v16986_v44 = vmax.f32 %v15489_v17, 0.0  ;;  %v16987_v1 = vmax.f32 %v15492_v41, 0.0  ;;  %v16988_v3 = vmax.f32 %v15871_v22, 0.0  ;;  %p9872_p11 = scmp.ne.s32.totalorder %s17172_s0, 1 }
 0x331   : > { %v2606_v20 = vmax.f32 %v16983_v63, %v16982_v25  ;;  %v2460_v2 = vmax.f32 %v2459_v54, %v16984_v53  ;;  %v2481_v40 = vmax.f32 %v2480_v33, %v16985_v21  ;;  %v16989_v61 = vmax.f32 %v15874_v36, 0.0 }
 0x332   : > { %v2502_v59 = vmax.f32 %v2501_v19, %v16986_v44  ;;  %v2523_v39 = vmax.f32 %v2522_v55, %v16987_v1  ;;  %v2544_v45 = vmax.f32 %v2543_v57, %v16988_v3  ;;  %v16990_v23 = vmax.f32 %v15861_v27, 0.0 }
 0x333   : > { %v2565_v31 = vmax.f32 %v2564_v42, %v16989_v61  ;;  %v16991_v48 = vmax.f32 %v15864_v60, 0.0  ;;  %v16992_v49 = vmax.f32 %v15523_v28, 0.0  ;;  %v16993_v17 = vmax.f32 %v15526_v29, 0.0 }
 0x334   : > { %v2586_v11 = vmax.f32 %v2585_v37, %v16990_v23  ;;  %v16994_v41 = vmax.f32 %v15513_v8, 0.0  ;;  %v16995_v22 = vmax.f32 %v15516_v9, 0.0  ;;  %v16996_v36 = vmax.f32 %v15891_v26, 0.0 }
 0x335   : > { %v2607_v54 = vmax.f32 %v2606_v20, %v16991_v48  ;;  %v2461_v33 = vmax.f32 %v2460_v2, %v16992_v49  ;;  %v2482_v19 = vmax.f32 %v2481_v40, %v16993_v17  ;;  %v16997_v27 = vmax.f32 %v15894_v43, 0.0 }
 0x336   : > { %v2503_v55 = vmax.f32 %v2502_v59, %v16994_v41  ;;  %v2524_v57 = vmax.f32 %v2523_v39, %v16995_v22  ;;  %v2545_v32 = vmax.f32 %v2544_v45, %v16996_v36  ;;  %v16998_v60 = vmax.f32 %v15881_v5, 0.0  ;;  %v17026_v22 = vld [vmem:[#allocation45_spill] sm:$0xff] }
 0x337   : > { %v2566_v12 = vmax.f32 %v2565_v31, %v16997_v27  ;;  %v16999_v28 = vmax.f32 %v15884_v7, 0.0  ;;  %v17000_v29 = vmax.f32 %v15543_v14, 0.0  ;;  %v17001_v8 = vmax.f32 %v15546_v18, 0.0 }
 0x338   : > { %v2587_v42 = vmax.f32 %v2586_v11, %v16998_v60  ;;  %v17002_v9 = vmax.f32 %v15533_v56, 0.0  ;;  %v17003_v26 = vmax.f32 %v15536_v46, 0.0  ;;  %v17004_v43 = vmax.f32 %v15911_v47, 0.0  ;;  %v17010_v46 = vld [vmem:[#allocation43_spill] sm:$0xff]  ;;  %v17012_v47 = vld [vmem:[#allocation44_spill] sm:$0xff] }
 0x339   : > { %v2608_v24 = vmax.f32 %v2607_v54, %v16999_v28  ;;  %v2462_v62 = vmax.f32 %v2461_v33, %v17000_v29  ;;  %v2483_v37 = vmax.f32 %v2482_v19, %v17001_v8  ;;  %v17005_v5 = vmax.f32 %v15914_v30, 0.0  ;;  %v17014_v30 = vld [vmem:[#allocation87_spill] sm:$0xff]  ;;  %v17024_v19 = vld [vmem:[#allocation48_spill] sm:$0xff]  ;;  %v17034_v8 = vld [vmem:[#allocation89_spill] sm:$0xff] }
 0x33a   : > { %v2504_v25 = vmax.f32 %v2503_v55, %v17002_v9  ;;  %v2525_v63 = vmax.f32 %v2524_v57, %v17003_v26  ;;  %v2546_v20 = vmax.f32 %v2545_v32, %v17004_v43  ;;  %v17006_v7 = vmax.f32 %v15901_v58, 0.0  ;;  %v17016_v58 = vld [vmem:[#allocation88_spill] sm:$0xff]  ;;  %v17028_v32 = vld [vmem:[#allocation46_spill] sm:$0xff]  ;;  %v17030_v60 = vld [vmem:[#allocation91_spill] sm:$0xff] }
 0x33b   : > { %v2567_v53 = vmax.f32 %v2566_v12, %v17005_v5  ;;  %v17007_v14 = vmax.f32 %v15904_v15, 0.0  ;;  %v17008_v18 = vmax.f32 %v15567_v16, 0.0  ;;  %v17009_v56 = vmax.f32 %v15570_v34, 0.0  ;;  %v17018_v15 = vld [vmem:[#allocation85_spill] sm:$0xff]  ;;  %v17020_v16 = vld [vmem:[#allocation86_spill] sm:$0xff]  ;;  %v17022_v34 = vld [vmem:[#allocation47_spill] sm:$0xff] }
 0x33c   : > { %v2588_v2 = vmax.f32 %v2587_v42, %v17006_v7  ;;  %v17011_v59 = vmax.f32 %v17010_v46, 0.0  ;;  %v17013_v39 = vmax.f32 %v17012_v47, 0.0  ;;  %v17015_v45 = vmax.f32 %v17014_v30, 0.0  ;;  %v17038_v43 = vld [vmem:[#allocation51_spill] sm:$0xff]  ;;  %v17048_v47 = vld [vmem:[#allocation96_spill] sm:$0xff]  ;;  %v17050_v30 = vld [vmem:[#allocation93_spill] sm:$0xff] }
 0x33d   : > { %v2609_v21 = vmax.f32 %v2608_v24, %v17007_v14  ;;  %v2463_v40 = vmax.f32 %v2462_v62, %v17008_v18  ;;  %v2484_v44 = vmax.f32 %v2483_v37, %v17009_v56  ;;  %v17017_v31 = vmax.f32 %v17016_v58, 0.0  ;;  %v17032_v24 = vld [vmem:[#allocation92_spill] sm:$0xff]  ;;  %v17042_v14 = vld [vmem:[#allocation49_spill] sm:$0xff]  ;;  %v17046_v46 = vld [vmem:[#allocation95_spill] sm:$0xff] }
 0x33e   : > { %v2505_v1 = vmax.f32 %v2504_v25, %v17011_v59  ;;  %v2526_v3 = vmax.f32 %v2525_v63, %v17013_v39  ;;  %v2547_v61 = vmax.f32 %v2546_v20, %v17015_v45  ;;  %v17019_v11 = vmax.f32 %v17018_v15, 0.0  ;;  %v17036_v25 = vld [vmem:[#allocation90_spill] sm:$0xff]  ;;  %v17054_v15 = vld [vmem:[#allocation55_spill] sm:$0xff] }
 0x33f   : > { %v2568_v23 = vmax.f32 %v2567_v53, %v17017_v31  ;;  %v17021_v54 = vmax.f32 %v17020_v16, 0.0  ;;  %v17023_v33 = vmax.f32 %v17022_v34, 0.0  ;;  %v17025_v41 = vmax.f32 %v17024_v19, 0.0  ;;  %v17040_v53 = vld [vmem:[#allocation52_spill] sm:$0xff]  ;;  %v17052_v58 = vld [vmem:[#allocation94_spill] sm:$0xff]  ;;  %v17058_v34 = vld [vmem:[#allocation53_spill] sm:$0xff] }
 0x340   : > { %v2589_v48 = vmax.f32 %v2588_v2, %v17019_v11  ;;  %v17027_v57 = vmax.f32 %v17026_v22, 0.0  ;;  %v17029_v27 = vmax.f32 %v17028_v32, 0.0  ;;  %v17031_v42 = vmax.f32 %v17030_v60, 0.0  ;;  %v17056_v16 = vld [vmem:[#allocation56_spill] sm:$0xff]  ;;  %v17060_v19 = vld [vmem:[#allocation54_spill] sm:$0xff]  ;;  %v17062_v22 = vld [vmem:[#allocation99_spill] sm:$0xff] }
 0x341   : > { %v2610_v49 = vmax.f32 %v2609_v21, %v17021_v54  ;;  %v2464_v17 = vmax.f32 %v2463_v40, %v17023_v33  ;;  %v2485_v55 = vmax.f32 %v2484_v44, %v17025_v41  ;;  %v17033_v29 = vmax.f32 %v17032_v24, 0.0  ;;  %v17044_v40 = vld [vmem:[#allocation50_spill] sm:$0xff]  ;;  %v17064_v32 = vld [vmem:[#allocation100_spill] sm:$0xff]  ;;  %v17066_v60 = vld [vmem:[#allocation97_spill] sm:$0xff] }
 0x342   : > { %v2506_v36 = vmax.f32 %v2505_v1, %v17027_v57  ;;  %v2527_v12 = vmax.f32 %v2526_v3, %v17029_v27  ;;  %v2548_v28 = vmax.f32 %v2547_v61, %v17031_v42  ;;  %v17035_v37 = vmax.f32 %v17034_v8, 0.0  ;;  %v17068_v24 = vld [vmem:[#allocation98_spill] sm:$0xff]  ;;  %v17070_v8 = vld [vmem:[#allocation59_spill] sm:$0xff] }
 0x343   : > { %v2569_v62 = vmax.f32 %v2568_v23, %v17033_v29  ;;  %v17037_v26 = vmax.f32 %v17036_v25, 0.0  ;;  %v17039_v20 = vmax.f32 %v17038_v43, 0.0  ;;  %v17041_v7 = vmax.f32 %v17040_v53, 0.0  ;;  %v17072_v25 = vld [vmem:[#allocation60_spill] sm:$0xff]  ;;  %v17074_v43 = vld [vmem:[#allocation57_spill] sm:$0xff]  ;;  %v17076_v53 = vld [vmem:[#allocation58_spill] sm:$0xff] }
 0x344   : > { %v2590_v9 = vmax.f32 %v2589_v48, %v17035_v37  ;;  %v17043_v21 = vmax.f32 %v17042_v14, 0.0  ;;  %v17045_v56 = vmax.f32 %v17044_v40, 0.0  ;;  %v17047_v59 = vmax.f32 %v17046_v46, 0.0  ;;  %v17078_v14 = vld [vmem:[#allocation103_spill] sm:$0xff]  ;;  %v17080_v40 = vld [vmem:[#allocation104_spill] sm:$0xff]  ;;  %v17082_v46 = vld [vmem:[#allocation101_spill] sm:$0xff] }
 0x345   : > { %v2611_v63 = vmax.f32 %v2610_v49, %v17037_v26  ;;  %v2465_v5 = vmax.f32 %v2464_v17, %v17039_v20  ;;  %v2486_v2 = vmax.f32 %v2485_v55, %v17041_v7  ;;  %v17049_v39 = vmax.f32 %v17048_v47, 0.0  ;;  %v17084_v47 = vld [vmem:[#allocation102_spill] sm:$0xff] }
 0x346   : > { %v2507_v18 = vmax.f32 %v2506_v36, %v17043_v21  ;;  %v2528_v44 = vmax.f32 %v2527_v12, %v17045_v56  ;;  %v2549_v1 = vmax.f32 %v2548_v28, %v17047_v59  ;;  %v17051_v45 = vmax.f32 %v17050_v30, 0.0  ;;  %v17086_v30 = vld [vmem:[#allocation63_spill] sm:$0xff] }
 0x347   : > { %v2570_v3 = vmax.f32 %v2569_v62, %v17049_v39  ;;  %v17053_v31 = vmax.f32 %v17052_v58, 0.0  ;;  %v17055_v11 = vmax.f32 %v17054_v15, 0.0  ;;  %v17057_v54 = vmax.f32 %v17056_v16, 0.0  ;;  %v17088_v58 = vld [vmem:[#allocation64_spill] sm:$0xff]  ;;  %v17090_v15 = vld [vmem:[#allocation61_spill] sm:$0xff]  ;;  %v17092_v16 = vld [vmem:[#allocation62_spill] sm:$0xff] }
 0x348   : > { %v2591_v61 = vmax.f32 %v2590_v9, %v17051_v45  ;;  %v17059_v33 = vmax.f32 %v17058_v34, 0.0  ;;  %v17061_v41 = vmax.f32 %v17060_v19, 0.0  ;;  %v17063_v57 = vmax.f32 %v17062_v22, 0.0  ;;  %v17094_v34 = vld [vmem:[#allocation107_spill] sm:$0xff]  ;;  %v17096_v19 = vld [vmem:[#allocation108_spill] sm:$0xff]  ;;  %v17098_v22 = vld [vmem:[#allocation105_spill] sm:$0xff] }
 0x349   : > { %v2612_v23 = vmax.f32 %v2611_v63, %v17053_v31  ;;  %v2466_v48 = vmax.f32 %v2465_v5, %v17055_v11  ;;  %v2487_v49 = vmax.f32 %v2486_v2, %v17057_v54  ;;  %v17065_v27 = vmax.f32 %v17064_v32, 0.0  ;;  %v17100_v32 = vld [vmem:[#allocation106_spill] sm:$0xff] }
 0x34a   : > { %v2508_v17 = vmax.f32 %v2507_v18, %v17059_v33  ;;  %v2529_v55 = vmax.f32 %v2528_v44, %v17061_v41  ;;  %v2550_v36 = vmax.f32 %v2549_v1, %v17063_v57  ;;  %v17067_v42 = vmax.f32 %v17066_v60, 0.0  ;;  %v17102_v60 = vld [vmem:[#allocation67_spill] sm:$0xff] }
 0x34b   : > { %v2571_v12 = vmax.f32 %v2570_v3, %v17065_v27  ;;  %v17069_v29 = vmax.f32 %v17068_v24, 0.0  ;;  %v17071_v37 = vmax.f32 %v17070_v8, 0.0  ;;  %v17073_v26 = vmax.f32 %v17072_v25, 0.0  ;;  %v17104_v24 = vld [vmem:[#allocation68_spill] sm:$0xff]  ;;  %v17106_v8 = vld [vmem:[#allocation65_spill] sm:$0xff]  ;;  %v17108_v25 = vld [vmem:[#allocation66_spill] sm:$0xff] }
 0x34c   : > { %v2592_v28 = vmax.f32 %v2591_v61, %v17067_v42  ;;  %v17075_v20 = vmax.f32 %v17074_v43, 0.0  ;;  %v17077_v7 = vmax.f32 %v17076_v53, 0.0  ;;  %v17079_v21 = vmax.f32 %v17078_v14, 0.0  ;;  %v17110_v43 = vld [vmem:[#allocation111_spill] sm:$0xff]  ;;  %v17112_v53 = vld [vmem:[#allocation112_spill] sm:$0xff]  ;;  %v17114_v14 = vld [vmem:[#allocation109_spill] sm:$0xff] }
 0x34d   : > { %v2613_v62 = vmax.f32 %v2612_v23, %v17069_v29  ;;  %v2467_v9 = vmax.f32 %v2466_v48, %v17071_v37  ;;  %v2488_v63 = vmax.f32 %v2487_v49, %v17073_v26  ;;  %v17081_v56 = vmax.f32 %v17080_v40, 0.0  ;;  %v17116_v40 = vld [vmem:[#allocation110_spill] sm:$0xff] }
 0x34e   : > { %v2509_v5 = vmax.f32 %v2508_v17, %v17075_v20  ;;  %v2530_v2 = vmax.f32 %v2529_v55, %v17077_v7  ;;  %v2551_v18 = vmax.f32 %v2550_v36, %v17079_v21  ;;  %v17083_v59 = vmax.f32 %v17082_v46, 0.0  ;;  %v17118_v46 = vld [vmem:[#allocation71_spill] sm:$0xff] }
 0x34f   : > { %v2572_v44 = vmax.f32 %v2571_v12, %v17081_v56  ;;  %v17085_v39 = vmax.f32 %v17084_v47, 0.0  ;;  %v17087_v45 = vmax.f32 %v17086_v30, 0.0  ;;  %v17089_v31 = vmax.f32 %v17088_v58, 0.0  ;;  %v17120_v47 = vld [vmem:[#allocation72_spill] sm:$0xff]  ;;  %v17122_v30 = vld [vmem:[#allocation69_spill] sm:$0xff]  ;;  %v17124_v58 = vld [vmem:[#allocation70_spill] sm:$0xff] }
 0x350   : > { %v2593_v1 = vmax.f32 %v2592_v28, %v17083_v59  ;;  %v17091_v11 = vmax.f32 %v17090_v15, 0.0  ;;  %v17093_v54 = vmax.f32 %v17092_v16, 0.0  ;;  %v17095_v33 = vmax.f32 %v17094_v34, 0.0 }
 0x351   : > { %v2614_v3 = vmax.f32 %v2613_v62, %v17085_v39  ;;  %v2468_v61 = vmax.f32 %v2467_v9, %v17087_v45  ;;  %v2489_v23 = vmax.f32 %v2488_v63, %v17089_v31  ;;  %v17097_v41 = vmax.f32 %v17096_v19, 0.0 }
 0x352   : > { %v2510_v48 = vmax.f32 %v2509_v5, %v17091_v11  ;;  %v2531_v49 = vmax.f32 %v2530_v2, %v17093_v54  ;;  %v2552_v17 = vmax.f32 %v2551_v18, %v17095_v33  ;;  %v17099_v57 = vmax.f32 %v17098_v22, 0.0 }
 0x353   : > { %v2573_v55 = vmax.f32 %v2572_v44, %v17097_v41  ;;  %v17101_v27 = vmax.f32 %v17100_v32, 0.0  ;;  %v17103_v42 = vmax.f32 %v17102_v60, 0.0  ;;  %v17105_v29 = vmax.f32 %v17104_v24, 0.0 }
 0x354   : > { %v2594_v36 = vmax.f32 %v2593_v1, %v17099_v57  ;;  %v17107_v37 = vmax.f32 %v17106_v8, 0.0  ;;  %v17109_v26 = vmax.f32 %v17108_v25, 0.0  ;;  %v17111_v20 = vmax.f32 %v17110_v43, 0.0 }
 0x355   : > { %v2615_v12 = vmax.f32 %v2614_v3, %v17101_v27  ;;  %v2469_v28 = vmax.f32 %v2468_v61, %v17103_v42  ;;  %v2490_v62 = vmax.f32 %v2489_v23, %v17105_v29  ;;  %v17113_v7 = vmax.f32 %v17112_v53, 0.0  ;;  %v17141_v29 = vld [vmem:[#allocation118_spill] sm:$0xff] }
 0x356   : > { %v2511_v9 = vmax.f32 %v2510_v48, %v17107_v37  ;;  %v2532_v63 = vmax.f32 %v2531_v49, %v17109_v26  ;;  %v2553_v5 = vmax.f32 %v2552_v17, %v17111_v20  ;;  %v17115_v21 = vmax.f32 %v17114_v14, 0.0  ;;  %v17127_v48 = vld [vmem:[#allocation115_spill] sm:$0xff]  ;;  %v17129_v49 = vld [vmem:[#allocation113_spill] sm:$0xff]  ;;  %v17131_v17 = vld [vmem:[#allocation114_spill] sm:$0xff] }
 0x357   : > { %v2574_v2 = vmax.f32 %v2573_v55, %v17113_v7  ;;  %v17117_v56 = vmax.f32 %v17116_v40, 0.0  ;;  %v17119_v59 = vmax.f32 %v17118_v46, 0.0  ;;  %v17121_v39 = vmax.f32 %v17120_v47, 0.0  ;;  %v17133_v55 = vld [vmem:[#allocation75_spill] sm:$0xff]  ;;  %v17145_v26 = vld [vmem:[#allocation116_spill] sm:$0xff]  ;;  %v17147_v20 = vld [vmem:[#allocation117_spill] sm:$0xff] }
 0x358   : > { %v2595_v18 = vmax.f32 %v2594_v36, %v17115_v21  ;;  %v17123_v45 = vmax.f32 %v17122_v30, 0.0  ;;  %v17125_v31 = vmax.f32 %v17124_v58, 0.0  ;;  %v17126_v15 = vmax.f32 %v16071_v50, 0.0  ;;  %v17135_v36 = vld [vmem:[#allocation76_spill] sm:$0xff]  ;;  %v17139_v50 = vld [vmem:[#allocation74_spill] sm:$0xff]  ;;  %v17143_v37 = vld [vmem:[#allocation119_spill] sm:$0xff] }
 0x359   : > { %v2616_v44 = vmax.f32 %v2615_v12, %v17117_v56  ;;  %v2470_v1 = vmax.f32 %v2469_v28, %v17119_v59  ;;  %v2491_v3 = vmax.f32 %v2490_v62, %v17121_v39  ;;  %v17128_v16 = vmax.f32 %v17127_v48, 0.0  ;;  %v17137_v12 = vld [vmem:[#allocation73_spill] sm:$0xff]  ;;  %v17149_v7 = vld [vmem:[#allocation79_spill] sm:$0xff]  ;;  %v17151_v21 = vld [vmem:[#allocation80_spill] sm:$0xff] }
 0x35a   : > { %v2512_v61 = vmax.f32 %v2511_v9, %v17123_v45  ;;  %v2533_v23 = vmax.f32 %v2532_v63, %v17125_v31  ;;  %v2554_v11 = vmax.f32 %v2553_v5, %v17126_v15  ;;  %v17130_v34 = vmax.f32 %v17129_v49, 0.0  ;;  %v17153_v56 = vld [vmem:[#allocation77_spill] sm:$0xff]  ;;  %v17155_v59 = vld [vmem:[#allocation78_spill] sm:$0xff]  ;;  %v17162_v48 = vld [vmem:[#allocation84_spill] sm:$0xff] }
 0x35b   : > { %v2575_v54 = vmax.f32 %v2574_v2, %v17128_v16  ;;  %v17132_v19 = vmax.f32 %v17131_v17, 0.0  ;;  %v17134_v22 = vmax.f32 %v17133_v55, 0.0  ;;  %v17136_v32 = vmax.f32 %v17135_v36, 0.0  ;;  %v17164_v49 = vld [vmem:[#allocation81_spill] sm:$0xff] }
 0x35c   : > { %v2596_v33 = vmax.f32 %v2595_v18, %v17130_v34  ;;  %v17138_v60 = vmax.f32 %v17137_v12, 0.0  ;;  %v17140_v28 = vmax.f32 %v17139_v50, 0.0  ;;  %v17142_v62 = vmax.f32 %v17141_v29, 0.0 }
 0x35d   : > { %v2617_v41 = vmax.f32 %v2616_v44, %v17132_v19  ;;  %v2471_v57 = vmax.f32 %v2470_v1, %v17134_v22  ;;  %v2492_v27 = vmax.f32 %v2491_v3, %v17136_v32  ;;  %v17144_v9 = vmax.f32 %v17143_v37, 0.0 }
 0x35e   : > { %v2513_v42 = vmax.f32 %v2512_v61, %v17138_v60  ;;  %v2534_v24 = vmax.f32 %v2533_v23, %v17140_v28  ;;  %v2555_v8 = vmax.f32 %v2554_v11, %v17142_v62  ;;  %v17146_v63 = vmax.f32 %v17145_v26, 0.0  ;;  %v17158_v61 = vld [vmem:[#allocation120_spill] sm:$0xff]  ;;  %v17160_v23 = vld [vmem:[#allocation83_spill] sm:$0xff] }
 0x35f   : > { %v2576_v25 = vmax.f32 %v2575_v54, %v17144_v9  ;;  %v17148_v5 = vmax.f32 %v17147_v20, 0.0  ;;  %v17150_v2 = vmax.f32 %v17149_v7, 0.0  ;;  %v17152_v18 = vmax.f32 %v17151_v21, 0.0 }
 0x360   : > { %v2597_v43 = vmax.f32 %v2596_v33, %v17146_v63  ;;  %v17154_v44 = vmax.f32 %v17153_v56, 0.0  ;;  %v17156_v1 = vmax.f32 %v17155_v59, 0.0  ;;  %v2556_v39 = vmax.f32 %v2555_v8, %v2441_v51 }
 0x361   : > { %v2618_v53 = vmax.f32 %v2617_v41, %v17148_v5  ;;  %v2472_v14 = vmax.f32 %v2471_v57, %v17150_v2  ;;  %v2493_v40 = vmax.f32 %v2492_v27, %v17152_v18  ;;  %v17157_v3 = vmax.f32 %v16109_v0, 0.0 }
 0x362   : > { %v2514_v46 = vmax.f32 %v2513_v42, %v17154_v44  ;;  %v2535_v47 = vmax.f32 %v2534_v24, %v17156_v1  ;;  %v2598_v45 = vmax.f32 %v2597_v43, %v2443_v6  ;;  %v17159_v58 = vmax.f32 %v17158_v61, 0.0 }
 0x363   : > { %v2577_v30 = vmax.f32 %v2576_v25, %v17157_v3  ;;  %v17161_v15 = vmax.f32 %v17160_v23, 0.0  ;;  %v17163_v16 = vmax.f32 %v17162_v48, 0.0  ;;  %v17165_v34 = vmax.f32 %v17164_v49, 0.0 }
 0x364   : > { %v2619_v31 = vmax.f32 %v2618_v53, %v17159_v58  ;;  %v17167_v51 = vmax.f32 %v17166_v35, 0.0  ;;  %v17168_v0 = vmax.f32 %v16121_v38, 0.0  ;;  %v17169_v10 = vmax.f32 %v16124_v52, 0.0 }
 0x365   : > { %v2473_v11 = vmax.f32 %v2472_v14, %v17161_v15  ;;  %v2494_v54 = vmax.f32 %v2493_v40, %v17163_v16  ;;  %v2515_v33 = vmax.f32 %v2514_v46, %v17165_v34  ;;  %v17170_v41 = vmax.f32 %v16135_v4, 0.0 }
 0x366   : > { %v2536_v17 = vmax.f32 %v2535_v47, %v17167_v51  ;;  %v2557_v19 = vmax.f32 %v2556_v39, %v17168_v0  ;;  %v2578_v6 = vmax.f32 %v2577_v30, %v17169_v10  ;;  %v17171_v22 = vmax.f32 %v16115_v13, 0.0  ;;  %v2458_v10 = vld [vmem:[#allocation2] sm:$0xff] }
 0x367   : > { %v2599_v55 = vmax.f32 %v2598_v45, %v17170_v41  ;;  %v2474_v36 = vrot.slane %v2473_v11, 4  ;;  %v2495_v32 = vrot.slane %v2494_v54, 4  ;;  %v2516_v27 = vrot.slane %v2515_v33, 4 }
 0x368   : > { %v2620_v57 = vmax.f32 %v2619_v31, %v17171_v22  ;;  %v2537_v12 = vrot.slane %v2536_v17, 4  ;;  %v2558_v60 = vrot.slane %v2557_v19, 4  ;;  %v2579_v42 = vrot.slane %v2578_v6, 4 }
 0x369   : > { %v2600_v50 = vrot.slane %v2599_v55, 4  ;;  %v2475_v24 = vmax.f32 %v2473_v11, %v2474_v36  ;;  %v2496_v38 = vmax.f32 %v2494_v54, %v2495_v32  ;;  %v2517_v29 = vmax.f32 %v2515_v33, %v2516_v27 }
 0x36a   : > { %v2621_v28 = vrot.slane %v2620_v57, 4  ;;  %v2538_v62 = vmax.f32 %v2536_v17, %v2537_v12  ;;  %v2559_v52 = vmax.f32 %v2557_v19, %v2558_v60  ;;  %v2580_v8 = vmax.f32 %v2578_v6, %v2579_v42 }
 0x36b   : > { %v2601_v37 = vmax.f32 %v2599_v55, %v2600_v50  ;;  %v2476_v9 = vrot.slane %v2475_v24, 2  ;;  %v2497_v25 = vrot.slane %v2496_v38, 2  ;;  %v2518_v13 = vrot.slane %v2517_v29, 2 }
 0x36c   : > { %v2622_v4 = vmax.f32 %v2620_v57, %v2621_v28  ;;  %v2539_v26 = vrot.slane %v2538_v62, 2  ;;  %v2560_v63 = vrot.slane %v2559_v52, 2  ;;  %v2581_v43 = vrot.slane %v2580_v8, 2 }
 0x36d   : > { %v2602_v20 = vrot.slane %v2601_v37, 2  ;;  %v2477_v53 = vmax.f32 %v2475_v24, %v2476_v9  ;;  %v2498_v7 = vmax.f32 %v2496_v38, %v2497_v25  ;;  %v2519_v2 = vmax.f32 %v2517_v29, %v2518_v13 }
 0x36e   : > { %v2623_v5 = vrot.slane %v2622_v4, 2  ;;  %v2540_v14 = vmax.f32 %v2538_v62, %v2539_v26  ;;  %v2561_v21 = vmax.f32 %v2559_v52, %v2560_v63  ;;  %v2582_v18 = vmax.f32 %v2580_v8, %v2581_v43 }
 0x36f   : > { %v2603_v40 = vmax.f32 %v2601_v37, %v2602_v20  ;;  %v2478_v44 = vrot.slane %v2477_v53, 1  ;;  %v2499_v46 = vrot.slane %v2498_v7, 1  ;;  %v2520_v59 = vrot.slane %v2519_v2, 1 }
 0x370   : > { %v2624_v56 = vmax.f32 %v2622_v4, %v2623_v5  ;;  %v2541_v1 = vrot.slane %v2540_v14, 1  ;;  %v2562_v47 = vrot.slane %v2561_v21, 1  ;;  %v2583_v39 = vrot.slane %v2582_v18, 1 }
 0x371   : > { %v2604_v3 = vrot.slane %v2603_v40, 1  ;;  %v2479_v45 = vmax.f32 %v2477_v53, %v2478_v44  ;;  %v2500_v61 = vmax.f32 %v2498_v7, %v2499_v46  ;;  %v2521_v58 = vmax.f32 %v2519_v2, %v2520_v59 }
 0x372   : > { %v2625_v30 = vrot.slane %v2624_v56, 1  ;;  %v2542_v31 = vmax.f32 %v2540_v14, %v2541_v1  ;;  %v2563_v23 = vmax.f32 %v2561_v21, %v2562_v47  ;;  %v2584_v15 = vmax.f32 %v2582_v18, %v2583_v39 }
 0x373   : > { %v2605_v11 = vmax.f32 %v2603_v40, %v2604_v3  ;;  %v2635_v16 = vrot.slane %v2500_v61, 7  ;;  %v2636_v54 = vrot.slane %v2521_v58, 6  ;;  %vm2642_vm1 = vcmask 1040384  }
 0x374   : > { %v2626_v48 = vmax.f32 %v2624_v56, %v2625_v30  ;;  %v2637_v49 = vrot.slane %v2542_v31, 5  ;;  %v2638_v34 = vrot.slane %v2563_v23, 4  ;;  %v2639_v33 = vrot.slane %v2584_v15, 3 }
 0x375   : > { %v2640_v35 = vrot.slane %v2605_v11, 2  ;;  %v2643_v17 = vsel %vm2642_vm1, %v2479_v45, %v2635_v16  ;;  %vm2644_vm2 = vcmask 1042434   ;;  %vm2646_vm3 = vcmask 1041408  }
 0x376   : > { %v2641_v51 = vrot.slane %v2626_v48, 1  ;;  %vm2648_vm4 = vcmask 1044484   ;;  %v2645_v0 = vsel %vm2644_vm2, %v2636_v54, %v2637_v49  ;;  %vm2650_vm5 = vcmask 1046534  }
 0x377   : > { %v2649_v19 = vsel %vm2648_vm4, %v2638_v34, %v2639_v33  ;;  %vm2652_vm6 = vcmask 1045508   ;;  %v2647_v6 = vsel %vm2646_vm3, %v2643_v17, %v2645_v0  ;;  %vm2654_vm7 = vcmask 1043456  }
 0x378   : > { %v2651_v41 = vsel %vm2650_vm5, %v2640_v35, %v2641_v51 }
 0x379   : > { %v2653_v55 = vsel %vm2652_vm6, %v2649_v19, %v2651_v41  ;;  %2662 = sbr.rel (%p9872_p11) target bundleno = 2049 (0x801), region = 168 }
 0x37a   : > { %v2655_v22 = vsel %vm2654_vm7, %v2647_v6, %v2653_v55 }
 0x37b   : > { %v2657_v57 = vmax.f32 %v2458_v10, %v2655_v22 }
 0x37d   : > { %2658 = vst [vmem:[#allocation2] sm:$0xff] %v2657_v57 }
 0x37e   : > { %v9987_v36 = vld [vmem:[#allocation17 + $0xe0] sm:$0xf]  ;;  %v13313_v32 = vld [vmem:[#allocation17 + $0xec] sm:$0xf0] }
 0x37f   : > { %v10115_v27 = vld [vmem:[#allocation17 + $0x1e0] sm:$0xf]  ;;  %v9988_v12 = vor.u32 %v13313_v32, %v9987_v36  ;;  %v13345_v60 = vld [vmem:[#allocation17 + $0x1ec] sm:$0xf0] }
 0x380   : > { %v10243_v42 = vld [vmem:[#allocation17 + $0x2e0] sm:$0xf]  ;;  %v13377_v50 = vld [vmem:[#allocation17 + $0x2ec] sm:$0xf0]  ;;  %v10116_v28 = vor.u32 %v13345_v60, %v10115_v27 }
 0x381   : > { %v10244_v24 = vor.u32 %v13377_v50, %v10243_v42  ;;  %v10371_v38 = vld [vmem:[#allocation17 + $0x3e0] sm:$0xf]  ;;  %v13409_v29 = vld [vmem:[#allocation17 + $0x3ec] sm:$0xf0]  ;;  %4225 = vmatpush.bf16.msra.mxu0 %v9988_v12 }
 0x382   : > { %v9971_v62 = vld [vmem:[#allocation17 + $0xc0] sm:$0xf]  ;;  %v10372_v52 = vor.u32 %v13409_v29, %v10371_v38  ;;  %v13309_v8 = vld [vmem:[#allocation17 + $0xcc] sm:$0xf0]  ;;  %4238 = vmatpush.bf16.msra.mxu1 %v10116_v28 }
 0x383   : > { %v10099_v37 = vld [vmem:[#allocation17 + $0x1c0] sm:$0xf]  ;;  %v13341_v4 = vld [vmem:[#allocation17 + $0x1cc] sm:$0xf0]  ;;  %4251 = vmatpush.bf16.msra.mxu2 %v10244_v24  ;;  %v9972_v9 = vor.u32 %v13309_v8, %v9971_v62 }
 0x384   : > { %v10100_v25 = vor.u32 %v13341_v4, %v10099_v37  ;;  %v10227_v13 = vld [vmem:[#allocation17 + $0x2c0] sm:$0xf]  ;;  %v13373_v26 = vld [vmem:[#allocation17 + $0x2cc] sm:$0xf0]  ;;  %4264 = vmatpush.bf16.msra.mxu3 %v10372_v52 }
 0x385   : > { %v10355_v63 = vld [vmem:[#allocation17 + $0x3c0] sm:$0xf]  ;;  %v10228_v43 = vor.u32 %v13373_v26, %v10227_v13  ;;  %v13405_v20 = vld [vmem:[#allocation17 + $0x3cc] sm:$0xf0]  ;;  %4226 = vmatpush.bf16.msra.mxu0 %v9972_v9 }
 0x386   : > { %v9955_v5 = vld [vmem:[#allocation17 + $0xa0] sm:$0xf]  ;;  %v13305_v53 = vld [vmem:[#allocation17 + $0xac] sm:$0xf0]  ;;  %v10356_v7 = vor.u32 %v13405_v20, %v10355_v63  ;;  %4239 = vmatpush.bf16.msra.mxu1 %v10100_v25 }
 0x387   : > { %v10083_v2 = vld [vmem:[#allocation17 + $0x1a0] sm:$0xf]  ;;  %v13337_v14 = vld [vmem:[#allocation17 + $0x1ac] sm:$0xf0]  ;;  %v9956_v18 = vor.u32 %v13305_v53, %v9955_v5  ;;  %4252 = vmatpush.bf16.msra.mxu2 %v10228_v43 }
 0x388   : > { %v10211_v21 = vld [vmem:[#allocation17 + $0x2a0] sm:$0xf]  ;;  %v13369_v40 = vld [vmem:[#allocation17 + $0x2ac] sm:$0xf0]  ;;  %v10084_v46 = vor.u32 %v13337_v14, %v10083_v2  ;;  %4265 = vmatpush.bf16.msra.mxu3 %v10356_v7 }
 0x389   : > { %v10339_v56 = vld [vmem:[#allocation17 + $0x3a0] sm:$0xf]  ;;  %v13401_v44 = vld [vmem:[#allocation17 + $0x3ac] sm:$0xf0]  ;;  %v10212_v59 = vor.u32 %v13369_v40, %v10211_v21  ;;  %4227 = vmatpush.bf16.msra.mxu0 %v9956_v18 }
 0x38a   : > { %v9939_v1 = vld [vmem:[#allocation17 + $0x80] sm:$0xf]  ;;  %v13301_v47 = vld [vmem:[#allocation17 + $0x8c] sm:$0xf0]  ;;  %v10340_v3 = vor.u32 %v13401_v44, %v10339_v56  ;;  %4240 = vmatpush.bf16.msra.mxu1 %v10084_v46 }
 0x38b   : > { %v10067_v39 = vld [vmem:[#allocation17 + $0x180] sm:$0xf]  ;;  %v13333_v30 = vld [vmem:[#allocation17 + $0x18c] sm:$0xf0]  ;;  %v9940_v23 = vor.u32 %v13301_v47, %v9939_v1  ;;  %4253 = vmatpush.bf16.msra.mxu2 %v10212_v59 }
 0x38c   : > { %v10195_v45 = vld [vmem:[#allocation17 + $0x280] sm:$0xf]  ;;  %v13365_v61 = vld [vmem:[#allocation17 + $0x28c] sm:$0xf0]  ;;  %v10068_v15 = vor.u32 %v13333_v30, %v10067_v39  ;;  %4266 = vmatpush.bf16.msra.mxu3 %v10340_v3 }
 0x38d   : > { %v10323_v58 = vld [vmem:[#allocation17 + $0x380] sm:$0xf]  ;;  %v13397_v31 = vld [vmem:[#allocation17 + $0x38c] sm:$0xf0]  ;;  %v10196_v11 = vor.u32 %v13365_v61, %v10195_v45  ;;  %4228 = vmatpush.bf16.msra.mxu0 %v9940_v23 }
 0x38e   : > { %v9923_v48 = vld [vmem:[#allocation17 + $0x60] sm:$0xf]  ;;  %v13297_v16 = vld [vmem:[#allocation17 + $0x6c] sm:$0xf0]  ;;  %v10324_v49 = vor.u32 %v13397_v31, %v10323_v58  ;;  %4241 = vmatpush.bf16.msra.mxu1 %v10068_v15 }
 0x38f   : > { %v10051_v54 = vld [vmem:[#allocation17 + $0x160] sm:$0xf]  ;;  %v13329_v34 = vld [vmem:[#allocation17 + $0x16c] sm:$0xf0]  ;;  %v9924_v0 = vor.u32 %v13297_v16, %v9923_v48  ;;  %4254 = vmatpush.bf16.msra.mxu2 %v10196_v11 }
 0x390   : > { %v10179_v33 = vld [vmem:[#allocation17 + $0x260] sm:$0xf]  ;;  %v13361_v35 = vld [vmem:[#allocation17 + $0x26c] sm:$0xf0]  ;;  %v10052_v19 = vor.u32 %v13329_v34, %v10051_v54  ;;  %4267 = vmatpush.bf16.msra.mxu3 %v10324_v49 }
 0x391   : > { %v10307_v51 = vld [vmem:[#allocation17 + $0x360] sm:$0xf]  ;;  %v13393_v17 = vld [vmem:[#allocation17 + $0x36c] sm:$0xf0]  ;;  %v10180_v10 = vor.u32 %v13361_v35, %v10179_v33  ;;  %4229 = vmatpush.bf16.msra.mxu0 %v9924_v0 }
 0x392   : > { %v9907_v6 = vld [vmem:[#allocation17 + $0x40] sm:$0xf]  ;;  %v13293_v41 = vld [vmem:[#allocation17 + $0x4c] sm:$0xf0]  ;;  %v10308_v22 = vor.u32 %v13393_v17, %v10307_v51  ;;  %4242 = vmatpush.bf16.msra.mxu1 %v10052_v19 }
 0x393   : > { %v10035_v55 = vld [vmem:[#allocation17 + $0x140] sm:$0xf]  ;;  %v13325_v57 = vld [vmem:[#allocation17 + $0x14c] sm:$0xf0]  ;;  %v9908_v60 = vor.u32 %v13293_v41, %v9907_v6  ;;  %4255 = vmatpush.bf16.msra.mxu2 %v10180_v10 }
 0x394   : > { %v10163_v36 = vld [vmem:[#allocation17 + $0x240] sm:$0xf]  ;;  %v13357_v32 = vld [vmem:[#allocation17 + $0x24c] sm:$0xf0]  ;;  %v10036_v42 = vor.u32 %v13325_v57, %v10035_v55  ;;  %4268 = vmatpush.bf16.msra.mxu3 %v10308_v22 }
 0x395   : > { %v10291_v27 = vld [vmem:[#allocation17 + $0x340] sm:$0xf]  ;;  %v13389_v12 = vld [vmem:[#allocation17 + $0x34c] sm:$0xf0]  ;;  %v10164_v50 = vor.u32 %v13357_v32, %v10163_v36  ;;  %4230 = vmatpush.bf16.msra.mxu0 %v9908_v60 }
 0x396   : > { %v9891_v28 = vld [vmem:[#allocation17 + $0x20] sm:$0xf]  ;;  %v13289_v24 = vld [vmem:[#allocation17 + $0x2c] sm:$0xf0]  ;;  %v10292_v29 = vor.u32 %v13389_v12, %v10291_v27  ;;  %4243 = vmatpush.bf16.msra.mxu1 %v10036_v42 }
 0x397   : > { %v10019_v38 = vld [vmem:[#allocation17 + $0x120] sm:$0xf]  ;;  %v13321_v62 = vld [vmem:[#allocation17 + $0x12c] sm:$0xf0]  ;;  %v9892_v9 = vor.u32 %v13289_v24, %v9891_v28  ;;  %4256 = vmatpush.bf16.msra.mxu2 %v10164_v50 }
 0x398   : > { %v10147_v52 = vld [vmem:[#allocation17 + $0x220] sm:$0xf]  ;;  %v13353_v8 = vld [vmem:[#allocation17 + $0x22c] sm:$0xf0]  ;;  %v10020_v26 = vor.u32 %v13321_v62, %v10019_v38  ;;  %4269 = vmatpush.bf16.msra.mxu3 %v10292_v29 }
 0x399   : > { %v10275_v37 = vld [vmem:[#allocation17 + $0x320] sm:$0xf]  ;;  %v13385_v4 = vld [vmem:[#allocation17 + $0x32c] sm:$0xf0]  ;;  %v10148_v63 = vor.u32 %v13353_v8, %v10147_v52  ;;  %4231 = vmatpush.bf16.msra.mxu0 %v9892_v9 }
 0x39a   : > { %v9875_v25 = vld [vmem:[#allocation17] sm:$0xf]  ;;  %v13285_v13 = vld [vmem:[#allocation17 + $0xc] sm:$0xf0]  ;;  %v10276_v53 = vor.u32 %v13385_v4, %v10275_v37  ;;  %4244 = vmatpush.bf16.msra.mxu1 %v10020_v26 }
 0x39b   : > { %v10003_v43 = vld [vmem:[#allocation17 + $0x100] sm:$0xf]  ;;  %v13317_v20 = vld [vmem:[#allocation17 + $0x10c] sm:$0xf0]  ;;  %v9876_v56 = vor.u32 %v13285_v13, %v9875_v25  ;;  %4257 = vmatpush.bf16.msra.mxu2 %v10148_v63 }
 0x39c   : > { %v10131_v5 = vld [vmem:[#allocation17 + $0x200] sm:$0xf]  ;;  %v13349_v7 = vld [vmem:[#allocation17 + $0x20c] sm:$0xf0]  ;;  %v10004_v1 = vor.u32 %v13317_v20, %v10003_v43  ;;  %4270 = vmatpush.bf16.msra.mxu3 %v10276_v53 }
 0x39d   : > { %v10259_v2 = vld [vmem:[#allocation17 + $0x300] sm:$0xf]  ;;  %v13381_v14 = vld [vmem:[#allocation17 + $0x30c] sm:$0xf0]  ;;  %v10132_v47 = vor.u32 %v13349_v7, %v10131_v5  ;;  %4232 = vmatpush.bf16.msra.mxu0 %v9876_v56 }
 0x39e   : > { %v10499_v21 = vld [vmem:[#allocation17 + $0x4e0] sm:$0xf]  ;;  %v13441_v18 = vld [vmem:[#allocation17 + $0x4ec] sm:$0xf0]  ;;  %v10260_v30 = vor.u32 %v13381_v14, %v10259_v2  ;;  %4245 = vmatpush.bf16.msra.mxu1 %v10004_v1 }
 0x39f   : > { %v10627_v40 = vld [vmem:[#allocation17 + $0x5e0] sm:$0xf]  ;;  %v13473_v44 = vld [vmem:[#allocation17 + $0x5ec] sm:$0xf0]  ;;  %v10500_v45 = vor.u32 %v13441_v18, %v10499_v21  ;;  %4258 = vmatpush.bf16.msra.mxu2 %v10132_v47 }
 0x3a0   : > { %v10755_v46 = vld [vmem:[#allocation17 + $0x6e0] sm:$0xf]  ;;  %v13505_v59 = vld [vmem:[#allocation17 + $0x6ec] sm:$0xf0]  ;;  %v10628_v61 = vor.u32 %v13473_v44, %v10627_v40  ;;  %4271 = vmatpush.bf16.msra.mxu3 %v10260_v30 }
 0x3a1   : > { %v10883_v39 = vld [vmem:[#allocation17 + $0x7e0] sm:$0xf]  ;;  %v13537_v3 = vld [vmem:[#allocation17 + $0x7ec] sm:$0xf0]  ;;  %v10756_v58 = vor.u32 %v13505_v59, %v10755_v46  ;;  %4277 = vmatpush.bf16.msrb.mxu0 %v10500_v45 }
 0x3a2   : > { %v10483_v31 = vld [vmem:[#allocation17 + $0x4c0] sm:$0xf]  ;;  %v13437_v23 = vld [vmem:[#allocation17 + $0x4cc] sm:$0xf0]  ;;  %v10884_v11 = vor.u32 %v13537_v3, %v10883_v39  ;;  %4290 = vmatpush.bf16.msrb.mxu1 %v10628_v61 }
 0x3a3   : > { %v10611_v15 = vld [vmem:[#allocation17 + $0x5c0] sm:$0xf]  ;;  %v13469_v48 = vld [vmem:[#allocation17 + $0x5cc] sm:$0xf0]  ;;  %v10484_v33 = vor.u32 %v13437_v23, %v10483_v31  ;;  %4303 = vmatpush.bf16.msrb.mxu2 %v10756_v58 }
 0x3a4   : > { %v10739_v16 = vld [vmem:[#allocation17 + $0x6c0] sm:$0xf]  ;;  %v13501_v54 = vld [vmem:[#allocation17 + $0x6cc] sm:$0xf0]  ;;  %v10612_v17 = vor.u32 %v13469_v48, %v10611_v15  ;;  %4316 = vmatpush.bf16.msrb.mxu3 %v10884_v11 }
 0x3a5   : > { %v10867_v49 = vld [vmem:[#allocation17 + $0x7c0] sm:$0xf]  ;;  %v13533_v34 = vld [vmem:[#allocation17 + $0x7cc] sm:$0xf0]  ;;  %v10740_v0 = vor.u32 %v13501_v54, %v10739_v16  ;;  %4278 = vmatpush.bf16.msrb.mxu0 %v10484_v33 }
 0x3a6   : > { %v10467_v35 = vld [vmem:[#allocation17 + $0x4a0] sm:$0xf]  ;;  %v13433_v51 = vld [vmem:[#allocation17 + $0x4ac] sm:$0xf0]  ;;  %v10868_v41 = vor.u32 %v13533_v34, %v10867_v49  ;;  %4291 = vmatpush.bf16.msrb.mxu1 %v10612_v17 }
 0x3a7   : > { %v10595_v19 = vld [vmem:[#allocation17 + $0x5a0] sm:$0xf]  ;;  %v13465_v10 = vld [vmem:[#allocation17 + $0x5ac] sm:$0xf0]  ;;  %v10468_v12 = vor.u32 %v13433_v51, %v10467_v35  ;;  %4304 = vmatpush.bf16.msrb.mxu2 %v10740_v0 }
 0x3a8   : > { %v16403_v6 = vld [vmem:[#allocation2] sm:$0xff]  ;;  %v13497_v22 = vld [vmem:[#allocation17 + $0x6ac] sm:$0xf0]  ;;  %v10596_v28 = vor.u32 %v13465_v10, %v10595_v19  ;;  %4317 = vmatpush.bf16.msrb.mxu3 %v10868_v41 }
 0x3a9   : > { %v10723_v55 = vld [vmem:[#allocation17 + $0x6a0] sm:$0xf]  ;;  %v2667_v57 = vperm.slane %v16403_v6, 2  ;;  %v2665_v36 = vperm.slane %v16403_v6, 0  ;;  %v13529_v27 = vld [vmem:[#allocation17 + $0x7ac] sm:$0xf0]  ;;  %4279 = vmatpush.bf16.msrb.mxu0 %v10468_v12 }
 0x3aa   : > { %v10851_v32 = vld [vmem:[#allocation17 + $0x7a0] sm:$0xf]  ;;  %v10724_v24 = vor.u32 %v13497_v22, %v10723_v55  ;;  %v13429_v38 = vld [vmem:[#allocation17 + $0x48c] sm:$0xf0]  ;;  %v2668_v62 = vperm.slane %v16403_v6, 3  ;;  %v2666_v52 = vperm.slane %v16403_v6, 1  ;;  %4292 = vmatpush.bf16.msrb.mxu1 %v10596_v28 }
 0x3ab   : > { %v10451_v60 = vld [vmem:[#allocation17 + $0x480] sm:$0xf]  ;;  %v16407_v42 = vpack.c.bf16 %v2667_v57, %v2667_v57  ;;  %v16409_v50 = vpack.c.bf16 %v2665_v36, %v2665_v36  ;;  %v10852_v8 = vor.u32 %v13529_v27, %v10851_v32  ;;  %v13461_v37 = vld [vmem:[#allocation17 + $0x58c] sm:$0xf0] }
 0x3ac   : > { %v10579_v29 = vld [vmem:[#allocation17 + $0x580] sm:$0xf]  ;;  %v13493_v9 = vld [vmem:[#allocation17 + $0x68c] sm:$0xf0]  ;;  %v16415_v26 = vpack.c.bf16 %v2668_v62, %v2668_v62  ;;  %v16417_v63 = vpack.c.bf16 %v2666_v52, %v2666_v52  ;;  %v10452_v43 = vor.u32 %v13429_v38, %v10451_v60  ;;  %4305 = vmatpush.bf16.msrb.mxu2 %v10724_v24  ;;  %v13311_v24 = vld [vmem:[#allocation17 + $0xe4] sm:$0xf] }
 0x3ad   : > { %v10707_v4 = vld [vmem:[#allocation17 + $0x680] sm:$0xf]  ;;  %4259 = vmatmul.bf16.vlgmr.msra.gmra.mxu2 %v16407_v42  ;;  %v13525_v13 = vld [vmem:[#allocation17 + $0x78c] sm:$0xf0]  ;;  %4233 = vmatmul.bf16.vlgmr.msra.gmra.mxu0 %v16409_v50  ;;  %v10580_v20 = vor.u32 %v13461_v37, %v10579_v29  ;;  %v9989_v38 = vld [vmem:[#allocation17 + $0xf0] sm:$0xf0] }
 0x3ae   : > { %v10835_v25 = vld [vmem:[#allocation17 + $0x780] sm:$0xf]  ;;  %v10708_v5 = vor.u32 %v13493_v9, %v10707_v4  ;;  %v13425_v7 = vld [vmem:[#allocation17 + $0x46c] sm:$0xf0]  ;;  %4318 = vmatpush.bf16.msrb.mxu3 %v10852_v8  ;;  %4246 = vmatmul.bf16.vlgmr.msra.gmra.mxu1 %v16417_v63  ;;  %v13343_v29 = vld [vmem:[#allocation17 + $0x1e4] sm:$0xf] }
 0x3af   : > { %v10435_v53 = vld [vmem:[#allocation17 + $0x460] sm:$0xf]  ;;  %v10836_v14 = vor.u32 %v13525_v13, %v10835_v25  ;;  %v13457_v21 = vld [vmem:[#allocation17 + $0x56c] sm:$0xf0]  ;;  %4272 = vmatmul.bf16.vlgmr.msra.gmra.mxu3 %v16415_v26  ;;  %4280 = vmatpush.bf16.msrb.mxu0 %v10452_v43  ;;  %v10117_v62 = vld [vmem:[#allocation17 + $0x1f0] sm:$0xf0] }
 0x3b0   : > { %v10563_v2 = vld [vmem:[#allocation17 + $0x560] sm:$0xf]  ;;  %v13489_v40 = vld [vmem:[#allocation17 + $0x66c] sm:$0xf0]  ;;  %v10436_v46 = vor.u32 %v13425_v7, %v10435_v53  ;;  %4293 = vmatpush.bf16.msrb.mxu1 %v10580_v20  ;;  %4306 = vmatpush.bf16.msrb.mxu2 %v10708_v5  ;;  %v13375_v8 = vld [vmem:[#allocation17 + $0x2e4] sm:$0xf]  ;;  %v9992_v7 = vor.u32 %v13311_v24, %v9989_v38 }
 0x3b1   : > { %v10691_v18 = vld [vmem:[#allocation17 + $0x660] sm:$0xf]  ;;  %v13521_v44 = vld [vmem:[#allocation17 + $0x76c] sm:$0xf0]  ;;  %v10564_v59 = vor.u32 %v13457_v21, %v10563_v2  ;;  %v10245_v37 = vld [vmem:[#allocation17 + $0x2f0] sm:$0xf0] }
 0x3b2   : > { %v10819_v56 = vld [vmem:[#allocation17 + $0x760] sm:$0xf]  ;;  %v10692_v1 = vor.u32 %v13489_v40, %v10691_v18  ;;  %v13421_v39 = vld [vmem:[#allocation17 + $0x44c] sm:$0xf0]  ;;  %4319 = vmatpush.bf16.msrb.mxu3 %v10836_v14  ;;  %v2671_v4 = vperm.slane %v16403_v6, 6  ;;  %v2669_v20 = vperm.slane %v16403_v6, 4  ;;  %v10120_v14 = vor.u32 %v13343_v29, %v10117_v62 }
 0x3b3   : > { %v10419_v47 = vld [vmem:[#allocation17 + $0x440] sm:$0xf]  ;;  %v10820_v30 = vor.u32 %v13521_v44, %v10819_v56  ;;  %v13453_v45 = vld [vmem:[#allocation17 + $0x54c] sm:$0xf0]  ;;  %4281 = vmatpush.bf16.msrb.mxu0 %v10436_v46  ;;  %v13407_v13 = vld [vmem:[#allocation17 + $0x3e4] sm:$0xf]  ;;  %v10248_v21 = vor.u32 %v13375_v8, %v10245_v37 }
 0x3b4   : > { %v10547_v3 = vld [vmem:[#allocation17 + $0x540] sm:$0xf]  ;;  %v13485_v58 = vld [vmem:[#allocation17 + $0x64c] sm:$0xf0]  ;;  %v10420_v15 = vor.u32 %v13421_v39, %v10419_v47  ;;  %4294 = vmatpush.bf16.msrb.mxu1 %v10564_v59  ;;  %4307 = vmatpush.bf16.msrb.mxu2 %v10692_v1  ;;  %v10373_v43 = vld [vmem:[#allocation17 + $0x3f0] sm:$0xf0]  ;;  %v16425_v47 = vpack.c.bf16 %v2671_v4, %v2671_v4 }
 0x3b5   : > { %v10675_v61 = vld [vmem:[#allocation17 + $0x640] sm:$0xf]  ;;  %v13517_v23 = vld [vmem:[#allocation17 + $0x74c] sm:$0xf0]  ;;  %v10548_v11 = vor.u32 %v13453_v45, %v10547_v3  ;;  %v2672_v5 = vperm.slane %v16403_v6, 7  ;;  %v2670_v2 = vperm.slane %v16403_v6, 5  ;;  %v10376_v44 = vor.u32 %v13407_v13, %v10373_v43 }
 0x3b6   : > { %v10803_v31 = vld [vmem:[#allocation17 + $0x740] sm:$0xf]  ;;  %v10676_v48 = vor.u32 %v13485_v58, %v10675_v61  ;;  %v13417_v54 = vld [vmem:[#allocation17 + $0x42c] sm:$0xf0]  ;;  %4320 = vmatpush.bf16.msrb.mxu3 %v10820_v30  ;;  %v13307_v18 = vld [vmem:[#allocation17 + $0xc4] sm:$0xf]  ;;  %v16427_v30 = vpack.c.bf16 %v2669_v20, %v2669_v20 }
 0x3b7   : > { %v10403_v16 = vld [vmem:[#allocation17 + $0x420] sm:$0xf]  ;;  %v10804_v34 = vor.u32 %v13517_v23, %v10803_v31  ;;  %v13449_v33 = vld [vmem:[#allocation17 + $0x52c] sm:$0xf0]  ;;  %4282 = vmatpush.bf16.msrb.mxu0 %v10420_v15  ;;  %v9973_v40 = vld [vmem:[#allocation17 + $0xd0] sm:$0xf0]  ;;  %v16429_v45 = vpack.c.bf16 %v2672_v5, %v2672_v5  ;;  %v16431_v61 = vpack.c.bf16 %v2670_v2, %v2670_v2 }
 0x3b8   : > { %v10531_v49 = vld [vmem:[#allocation17 + $0x520] sm:$0xf]  ;;  %v13481_v51 = vld [vmem:[#allocation17 + $0x62c] sm:$0xf0]  ;;  %v10404_v19 = vor.u32 %v13417_v54, %v10403_v16  ;;  %4295 = vmatpush.bf16.msrb.mxu1 %v10548_v11  ;;  %4308 = vmatpush.bf16.msrb.mxu2 %v10676_v48  ;;  %v13339_v56 = vld [vmem:[#allocation17 + $0x1c4] sm:$0xf]  ;;  %v9976_v6 = vor.u32 %v13307_v18, %v9973_v40 }
 0x3b9   : > { %v10659_v35 = vld [vmem:[#allocation17 + $0x620] sm:$0xf]  ;;  %v13513_v0 = vld [vmem:[#allocation17 + $0x72c] sm:$0xf0]  ;;  %v10532_v22 = vor.u32 %v13449_v33, %v10531_v49  ;;  %v10101_v46 = vld [vmem:[#allocation17 + $0x1d0] sm:$0xf0] }
 0x3ba   : > { %v10787_v17 = vld [vmem:[#allocation17 + $0x720] sm:$0xf]  ;;  %v13413_v41 = vld [vmem:[#allocation17 + $0x40c] sm:$0xf0]  ;;  %v10660_v57 = vor.u32 %v13481_v51, %v10659_v35  ;;  %4321 = vmatpush.bf16.msrb.mxu3 %v10804_v34  ;;  %v13371_v59 = vld [vmem:[#allocation17 + $0x2c4] sm:$0xf]  ;;  %v10104_v58 = vor.u32 %v13339_v56, %v10101_v46 }
 0x3bb   : > { %v10387_v10 = vld [vmem:[#allocation17 + $0x400] sm:$0xf]  ;;  %v13445_v36 = vld [vmem:[#allocation17 + $0x50c] sm:$0xf0]  ;;  %v10788_v12 = vor.u32 %v13513_v0, %v10787_v17  ;;  %4283 = vmatpush.bf16.msrb.mxu0 %v10404_v19  ;;  %v10229_v1 = vld [vmem:[#allocation17 + $0x2d0] sm:$0xf0] }
 0x3bc   : > { %v10515_v55 = vld [vmem:[#allocation17 + $0x500] sm:$0xf]  ;;  %v13477_v27 = vld [vmem:[#allocation17 + $0x60c] sm:$0xf0]  ;;  %v10388_v52 = vor.u32 %v13413_v41, %v10387_v10  ;;  %4296 = vmatpush.bf16.msrb.mxu1 %v10532_v22  ;;  %4309 = vmatpush.bf16.msrb.mxu2 %v10660_v57  ;;  %v13403_v39 = vld [vmem:[#allocation17 + $0x3c4] sm:$0xf]  ;;  %v10232_v31 = vor.u32 %v13371_v59, %v10229_v1 }
 0x3bd   : > { %v10643_v32 = vld [vmem:[#allocation17 + $0x600] sm:$0xf]  ;;  %v13509_v28 = vld [vmem:[#allocation17 + $0x70c] sm:$0xf0]  ;;  %v10516_v9 = vor.u32 %v13445_v36, %v10515_v55  ;;  %v10357_v3 = vld [vmem:[#allocation17 + $0x3d0] sm:$0xf0] }
 0x3be   : > { %v10771_v60 = vld [vmem:[#allocation17 + $0x700] sm:$0xf]  ;;  %v10644_v25 = vor.u32 %v13477_v27, %v10643_v32  ;;  %4322 = vmatpush.bf16.msrb.mxu3 %v10788_v12  ;;  %v13303_v23 = vld [vmem:[#allocation17 + $0xa4] sm:$0xf]  ;;  %v9957_v15 = vld [vmem:[#allocation17 + $0xb0] sm:$0xf0]  ;;  %v10360_v48 = vor.u32 %v13403_v39, %v10357_v3 }
 0x3bf   : > { %v10772_v53 = vor.u32 %v13509_v28, %v10771_v60  ;;  %4284 = vmatpush.bf16.msrb.mxu0 %v10388_v52  ;;  %v13335_v11 = vld [vmem:[#allocation17 + $0x1a4] sm:$0xf]  ;;  %v10085_v16 = vld [vmem:[#allocation17 + $0x1b0] sm:$0xf0]  ;;  %v9960_v35 = vor.u32 %v13303_v23, %v9957_v15 }
 0x3c0   : > { %4297 = vmatpush.bf16.msrb.mxu1 %v10516_v9  ;;  %4310 = vmatpush.bf16.msrb.mxu2 %v10644_v25  ;;  %v13367_v54 = vld [vmem:[#allocation17 + $0x2a4] sm:$0xf]  ;;  %v10213_v49 = vld [vmem:[#allocation17 + $0x2b0] sm:$0xf0]  ;;  %v10088_v51 = vor.u32 %v13335_v11, %v10085_v16 }
 0x3c1   : > { %v13399_v34 = vld [vmem:[#allocation17 + $0x3a4] sm:$0xf]  ;;  %v10341_v33 = vld [vmem:[#allocation17 + $0x3b0] sm:$0xf0]  ;;  %v10216_v17 = vor.u32 %v13367_v54, %v10213_v49 }
 0x3c2   : > { %4323 = vmatpush.bf16.msrb.mxu3 %v10772_v53  ;;  %4285 = vmatmul.bf16.vlgmr.msrb.gmra.mxu0 %v16427_v30  ;;  %v13299_v0 = vld [vmem:[#allocation17 + $0x84] sm:$0xf]  ;;  %v9941_v19 = vld [vmem:[#allocation17 + $0x90] sm:$0xf0]  ;;  %v10344_v41 = vor.u32 %v13399_v34, %v10341_v33 }
 0x3c3   : > { %4329 = vmatpush.bf16.msra.mxu0 %v9992_v7  ;;  %4311 = vmatmul.bf16.vlgmr.msrb.gmra.mxu2 %v16425_v47  ;;  %v13331_v10 = vld [vmem:[#allocation17 + $0x184] sm:$0xf]  ;;  %v10069_v55 = vld [vmem:[#allocation17 + $0x190] sm:$0xf0]  ;;  %v9944_v27 = vor.u32 %v13299_v0, %v9941_v19 }
 0x3c4   : > { %4342 = vmatpush.bf16.msra.mxu1 %v10120_v14  ;;  %4355 = vmatpush.bf16.msra.mxu2 %v10248_v21  ;;  %v13363_v22 = vld [vmem:[#allocation17 + $0x284] sm:$0xf]  ;;  %v10197_v57 = vld [vmem:[#allocation17 + $0x290] sm:$0xf0]  ;;  %v10072_v12 = vor.u32 %v13331_v10, %v10069_v55 }
 0x3c5   : > { %4324 = vmatmul.bf16.vlgmr.msrb.gmra.mxu3 %v16429_v45  ;;  %4298 = vmatmul.bf16.vlgmr.msrb.gmra.mxu1 %v16431_v61  ;;  %v13395_v36 = vld [vmem:[#allocation17 + $0x384] sm:$0xf]  ;;  %v10325_v32 = vld [vmem:[#allocation17 + $0x390] sm:$0xf0]  ;;  %v10200_v60 = vor.u32 %v13363_v22, %v10197_v57 }
 0x3c6   : > { %4368 = vmatpush.bf16.msra.mxu3 %v10376_v44  ;;  %v13295_v28 = vld [vmem:[#allocation17 + $0x64] sm:$0xf]  ;;  %v9925_v24 = vld [vmem:[#allocation17 + $0x70] sm:$0xf0]  ;;  %v10328_v29 = vor.u32 %v13395_v36, %v10325_v32 }
 0x3c7   : > { %4330 = vmatpush.bf16.msra.mxu0 %v9976_v6  ;;  %v13327_v38 = vld [vmem:[#allocation17 + $0x164] sm:$0xf]  ;;  %v10053_v62 = vld [vmem:[#allocation17 + $0x170] sm:$0xf0]  ;;  %v9928_v9 = vor.u32 %v13295_v28, %v9925_v24 }
 0x3c8   : > { %4343 = vmatpush.bf16.msra.mxu1 %v10104_v58  ;;  %4356 = vmatpush.bf16.msra.mxu2 %v10232_v31  ;;  %v13359_v52 = vld [vmem:[#allocation17 + $0x264] sm:$0xf]  ;;  %v10181_v8 = vld [vmem:[#allocation17 + $0x270] sm:$0xf0]  ;;  %v10056_v25 = vor.u32 %v13327_v38, %v10053_v62 }
 0x3c9   : > { %v13391_v37 = vld [vmem:[#allocation17 + $0x364] sm:$0xf]  ;;  %v10309_v4 = vld [vmem:[#allocation17 + $0x370] sm:$0xf0]  ;;  %v10184_v13 = vor.u32 %v13359_v52, %v10181_v8 }
 0x3ca   : > { %4369 = vmatpush.bf16.msra.mxu3 %v10360_v48  ;;  %v13291_v43 = vld [vmem:[#allocation17 + $0x44] sm:$0xf]  ;;  %v9909_v20 = vld [vmem:[#allocation17 + $0x50] sm:$0xf0]  ;;  %v10312_v53 = vor.u32 %v13391_v37, %v10309_v4 }
 0x3cb   : > { %4331 = vmatpush.bf16.msra.mxu0 %v9960_v35  ;;  %v13323_v5 = vld [vmem:[#allocation17 + $0x144] sm:$0xf]  ;;  %v10037_v7 = vld [vmem:[#allocation17 + $0x150] sm:$0xf0]  ;;  %v9912_v40 = vor.u32 %v13291_v43, %v9909_v20 }
 0x3cc   : > { %4344 = vmatpush.bf16.msra.mxu1 %v10088_v51  ;;  %4357 = vmatpush.bf16.msra.mxu2 %v10216_v17  ;;  %v13355_v2 = vld [vmem:[#allocation17 + $0x244] sm:$0xf]  ;;  %v10165_v14 = vld [vmem:[#allocation17 + $0x250] sm:$0xf0]  ;;  %v10040_v56 = vor.u32 %v13323_v5, %v10037_v7 }
 0x3cd   : > { %v13387_v21 = vld [vmem:[#allocation17 + $0x344] sm:$0xf]  ;;  %v10293_v18 = vld [vmem:[#allocation17 + $0x350] sm:$0xf0]  ;;  %v10168_v44 = vor.u32 %v13355_v2, %v10165_v14 }
 0x3ce   : > { %4370 = vmatpush.bf16.msra.mxu3 %v10344_v41  ;;  %v13287_v46 = vld [vmem:[#allocation17 + $0x24] sm:$0xf]  ;;  %v9893_v59 = vld [vmem:[#allocation17 + $0x30] sm:$0xf0]  ;;  %v10296_v39 = vor.u32 %v13387_v21, %v10293_v18 }
 0x3cf   : > { %4332 = vmatpush.bf16.msra.mxu0 %v9944_v27  ;;  %v13319_v1 = vld [vmem:[#allocation17 + $0x124] sm:$0xf]  ;;  %v10021_v3 = vld [vmem:[#allocation17 + $0x130] sm:$0xf0]  ;;  %v9896_v15 = vor.u32 %v13287_v46, %v9893_v59 }
 0x3d0   : > { %4345 = vmatpush.bf16.msra.mxu1 %v10072_v12  ;;  %4358 = vmatpush.bf16.msra.mxu2 %v10200_v60  ;;  %v13351_v6 = vld [vmem:[#allocation17 + $0x224] sm:$0xf]  ;;  %v10149_v58 = vld [vmem:[#allocation17 + $0x230] sm:$0xf0]  ;;  %v10024_v16 = vor.u32 %v13319_v1, %v10021_v3 }
 0x3d1   : > { %v13383_v31 = vld [vmem:[#allocation17 + $0x324] sm:$0xf]  ;;  %v10277_v23 = vld [vmem:[#allocation17 + $0x330] sm:$0xf0]  ;;  %v10152_v54 = vor.u32 %v13351_v6, %v10149_v58 }
 0x3d2   : > { %4371 = vmatpush.bf16.msra.mxu3 %v10328_v29  ;;  %v13283_v11 = vld [vmem:[#allocation17 + $0x4] sm:$0xf]  ;;  %v9877_v48 = vld [vmem:[#allocation17 + $0x10] sm:$0xf0]  ;;  %v10280_v35 = vor.u32 %v13383_v31, %v10277_v23 }
 0x3d3   : > { %4333 = vmatpush.bf16.msra.mxu0 %v9928_v9  ;;  %v13315_v49 = vld [vmem:[#allocation17 + $0x104] sm:$0xf]  ;;  %v10005_v34 = vld [vmem:[#allocation17 + $0x110] sm:$0xf0]  ;;  %v9880_v55 = vor.u32 %v13283_v11, %v9877_v48 }
 0x3d4   : > { %4346 = vmatpush.bf16.msra.mxu1 %v10056_v25  ;;  %4359 = vmatpush.bf16.msra.mxu2 %v10184_v13  ;;  %v13347_v33 = vld [vmem:[#allocation17 + $0x204] sm:$0xf]  ;;  %v10133_v51 = vld [vmem:[#allocation17 + $0x210] sm:$0xf0]  ;;  %v10008_v32 = vor.u32 %v13315_v49, %v10005_v34 }
 0x3d5   : > { %v13379_v17 = vld [vmem:[#allocation17 + $0x304] sm:$0xf]  ;;  %v10261_v0 = vld [vmem:[#allocation17 + $0x310] sm:$0xf0]  ;;  %v10136_v27 = vor.u32 %v13347_v33, %v10133_v51 }
 0x3d6   : > { %4372 = vmatpush.bf16.msra.mxu3 %v10312_v53  ;;  %v13439_v19 = vld [vmem:[#allocation17 + $0x4e4] sm:$0xf]  ;;  %v10501_v10 = vld [vmem:[#allocation17 + $0x4f0] sm:$0xf0]  ;;  %v10264_v28 = vor.u32 %v13379_v17, %v10261_v0 }
 0x3d7   : > { %4334 = vmatpush.bf16.msra.mxu0 %v9912_v40  ;;  %v13471_v41 = vld [vmem:[#allocation17 + $0x5e4] sm:$0xf]  ;;  %v10629_v22 = vld [vmem:[#allocation17 + $0x5f0] sm:$0xf0]  ;;  %v10504_v24 = vor.u32 %v13439_v19, %v10501_v10 }
 0x3d8   : > { %4347 = vmatpush.bf16.msra.mxu1 %v10040_v56  ;;  %4360 = vmatpush.bf16.msra.mxu2 %v10168_v44  ;;  %v13503_v57 = vld [vmem:[#allocation17 + $0x6e4] sm:$0xf]  ;;  %v10757_v36 = vld [vmem:[#allocation17 + $0x6f0] sm:$0xf0]  ;;  %v10632_v38 = vor.u32 %v13471_v41, %v10629_v22 }
 0x3d9   : > { %v13535_v12 = vld [vmem:[#allocation17 + $0x7e4] sm:$0xf]  ;;  %v10885_v60 = vld [vmem:[#allocation17 + $0x7f0] sm:$0xf0]  ;;  %v10760_v29 = vor.u32 %v13503_v57, %v10757_v36 }
 0x3da   : > { %4373 = vmatpush.bf16.msra.mxu3 %v10296_v39  ;;  %v13435_v62 = vld [vmem:[#allocation17 + $0x4c4] sm:$0xf]  ;;  %v10485_v52 = vld [vmem:[#allocation17 + $0x4d0] sm:$0xf0]  ;;  %v10888_v37 = vor.u32 %v13535_v12, %v10885_v60 }
 0x3db   : > { %4335 = vmatpush.bf16.msra.mxu0 %v9896_v15  ;;  %v13467_v8 = vld [vmem:[#allocation17 + $0x5c4] sm:$0xf]  ;;  %v10613_v4 = vld [vmem:[#allocation17 + $0x5d0] sm:$0xf0]  ;;  %v10488_v20 = vor.u32 %v13435_v62, %v10485_v52 }
 0x3dc   : > { %4348 = vmatpush.bf16.msra.mxu1 %v10024_v16  ;;  %4361 = vmatpush.bf16.msra.mxu2 %v10152_v54  ;;  %v13499_v9 = vld [vmem:[#allocation17 + $0x6c4] sm:$0xf]  ;;  %v10741_v25 = vld [vmem:[#allocation17 + $0x6d0] sm:$0xf0]  ;;  %v10616_v5 = vor.u32 %v13467_v8, %v10613_v4 }
 0x3dd   : > { %v13531_v13 = vld [vmem:[#allocation17 + $0x7c4] sm:$0xf]  ;;  %v10869_v43 = vld [vmem:[#allocation17 + $0x7d0] sm:$0xf0]  ;;  %v10744_v53 = vor.u32 %v13499_v9, %v10741_v25 }
 0x3de   : > { %4374 = vmatpush.bf16.msra.mxu3 %v10280_v35  ;;  %v13431_v7 = vld [vmem:[#allocation17 + $0x4a4] sm:$0xf]  ;;  %v10469_v2 = vld [vmem:[#allocation17 + $0x4b0] sm:$0xf0]  ;;  %v10872_v21 = vor.u32 %v13531_v13, %v10869_v43 }
 0x3df   : > { %4336 = vmatpush.bf16.msra.mxu0 %v9880_v55  ;;  %v13463_v14 = vld [vmem:[#allocation17 + $0x5a4] sm:$0xf]  ;;  %v10597_v18 = vld [vmem:[#allocation17 + $0x5b0] sm:$0xf0]  ;;  %v10472_v59 = vor.u32 %v13431_v7, %v10469_v2 }
 0x3e0   : > { %4349 = vmatpush.bf16.msra.mxu1 %v10008_v32  ;;  %4362 = vmatpush.bf16.msra.mxu2 %v10136_v27  ;;  %v13495_v40 = vld [vmem:[#allocation17 + $0x6a4] sm:$0xf]  ;;  %v10725_v56 = vld [vmem:[#allocation17 + $0x6b0] sm:$0xf0]  ;;  %v10600_v1 = vor.u32 %v13463_v14, %v10597_v18 }
 0x3e1   : > { %v13527_v44 = vld [vmem:[#allocation17 + $0x7a4] sm:$0xf]  ;;  %v10853_v46 = vld [vmem:[#allocation17 + $0x7b0] sm:$0xf0]  ;;  %v10728_v39 = vor.u32 %v13495_v40, %v10725_v56 }
 0x3e2   : > { %4375 = vmatpush.bf16.msra.mxu3 %v10264_v28  ;;  %4337 = vmatmul.bf16.vlgmr.msra.gmra.mxu0 %v16409_v50  ;;  %v13427_v3 = vld [vmem:[#allocation17 + $0x484] sm:$0xf]  ;;  %v10453_v6 = vld [vmem:[#allocation17 + $0x490] sm:$0xf0]  ;;  %v10856_v31 = vor.u32 %v13527_v44, %v10853_v46 }
 0x3e3   : > { %4381 = vmatpush.bf16.msrb.mxu0 %v10504_v24  ;;  %4363 = vmatmul.bf16.vlgmr.msra.gmra.mxu2 %v16407_v42  ;;  %v13459_v58 = vld [vmem:[#allocation17 + $0x584] sm:$0xf]  ;;  %v10581_v23 = vld [vmem:[#allocation17 + $0x590] sm:$0xf0]  ;;  %v10456_v54 = vor.u32 %v13427_v3, %v10453_v6  ;;  %v9995_v6 = vld [vmem:[#allocation17 + $0xe8] sm:$0xf] }
 0x3e4   : > { %4394 = vmatpush.bf16.msrb.mxu1 %v10632_v38  ;;  %4407 = vmatpush.bf16.msrb.mxu2 %v10760_v29  ;;  %v13491_v15 = vld [vmem:[#allocation17 + $0x684] sm:$0xf]  ;;  %v10709_v11 = vld [vmem:[#allocation17 + $0x690] sm:$0xf0]  ;;  %v10584_v49 = vor.u32 %v13459_v58, %v10581_v23  ;;  %v13314_v58 = vld [vmem:[#allocation17 + $0xf4] sm:$0xf0] }
 0x3e5   : > { %4376 = vmatmul.bf16.vlgmr.msra.gmra.mxu3 %v16415_v26  ;;  %4350 = vmatmul.bf16.vlgmr.msra.gmra.mxu1 %v16417_v63  ;;  %v13523_v48 = vld [vmem:[#allocation17 + $0x784] sm:$0xf]  ;;  %v10837_v16 = vld [vmem:[#allocation17 + $0x790] sm:$0xf0]  ;;  %v10712_v34 = vor.u32 %v13491_v15, %v10709_v11  ;;  %v13346_v15 = vld [vmem:[#allocation17 + $0x1f4] sm:$0xf0] }
 0x3e6   : > { %4420 = vmatpush.bf16.msrb.mxu3 %v10888_v37  ;;  %v13423_v33 = vld [vmem:[#allocation17 + $0x464] sm:$0xf]  ;;  %v10437_v35 = vld [vmem:[#allocation17 + $0x470] sm:$0xf0]  ;;  %v10840_v17 = vor.u32 %v13523_v48, %v10837_v16  ;;  %v10251_v11 = vld [vmem:[#allocation17 + $0x2e8] sm:$0xf] }
 0x3e7   : > { %4382 = vmatpush.bf16.msrb.mxu0 %v10488_v20  ;;  %v13455_v51 = vld [vmem:[#allocation17 + $0x564] sm:$0xf]  ;;  %v10565_v0 = vld [vmem:[#allocation17 + $0x570] sm:$0xf0]  ;;  %v10440_v22 = vor.u32 %v13423_v33, %v10437_v35  ;;  %v13378_v48 = vld [vmem:[#allocation17 + $0x2f4] sm:$0xf0]  ;;  %v9996_v35 = vor.u32 %v13314_v58, %v9995_v6 }
 0x3e8   : > { %4395 = vmatpush.bf16.msrb.mxu1 %v10616_v5  ;;  %4408 = vmatpush.bf16.msrb.mxu2 %v10744_v53  ;;  %v13487_v19 = vld [vmem:[#allocation17 + $0x664] sm:$0xf]  ;;  %v10693_v10 = vld [vmem:[#allocation17 + $0x670] sm:$0xf0]  ;;  %v10568_v57 = vor.u32 %v13455_v51, %v10565_v0  ;;  %v9979_v0 = vld [vmem:[#allocation17 + $0xc8] sm:$0xf] }
 0x3e9   : > { %v13519_v41 = vld [vmem:[#allocation17 + $0x764] sm:$0xf]  ;;  %v10821_v55 = vld [vmem:[#allocation17 + $0x770] sm:$0xf0]  ;;  %v10696_v36 = vor.u32 %v13487_v19, %v10693_v10  ;;  %v13310_v19 = vld [vmem:[#allocation17 + $0xd4] sm:$0xf0] }
 0x3ea   : > { %4421 = vmatpush.bf16.msrb.mxu3 %v10872_v21  ;;  %v13419_v32 = vld [vmem:[#allocation17 + $0x444] sm:$0xf]  ;;  %v10421_v27 = vld [vmem:[#allocation17 + $0x450] sm:$0xf0]  ;;  %v10824_v60 = vor.u32 %v13519_v41, %v10821_v55  ;;  %v10107_v10 = vld [vmem:[#allocation17 + $0x1c8] sm:$0xf] }
 0x3eb   : > { %4383 = vmatpush.bf16.msrb.mxu0 %v10472_v59  ;;  %v13451_v12 = vld [vmem:[#allocation17 + $0x544] sm:$0xf]  ;;  %v10549_v28 = vld [vmem:[#allocation17 + $0x550] sm:$0xf0]  ;;  %v10424_v52 = vor.u32 %v13419_v32, %v10421_v27  ;;  %v13342_v55 = vld [vmem:[#allocation17 + $0x1d4] sm:$0xf0]  ;;  %v9980_v27 = vor.u32 %v13310_v19, %v9979_v0 }
 0x3ec   : > { %4396 = vmatpush.bf16.msrb.mxu1 %v10600_v1  ;;  %4409 = vmatpush.bf16.msrb.mxu2 %v10728_v39  ;;  %v13483_v24 = vld [vmem:[#allocation17 + $0x644] sm:$0xf]  ;;  %v10677_v38 = vld [vmem:[#allocation17 + $0x650] sm:$0xf0]  ;;  %v10552_v8 = vor.u32 %v13451_v12, %v10549_v28  ;;  %v13406_v32 = vld [vmem:[#allocation17 + $0x3d4] sm:$0xf0]  ;;  %v10108_v12 = vor.u32 %v13342_v55, %v10107_v10 }
 0x3ed   : > { %v13515_v29 = vld [vmem:[#allocation17 + $0x744] sm:$0xf]  ;;  %v10805_v62 = vld [vmem:[#allocation17 + $0x750] sm:$0xf0]  ;;  %v10680_v37 = vor.u32 %v13483_v24, %v10677_v38  ;;  %v9963_v28 = vld [vmem:[#allocation17 + $0xa8] sm:$0xf] }
 0x3ee   : > { %4422 = vmatpush.bf16.msrb.mxu3 %v10856_v31  ;;  %v13415_v4 = vld [vmem:[#allocation17 + $0x424] sm:$0xf]  ;;  %v10405_v9 = vld [vmem:[#allocation17 + $0x430] sm:$0xf0]  ;;  %v10808_v13 = vor.u32 %v13515_v29, %v10805_v62  ;;  %v10123_v31 = vld [vmem:[#allocation17 + $0x1e8] sm:$0xf] }
 0x3ef   : > { %4384 = vmatpush.bf16.msrb.mxu0 %v10456_v54  ;;  %v13447_v25 = vld [vmem:[#allocation17 + $0x524] sm:$0xf]  ;;  %v10533_v43 = vld [vmem:[#allocation17 + $0x530] sm:$0xf0]  ;;  %v10408_v2 = vor.u32 %v13415_v4, %v10405_v9  ;;  %v10124_v51 = vor.u32 %v13346_v15, %v10123_v31  ;;  %v13306_v24 = vld [vmem:[#allocation17 + $0xb4] sm:$0xf0] }
 0x3f0   : > { %4397 = vmatpush.bf16.msrb.mxu1 %v10584_v49  ;;  %4410 = vmatpush.bf16.msrb.mxu2 %v10712_v34  ;;  %v13479_v20 = vld [vmem:[#allocation17 + $0x624] sm:$0xf]  ;;  %v10661_v5 = vld [vmem:[#allocation17 + $0x630] sm:$0xf0]  ;;  %v10536_v18 = vor.u32 %v13447_v25, %v10533_v43  ;;  %v10379_v49 = vld [vmem:[#allocation17 + $0x3e8] sm:$0xf]  ;;  %v9964_v9 = vor.u32 %v13306_v24, %v9963_v28 }
 0x3f1   : > { %v13511_v53 = vld [vmem:[#allocation17 + $0x724] sm:$0xf]  ;;  %v10789_v7 = vld [vmem:[#allocation17 + $0x730] sm:$0xf0]  ;;  %v10664_v40 = vor.u32 %v13479_v20, %v10661_v5  ;;  %v13410_v34 = vld [vmem:[#allocation17 + $0x3f4] sm:$0xf0] }
 0x3f2   : > { %4423 = vmatpush.bf16.msrb.mxu3 %v10840_v17  ;;  %v13411_v14 = vld [vmem:[#allocation17 + $0x404] sm:$0xf]  ;;  %v10389_v21 = vld [vmem:[#allocation17 + $0x410] sm:$0xf0]  ;;  %v10792_v59 = vor.u32 %v13511_v53, %v10789_v7  ;;  %v10252_v17 = vor.u32 %v13378_v48, %v10251_v11  ;;  %v10380_v41 = vor.u32 %v13410_v34, %v10379_v49  ;;  %v10091_v38 = vld [vmem:[#allocation17 + $0x1a8] sm:$0xf] }
 0x3f3   : > { %4385 = vmatpush.bf16.msrb.mxu0 %v10440_v22  ;;  %v13443_v56 = vld [vmem:[#allocation17 + $0x504] sm:$0xf]  ;;  %v10517_v44 = vld [vmem:[#allocation17 + $0x510] sm:$0xf0]  ;;  %v10392_v23 = vor.u32 %v13411_v14, %v10389_v21  ;;  %v10235_v22 = vld [vmem:[#allocation17 + $0x2c8] sm:$0xf] }
 0x3f4   : > { %4398 = vmatpush.bf16.msrb.mxu1 %v10568_v57  ;;  %4411 = vmatpush.bf16.msrb.mxu2 %v10696_v36  ;;  %v13475_v46 = vld [vmem:[#allocation17 + $0x604] sm:$0xf]  ;;  %v10645_v1 = vld [vmem:[#allocation17 + $0x610] sm:$0xf0]  ;;  %v10520_v16 = vor.u32 %v13443_v56, %v10517_v44  ;;  %v13374_v57 = vld [vmem:[#allocation17 + $0x2d4] sm:$0xf0] }
 0x3f5   : > { %v13507_v39 = vld [vmem:[#allocation17 + $0x704] sm:$0xf]  ;;  %v10773_v3 = vld [vmem:[#allocation17 + $0x710] sm:$0xf0]  ;;  %v10648_v54 = vor.u32 %v13475_v46, %v10645_v1  ;;  %v10363_v36 = vld [vmem:[#allocation17 + $0x3c8] sm:$0xf] }
 0x3f6   : > { %4424 = vmatpush.bf16.msrb.mxu3 %v10824_v60  ;;  %v10776_v33 = vor.u32 %v13507_v39, %v10773_v3  ;;  %v10236_v60 = vor.u32 %v13374_v57, %v10235_v22  ;;  %v10364_v29 = vor.u32 %v13406_v32, %v10363_v36  ;;  %v13338_v62 = vld [vmem:[#allocation17 + $0x1b4] sm:$0xf0]  ;;  %v9947_v43 = vld [vmem:[#allocation17 + $0x88] sm:$0xf] }
 0x3f7   : > { %4386 = vmatpush.bf16.msrb.mxu0 %v10424_v52  ;;  %v10219_v52 = vld [vmem:[#allocation17 + $0x2a8] sm:$0xf]  ;;  %v13402_v4 = vld [vmem:[#allocation17 + $0x3b4] sm:$0xf0]  ;;  %v10092_v25 = vor.u32 %v13338_v62, %v10091_v38 }
 0x3f8   : > { %4399 = vmatpush.bf16.msrb.mxu1 %v10552_v8  ;;  %4412 = vmatpush.bf16.msrb.mxu2 %v10680_v37  ;;  %v13370_v8 = vld [vmem:[#allocation17 + $0x2b4] sm:$0xf0]  ;;  %v10347_v37 = vld [vmem:[#allocation17 + $0x3a8] sm:$0xf] }
 0x3f9   : > { %v13302_v20 = vld [vmem:[#allocation17 + $0x94] sm:$0xf0]  ;;  %v10075_v5 = vld [vmem:[#allocation17 + $0x188] sm:$0xf]  ;;  %v10348_v53 = vor.u32 %v13402_v4, %v10347_v37 }
 0x3fa   : > { %4425 = vmatpush.bf16.msrb.mxu3 %v10808_v13  ;;  %v10220_v13 = vor.u32 %v13370_v8, %v10219_v52  ;;  %v13334_v7 = vld [vmem:[#allocation17 + $0x194] sm:$0xf0]  ;;  %v10331_v21 = vld [vmem:[#allocation17 + $0x388] sm:$0xf] }
 0x3fb   : > { %4387 = vmatpush.bf16.msrb.mxu0 %v10408_v2  ;;  %v10203_v2 = vld [vmem:[#allocation17 + $0x288] sm:$0xf]  ;;  %v13366_v14 = vld [vmem:[#allocation17 + $0x294] sm:$0xf0]  ;;  %v10076_v56 = vor.u32 %v13334_v7, %v10075_v5 }
 0x3fc   : > { %4400 = vmatpush.bf16.msrb.mxu1 %v10536_v18  ;;  %4413 = vmatpush.bf16.msrb.mxu2 %v10664_v40  ;;  %v13398_v18 = vld [vmem:[#allocation17 + $0x394] sm:$0xf0]  ;;  %v9948_v40 = vor.u32 %v13302_v20, %v9947_v43  ;;  %v10204_v44 = vor.u32 %v13366_v14, %v10203_v2  ;;  %v9931_v46 = vld [vmem:[#allocation17 + $0x68] sm:$0xf] }
 0x3fd   : > { %v10059_v1 = vld [vmem:[#allocation17 + $0x168] sm:$0xf]  ;;  %v10332_v39 = vor.u32 %v13398_v18, %v10331_v21  ;;  %v13330_v3 = vld [vmem:[#allocation17 + $0x174] sm:$0xf0] }
 0x3fe   : > { %4426 = vmatpush.bf16.msrb.mxu3 %v10792_v59  ;;  %v13298_v59 = vld [vmem:[#allocation17 + $0x74] sm:$0xf0]  ;;  %v10187_v6 = vld [vmem:[#allocation17 + $0x268] sm:$0xf]  ;;  %v10060_v11 = vor.u32 %v13330_v3, %v10059_v1 }
 0x3ff   : > { %4388 = vmatpush.bf16.msrb.mxu0 %v10392_v23  ;;  %v13362_v58 = vld [vmem:[#allocation17 + $0x274] sm:$0xf0]  ;;  %v10315_v31 = vld [vmem:[#allocation17 + $0x368] sm:$0xf]  ;;  %v9932_v15 = vor.u32 %v13298_v59, %v9931_v46 }
 0x400   : > { %4401 = vmatpush.bf16.msrb.mxu1 %v10520_v16  ;;  %4414 = vmatpush.bf16.msrb.mxu2 %v10648_v54  ;;  %v13394_v23 = vld [vmem:[#allocation17 + $0x374] sm:$0xf0]  ;;  %v10188_v48 = vor.u32 %v13362_v58, %v10187_v6  ;;  %v9915_v16 = vld [vmem:[#allocation17 + $0x48] sm:$0xf] }
 0x401   : > { %v13294_v54 = vld [vmem:[#allocation17 + $0x54] sm:$0xf0]  ;;  %v10043_v49 = vld [vmem:[#allocation17 + $0x148] sm:$0xf]  ;;  %v10316_v34 = vor.u32 %v13394_v23, %v10315_v31 }
 0x402   : > { %4427 = vmatpush.bf16.msrb.mxu3 %v10776_v33  ;;  %4389 = vmatmul.bf16.vlgmr.msrb.gmra.mxu0 %v16427_v30  ;;  %v13326_v33 = vld [vmem:[#allocation17 + $0x154] sm:$0xf0]  ;;  %v9916_v19 = vor.u32 %v13294_v54, %v9915_v16  ;;  %v9899_v55 = vld [vmem:[#allocation17 + $0x28] sm:$0xf] }
 0x403   : > { %4433 = vmatpush.bf16.msra.mxu0 %v9996_v35  ;;  %4415 = vmatmul.bf16.vlgmr.msrb.gmra.mxu2 %v16425_v47  ;;  %v10171_v35 = vld [vmem:[#allocation17 + $0x248] sm:$0xf]  ;;  %v13390_v0 = vld [vmem:[#allocation17 + $0x354] sm:$0xf0]  ;;  %v10044_v10 = vor.u32 %v13326_v33, %v10043_v49 }
 0x404   : > { %4446 = vmatpush.bf16.msra.mxu1 %v10124_v51  ;;  %4459 = vmatpush.bf16.msra.mxu2 %v10252_v17  ;;  %v13358_v51 = vld [vmem:[#allocation17 + $0x254] sm:$0xf0]  ;;  %v10299_v17 = vld [vmem:[#allocation17 + $0x348] sm:$0xf] }
 0x405   : > { %4428 = vmatmul.bf16.vlgmr.msrb.gmra.mxu3 %v16429_v45  ;;  %4402 = vmatmul.bf16.vlgmr.msrb.gmra.mxu1 %v16431_v61  ;;  %v13290_v22 = vld [vmem:[#allocation17 + $0x34] sm:$0xf0]  ;;  %v10027_v57 = vld [vmem:[#allocation17 + $0x128] sm:$0xf]  ;;  %v10300_v36 = vor.u32 %v13390_v0, %v10299_v17 }
 0x406   : > { %4472 = vmatpush.bf16.msra.mxu3 %v10380_v41  ;;  %v10172_v41 = vor.u32 %v13358_v51, %v10171_v35  ;;  %v13322_v32 = vld [vmem:[#allocation17 + $0x134] sm:$0xf0]  ;;  %v9900_v24 = vor.u32 %v13290_v22, %v9899_v55  ;;  %v9883_v38 = vld [vmem:[#allocation17 + $0x8] sm:$0xf] }
 0x407   : > { %4434 = vmatpush.bf16.msra.mxu0 %v9980_v27  ;;  %v10155_v27 = vld [vmem:[#allocation17 + $0x228] sm:$0xf]  ;;  %v13386_v28 = vld [vmem:[#allocation17 + $0x334] sm:$0xf0]  ;;  %v10028_v62 = vor.u32 %v13322_v32, %v10027_v57 }
 0x408   : > { %4447 = vmatpush.bf16.msra.mxu1 %v10108_v12  ;;  %4460 = vmatpush.bf16.msra.mxu2 %v10236_v60  ;;  %v13354_v12 = vld [vmem:[#allocation17 + $0x234] sm:$0xf0]  ;;  %v10283_v60 = vld [vmem:[#allocation17 + $0x328] sm:$0xf] }
 0x409   : > { %v10156_v52 = vor.u32 %v13354_v12, %v10155_v27  ;;  %v10011_v8 = vld [vmem:[#allocation17 + $0x108] sm:$0xf]  ;;  %v13318_v37 = vld [vmem:[#allocation17 + $0x114] sm:$0xf0] }
 0x40a   : > { %4473 = vmatpush.bf16.msra.mxu3 %v10364_v29  ;;  %v13286_v29 = vld [vmem:[#allocation17 + $0x14] sm:$0xf0]  ;;  %v10139_v4 = vld [vmem:[#allocation17 + $0x208] sm:$0xf]  ;;  %v10012_v18 = vor.u32 %v13318_v37, %v10011_v8 }
 0x40b   : > { %4435 = vmatpush.bf16.msra.mxu0 %v9964_v9  ;;  %v10284_v9 = vor.u32 %v13386_v28, %v10283_v60  ;;  %v13382_v43 = vld [vmem:[#allocation17 + $0x314] sm:$0xf0]  ;;  %v10507_v20 = vld [vmem:[#allocation17 + $0x4e8] sm:$0xf]  ;;  %v9884_v7 = vor.u32 %v13286_v29, %v9883_v38 }
 0x40c   : > { %4448 = vmatpush.bf16.msra.mxu1 %v10092_v25  ;;  %4461 = vmatpush.bf16.msra.mxu2 %v10220_v13  ;;  %v13350_v25 = vld [vmem:[#allocation17 + $0x214] sm:$0xf0]  ;;  %v10267_v13 = vld [vmem:[#allocation17 + $0x308] sm:$0xf] }
 0x40d   : > { %v13442_v5 = vld [vmem:[#allocation17 + $0x4f4] sm:$0xf0]  ;;  %v10763_v14 = vld [vmem:[#allocation17 + $0x6e8] sm:$0xf]  ;;  %v10268_v46 = vor.u32 %v13382_v43, %v10267_v13 }
 0x40e   : > { %4474 = vmatpush.bf16.msra.mxu3 %v10348_v53  ;;  %v10635_v53 = vld [vmem:[#allocation17 + $0x5e8] sm:$0xf]  ;;  %v13474_v2 = vld [vmem:[#allocation17 + $0x5f4] sm:$0xf0]  ;;  %v10508_v59 = vor.u32 %v13442_v5, %v10507_v20 }
 0x40f   : > { %4436 = vmatpush.bf16.msra.mxu0 %v9948_v40  ;;  %v13506_v21 = vld [vmem:[#allocation17 + $0x6f4] sm:$0xf0]  ;;  %v10140_v40 = vor.u32 %v13350_v25, %v10139_v4  ;;  %v10636_v1 = vor.u32 %v13474_v2, %v10635_v53  ;;  %v10491_v3 = vld [vmem:[#allocation17 + $0x4c8] sm:$0xf] }
 0x410   : > { %4449 = vmatpush.bf16.msra.mxu1 %v10076_v56  ;;  %4462 = vmatpush.bf16.msra.mxu2 %v10204_v44  ;;  %v10891_v56 = vld [vmem:[#allocation17 + $0x7e8] sm:$0xf]  ;;  %v13538_v44 = vld [vmem:[#allocation17 + $0x7f4] sm:$0xf0] }
 0x411   : > { %v13438_v6 = vld [vmem:[#allocation17 + $0x4d4] sm:$0xf0]  ;;  %v10619_v58 = vld [vmem:[#allocation17 + $0x5c8] sm:$0xf]  ;;  %v10892_v31 = vor.u32 %v13538_v44, %v10891_v56 }
 0x412   : > { %4475 = vmatpush.bf16.msra.mxu3 %v10332_v39  ;;  %v10764_v39 = vor.u32 %v13506_v21, %v10763_v14  ;;  %v13470_v23 = vld [vmem:[#allocation17 + $0x5d4] sm:$0xf0]  ;;  %v10492_v54 = vor.u32 %v13438_v6, %v10491_v3  ;;  %v10475_v33 = vld [vmem:[#allocation17 + $0x4a8] sm:$0xf] }
 0x413   : > { %4437 = vmatpush.bf16.msra.mxu0 %v9932_v15  ;;  %v10747_v15 = vld [vmem:[#allocation17 + $0x6c8] sm:$0xf]  ;;  %v13534_v16 = vld [vmem:[#allocation17 + $0x7d4] sm:$0xf0]  ;;  %v10620_v49 = vor.u32 %v13470_v23, %v10619_v58 }
 0x414   : > { %4450 = vmatpush.bf16.msra.mxu1 %v10060_v11  ;;  %4463 = vmatpush.bf16.msra.mxu2 %v10188_v48  ;;  %v13502_v11 = vld [vmem:[#allocation17 + $0x6d4] sm:$0xf0]  ;;  %v10875_v48 = vld [vmem:[#allocation17 + $0x7c8] sm:$0xf] }
 0x415   : > { %v13434_v35 = vld [vmem:[#allocation17 + $0x4b4] sm:$0xf0]  ;;  %v10603_v51 = vld [vmem:[#allocation17 + $0x5a8] sm:$0xf]  ;;  %v10876_v17 = vor.u32 %v13534_v16, %v10875_v48 }
 0x416   : > { %4476 = vmatpush.bf16.msra.mxu3 %v10316_v34  ;;  %v10748_v34 = vor.u32 %v13502_v11, %v10747_v15  ;;  %v13466_v0 = vld [vmem:[#allocation17 + $0x5b4] sm:$0xf0]  ;;  %v10476_v22 = vor.u32 %v13434_v35, %v10475_v33  ;;  %v10459_v32 = vld [vmem:[#allocation17 + $0x488] sm:$0xf] }
 0x417   : > { %4438 = vmatpush.bf16.msra.mxu0 %v9916_v19  ;;  %v10731_v19 = vld [vmem:[#allocation17 + $0x6a8] sm:$0xf]  ;;  %v13530_v55 = vld [vmem:[#allocation17 + $0x7b4] sm:$0xf0]  ;;  %v10604_v57 = vor.u32 %v13466_v0, %v10603_v51 }
 0x418   : > { %4451 = vmatpush.bf16.msra.mxu1 %v10044_v10  ;;  %4464 = vmatpush.bf16.msra.mxu2 %v10172_v41  ;;  %v13498_v10 = vld [vmem:[#allocation17 + $0x6b4] sm:$0xf0]  ;;  %v10859_v41 = vld [vmem:[#allocation17 + $0x7a8] sm:$0xf] }
 0x419   : > { %v13430_v27 = vld [vmem:[#allocation17 + $0x494] sm:$0xf0]  ;;  %v10587_v12 = vld [vmem:[#allocation17 + $0x588] sm:$0xf]  ;;  %v10860_v60 = vor.u32 %v13530_v55, %v10859_v41 }
 0x41a   : > { %4477 = vmatpush.bf16.msra.mxu3 %v10300_v36  ;;  %v10732_v36 = vor.u32 %v13498_v10, %v10731_v19  ;;  %v13462_v28 = vld [vmem:[#allocation17 + $0x594] sm:$0xf0]  ;;  %v10843_v29 = vld [vmem:[#allocation17 + $0x788] sm:$0xf] }
 0x41b   : > { %4439 = vmatpush.bf16.msra.mxu0 %v9900_v24  ;;  %v10715_v24 = vld [vmem:[#allocation17 + $0x688] sm:$0xf]  ;;  %v13494_v38 = vld [vmem:[#allocation17 + $0x694] sm:$0xf0]  ;;  %v10588_v8 = vor.u32 %v13462_v28, %v10587_v12 }
 0x41c   : > { %4452 = vmatpush.bf16.msra.mxu1 %v10028_v62  ;;  %4465 = vmatpush.bf16.msra.mxu2 %v10156_v52  ;;  %v13526_v62 = vld [vmem:[#allocation17 + $0x794] sm:$0xf0]  ;;  %v10460_v52 = vor.u32 %v13430_v27, %v10459_v32  ;;  %v10716_v37 = vor.u32 %v13494_v38, %v10715_v24  ;;  %v10443_v4 = vld [vmem:[#allocation17 + $0x468] sm:$0xf] }
 0x41d   : > { %v10571_v25 = vld [vmem:[#allocation17 + $0x568] sm:$0xf]  ;;  %v10844_v13 = vor.u32 %v13526_v62, %v10843_v29  ;;  %v13458_v43 = vld [vmem:[#allocation17 + $0x574] sm:$0xf0]  ;;  %v13312_v62 = vld [vmem:[#allocation17 + $0xec] sm:$0xf] }
 0x41e   : > { %4478 = vmatpush.bf16.msra.mxu3 %v10284_v9  ;;  %v13426_v9 = vld [vmem:[#allocation17 + $0x474] sm:$0xf0]  ;;  %v10699_v20 = vld [vmem:[#allocation17 + $0x668] sm:$0xf]  ;;  %v10572_v21 = vor.u32 %v13458_v43, %v10571_v25  ;;  %v10125_v25 = vld [vmem:[#allocation17 + $0x1f8] sm:$0xf0] }
 0x41f   : > { %4440 = vmatpush.bf16.msra.mxu0 %v9884_v7  ;;  %v13490_v5 = vld [vmem:[#allocation17 + $0x674] sm:$0xf0]  ;;  %v10827_v53 = vld [vmem:[#allocation17 + $0x768] sm:$0xf]  ;;  %v10444_v2 = vor.u32 %v13426_v9, %v10443_v4  ;;  %v10253_v43 = vld [vmem:[#allocation17 + $0x2f8] sm:$0xf0] }
 0x420   : > { %4453 = vmatpush.bf16.msra.mxu1 %v10012_v18  ;;  %4466 = vmatpush.bf16.msra.mxu2 %v10140_v40  ;;  %v13522_v7 = vld [vmem:[#allocation17 + $0x774] sm:$0xf0]  ;;  %v10700_v18 = vor.u32 %v13490_v5, %v10699_v20  ;;  %v10427_v40 = vld [vmem:[#allocation17 + $0x448] sm:$0xf] }
 0x421   : > { %v13422_v56 = vld [vmem:[#allocation17 + $0x454] sm:$0xf0]  ;;  %v10555_v44 = vld [vmem:[#allocation17 + $0x548] sm:$0xf] }
 0x422   : > { %4479 = vmatpush.bf16.msra.mxu3 %v10268_v46  ;;  %4441 = vmatmul.bf16.vlgmr.msra.gmra.mxu0 %v16409_v50  ;;  %v10828_v46 = vor.u32 %v13522_v7, %v10827_v53  ;;  %v10811_v3 = vld [vmem:[#allocation17 + $0x748] sm:$0xf]  ;;  %v13518_v6 = vld [vmem:[#allocation17 + $0x754] sm:$0xf0]  ;;  %v13408_v53 = vld [vmem:[#allocation17 + $0x3ec] sm:$0xf] }
 0x423   : > { %4485 = vmatpush.bf16.msrb.mxu0 %v10508_v59  ;;  %4467 = vmatmul.bf16.vlgmr.msra.gmra.mxu2 %v16407_v42  ;;  %v13454_v59 = vld [vmem:[#allocation17 + $0x554] sm:$0xf0]  ;;  %v10411_v48 = vld [vmem:[#allocation17 + $0x428] sm:$0xf]  ;;  %v10381_v7 = vld [vmem:[#allocation17 + $0x3f8] sm:$0xf0] }
 0x424   : > { %4498 = vmatpush.bf16.msrb.mxu1 %v10636_v1  ;;  %4511 = vmatpush.bf16.msrb.mxu2 %v10764_v39  ;;  %v10683_v1 = vld [vmem:[#allocation17 + $0x648] sm:$0xf]  ;;  %v13486_v39 = vld [vmem:[#allocation17 + $0x654] sm:$0xf0]  ;;  %v10556_v15 = vor.u32 %v13454_v59, %v10555_v44  ;;  %v9981_v44 = vld [vmem:[#allocation17 + $0xd8] sm:$0xf0]  ;;  %v10384_v59 = vor.u32 %v13408_v53, %v10381_v7 }
 0x425   : > { %4480 = vmatmul.bf16.vlgmr.msra.gmra.mxu3 %v16415_v26  ;;  %4454 = vmatmul.bf16.vlgmr.msra.gmra.mxu1 %v16417_v63  ;;  %v10684_v11 = vor.u32 %v13486_v39, %v10683_v1  ;;  %v13418_v16 = vld [vmem:[#allocation17 + $0x434] sm:$0xf0]  ;;  %v10667_v35 = vld [vmem:[#allocation17 + $0x628] sm:$0xf]  ;;  %v10109_v1 = vld [vmem:[#allocation17 + $0x1d8] sm:$0xf0] }
 0x426   : > { %4524 = vmatpush.bf16.msrb.mxu3 %v10892_v31  ;;  %v10428_v31 = vor.u32 %v13422_v56, %v10427_v40  ;;  %v13450_v33 = vld [vmem:[#allocation17 + $0x534] sm:$0xf0]  ;;  %v10795_v0 = vld [vmem:[#allocation17 + $0x728] sm:$0xf]  ;;  %v10412_v10 = vor.u32 %v13418_v16, %v10411_v48  ;;  %v13308_v56 = vld [vmem:[#allocation17 + $0xcc] sm:$0xf] }
 0x427   : > { %4486 = vmatpush.bf16.msrb.mxu0 %v10492_v54  ;;  %v10539_v54 = vld [vmem:[#allocation17 + $0x528] sm:$0xf]  ;;  %v13482_v51 = vld [vmem:[#allocation17 + $0x634] sm:$0xf0]  ;;  %v13372_v39 = vld [vmem:[#allocation17 + $0x2cc] sm:$0xf] }
 0x428   : > { %4499 = vmatpush.bf16.msrb.mxu1 %v10620_v49  ;;  %4512 = vmatpush.bf16.msrb.mxu2 %v10748_v34  ;;  %v10812_v34 = vor.u32 %v13518_v6, %v10811_v3  ;;  %v13514_v19 = vld [vmem:[#allocation17 + $0x734] sm:$0xf0]  ;;  %v10395_v41 = vld [vmem:[#allocation17 + $0x408] sm:$0xf]  ;;  %v10237_v3 = vld [vmem:[#allocation17 + $0x2d8] sm:$0xf0] }
 0x429   : > { %v13414_v55 = vld [vmem:[#allocation17 + $0x414] sm:$0xf0]  ;;  %v10523_v32 = vld [vmem:[#allocation17 + $0x508] sm:$0xf]  ;;  %v13404_v6 = vld [vmem:[#allocation17 + $0x3cc] sm:$0xf] }
 0x42a   : > { %4525 = vmatpush.bf16.msrb.mxu3 %v10876_v17  ;;  %v4234_v14 = vpop.f32.mrf.mxu0  ;;  %v13446_v27 = vld [vmem:[#allocation17 + $0x514] sm:$0xf0]  ;;  %v10651_v12 = vld [vmem:[#allocation17 + $0x608] sm:$0xf]  ;;  %v10396_v9 = vor.u32 %v13414_v55, %v10395_v41  ;;  %v13304_v48 = vld [vmem:[#allocation17 + $0xac] sm:$0xf] }
 0x42b   : > { %4487 = vmatpush.bf16.msrb.mxu0 %v10476_v22  ;;  %v4247_v58 = vpop.f32.mrf.mxu1  ;;  %v13478_v28 = vld [vmem:[#allocation17 + $0x614] sm:$0xf0]  ;;  %v10779_v24 = vld [vmem:[#allocation17 + $0x708] sm:$0xf]  ;;  %v10524_v20 = vor.u32 %v13446_v27, %v10523_v32  ;;  %v9965_v16 = vld [vmem:[#allocation17 + $0xb8] sm:$0xf0] }
 0x42c   : > { %4500 = vmatpush.bf16.msrb.mxu1 %v10604_v57  ;;  %4513 = vmatpush.bf16.msrb.mxu2 %v10732_v36  ;;  %v4248_v23 = vadd.f32 %v4247_v58, %v4234_v14  ;;  %v10540_v57 = vor.u32 %v13450_v33, %v10539_v54  ;;  %v10668_v36 = vor.u32 %v13482_v51, %v10667_v35  ;;  %v13510_v38 = vld [vmem:[#allocation17 + $0x714] sm:$0xf0]  ;;  %v10365_v58 = vld [vmem:[#allocation17 + $0x3d8] sm:$0xf0]  ;;  %v13336_v54 = vld [vmem:[#allocation17 + $0x1ac] sm:$0xf] }
 0x42d   : > { %v10652_v5 = vor.u32 %v13478_v28, %v10651_v12  ;;  %v10780_v14 = vor.u32 %v13510_v38, %v10779_v24  ;;  %v13368_v33 = vld [vmem:[#allocation17 + $0x2ac] sm:$0xf]  ;;  %v10221_v35 = vld [vmem:[#allocation17 + $0x2b8] sm:$0xf0] }
 0x42e   : > { %4526 = vmatpush.bf16.msrb.mxu3 %v10860_v60  ;;  %v10796_v60 = vor.u32 %v13514_v19, %v10795_v0  ;;  %v13400_v51 = vld [vmem:[#allocation17 + $0x3ac] sm:$0xf]  ;;  %v9968_v0 = vor.u32 %v13304_v48, %v9965_v16  ;;  %v9949_v55 = vld [vmem:[#allocation17 + $0x98] sm:$0xf0] }
 0x42f   : > { %4488 = vmatpush.bf16.msrb.mxu0 %v10460_v52  ;;  %v9997_v52 = vld [vmem:[#allocation17 + $0xf8] sm:$0xf0]  ;;  %v13300_v41 = vld [vmem:[#allocation17 + $0x8c] sm:$0xf] }
 0x430   : > { %4501 = vmatpush.bf16.msrb.mxu1 %v10588_v8  ;;  %4514 = vmatpush.bf16.msrb.mxu2 %v10716_v37  ;;  %v4260_v49 = vpop.f32.mrf.mxu2  ;;  %v13344_v8 = vld [vmem:[#allocation17 + $0x1ec] sm:$0xf]  ;;  %v10205_v27 = vld [vmem:[#allocation17 + $0x298] sm:$0xf0]  ;;  %v9952_v28 = vor.u32 %v13300_v41, %v9949_v55 }
 0x431   : > { %v4261_v17 = vadd.f32 %v4260_v49, %v4248_v23  ;;  %v10368_v49 = vor.u32 %v13404_v6, %v10365_v58  ;;  %v13364_v32 = vld [vmem:[#allocation17 + $0x28c] sm:$0xf]  ;;  %v10317_v53 = vld [vmem:[#allocation17 + $0x378] sm:$0xf0] }
 0x432   : > { %4527 = vmatpush.bf16.msrb.mxu3 %v10844_v13  ;;  %v4236_v22 = vpop.f32.mrf.mxu0  ;;  %v4273_v29 = vpop.f32.mrf.mxu3  ;;  %v13376_v13 = vld [vmem:[#allocation17 + $0x2ec] sm:$0xf]  ;;  %v10301_v58 = vld [vmem:[#allocation17 + $0x358] sm:$0xf0] }
 0x433   : > { %4489 = vmatpush.bf16.msrb.mxu0 %v10444_v2  ;;  %v16449_v37 = vadd.f32 %v4273_v29, %v4261_v17  ;;  %v4249_v4 = vpop.f32.mrf.mxu1  ;;  %v10256_v40 = vor.u32 %v13376_v13, %v10253_v43  ;;  %v10349_v17 = vld [vmem:[#allocation17 + $0x3b8] sm:$0xf0]  ;;  %v13332_v22 = vld [vmem:[#allocation17 + $0x18c] sm:$0xf]  ;;  %v10208_v29 = vor.u32 %v13364_v32, %v10205_v27 }
 0x434   : > { %4502 = vmatpush.bf16.msrb.mxu1 %v10572_v21  ;;  %4515 = vmatpush.bf16.msrb.mxu2 %v10700_v18  ;;  %v10000_v21 = vor.u32 %v13312_v62, %v9997_v52  ;;  %v10128_v18 = vor.u32 %v13344_v8, %v10125_v25  ;;  %v13396_v12 = vld [vmem:[#allocation17 + $0x38c] sm:$0xf]  ;;  %v9933_v52 = vld [vmem:[#allocation17 + $0x78] sm:$0xf0] }
 0x435   : > { %v13296_v62 = vld [vmem:[#allocation17 + $0x6c] sm:$0xf]  ;;  %v10061_v13 = vld [vmem:[#allocation17 + $0x178] sm:$0xf0] }
 0x436   : > { %4528 = vmatpush.bf16.msrb.mxu3 %v10828_v46  ;;  %v13340_v46 = vld [vmem:[#allocation17 + $0x1cc] sm:$0xf]  ;;  %v9885_v55 = vld [vmem:[#allocation17 + $0x18] sm:$0xf0] }
 0x437   : > { %4490 = vmatpush.bf16.msrb.mxu0 %v10428_v31  ;;  %v9984_v31 = vor.u32 %v13308_v56, %v9981_v44  ;;  %v13328_v8 = vld [vmem:[#allocation17 + $0x16c] sm:$0xf]  ;;  %v10013_v32 = vld [vmem:[#allocation17 + $0x118] sm:$0xf0] }
 0x438   : > { %4503 = vmatpush.bf16.msrb.mxu1 %v10556_v15  ;;  %4516 = vmatpush.bf16.msrb.mxu2 %v10684_v11  ;;  %v4262_v2 = vpop.f32.mrf.mxu2  ;;  %v10112_v15 = vor.u32 %v13340_v46, %v10109_v1  ;;  %v10240_v11 = vor.u32 %v13372_v39, %v10237_v3  ;;  %v13360_v43 = vld [vmem:[#allocation17 + $0x26c] sm:$0xf]  ;;  %v10045_v46 = vld [vmem:[#allocation17 + $0x158] sm:$0xf0] }
 0x439   : > { %v9936_v2 = vor.u32 %v13296_v62, %v9933_v52  ;;  %v13324_v56 = vld [vmem:[#allocation17 + $0x14c] sm:$0xf]  ;;  %v10173_v1 = vld [vmem:[#allocation17 + $0x258] sm:$0xf0] }
 0x43a   : > { %4529 = vmatpush.bf16.msrb.mxu3 %v10812_v34  ;;  %v4275_v23 = vpop.f32.mrf.mxu3  ;;  %v10093_v34 = vld [vmem:[#allocation17 + $0x1b8] sm:$0xf0]  ;;  %v13388_v6 = vld [vmem:[#allocation17 + $0x34c] sm:$0xf] }
 0x43b   : > { %4491 = vmatpush.bf16.msrb.mxu0 %v10412_v10  ;;  %v10096_v19 = vor.u32 %v13336_v54, %v10093_v34  ;;  %v10224_v10 = vor.u32 %v13368_v33, %v10221_v35  ;;  %v13288_v16 = vld [vmem:[#allocation17 + $0x2c] sm:$0xf]  ;;  %v9901_v54 = vld [vmem:[#allocation17 + $0x38] sm:$0xf0]  ;;  %v10304_v33 = vor.u32 %v13388_v6, %v10301_v58 }
 0x43c   : > { %4504 = vmatpush.bf16.msrb.mxu1 %v10540_v57  ;;  %4517 = vmatpush.bf16.msrb.mxu2 %v10668_v36  ;;  %v10352_v57 = vor.u32 %v13400_v51, %v10349_v17  ;;  %v10077_v36 = vld [vmem:[#allocation17 + $0x198] sm:$0xf0]  ;;  %v13352_v51 = vld [vmem:[#allocation17 + $0x22c] sm:$0xf] }
 0x43d   : > { %v10080_v38 = vor.u32 %v13332_v22, %v10077_v36  ;;  %v10029_v35 = vld [vmem:[#allocation17 + $0x138] sm:$0xf0]  ;;  %v13284_v41 = vld [vmem:[#allocation17 + $0xc] sm:$0xf] }
 0x43e   : > { %4530 = vmatpush.bf16.msrb.mxu3 %v10796_v60  ;;  %v10333_v60 = vld [vmem:[#allocation17 + $0x398] sm:$0xf0]  ;;  %v13316_v36 = vld [vmem:[#allocation17 + $0x10c] sm:$0xf] }
 0x43f   : > { %4492 = vmatpush.bf16.msrb.mxu0 %v10396_v9  ;;  %v4286_v24 = vpop.f32.mrf.mxu0  ;;  %v10336_v25 = vor.u32 %v13396_v12, %v10333_v60  ;;  %v10157_v17 = vld [vmem:[#allocation17 + $0x238] sm:$0xf0]  ;;  %v13348_v27 = vld [vmem:[#allocation17 + $0x20c] sm:$0xf] }
 0x440   : > { %4505 = vmatpush.bf16.msrb.mxu1 %v10524_v20  ;;  %4518 = vmatpush.bf16.msrb.mxu2 %v10652_v5  ;;  %v4287_v4 = vadd.f32 %v4286_v24, %v16449_v37  ;;  %v10189_v20 = vld [vmem:[#allocation17 + $0x278] sm:$0xf0]  ;;  %v13392_v5 = vld [vmem:[#allocation17 + $0x36c] sm:$0xf] }
 0x441   : > { %v10320_v37 = vor.u32 %v13392_v5, %v10317_v53  ;;  %v13380_v24 = vld [vmem:[#allocation17 + $0x30c] sm:$0xf]  ;;  %v10509_v52 = vld [vmem:[#allocation17 + $0x4f8] sm:$0xf0] }
 0x442   : > { %4531 = vmatpush.bf16.msrb.mxu3 %v10780_v14  ;;  %4493 = vmatmul.bf16.vlgmr.msrb.gmra.mxu0 %v16427_v30  ;;  %v4299_v9 = vpop.f32.mrf.mxu1  ;;  %v10064_v14 = vor.u32 %v13328_v8, %v10061_v13  ;;  %v13440_v62 = vld [vmem:[#allocation17 + $0x4ec] sm:$0xf]  ;;  %v10765_v13 = vld [vmem:[#allocation17 + $0x6f8] sm:$0xf0] }
 0x443   : > { %4537 = vmatpush.bf16.msra.mxu0 %v10000_v21  ;;  %4519 = vmatmul.bf16.vlgmr.msrb.gmra.mxu2 %v16425_v47  ;;  %v4300_v7 = vadd.f32 %v4299_v9, %v4287_v4  ;;  %v10192_v21 = vor.u32 %v13360_v43, %v10189_v20  ;;  %v13472_v8 = vld [vmem:[#allocation17 + $0x5ec] sm:$0xf]  ;;  %v9888_v4 = vor.u32 %v13284_v41, %v9885_v55  ;;  %v10637_v9 = vld [vmem:[#allocation17 + $0x5f8] sm:$0xf0] }
 0x444   : > { %4550 = vmatpush.bf16.msra.mxu1 %v10128_v18  ;;  %4563 = vmatpush.bf16.msra.mxu2 %v10256_v40  ;;  %v13292_v18 = vld [vmem:[#allocation17 + $0x4c] sm:$0xf]  ;;  %v9917_v40 = vld [vmem:[#allocation17 + $0x58] sm:$0xf0]  ;;  %v10016_v43 = vor.u32 %v13316_v36, %v10013_v32 }
 0x445   : > { %4532 = vmatmul.bf16.vlgmr.msrb.gmra.mxu3 %v16429_v45  ;;  %4506 = vmatmul.bf16.vlgmr.msrb.gmra.mxu1 %v16431_v61  ;;  %v13536_v5 = vld [vmem:[#allocation17 + $0x7ec] sm:$0xf]  ;;  %v10893_v53 = vld [vmem:[#allocation17 + $0x7f8] sm:$0xf0] }
 0x446   : > { %4576 = vmatpush.bf16.msra.mxu3 %v10384_v59  ;;  %v4312_v44 = vpop.f32.mrf.mxu2  ;;  %v13356_v59 = vld [vmem:[#allocation17 + $0x24c] sm:$0xf]  ;;  %v10589_v41 = vld [vmem:[#allocation17 + $0x598] sm:$0xf0] }
 0x447   : > { %4538 = vmatpush.bf16.msra.mxu0 %v9984_v31  ;;  %v4313_v39 = vadd.f32 %v4312_v44, %v4300_v7  ;;  %v9920_v31 = vor.u32 %v13292_v18, %v9917_v40  ;;  %v10176_v48 = vor.u32 %v13356_v59, %v10173_v1  ;;  %v13436_v18 = vld [vmem:[#allocation17 + $0x4cc] sm:$0xf]  ;;  %v10493_v40 = vld [vmem:[#allocation17 + $0x4d8] sm:$0xf0]  ;;  %v10896_v44 = vor.u32 %v13536_v5, %v10893_v53 }
 0x448   : > { %4551 = vmatpush.bf16.msra.mxu1 %v10112_v15  ;;  %4564 = vmatpush.bf16.msra.mxu2 %v10240_v11  ;;  %v4325_v3 = vpop.f32.mrf.mxu3  ;;  %v4288_v15 = vpop.f32.mrf.mxu0  ;;  %v10048_v11 = vor.u32 %v13324_v56, %v10045_v46  ;;  %v13468_v56 = vld [vmem:[#allocation17 + $0x5cc] sm:$0xf]  ;;  %v10749_v59 = vld [vmem:[#allocation17 + $0x6d8] sm:$0xf0] }
 0x449   : > { %v16456_v23 = vadd.f32 %v4325_v3, %v4313_v39  ;;  %v13500_v46 = vld [vmem:[#allocation17 + $0x6cc] sm:$0xf]  ;;  %v10877_v39 = vld [vmem:[#allocation17 + $0x7d8] sm:$0xf0]  ;;  %v10496_v3 = vor.u32 %v13436_v18, %v10493_v40 }
 0x44a   : > { %4577 = vmatpush.bf16.msra.mxu3 %v10368_v49  ;;  %v13320_v49 = vld [vmem:[#allocation17 + $0x12c] sm:$0xf]  ;;  %v4301_v34 = vpop.f32.mrf.mxu1  ;;  %v10752_v58 = vor.u32 %v13500_v46, %v10749_v59  ;;  %v10477_v15 = vld [vmem:[#allocation17 + $0x4b8] sm:$0xf0] }
 0x44b   : > { %4539 = vmatpush.bf16.msra.mxu0 %v9968_v0  ;;  %v13384_v0 = vld [vmem:[#allocation17 + $0x32c] sm:$0xf]  ;;  %v10032_v22 = vor.u32 %v13320_v49, %v10029_v35  ;;  %v10733_v49 = vld [vmem:[#allocation17 + $0x6b8] sm:$0xf0] }
 0x44c   : > { %4552 = vmatpush.bf16.msra.mxu1 %v10096_v19  ;;  %4565 = vmatpush.bf16.msra.mxu2 %v10224_v10  ;;  %v10285_v19 = vld [vmem:[#allocation17 + $0x338] sm:$0xf0]  ;;  %v9904_v10 = vor.u32 %v13288_v16, %v9901_v54  ;;  %v13532_v1 = vld [vmem:[#allocation17 + $0x7cc] sm:$0xf] }
 0x44d   : > { %v10288_v60 = vor.u32 %v13384_v0, %v10285_v19  ;;  %v10605_v16 = vld [vmem:[#allocation17 + $0x5b8] sm:$0xf0]  ;;  %v13496_v54 = vld [vmem:[#allocation17 + $0x6ac] sm:$0xf] }
 0x44e   : > { %4578 = vmatpush.bf16.msra.mxu3 %v10352_v57  ;;  %v10160_v57 = vor.u32 %v13352_v51, %v10157_v17  ;;  %v4314_v12 = vpop.f32.mrf.mxu2  ;;  %v13528_v34 = vld [vmem:[#allocation17 + $0x7ac] sm:$0xf]  ;;  %v10736_v17 = vor.u32 %v13496_v54, %v10733_v49  ;;  %v10461_v19 = vld [vmem:[#allocation17 + $0x498] sm:$0xf0] }
 0x44f   : > { %4540 = vmatpush.bf16.msra.mxu0 %v9952_v28  ;;  %v10141_v28 = vld [vmem:[#allocation17 + $0x218] sm:$0xf0]  ;;  %v13428_v0 = vld [vmem:[#allocation17 + $0x48c] sm:$0xf] }
 0x450   : > { %4553 = vmatpush.bf16.msra.mxu1 %v10080_v38  ;;  %4566 = vmatpush.bf16.msra.mxu2 %v10208_v29  ;;  %v10269_v38 = vld [vmem:[#allocation17 + $0x318] sm:$0xf0]  ;;  %v4327_v29 = vpop.f32.mrf.mxu3  ;;  %v10144_v20 = vor.u32 %v13348_v27, %v10141_v28  ;;  %v13492_v55 = vld [vmem:[#allocation17 + $0x68c] sm:$0xf] }
 0x451   : > { %v10272_v7 = vor.u32 %v13380_v24, %v10269_v38  ;;  %v13424_v27 = vld [vmem:[#allocation17 + $0x46c] sm:$0xf]  ;;  %v10445_v12 = vld [vmem:[#allocation17 + $0x478] sm:$0xf0] }
 0x452   : > { %4579 = vmatpush.bf16.msra.mxu3 %v10336_v25  ;;  %v13504_v25 = vld [vmem:[#allocation17 + $0x6ec] sm:$0xf]  ;;  %v10573_v38 = vld [vmem:[#allocation17 + $0x578] sm:$0xf0] }
 0x453   : > { %4541 = vmatpush.bf16.msra.mxu0 %v9936_v2  ;;  %v10512_v2 = vor.u32 %v13440_v62, %v10509_v52  ;;  %v13488_v29 = vld [vmem:[#allocation17 + $0x66c] sm:$0xf]  ;;  %v10701_v62 = vld [vmem:[#allocation17 + $0x678] sm:$0xf0] }
 0x454   : > { %4554 = vmatpush.bf16.msra.mxu1 %v10064_v14  ;;  %4567 = vmatpush.bf16.msra.mxu2 %v10192_v21  ;;  %v10640_v14 = vor.u32 %v13472_v8, %v10637_v9  ;;  %v10768_v21 = vor.u32 %v13504_v25, %v10765_v13  ;;  %v13520_v52 = vld [vmem:[#allocation17 + $0x76c] sm:$0xf]  ;;  %v10829_v8 = vld [vmem:[#allocation17 + $0x778] sm:$0xf0]  ;;  %v10704_v25 = vor.u32 %v13488_v29, %v10701_v62  ;;  %v10947_v29 = vld [vmem:[#allocation22 + $0x60] sm:$0xf] }
 0x455   : > { %v13420_v13 = vld [vmem:[#allocation17 + $0x44c] sm:$0xf]  ;;  %v10832_v53 = vor.u32 %v13520_v52, %v10829_v8  ;;  %v10813_v40 = vld [vmem:[#allocation17 + $0x758] sm:$0xf0]  ;;  %v13552_v62 = vld [vmem:[#allocation22 + $0x64] sm:$0xf0] }
 0x456   : > { %4580 = vmatpush.bf16.msra.mxu3 %v10320_v37  ;;  %v10621_v37 = vld [vmem:[#allocation17 + $0x5d8] sm:$0xf0]  ;;  %v13516_v18 = vld [vmem:[#allocation17 + $0x74c] sm:$0xf]  ;;  %v11011_v52 = vld [vmem:[#allocation22 + $0xe0] sm:$0xf] }
 0x457   : > { %4542 = vmatpush.bf16.msra.mxu0 %v9920_v31  ;;  %v10624_v6 = vor.u32 %v13468_v56, %v10621_v37  ;;  %v13432_v31 = vld [vmem:[#allocation17 + $0x4ac] sm:$0xf]  ;;  %v13568_v8 = vld [vmem:[#allocation22 + $0xe4] sm:$0xf0] }
 0x458   : > { %4555 = vmatpush.bf16.msra.mxu1 %v10048_v11  ;;  %4568 = vmatpush.bf16.msra.mxu2 %v10176_v48  ;;  %v13464_v11 = vld [vmem:[#allocation17 + $0x5ac] sm:$0xf]  ;;  %v10880_v48 = vor.u32 %v13532_v1, %v10877_v39  ;;  %v10480_v35 = vor.u32 %v13432_v31, %v10477_v15  ;;  %v10413_v1 = vld [vmem:[#allocation17 + $0x438] sm:$0xf0] }
 0x459   : > { %v10608_v51 = vor.u32 %v13464_v11, %v10605_v16  ;;  %v13416_v59 = vld [vmem:[#allocation17 + $0x42c] sm:$0xf]  ;;  %v10669_v15 = vld [vmem:[#allocation17 + $0x638] sm:$0xf0] }
 0x45a   : > { %4581 = vmatpush.bf16.msra.mxu3 %v10304_v33  ;;  %v10861_v33 = vld [vmem:[#allocation17 + $0x7b8] sm:$0xf0]  ;;  %v13448_v39 = vld [vmem:[#allocation17 + $0x52c] sm:$0xf]  ;;  %v10416_v16 = vor.u32 %v13416_v59, %v10413_v1  ;;  %v13562_v59 = vld [vmem:[#allocation22 + $0xb4] sm:$0xf0] }
 0x45b   : > { %4543 = vmatpush.bf16.msra.mxu0 %v9904_v10  ;;  %v10864_v10 = vor.u32 %v13528_v34, %v10861_v33  ;;  %v13480_v31 = vld [vmem:[#allocation17 + $0x62c] sm:$0xf]  ;;  %v10397_v33 = vld [vmem:[#allocation17 + $0x418] sm:$0xf0]  ;;  %v13586_v1 = vld [vmem:[#allocation22 + $0x174] sm:$0xf0] }
 0x45c   : > { %4556 = vmatpush.bf16.msra.mxu1 %v10032_v22  ;;  %4569 = vmatpush.bf16.msra.mxu2 %v10160_v57  ;;  %v10717_v22 = vld [vmem:[#allocation17 + $0x698] sm:$0xf0]  ;;  %v13524_v57 = vld [vmem:[#allocation17 + $0x78c] sm:$0xf]  ;;  %v10672_v34 = vor.u32 %v13480_v31, %v10669_v15 }
 0x45d   : > { %v10720_v32 = vor.u32 %v13492_v55, %v10717_v22  ;;  %v13512_v11 = vld [vmem:[#allocation17 + $0x72c] sm:$0xf]  ;;  %v10781_v55 = vld [vmem:[#allocation17 + $0x718] sm:$0xf0]  ;;  %v10955_v22 = vld [vmem:[#allocation22 + $0x70] sm:$0xf] }
 0x45e   : > { %4582 = vmatpush.bf16.msra.mxu3 %v10288_v60  ;;  %v13456_v60 = vld [vmem:[#allocation17 + $0x56c] sm:$0xf] }
 0x45f   : > { %4544 = vmatpush.bf16.msra.mxu0 %v9888_v4  ;;  %v16462_v36 = vpop.f32.mrf.mxu0  ;;  %v10448_v4 = vor.u32 %v13424_v27, %v10445_v12  ;;  %v10576_v9 = vor.u32 %v13456_v60, %v10573_v38  ;;  %v13412_v54 = vld [vmem:[#allocation17 + $0x40c] sm:$0xf] }
 0x460   : > { %4557 = vmatpush.bf16.msra.mxu1 %v10016_v43  ;;  %4570 = vmatpush.bf16.msra.mxu2 %v10144_v20  ;;  %v10429_v43 = vld [vmem:[#allocation17 + $0x458] sm:$0xf0]  ;;  %v13452_v20 = vld [vmem:[#allocation17 + $0x54c] sm:$0xf] }
 0x461   : > { %v10432_v56 = vor.u32 %v13420_v13, %v10429_v43  ;;  %v10939_v13 = vld [vmem:[#allocation22 + $0x50] sm:$0xf]  ;;  %v13550_v43 = vld [vmem:[#allocation22 + $0x54] sm:$0xf0] }
 0x462   : > { %4583 = vmatpush.bf16.msra.mxu3 %v10272_v7  ;;  %4545 = vmatmul.bf16.vlgmr.msra.gmra.mxu0 %v16409_v50  ;;  %v10845_v50 = vld [vmem:[#allocation17 + $0x798] sm:$0xf0]  ;;  %v16464_v28 = vpop.f32.mrf.mxu1 }
 0x463   : > { %4589 = vmatpush.bf16.msrb.mxu0 %v10512_v2  ;;  %4571 = vmatmul.bf16.vlgmr.msra.gmra.mxu2 %v16407_v42  ;;  %v13460_v42 = vld [vmem:[#allocation17 + $0x58c] sm:$0xf]  ;;  %v10848_v24 = vor.u32 %v13524_v57, %v10845_v50  ;;  %v10557_v7 = vld [vmem:[#allocation17 + $0x558] sm:$0xf0]  ;;  %v13554_v57 = vld [vmem:[#allocation22 + $0x74] sm:$0xf0]  ;;  %v10400_v50 = vor.u32 %v13412_v54, %v10397_v33 }
 0x464   : > { %4602 = vmatpush.bf16.msrb.mxu1 %v10640_v14  ;;  %4615 = vmatpush.bf16.msrb.mxu2 %v10768_v21  ;;  %v13484_v2 = vld [vmem:[#allocation17 + $0x64c] sm:$0xf]  ;;  %v10685_v14 = vld [vmem:[#allocation17 + $0x658] sm:$0xf0]  ;;  %v10560_v37 = vor.u32 %v13452_v20, %v10557_v7  ;;  %v10956_v60 = vor.u32 %v13554_v57, %v10955_v22  ;;  %v10940_v20 = vor.u32 %v13550_v43, %v10939_v13  ;;  %v13544_v54 = vld [vmem:[#allocation22 + $0x24] sm:$0xf0] }
 0x465   : > { %4584 = vmatmul.bf16.vlgmr.msra.gmra.mxu3 %v16415_v26  ;;  %4558 = vmatmul.bf16.vlgmr.msra.gmra.mxu1 %v16417_v63  ;;  %v10464_v26 = vor.u32 %v13428_v0, %v10461_v19  ;;  %v10592_v63 = vor.u32 %v13460_v42, %v10589_v41  ;;  %v10688_v46 = vor.u32 %v13484_v2, %v10685_v14  ;;  %v13476_v19 = vld [vmem:[#allocation17 + $0x60c] sm:$0xf]  ;;  %v10653_v42 = vld [vmem:[#allocation17 + $0x618] sm:$0xf0]  ;;  %v13548_v2 = vld [vmem:[#allocation22 + $0x44] sm:$0xf0] }
 0x466   : > { %4628 = vmatpush.bf16.msrb.mxu3 %v10896_v44  ;;  %v16466_v5 = vpop.f32.mrf.mxu2  ;;  %v10656_v27 = vor.u32 %v13476_v19, %v10653_v42  ;;  %v13564_v14 = vld [vmem:[#allocation22 + $0xc4] sm:$0xf0]  ;;  %v13553_v13 = vld [vmem:[#allocation22 + $0x74] sm:$0xf] }
 0x467   : > { %4590 = vmatpush.bf16.msrb.mxu0 %v10496_v3  ;;  %v4340_v44 = vpop.f32.mrf.mxu0 }
 0x468   : > { %4603 = vmatpush.bf16.msrb.mxu1 %v10624_v6  ;;  %4616 = vmatpush.bf16.msrb.mxu2 %v10752_v58  ;;  %v16468_v21 = vpop.f32.mrf.mxu3  ;;  %v10816_v6 = vor.u32 %v13516_v18, %v10813_v40  ;;  %v10541_v58 = vld [vmem:[#allocation17 + $0x538] sm:$0xf0]  ;;  %v16478_v18 = vld [vmem:[#allocation19] sm:$0xf] }
 0x469   : > { %v10544_v49 = vor.u32 %v13448_v39, %v10541_v58  ;;  %v16481_v58 = vld [vmem:[#allocation20] sm:$0xf]  ;;  %v4644_v15 = vperm.slane %v16478_v18, 1 }
 0x46a   : > { %4629 = vmatpush.bf16.msrb.mxu3 %v10880_v48  ;;  %v4353_v3 = vpop.f32.mrf.mxu1  ;;  %v10797_v48 = vld [vmem:[#allocation17 + $0x738] sm:$0xf0]  ;;  %v4657_v19 = vperm.slane %v16481_v58, 0 }
 0x46b   : > { %4591 = vmatpush.bf16.msrb.mxu0 %v10480_v35  ;;  %v13444_v35 = vld [vmem:[#allocation17 + $0x50c] sm:$0xf]  ;;  %v10800_v0 = vor.u32 %v13512_v11, %v10797_v48 }
 0x46c   : > { %4604 = vmatpush.bf16.msrb.mxu1 %v10608_v51  ;;  %4617 = vmatpush.bf16.msrb.mxu2 %v10736_v17  ;;  %v10525_v51 = vld [vmem:[#allocation17 + $0x518] sm:$0xf0] }
 0x46e   : > { %4630 = vmatpush.bf16.msrb.mxu3 %v10864_v10  ;;  %v4366_v17 = vpop.f32.mrf.mxu2  ;;  %v13508_v10 = vld [vmem:[#allocation17 + $0x70c] sm:$0xf] }
 0x46f   : > { %4592 = vmatpush.bf16.msrb.mxu0 %v10464_v26  ;;  %v11019_v26 = vld [vmem:[#allocation22 + $0xf0] sm:$0xf]  ;;  %v10784_v12 = vor.u32 %v13508_v10, %v10781_v55  ;;  %v13584_v17 = vld [vmem:[#allocation22 + $0x164] sm:$0xf0]  ;;  %v4658_v10 = vperm.slane %v16481_v58, 1 }
 0x470   : > { %4605 = vmatpush.bf16.msrb.mxu1 %v10592_v63  ;;  %4618 = vmatpush.bf16.msrb.mxu2 %v10720_v32  ;;  %v4379_v41 = vpop.f32.mrf.mxu3  ;;  %v13570_v63 = vld [vmem:[#allocation22 + $0xf4] sm:$0xf0]  ;;  %v10528_v32 = vor.u32 %v13444_v35, %v10525_v51  ;;  %v13560_v35 = vld [vmem:[#allocation22 + $0xa4] sm:$0xf0]  ;;  %v11075_v51 = vld [vmem:[#allocation22 + $0x160] sm:$0xf] }
 0x471   : > { %v11020_v38 = vor.u32 %v13570_v63, %v11019_v26  ;;  %v13542_v26 = vld [vmem:[#allocation22 + $0x14] sm:$0xf0]  ;;  %v10971_v63 = vld [vmem:[#allocation22 + $0x90] sm:$0xf] }
 0x472   : > { %4631 = vmatpush.bf16.msrb.mxu3 %v10848_v24  ;;  %v4352_v24 = vadd.f32 %v16464_v28, %v16462_v36  ;;  %v11003_v36 = vld [vmem:[#allocation22 + $0xd0] sm:$0xf]  ;;  %v13566_v28 = vld [vmem:[#allocation22 + $0xd4] sm:$0xf0] }
 0x473   : > { %4593 = vmatpush.bf16.msrb.mxu0 %v10448_v4  ;;  %v10948_v4 = vor.u32 %v13552_v62, %v10947_v29  ;;  %v11004_v7 = vor.u32 %v13566_v28, %v11003_v36  ;;  %v10957_v36 = vld [vmem:[#allocation22 + $0x78] sm:$0xf0] }
 0x474   : > { %4606 = vmatpush.bf16.msrb.mxu1 %v10576_v9  ;;  %4619 = vmatpush.bf16.msrb.mxu2 %v10704_v25  ;;  %v4365_v9 = vadd.f32 %v16466_v5, %v4352_v24  ;;  %v11012_v25 = vor.u32 %v13568_v8, %v11011_v52  ;;  %v10931_v5 = vld [vmem:[#allocation22 + $0x40] sm:$0xf]  ;;  %v13582_v24 = vld [vmem:[#allocation22 + $0x154] sm:$0xf0]  ;;  %v13540_v8 = vld [vmem:[#allocation22 + $0x4] sm:$0xf0] }
 0x475   : > { %v10899_v52 = vld [vmem:[#allocation22] sm:$0xf] }
 0x476   : > { %4632 = vmatpush.bf16.msrb.mxu3 %v10832_v53  ;;  %v4378_v53 = vadd.f32 %v16468_v21, %v4365_v9  ;;  %v11083_v21 = vld [vmem:[#allocation22 + $0x170] sm:$0xf]  ;;  %v10963_v9 = vld [vmem:[#allocation22 + $0x80] sm:$0xf] }
 0x477   : > { %4594 = vmatpush.bf16.msrb.mxu0 %v10432_v56  ;;  %v11084_v3 = vor.u32 %v13586_v1, %v11083_v21  ;;  %v11013_v21 = vld [vmem:[#allocation22 + $0xe8] sm:$0xf0] }
 0x478   : > { %4607 = vmatpush.bf16.msrb.mxu1 %v10560_v37  ;;  %4620 = vmatpush.bf16.msrb.mxu2 %v10688_v46  ;;  %v13546_v37 = vld [vmem:[#allocation22 + $0x34] sm:$0xf0]  ;;  %v10987_v46 = vld [vmem:[#allocation22 + $0xb0] sm:$0xf] }
 0x479   : > { %v10988_v11 = vor.u32 %v13562_v59, %v10987_v46  ;;  %v13578_v46 = vld [vmem:[#allocation22 + $0x134] sm:$0xf0]  ;;  %v13567_v59 = vld [vmem:[#allocation22 + $0xe4] sm:$0xf] }
 0x47a   : > { %4633 = vmatpush.bf16.msrb.mxu3 %v10816_v6  ;;  %v4643_v6 = vperm.slane %v16478_v18, 0 }
 0x47b   : > { %4595 = vmatpush.bf16.msrb.mxu0 %v10416_v16  ;;  %v10915_v16 = vld [vmem:[#allocation22 + $0x20] sm:$0xf] }
 0x47c   : > { %4608 = vmatpush.bf16.msrb.mxu1 %v10544_v49  ;;  %4621 = vmatpush.bf16.msrb.mxu2 %v10672_v34  ;;  %v10979_v49 = vld [vmem:[#allocation22 + $0xa0] sm:$0xf]  ;;  %v10916_v41 = vor.u32 %v13544_v54, %v10915_v16  ;;  %v4651_v22 = vmul.f32 %v4643_v6, %v16456_v23  ;;  %v10941_v16 = vld [vmem:[#allocation22 + $0x58] sm:$0xf0]  ;;  %v13565_v54 = vld [vmem:[#allocation22 + $0xd4] sm:$0xf] }
 0x47d   : > { %v10980_v57 = vor.u32 %v13560_v35, %v10979_v49  ;;  %v13574_v35 = vld [vmem:[#allocation22 + $0x114] sm:$0xf0] }
 0x47e   : > { %4634 = vmatpush.bf16.msrb.mxu3 %v10800_v0  ;;  %v11076_v0 = vor.u32 %v13584_v17, %v11075_v51 }
 0x47f   : > { %4596 = vmatpush.bf16.msrb.mxu0 %v10400_v50  ;;  %v4390_v40 = vpop.f32.mrf.mxu0  ;;  %v10907_v50 = vld [vmem:[#allocation22 + $0x10] sm:$0xf] }
 0x480   : > { %4609 = vmatpush.bf16.msrb.mxu1 %v10528_v32  ;;  %4622 = vmatpush.bf16.msrb.mxu2 %v10656_v27  ;;  %v4391_v56 = vadd.f32 %v4390_v40, %v4378_v53  ;;  %v10908_v62 = vor.u32 %v13542_v26, %v10907_v50  ;;  %v13580_v53 = vld [vmem:[#allocation22 + $0x144] sm:$0xf0]  ;;  %v13545_v26 = vld [vmem:[#allocation22 + $0x34] sm:$0xf] }
 0x482   : > { %4635 = vmatpush.bf16.msrb.mxu3 %v10784_v12  ;;  %4597 = vmatmul.bf16.vlgmr.msrb.gmra.mxu0 %v16427_v30  ;;  %v10995_v30 = vld [vmem:[#allocation22 + $0xc0] sm:$0xf]  ;;  %v4403_v44 = vpop.f32.mrf.mxu1  ;;  %v13558_v12 = vld [vmem:[#allocation22 + $0x94] sm:$0xf0] }
 0x483   : > { %5061 = vmatpush.bf16.msra.mxu0 %v10956_v60  ;;  %4610 = vmatmul.bf16.vlgmr.msrb.gmra.mxu1 %v16431_v61  ;;  %v10932_v61 = vor.u32 %v13548_v2, %v10931_v5  ;;  %v4404_v39 = vadd.f32 %v4403_v44, %v4391_v56  ;;  %v11067_v60 = vld [vmem:[#allocation22 + $0x150] sm:$0xf]  ;;  %v10972_v23 = vor.u32 %v13558_v12, %v10971_v63  ;;  %v11021_v5 = vld [vmem:[#allocation22 + $0xf8] sm:$0xf0]  ;;  %v13551_v56 = vld [vmem:[#allocation22 + $0x64] sm:$0xf] }
 0x484   : > { %5074 = vmatpush.bf16.msra.mxu1 %v11020_v38  ;;  %4623 = vmatmul.bf16.vlgmr.msrb.gmra.mxu2 %v16425_v47  ;;  %v10996_v47 = vor.u32 %v13564_v14, %v10995_v30  ;;  %v11068_v38 = vor.u32 %v13582_v24, %v11067_v60  ;;  %v10900_v14 = vor.u32 %v13540_v8, %v10899_v52  ;;  %v10925_v63 = vld [vmem:[#allocation22 + $0x38] sm:$0xf0] }
 0x485   : > { %4636 = vmatmul.bf16.vlgmr.msrb.gmra.mxu3 %v16429_v45  ;;  %v10923_v45 = vld [vmem:[#allocation22 + $0x30] sm:$0xf]  ;;  %5087 = vmatpush.bf16.msra.mxu2 %v11084_v3  ;;  %v10989_v60 = vld [vmem:[#allocation22 + $0xb8] sm:$0xf0]  ;;  %v10928_v52 = vor.u32 %v13545_v26, %v10925_v63  ;;  %v11029_v26 = vld [vmem:[#allocation22 + $0x108] sm:$0xf0] }
 0x486   : > { %v10924_v31 = vor.u32 %v13546_v37, %v10923_v45  ;;  %v4416_v48 = vpop.f32.mrf.mxu2  ;;  %v10949_v45 = vld [vmem:[#allocation22 + $0x68] sm:$0xf0]  ;;  %v11051_v37 = vld [vmem:[#allocation22 + $0x130] sm:$0xf] }
 0x487   : > { %5062 = vmatpush.bf16.msra.mxu0 %v10948_v4  ;;  %v4417_v34 = vadd.f32 %v4416_v48, %v4404_v39  ;;  %v4392_v55 = vpop.f32.mrf.mxu0  ;;  %v4665_v4 = vadd.f32 %v4657_v19, %v4651_v22  ;;  %v11052_v1 = vor.u32 %v13578_v46, %v11051_v37  ;;  %v10952_v6 = vor.u32 %v13551_v56, %v10949_v45  ;;  %v13549_v48 = vld [vmem:[#allocation22 + $0x54] sm:$0xf]  ;;  %v10933_v19 = vld [vmem:[#allocation22 + $0x48] sm:$0xf0]  ;;  %v11027_v22 = vld [vmem:[#allocation22 + $0x100] sm:$0xf] }
 0x488   : > { %5075 = vmatpush.bf16.msra.mxu1 %v11012_v25  ;;  %v4429_v33 = vpop.f32.mrf.mxu3  ;;  %v13556_v25 = vld [vmem:[#allocation22 + $0x84] sm:$0xf0]  ;;  %v10944_v51 = vor.u32 %v13549_v48, %v10941_v16  ;;  %v11069_v56 = vld [vmem:[#allocation22 + $0x158] sm:$0xf0]  ;;  %v13539_v46 = vld [vmem:[#allocation22 + $0x4] sm:$0xf] }
 0x489   : > { %v4430_v42 = vadd.f32 %v4429_v33, %v4417_v34  ;;  %5088 = vmatpush.bf16.msra.mxu2 %v11076_v0  ;;  %v10964_v40 = vor.u32 %v13556_v25, %v10963_v9  ;;  %v11005_v34 = vld [vmem:[#allocation22 + $0xd8] sm:$0xf0]  ;;  %v11035_v33 = vld [vmem:[#allocation22 + $0x110] sm:$0xf]  ;;  %v13547_v0 = vld [vmem:[#allocation22 + $0x44] sm:$0xf] }
 0x48a   : > { %v4405_v32 = vpop.f32.mrf.mxu1  ;;  %v11008_v17 = vor.u32 %v13565_v54, %v11005_v34  ;;  %v10936_v55 = vor.u32 %v13547_v0, %v10933_v19  ;;  %v13559_v9 = vld [vmem:[#allocation22 + $0xa4] sm:$0xf]  ;;  %v10981_v25 = vld [vmem:[#allocation22 + $0xa8] sm:$0xf0]  ;;  %v11053_v34 = vld [vmem:[#allocation22 + $0x138] sm:$0xf0] }
 0x48b   : > { %5063 = vmatpush.bf16.msra.mxu0 %v10940_v20  ;;  %v4652_v27 = vmul.f32 %v4644_v15, %v4430_v42  ;;  %v11059_v20 = vld [vmem:[#allocation22 + $0x140] sm:$0xf]  ;;  %v13576_v15 = vld [vmem:[#allocation22 + $0x124] sm:$0xf0]  ;;  %v11036_v42 = vor.u32 %v13574_v35, %v11035_v33  ;;  %v13561_v32 = vld [vmem:[#allocation22 + $0xb4] sm:$0xf] }
 0x48c   : > { %5076 = vmatpush.bf16.msra.mxu1 %v11004_v7  ;;  %v13569_v7 = vld [vmem:[#allocation22 + $0xf4] sm:$0xf]  ;;  %v11060_v2 = vor.u32 %v13580_v53, %v11059_v20  ;;  %v10992_v8 = vor.u32 %v13561_v32, %v10989_v60  ;;  %v13575_v35 = vld [vmem:[#allocation22 + $0x124] sm:$0xf]  ;;  %v13602_v19 = vld [vmem:[#allocation22 + $0x1f4] sm:$0xf0] }
 0x48d   : > { %v4666_v29 = vadd.f32 %v4658_v10, %v4652_v27  ;;  %5089 = vmatpush.bf16.msra.mxu2 %v11068_v38  ;;  %v11024_v44 = vor.u32 %v13569_v7, %v11021_v5  ;;  %v13563_v10 = vld [vmem:[#allocation22 + $0xc4] sm:$0xf]  ;;  %v13585_v38 = vld [vmem:[#allocation22 + $0x174] sm:$0xf]  ;;  %v10984_v7 = vor.u32 %v13559_v9, %v10981_v25  ;;  %v4645_v9 = vperm.slane %v16478_v18, 2 }
 0x48e   : > { %v4418_v43 = vpop.f32.mrf.mxu2  ;;  %v13541_v5 = vld [vmem:[#allocation22 + $0x14] sm:$0xf]  ;;  %v11123_v25 = vld [vmem:[#allocation22 + $0x1c0] sm:$0xf] }
 0x48f   : > { %5064 = vmatpush.bf16.msra.mxu0 %v10932_v61  ;;  %v4670_v30 = vmax.f32 %v4666_v29, 0.0  ;;  %v4669_v61 = vmax.f32 %v4665_v4, 0.0  ;;  %v11085_v29 = vld [vmem:[#allocation22 + $0x178] sm:$0xf0]  ;;  %v13543_v4 = vld [vmem:[#allocation22 + $0x24] sm:$0xf] }
 0x490   : > { %5077 = vmatpush.bf16.msra.mxu1 %v10996_v47  ;;  %v4431_v28 = vpop.f32.mrf.mxu3  ;;  %v10960_v47 = vor.u32 %v13553_v13, %v10957_v36  ;;  %v13583_v43 = vld [vmem:[#allocation22 + $0x164] sm:$0xf]  ;;  %v11077_v36 = vld [vmem:[#allocation22 + $0x168] sm:$0xf0] }
 0x491   : > { %5090 = vmatpush.bf16.msra.mxu2 %v11060_v2  ;;  %v16487_v39 = vpack.c.bf16 %v4670_v30, %v4670_v30  ;;  %v16489_v3 = vpack.c.bf16 %v4669_v61, %v4669_v61  ;;  %v11080_v20 = vor.u32 %v13583_v43, %v11077_v36  ;;  %v10909_v2 = vld [vmem:[#allocation22 + $0x18] sm:$0xf0]  ;;  %v13557_v30 = vld [vmem:[#allocation22 + $0x94] sm:$0xf]  ;;  %v4659_v36 = vperm.slane %v16481_v58, 2 }
 0x492   : > { %v10973_v61 = vld [vmem:[#allocation22 + $0x98] sm:$0xf0]  ;;  %v10912_v45 = vor.u32 %v13541_v5, %v10909_v2  ;;  %v11115_v5 = vld [vmem:[#allocation22 + $0x1b0] sm:$0xf]  ;;  %v13594_v2 = vld [vmem:[#allocation22 + $0x1b4] sm:$0xf0] }
 0x493   : > { %5065 = vmatpush.bf16.msra.mxu0 %v10924_v31  ;;  %v11043_v31 = vld [vmem:[#allocation22 + $0x120] sm:$0xf]  ;;  %v10976_v37 = vor.u32 %v13557_v30, %v10973_v61  ;;  %v11116_v61 = vor.u32 %v13594_v2, %v11115_v5  ;;  %v4660_v2 = vperm.slane %v16481_v58, 3  ;;  %v12051_v58 = vld [vmem:[#allocation26 + $0x700] sm:$0xf] }
 0x494   : > { %5078 = vmatpush.bf16.msra.mxu1 %v10988_v11  ;;  %v11016_v11 = vor.u32 %v13567_v59, %v11013_v21  ;;  %v11044_v49 = vor.u32 %v13576_v15, %v11043_v31  ;;  %v10901_v59 = vld [vmem:[#allocation22 + $0x8] sm:$0xf0]  ;;  %v13555_v21 = vld [vmem:[#allocation22 + $0x84] sm:$0xf] }
 0x495   : > { %5091 = vmatpush.bf16.msra.mxu2 %v11052_v1  ;;  %v10965_v1 = vld [vmem:[#allocation22 + $0x88] sm:$0xf0]  ;;  %v13579_v31 = vld [vmem:[#allocation22 + $0x144] sm:$0xf]  ;;  %v10904_v16 = vor.u32 %v13539_v46, %v10901_v59  ;;  %v11099_v46 = vld [vmem:[#allocation22 + $0x190] sm:$0xf] }
 0x496   : > { %v11061_v15 = vld [vmem:[#allocation22 + $0x148] sm:$0xf0]  ;;  %v10968_v54 = vor.u32 %v13555_v21, %v10965_v1  ;;  %v13590_v59 = vld [vmem:[#allocation22 + $0x194] sm:$0xf0]  ;;  %v11091_v1 = vld [vmem:[#allocation22 + $0x180] sm:$0xf] }
 0x497   : > { %5066 = vmatpush.bf16.msra.mxu0 %v10916_v41  ;;  %v10997_v41 = vld [vmem:[#allocation22 + $0xc8] sm:$0xf0]  ;;  %v11064_v48 = vor.u32 %v13579_v31, %v11061_v15  ;;  %v11100_v21 = vor.u32 %v13590_v59, %v11099_v46  ;;  %v13601_v15 = vld [vmem:[#allocation22 + $0x1f4] sm:$0xf] }
 0x498   : > { %5079 = vmatpush.bf16.msra.mxu1 %v10980_v57  ;;  %v13572_v57 = vld [vmem:[#allocation22 + $0x104] sm:$0xf0]  ;;  %v11000_v50 = vor.u32 %v13563_v10, %v10997_v41  ;;  %v13573_v41 = vld [vmem:[#allocation22 + $0x114] sm:$0xf] }
 0x499   : > { %5092 = vmatpush.bf16.msra.mxu2 %v11044_v49  ;;  %v11028_v12 = vor.u32 %v13572_v57, %v11027_v22  ;;  %v13577_v49 = vld [vmem:[#allocation22 + $0x134] sm:$0xf] }
 0x49a   : > { %v11056_v33 = vor.u32 %v13577_v49, %v11053_v34  ;;  %v13599_v49 = vld [vmem:[#allocation22 + $0x1e4] sm:$0xf]  ;;  %v11141_v34 = vld [vmem:[#allocation22 + $0x1e8] sm:$0xf0] }
 0x49b   : > { %5067 = vmatpush.bf16.msra.mxu0 %v10908_v62  ;;  %v11088_v62 = vor.u32 %v13585_v38, %v11085_v29  ;;  %v13600_v38 = vld [vmem:[#allocation22 + $0x1e4] sm:$0xf0] }
 0x49c   : > { %5080 = vmatpush.bf16.msra.mxu1 %v10972_v23  ;;  %v10917_v23 = vld [vmem:[#allocation22 + $0x28] sm:$0xf0] }
 0x49d   : > { %5093 = vmatpush.bf16.msra.mxu2 %v11036_v42  ;;  %v10920_v53 = vor.u32 %v13543_v4, %v10917_v23 }
 0x49f   : > { %5068 = vmatpush.bf16.msra.mxu0 %v10900_v14  ;;  %v4442_v27 = vpop.f32.mrf.mxu0 }
 0x4a0   : > { %5081 = vmatpush.bf16.msra.mxu1 %v10964_v40 }
 0x4a1   : > { %5094 = vmatpush.bf16.msra.mxu2 %v11028_v12 }
 0x4a2   : > { %5069 = vmatmul.bf16.vlgmr.msra.gmra.mxu0 %v16489_v3  ;;  %v4455_v24 = vpop.f32.mrf.mxu1 }
 0x4a3   : > { %5113 = vmatpush.bf16.msrb.mxu0 %v10960_v47  ;;  %5082 = vmatmul.bf16.vlgmr.msra.gmra.mxu1 %v16487_v39  ;;  %v13581_v47 = vld [vmem:[#allocation22 + $0x154] sm:$0xf]  ;;  %v4456_v0 = vadd.f32 %v4455_v24, %v4442_v27  ;;  %v11139_v24 = vld [vmem:[#allocation22 + $0x1e0] sm:$0xf] }
 0x4a4   : > { %5126 = vmatpush.bf16.msrb.mxu1 %v11024_v44  ;;  %v11072_v44 = vor.u32 %v13581_v47, %v11069_v56  ;;  %v11107_v56 = vld [vmem:[#allocation22 + $0x1a0] sm:$0xf] }
 0x4a5   : > { %5139 = vmatpush.bf16.msrb.mxu2 %v11088_v62  ;;  %v11131_v62 = vld [vmem:[#allocation22 + $0x1d0] sm:$0xf] }
 0x4a6   : > { %v4468_v13 = vpop.f32.mrf.mxu2 }
 0x4a7   : > { %5114 = vmatpush.bf16.msrb.mxu0 %v10952_v6  ;;  %v4444_v14 = vpop.f32.mrf.mxu0  ;;  %v4469_v22 = vadd.f32 %v4468_v13, %v4456_v0  ;;  %v13596_v13 = vld [vmem:[#allocation22 + $0x1c4] sm:$0xf0]  ;;  %v11133_v0 = vld [vmem:[#allocation22 + $0x1d8] sm:$0xf0] }
 0x4a8   : > { %5127 = vmatpush.bf16.msrb.mxu1 %v11016_v11  ;;  %v4481_v28 = vpop.f32.mrf.mxu3 }
 0x4a9   : > { %5140 = vmatpush.bf16.msrb.mxu2 %v11080_v20  ;;  %v4482_v63 = vadd.f32 %v4481_v28, %v4469_v22 }
 0x4aa   : > { %v4457_v40 = vpop.f32.mrf.mxu1 }
 0x4ab   : > { %5115 = vmatpush.bf16.msrb.mxu0 %v10944_v51  ;;  %v11045_v51 = vld [vmem:[#allocation22 + $0x128] sm:$0xf0] }
 0x4ac   : > { %5128 = vmatpush.bf16.msrb.mxu1 %v11008_v17  ;;  %v11147_v17 = vld [vmem:[#allocation22 + $0x1f0] sm:$0xf]  ;;  %v11048_v10 = vor.u32 %v13575_v35, %v11045_v51 }
 0x4ad   : > { %5141 = vmatpush.bf16.msrb.mxu2 %v11072_v44  ;;  %v11148_v42 = vor.u32 %v13602_v19, %v11147_v17  ;;  %v13592_v44 = vld [vmem:[#allocation22 + $0x1a4] sm:$0xf0]  ;;  %v13597_v17 = vld [vmem:[#allocation22 + $0x1d4] sm:$0xf] }
 0x4ae   : > { %v4470_v6 = vpop.f32.mrf.mxu2 }
 0x4af   : > { %5116 = vmatpush.bf16.msrb.mxu0 %v10936_v55  ;;  %v11037_v55 = vld [vmem:[#allocation22 + $0x118] sm:$0xf0]  ;;  %5100 = vmatpush.bf16.msra.mxu3 %v11148_v42  ;;  %v13588_v6 = vld [vmem:[#allocation22 + $0x184] sm:$0xf0]  ;;  %v11136_v42 = vor.u32 %v13597_v17, %v11133_v0  ;;  %v11795_v0 = vld [vmem:[#allocation26 + $0x500] sm:$0xf] }
 0x4b0   : > { %5129 = vmatpush.bf16.msrb.mxu1 %v11000_v50  ;;  %v4483_v11 = vpop.f32.mrf.mxu3  ;;  %v11040_v57 = vor.u32 %v13573_v41, %v11037_v55  ;;  %v13571_v50 = vld [vmem:[#allocation22 + $0x104] sm:$0xf]  ;;  %v11092_v31 = vor.u32 %v13588_v6, %v11091_v1  ;;  %v11125_v55 = vld [vmem:[#allocation22 + $0x1c8] sm:$0xf0] }
 0x4b1   : > { %5142 = vmatpush.bf16.msrb.mxu2 %v11064_v48  ;;  %v11032_v32 = vor.u32 %v13571_v50, %v11029_v26  ;;  %v11149_v11 = vld [vmem:[#allocation22 + $0x1f8] sm:$0xf0]  ;;  %v13595_v41 = vld [vmem:[#allocation22 + $0x1c4] sm:$0xf]  ;;  %v13593_v26 = vld [vmem:[#allocation22 + $0x1b4] sm:$0xf] }
 0x4b2   : > { %v11128_v22 = vor.u32 %v13595_v41, %v11125_v55  ;;  %v11797_v41 = vld [vmem:[#allocation26 + $0x580] sm:$0xf0]  ;;  %v11667_v55 = vld [vmem:[#allocation26 + $0x400] sm:$0xf] }
 0x4b3   : > { %5117 = vmatpush.bf16.msrb.mxu0 %v10928_v52  ;;  %v13598_v52 = vld [vmem:[#allocation22 + $0x1d4] sm:$0xf0] }
 0x4b4   : > { %5130 = vmatpush.bf16.msrb.mxu1 %v10992_v8 }
 0x4b5   : > { %5143 = vmatpush.bf16.msrb.mxu2 %v11056_v33  ;;  %v11144_v33 = vor.u32 %v13599_v49, %v11141_v34  ;;  %v13811_v49 = vld [vmem:[#allocation26 + $0x67c] sm:$0xf0] }
 0x4b7   : > { %5118 = vmatpush.bf16.msrb.mxu0 %v10920_v53  ;;  %v11124_v53 = vor.u32 %v13596_v13, %v11123_v25 }
 0x4b8   : > { %5131 = vmatpush.bf16.msrb.mxu1 %v10984_v7 }
 0x4b9   : > { %5144 = vmatpush.bf16.msrb.mxu2 %v11048_v10 }
 0x4bb   : > { %5119 = vmatpush.bf16.msrb.mxu0 %v10912_v45 }
 0x4bc   : > { %5132 = vmatpush.bf16.msrb.mxu1 %v10976_v37  ;;  %v11108_v37 = vor.u32 %v13592_v44, %v11107_v56 }
 0x4bd   : > { %5145 = vmatpush.bf16.msrb.mxu2 %v11040_v57 }
 0x4bf   : > { %5120 = vmatpush.bf16.msrb.mxu0 %v10904_v16  ;;  %v4494_v27 = vpop.f32.mrf.mxu0  ;;  %v11152_v16 = vor.u32 %v13601_v15, %v11149_v11  ;;  %v13827_v15 = vld [vmem:[#allocation26 + $0x704] sm:$0xf] }
 0x4c0   : > { %5133 = vmatpush.bf16.msrb.mxu1 %v10968_v54  ;;  %v4495_v12 = vadd.f32 %v4494_v27, %v4482_v63  ;;  %v11117_v63 = vld [vmem:[#allocation22 + $0x1b8] sm:$0xf0]  ;;  %v13591_v27 = vld [vmem:[#allocation22 + $0x1a4] sm:$0xf] }
 0x4c1   : > { %5146 = vmatpush.bf16.msrb.mxu2 %v11032_v32  ;;  %v11120_v32 = vor.u32 %v13593_v26, %v11117_v63  ;;  %v11669_v26 = vld [vmem:[#allocation26 + $0x480] sm:$0xf0] }
 0x4c2   : > { %5121 = vmatmul.bf16.vlgmr.msrb.gmra.mxu0 %v16489_v3  ;;  %v4507_v60 = vpop.f32.mrf.mxu1  ;;  %v11140_v3 = vor.u32 %v13600_v38, %v11139_v24  ;;  %v13589_v24 = vld [vmem:[#allocation22 + $0x194] sm:$0xf]  ;;  %v11101_v38 = vld [vmem:[#allocation22 + $0x198] sm:$0xf0] }
 0x4c3   : > { %5134 = vmatmul.bf16.vlgmr.msrb.gmra.mxu1 %v16487_v39  ;;  %v4508_v29 = vadd.f32 %v4507_v60, %v4495_v12  ;;  %v11132_v39 = vor.u32 %v13598_v52, %v11131_v62  ;;  %v11109_v12 = vld [vmem:[#allocation22 + $0x1a8] sm:$0xf0]  ;;  %v13587_v52 = vld [vmem:[#allocation22 + $0x184] sm:$0xf] }
 0x4c4   : > { %5101 = vmatpush.bf16.msra.mxu3 %v11140_v3  ;;  %v11112_v60 = vor.u32 %v13591_v27, %v11109_v12  ;;  %v11104_v3 = vor.u32 %v13589_v24, %v11101_v38  ;;  %v11539_v27 = vld [vmem:[#allocation26 + $0x300] sm:$0xf] }
 0x4c5   : > { %v13715_v12 = vld [vmem:[#allocation26 + $0x37c] sm:$0xf0] }
 0x4c6   : > { %v4520_v8 = vpop.f32.mrf.mxu2  ;;  %v11540_v24 = vor.u32 %v13715_v12, %v11539_v27  ;;  %v14099_v38 = vld [vmem:[#allocation26 + $0xf7c] sm:$0xf0]  ;;  %v11933_v27 = vld [vmem:[#allocation26 + $0x688] sm:$0xf0] }
 0x4c7   : > { %v4521_v4 = vadd.f32 %v4520_v8, %v4508_v29  ;;  %v4496_v28 = vpop.f32.mrf.mxu0  ;;  %v11093_v8 = vld [vmem:[#allocation22 + $0x188] sm:$0xf0] }
 0x4c8   : > { %v4533_v23 = vpop.f32.mrf.mxu3  ;;  %5102 = vmatpush.bf16.msra.mxu3 %v11132_v39 }
 0x4c9   : > { %v4534_v43 = vadd.f32 %v4533_v23, %v4521_v4  ;;  %v11096_v23 = vor.u32 %v13587_v52, %v11093_v8  ;;  %v14083_v8 = vld [vmem:[#allocation26 + $0xf04] sm:$0xf] }
 0x4ca   : > { %v4509_v20 = vpop.f32.mrf.mxu1 }
 0x4cb   : > { %v4653_v7 = vmul.f32 %v4645_v9, %v4534_v43  ;;  %v4646_v20 = vperm.slane %v16478_v18, 3 }
 0x4cc   : > { %5103 = vmatpush.bf16.msra.mxu3 %v11124_v53 }
 0x4cd   : > { %v4667_v30 = vadd.f32 %v4659_v36, %v4653_v7 }
 0x4ce   : > { %v4522_v14 = vpop.f32.mrf.mxu2 }
 0x4cf   : > { %v4671_v40 = vmax.f32 %v4667_v30, 0.0 }
 0x4d0   : > { %v4535_v47 = vpop.f32.mrf.mxu3  ;;  %5104 = vmatpush.bf16.msra.mxu3 %v11116_v61 }
 0x4d1   : > { %v4675_v45 = vpack.c.bf16 %v4671_v40, %v4671_v40 }
 0x4d3   : > { %5095 = vmatmul.bf16.vlgmr.msra.gmra.mxu2 %v4675_v45 }
 0x4d4   : > { %5105 = vmatpush.bf16.msra.mxu3 %v11108_v37 }
 0x4d8   : > { %5106 = vmatpush.bf16.msra.mxu3 %v11100_v21 }
 0x4dc   : > { %5107 = vmatpush.bf16.msra.mxu3 %v11092_v31  ;;  %v13843_v31 = vld [vmem:[#allocation26 + $0x77c] sm:$0xf0] }
 0x4df   : > { %v4546_v48 = vpop.f32.mrf.mxu0 }
 0x4e0   : > { %5152 = vmatpush.bf16.msrb.mxu3 %v11152_v16  ;;  %v12053_v16 = vld [vmem:[#allocation26 + $0x780] sm:$0xf0] }
 0x4e1   : > { %v12056_v34 = vor.u32 %v13827_v15, %v12053_v16  ;;  %v11157_v16 = vld [vmem:[#allocation26 + $0x80] sm:$0xf0] }
 0x4e2   : > { %v4559_v54 = vpop.f32.mrf.mxu1 }
 0x4e3   : > { %5147 = vmatmul.bf16.vlgmr.msrb.gmra.mxu2 %v4675_v45  ;;  %v4560_v29 = vadd.f32 %v4559_v54, %v4546_v48  ;;  %v12052_v48 = vor.u32 %v13843_v31, %v12051_v58  ;;  %v11923_v54 = vld [vmem:[#allocation26 + $0x600] sm:$0xf] }
 0x4e4   : > { %5153 = vmatpush.bf16.msrb.mxu3 %v11144_v33  ;;  %v13795_v33 = vld [vmem:[#allocation26 + $0x604] sm:$0xf]  ;;  %8355 = vmatpush.bf16.msra.mxu2 %v12056_v34  ;;  %v12691_v58 = vld [vmem:[#allocation26 + $0xc00] sm:$0xf]  ;;  %v12059_v34 = vld [vmem:[#allocation26 + $0x708] sm:$0xf] }
 0x4e5   : > { %8329 = vmatpush.bf16.msra.mxu0 %v12052_v48  ;;  %v13603_v48 = vld [vmem:[#allocation26 + $0x4] sm:$0xf] }
 0x4e6   : > { %v4572_v35 = vpop.f32.mrf.mxu2 }
 0x4e7   : > { %v4548_v19 = vpop.f32.mrf.mxu0  ;;  %v4573_v62 = vadd.f32 %v4572_v35, %v4560_v29  ;;  %v11925_v35 = vld [vmem:[#allocation26 + $0x680] sm:$0xf0] }
 0x4e8   : > { %v4585_v51 = vpop.f32.mrf.mxu3  ;;  %5154 = vmatpush.bf16.msrb.mxu3 %v11136_v42  ;;  %v11928_v17 = vor.u32 %v13795_v33, %v11925_v35  ;;  %v13779_v19 = vld [vmem:[#allocation26 + $0x57c] sm:$0xf0]  ;;  %v13763_v42 = vld [vmem:[#allocation26 + $0x504] sm:$0xf]  ;;  %v13844_v33 = vld [vmem:[#allocation26 + $0x784] sm:$0xf0] }
 0x4e9   : > { %v4586_v39 = vadd.f32 %v4585_v51, %v4573_v62  ;;  %v11924_v51 = vor.u32 %v13811_v49, %v11923_v54  ;;  %v13699_v29 = vld [vmem:[#allocation26 + $0x304] sm:$0xf]  ;;  %v13828_v35 = vld [vmem:[#allocation26 + $0x70c] sm:$0xf] }
 0x4ea   : > { %v4561_v10 = vpop.f32.mrf.mxu1  ;;  %8356 = vmatpush.bf16.msra.mxu2 %v11928_v17  ;;  %v13987_v54 = vld [vmem:[#allocation26 + $0xc04] sm:$0xf] }
 0x4eb   : > { %8330 = vmatpush.bf16.msra.mxu0 %v11924_v51  ;;  %v11796_v10 = vor.u32 %v13779_v19, %v11795_v0  ;;  %v12693_v49 = vld [vmem:[#allocation26 + $0xc80] sm:$0xf0]  ;;  %v12061_v51 = vld [vmem:[#allocation26 + $0x788] sm:$0xf0]  ;;  %v11160_v19 = vor.u32 %v13603_v48, %v11157_v16 }
 0x4ec   : > { %5155 = vmatpush.bf16.msrb.mxu3 %v11128_v22  ;;  %v13747_v22 = vld [vmem:[#allocation26 + $0x47c] sm:$0xf0]  ;;  %v11549_v48 = vld [vmem:[#allocation26 + $0x388] sm:$0xf0] }
 0x4ed   : > { %v11668_v63 = vor.u32 %v13747_v22, %v11667_v55  ;;  %v12060_v55 = vor.u32 %v13844_v33, %v12059_v34  ;;  %v12064_v22 = vor.u32 %v13828_v35, %v12061_v51 }
 0x4ee   : > { %v4574_v57 = vpop.f32.mrf.mxu2 }
 0x4ef   : > { %v11800_v57 = vor.u32 %v13763_v42, %v11797_v41  ;;  %8331 = vmatpush.bf16.msra.mxu0 %v11796_v10  ;;  %v12696_v42 = vor.u32 %v13987_v54, %v12693_v49  ;;  %v12563_v10 = vld [vmem:[#allocation26 + $0xb00] sm:$0xf]  ;;  %v14084_v54 = vld [vmem:[#allocation26 + $0xf0c] sm:$0xf] }
 0x4f0   : > { %v4587_v50 = vpop.f32.mrf.mxu3  ;;  %5156 = vmatpush.bf16.msrb.mxu3 %v11120_v32  ;;  %v13971_v41 = vld [vmem:[#allocation26 + $0xb7c] sm:$0xf0]  ;;  %v13085_v49 = vld [vmem:[#allocation26 + $0xf88] sm:$0xf0] }
 0x4f1   : > { %v13731_v50 = vld [vmem:[#allocation26 + $0x404] sm:$0xf]  ;;  %8357 = vmatpush.bf16.msra.mxu2 %v11800_v57 }
 0x4f2   : > { %v11672_v32 = vor.u32 %v13731_v50, %v11669_v26  ;;  %v13955_v57 = vld [vmem:[#allocation26 + $0xb04] sm:$0xf]  ;;  %v11931_v26 = vld [vmem:[#allocation26 + $0x608] sm:$0xf] }
 0x4f3   : > { %8332 = vmatpush.bf16.msra.mxu0 %v11668_v63  ;;  %v12565_v50 = vld [vmem:[#allocation26 + $0xb80] sm:$0xf0]  ;;  %v13812_v63 = vld [vmem:[#allocation26 + $0x684] sm:$0xf0] }
 0x4f4   : > { %5157 = vmatpush.bf16.msrb.mxu3 %v11112_v60  ;;  %v13075_v60 = vld [vmem:[#allocation26 + $0xf00] sm:$0xf] }
 0x4f5   : > { %8358 = vmatpush.bf16.msra.mxu2 %v11672_v32  ;;  %v13076_v62 = vor.u32 %v14099_v38, %v13075_v60  ;;  %v13796_v32 = vld [vmem:[#allocation26 + $0x60c] sm:$0xf]  ;;  %v12564_v60 = vor.u32 %v13971_v41, %v12563_v10  ;;  %v12435_v38 = vld [vmem:[#allocation26 + $0xa00] sm:$0xf]  ;;  %v12955_v10 = vld [vmem:[#allocation26 + $0xe08] sm:$0xf] }
 0x4f7   : > { %8333 = vmatpush.bf16.msra.mxu0 %v11540_v24  ;;  %8342 = vmatpush.bf16.msra.mxu1 %v13076_v62  ;;  %v12568_v24 = vor.u32 %v13955_v57, %v12565_v50  ;;  %v11936_v62 = vor.u32 %v13796_v32, %v11933_v27  ;;  %v11421_v50 = vld [vmem:[#allocation26 + $0x288] sm:$0xf0] }
 0x4f8   : > { %5158 = vmatpush.bf16.msrb.mxu3 %v11104_v3  ;;  %v11541_v3 = vld [vmem:[#allocation26 + $0x380] sm:$0xf0]  ;;  %v12957_v32 = vld [vmem:[#allocation26 + $0xe88] sm:$0xf0] }
 0x4f9   : > { %v11544_v52 = vor.u32 %v13699_v29, %v11541_v3  ;;  %v13939_v29 = vld [vmem:[#allocation26 + $0xa7c] sm:$0xf0]  ;;  %v11932_v3 = vor.u32 %v13812_v63, %v11931_v26  ;;  %v14052_v26 = vld [vmem:[#allocation26 + $0xe0c] sm:$0xf] }
 0x4fa   : > { %v12960_v27 = vor.u32 %v14052_v26, %v12957_v32  ;;  %v12067_v26 = vld [vmem:[#allocation26 + $0x710] sm:$0xf] }
 0x4fb   : > { %8359 = vmatpush.bf16.msra.mxu2 %v11544_v52  ;;  %v13923_v52 = vld [vmem:[#allocation26 + $0xa04] sm:$0xf]  ;;  %v13845_v32 = vld [vmem:[#allocation26 + $0x78c] sm:$0xf0] }
 0x4fc   : > { %5159 = vmatpush.bf16.msrb.mxu3 %v11096_v23 }
 0x4ff   : > { %v4598_v4 = vpop.f32.mrf.mxu0 }
 0x500   : > { %v4611_v9 = vpop.f32.mrf.mxu1  ;;  %v4599_v25 = vadd.f32 %v4598_v4, %v4586_v39  ;;  %v13077_v39 = vld [vmem:[#allocation26 + $0xf80] sm:$0xf0]  ;;  %v11411_v4 = vld [vmem:[#allocation26 + $0x200] sm:$0xf] }
 0x501   : > { %v13080_v23 = vor.u32 %v14083_v8, %v13077_v39  ;;  %v12437_v8 = vld [vmem:[#allocation26 + $0xa80] sm:$0xf0]  ;;  %v11803_v39 = vld [vmem:[#allocation26 + $0x508] sm:$0xf] }
 0x502   : > { %v4612_v13 = vadd.f32 %v4611_v9, %v4599_v25  ;;  %v13683_v9 = vld [vmem:[#allocation26 + $0x27c] sm:$0xf0] }
 0x503   : > { %v12947_v25 = vld [vmem:[#allocation26 + $0xe00] sm:$0xf] }
 0x507   : > { %v4624_v43 = vpop.f32.mrf.mxu2  ;;  %v4600_v53 = vpop.f32.mrf.mxu0 }
 0x508   : > { %v4625_v36 = vadd.f32 %v4624_v43, %v4612_v13  ;;  %v4637_v28 = vpop.f32.mrf.mxu3  ;;  %v4613_v7 = vpop.f32.mrf.mxu1  ;;  %v14067_v13 = vld [vmem:[#allocation26 + $0xe7c] sm:$0xf0]  ;;  %v11412_v43 = vor.u32 %v13683_v9, %v11411_v4  ;;  %v14051_v53 = vld [vmem:[#allocation26 + $0xe04] sm:$0xf]  ;;  %v13780_v4 = vld [vmem:[#allocation26 + $0x584] sm:$0xf0] }
 0x509   : > { %v11805_v9 = vld [vmem:[#allocation26 + $0x588] sm:$0xf0] }
 0x50a   : > { %v4638_v5 = vadd.f32 %v4637_v28, %v4625_v36  ;;  %v12948_v36 = vor.u32 %v14067_v13, %v12947_v25  ;;  %v13667_v28 = vld [vmem:[#allocation26 + $0x204] sm:$0xf]  ;;  %8334 = vmatpush.bf16.msra.mxu0 %v11412_v43  ;;  %v12436_v25 = vor.u32 %v13939_v29, %v12435_v38  ;;  %v12440_v13 = vor.u32 %v13923_v52, %v12437_v8  ;;  %v12307_v43 = vld [vmem:[#allocation26 + $0x900] sm:$0xf]  ;;  %v12827_v38 = vld [vmem:[#allocation26 + $0xd08] sm:$0xf] }
 0x50b   : > { %v14036_v29 = vld [vmem:[#allocation26 + $0xd84] sm:$0xf0]  ;;  %v11293_v52 = vld [vmem:[#allocation26 + $0x188] sm:$0xf0] }
 0x50c   : > { %v4654_v30 = vmul.f32 %v4646_v20, %v4638_v5  ;;  %v11413_v20 = vld [vmem:[#allocation26 + $0x280] sm:$0xf0]  ;;  %8343 = vmatpush.bf16.msra.mxu1 %v12948_v36  ;;  %v13907_v36 = vld [vmem:[#allocation26 + $0x97c] sm:$0xf0]  ;;  %v14020_v8 = vld [vmem:[#allocation26 + $0xd0c] sm:$0xf] }
 0x50d   : > { %v11416_v7 = vor.u32 %v13667_v28, %v11413_v20  ;;  %v12949_v5 = vld [vmem:[#allocation26 + $0xe80] sm:$0xf0]  ;;  %v11804_v28 = vor.u32 %v13780_v4, %v11803_v39  ;;  %v12829_v39 = vld [vmem:[#allocation26 + $0xd88] sm:$0xf0] }
 0x50e   : > { %v4668_v14 = vadd.f32 %v4660_v2, %v4654_v30  ;;  %v11283_v2 = vld [vmem:[#allocation26 + $0x100] sm:$0xf] }
 0x50f   : > { %v4626_v61 = vpop.f32.mrf.mxu2  ;;  %v13651_v30 = vld [vmem:[#allocation26 + $0x17c] sm:$0xf0]  ;;  %8360 = vmatpush.bf16.msra.mxu2 %v11416_v7  ;;  %v12309_v7 = vld [vmem:[#allocation26 + $0x980] sm:$0xf0] }
 0x510   : > { %v4672_v40 = vmax.f32 %v4668_v14, 0.0  ;;  %v4639_v47 = vpop.f32.mrf.mxu3  ;;  %v12952_v14 = vor.u32 %v14051_v53, %v12949_v5  ;;  %v12819_v61 = vld [vmem:[#allocation26 + $0xd00] sm:$0xf]  ;;  %v13891_v53 = vld [vmem:[#allocation26 + $0x904] sm:$0xf] }
 0x511   : > { %v13635_v47 = vld [vmem:[#allocation26 + $0x104] sm:$0xf]  ;;  %v11675_v5 = vld [vmem:[#allocation26 + $0x408] sm:$0xf] }
 0x512   : > { %v4676_v56 = vpack.c.bf16 %v4672_v40, %v4672_v40  ;;  %v14035_v40 = vld [vmem:[#allocation26 + $0xd7c] sm:$0xf0] }
 0x514   : > { %5108 = vmatmul.bf16.vlgmr.msra.gmra.mxu3 %v4676_v56 }
 0x515   : > { %8368 = vmatpush.bf16.msra.mxu3 %v13080_v23  ;;  %v13764_v23 = vld [vmem:[#allocation26 + $0x50c] sm:$0xf] }
 0x516   : > { %v11808_v20 = vor.u32 %v13764_v23, %v11805_v9  ;;  %v12832_v23 = vor.u32 %v14020_v8, %v12829_v39  ;;  %v11163_v9 = vld [vmem:[#allocation26 + $0x8] sm:$0xf]  ;;  %v13797_v8 = vld [vmem:[#allocation26 + $0x614] sm:$0xf] }
 0x519   : > { %8369 = vmatpush.bf16.msra.mxu3 %v12952_v14  ;;  %v11677_v14 = vld [vmem:[#allocation26 + $0x488] sm:$0xf0] }
 0x51f   : > { %v5070_v44 = vpop.f32.mrf.mxu0 }
 0x520   : > { %v5083_v45 = vpop.f32.mrf.mxu1 }
 0x521   : > { %v16499_v37 = vadd.f32 %v5083_v45, %v5070_v44  ;;  %v14019_v44 = vld [vmem:[#allocation26 + $0xd04] sm:$0xf] }
 0x522   : > { %v12821_v45 = vld [vmem:[#allocation26 + $0xd80] sm:$0xf0] }
 0x523   : > { %v12824_v15 = vor.u32 %v14019_v44, %v12821_v45  ;;  %v13875_v44 = vld [vmem:[#allocation26 + $0x87c] sm:$0xf0]  ;;  %v13859_v45 = vld [vmem:[#allocation26 + $0x804] sm:$0xf] }
 0x524   : > { %5160 = vmatmul.bf16.vlgmr.msrb.gmra.mxu3 %v4676_v56  ;;  %v11285_v56 = vld [vmem:[#allocation26 + $0x180] sm:$0xf0] }
 0x525   : > { %v11288_v31 = vor.u32 %v13635_v47, %v11285_v56  ;;  %8370 = vmatpush.bf16.msra.mxu3 %v12824_v15  ;;  %v12179_v47 = vld [vmem:[#allocation26 + $0x800] sm:$0xf]  ;;  %v12312_v56 = vor.u32 %v13891_v53, %v12309_v7  ;;  %v13716_v15 = vld [vmem:[#allocation26 + $0x384] sm:$0xf0] }
 0x526   : > { %v12180_v16 = vor.u32 %v13875_v44, %v12179_v47  ;;  %v13956_v47 = vld [vmem:[#allocation26 + $0xb0c] sm:$0xf] }
 0x527   : > { %v5072_v46 = vpop.f32.mrf.mxu0  ;;  %8361 = vmatpush.bf16.msra.mxu2 %v11288_v31  ;;  %v14100_v31 = vld [vmem:[#allocation26 + $0xf84] sm:$0xf0]  ;;  %v12573_v44 = vld [vmem:[#allocation26 + $0xb88] sm:$0xf0] }
 0x528   : > { %v5085_v59 = vpop.f32.mrf.mxu1 }
 0x529   : > { %v11284_v59 = vor.u32 %v13651_v30, %v11283_v2  ;;  %8371 = vmatpush.bf16.msra.mxu3 %v12696_v42  ;;  %v13748_v2 = vld [vmem:[#allocation26 + $0x484] sm:$0xf0]  ;;  %v13732_v30 = vld [vmem:[#allocation26 + $0x40c] sm:$0xf] }
 0x52a   : > { %v13684_v42 = vld [vmem:[#allocation26 + $0x284] sm:$0xf0] }
 0x52b   : > { %8335 = vmatpush.bf16.msra.mxu0 %v11284_v59  ;;  %8362 = vmatpush.bf16.msra.mxu2 %v11160_v19  ;;  %v12181_v59 = vld [vmem:[#allocation26 + $0x880] sm:$0xf0]  ;;  %v11419_v19 = vld [vmem:[#allocation26 + $0x208] sm:$0xf] }
 0x52c   : > { %v12184_v34 = vor.u32 %v13859_v45, %v12181_v59  ;;  %v11420_v41 = vor.u32 %v13684_v42, %v11419_v19  ;;  %v12576_v45 = vor.u32 %v13956_v47, %v12573_v44  ;;  %v12443_v59 = vld [vmem:[#allocation26 + $0xa08] sm:$0xf]  ;;  %v5165_v19 = vld [vmem:[#allocation23] sm:$0x3]  ;;  %v5173_v42 = vld [vmem:[#allocation25] sm:$0x3] }
 0x52d   : > { %8372 = vmatpush.bf16.msra.mxu3 %v12568_v24 }
 0x52f   : > { %8407 = vmatpush.bf16.msrb.mxu2 %v12064_v22  ;;  %v13668_v22 = vld [vmem:[#allocation26 + $0x20c] sm:$0xf] }
 0x530   : > { %v11424_v63 = vor.u32 %v13668_v22, %v11421_v50 }
 0x531   : > { %8373 = vmatpush.bf16.msra.mxu3 %v12440_v13  ;;  %v12699_v13 = vld [vmem:[#allocation26 + $0xc08] sm:$0xf] }
 0x533   : > { %8408 = vmatpush.bf16.msrb.mxu2 %v11936_v62  ;;  %v12828_v62 = vor.u32 %v14036_v29, %v12827_v38  ;;  %v12068_v38 = vor.u32 %v13845_v32, %v12067_v26  ;;  %v12835_v26 = vld [vmem:[#allocation26 + $0xd10] sm:$0xf]  ;;  %v13637_v32 = vld [vmem:[#allocation26 + $0x114] sm:$0xf] }
 0x535   : > { %8374 = vmatpush.bf16.msra.mxu3 %v12312_v56 }
 0x537   : > { %8409 = vmatpush.bf16.msrb.mxu2 %v11808_v20  ;;  %v11165_v20 = vld [vmem:[#allocation26 + $0x88] sm:$0xf0] }
 0x539   : > { %8375 = vmatpush.bf16.msra.mxu3 %v12184_v34  ;;  %v12187_v34 = vld [vmem:[#allocation26 + $0x808] sm:$0xf] }
 0x53f   : > { %v5122_v18 = vpop.f32.mrf.mxu0 }
 0x540   : > { %v5135_v21 = vpop.f32.mrf.mxu1 }
 0x541   : > { %v16501_v1 = vadd.f32 %v5135_v21, %v5122_v18  ;;  %v12820_v18 = vor.u32 %v14035_v40, %v12819_v61  ;;  %v11155_v21 = vld [vmem:[#allocation26] sm:$0xf]  ;;  %v12308_v40 = vor.u32 %v13907_v36, %v12307_v43  ;;  %v14004_v36 = vld [vmem:[#allocation26 + $0xc84] sm:$0xf0] }
 0x542   : > { %v12700_v53 = vor.u32 %v14004_v36, %v12699_v13 }
 0x543   : > { %8344 = vmatpush.bf16.msra.mxu1 %v12820_v18  ;;  %v11676_v18 = vor.u32 %v13748_v2, %v11675_v5  ;;  %v13988_v5 = vld [vmem:[#allocation26 + $0xc0c] sm:$0xf] }
 0x544   : > { %v12701_v2 = vld [vmem:[#allocation26 + $0xc88] sm:$0xf0] }
 0x547   : > { %v5124_v6 = vpop.f32.mrf.mxu0 }
 0x548   : > { %v5137_v11 = vpop.f32.mrf.mxu1  ;;  %v13619_v6 = vld [vmem:[#allocation26 + $0x7c] sm:$0xf0] }
 0x549   : > { %v14003_v11 = vld [vmem:[#allocation26 + $0xc7c] sm:$0xf0]  ;;  %v11156_v17 = vor.u32 %v13619_v6, %v11155_v21  ;;  %v11680_v21 = vor.u32 %v13732_v30, %v11677_v14  ;;  %v11547_v6 = vld [vmem:[#allocation26 + $0x308] sm:$0xf]  ;;  %v12704_v30 = vor.u32 %v13988_v5, %v12701_v2  ;;  %v13749_v2 = vld [vmem:[#allocation26 + $0x48c] sm:$0xf0] }
 0x54a   : > { %v12692_v0 = vor.u32 %v14003_v11, %v12691_v58  ;;  %v13083_v58 = vld [vmem:[#allocation26 + $0xf08] sm:$0xf]  ;;  %v13700_v11 = vld [vmem:[#allocation26 + $0x30c] sm:$0xf]  ;;  %v11548_v35 = vor.u32 %v13716_v15, %v11547_v6 }
 0x54b   : > { %8336 = vmatpush.bf16.msra.mxu0 %v11156_v17  ;;  %v13084_v33 = vor.u32 %v14100_v31, %v13083_v58  ;;  %8410 = vmatpush.bf16.msrb.mxu2 %v11680_v21  ;;  %v11552_v51 = vor.u32 %v13700_v11, %v11549_v48  ;;  %v13088_v17 = vor.u32 %v14084_v54, %v13085_v49  ;;  %v12571_v14 = vld [vmem:[#allocation26 + $0xb08] sm:$0xf]  ;;  %v13924_v21 = vld [vmem:[#allocation26 + $0xa0c] sm:$0xf] }
 0x54c   : > { %8345 = vmatpush.bf16.msra.mxu1 %v12692_v0  ;;  %v12445_v58 = vld [vmem:[#allocation26 + $0xa88] sm:$0xf0]  ;;  %v12315_v15 = vld [vmem:[#allocation26 + $0x908] sm:$0xf] }
 0x54d   : > { %8420 = vmatpush.bf16.msrb.mxu3 %v13088_v17  ;;  %v12448_v31 = vor.u32 %v13924_v21, %v12445_v58  ;;  %v13908_v11 = vld [vmem:[#allocation26 + $0x984] sm:$0xf0]  ;;  %v13892_v48 = vld [vmem:[#allocation26 + $0x90c] sm:$0xf]  ;;  %v11557_v21 = vld [vmem:[#allocation26 + $0x390] sm:$0xf0] }
 0x54e   : > { %v12317_v54 = vld [vmem:[#allocation26 + $0x988] sm:$0xf0]  ;;  %v14085_v58 = vld [vmem:[#allocation26 + $0xf14] sm:$0xf] }
 0x54f   : > { %8381 = vmatpush.bf16.msrb.mxu0 %v12060_v55  ;;  %8411 = vmatpush.bf16.msrb.mxu2 %v11552_v51  ;;  %v14068_v55 = vld [vmem:[#allocation26 + $0xe84] sm:$0xf0]  ;;  %v12320_v49 = vor.u32 %v13892_v48, %v12317_v54  ;;  %v12189_v17 = vld [vmem:[#allocation26 + $0x888] sm:$0xf0]  ;;  %v11427_v54 = vld [vmem:[#allocation26 + $0x210] sm:$0xf] }
 0x550   : > { %8346 = vmatpush.bf16.msra.mxu1 %v12564_v60  ;;  %v12956_v57 = vor.u32 %v14068_v55, %v12955_v10  ;;  %v13652_v60 = vld [vmem:[#allocation26 + $0x184] sm:$0xf0] }
 0x551   : > { %8421 = vmatpush.bf16.msrb.mxu3 %v12960_v27  ;;  %v13829_v27 = vld [vmem:[#allocation26 + $0x714] sm:$0xf] }
 0x553   : > { %8382 = vmatpush.bf16.msrb.mxu0 %v11932_v3  ;;  %8412 = vmatpush.bf16.msrb.mxu2 %v11424_v63  ;;  %v13636_v3 = vld [vmem:[#allocation26 + $0x10c] sm:$0xf] }
 0x554   : > { %8347 = vmatpush.bf16.msra.mxu1 %v12436_v25  ;;  %v11296_v4 = vor.u32 %v13636_v3, %v11293_v52  ;;  %v13620_v25 = vld [vmem:[#allocation26 + $0x84] sm:$0xf0]  ;;  %v11939_v3 = vld [vmem:[#allocation26 + $0x610] sm:$0xf] }
 0x555   : > { %v11164_v43 = vor.u32 %v13620_v25, %v11163_v9  ;;  %8422 = vmatpush.bf16.msrb.mxu3 %v12832_v23  ;;  %v13813_v52 = vld [vmem:[#allocation26 + $0x68c] sm:$0xf0]  ;;  %v13765_v9 = vld [vmem:[#allocation26 + $0x514] sm:$0xf] }
 0x556   : > { %v16503_v46 = vpop.f32.mrf.mxu2  ;;  %v13781_v23 = vld [vmem:[#allocation26 + $0x58c] sm:$0xf0]  ;;  %v11813_v25 = vld [vmem:[#allocation26 + $0x590] sm:$0xf0] }
 0x557   : > { %8383 = vmatpush.bf16.msrb.mxu0 %v11804_v28  ;;  %8413 = vmatpush.bf16.msrb.mxu2 %v11296_v4  ;;  %v13604_v28 = vld [vmem:[#allocation26 + $0xc] sm:$0xf]  ;;  %v5097_v10 = vadd.f32 %v16503_v46, %v16499_v37  ;;  %v11941_v37 = vld [vmem:[#allocation26 + $0x690] sm:$0xf0]  ;;  %v11940_v46 = vor.u32 %v13813_v52, %v11939_v3  ;;  %v11811_v4 = vld [vmem:[#allocation26 + $0x510] sm:$0xf] }
 0x558   : > { %8348 = vmatpush.bf16.msra.mxu1 %v12308_v40  ;;  %v11168_v7 = vor.u32 %v13604_v28, %v11165_v20  ;;  %v13972_v40 = vld [vmem:[#allocation26 + $0xb84] sm:$0xf0]  ;;  %v11944_v39 = vor.u32 %v13797_v8, %v11941_v37  ;;  %v5176_v28 = vperm.slane %v5173_v42, 1  ;;  %v11812_v20 = vor.u32 %v13781_v23, %v11811_v4  ;;  %v13621_v3 = vld [vmem:[#allocation26 + $0x8c] sm:$0xf0] }
 0x559   : > { %v12572_v56 = vor.u32 %v13972_v40, %v12571_v14  ;;  %8423 = vmatpush.bf16.msrb.mxu3 %v12704_v30  ;;  %v13733_v30 = vld [vmem:[#allocation26 + $0x414] sm:$0xf]  ;;  %v12707_v52 = vld [vmem:[#allocation26 + $0xc10] sm:$0xf] }
 0x55a   : > { %v11685_v14 = vld [vmem:[#allocation26 + $0x490] sm:$0xf0] }
 0x55b   : > { %8384 = vmatpush.bf16.msrb.mxu0 %v11676_v18  ;;  %8414 = vmatpush.bf16.msrb.mxu2 %v11168_v7  ;;  %v13940_v18 = vld [vmem:[#allocation26 + $0xa84] sm:$0xf0]  ;;  %v11683_v7 = vld [vmem:[#allocation26 + $0x410] sm:$0xf]  ;;  %v11173_v4 = vld [vmem:[#allocation26 + $0x90] sm:$0xf0] }
 0x55c   : > { %8349 = vmatpush.bf16.msra.mxu1 %v12180_v16  ;;  %v12444_v6 = vor.u32 %v13940_v18, %v12443_v59  ;;  %v12316_v16 = vor.u32 %v13908_v11, %v12315_v15  ;;  %v11684_v47 = vor.u32 %v13749_v2, %v11683_v7  ;;  %v14101_v59 = vld [vmem:[#allocation26 + $0xf8c] sm:$0xf0]  ;;  %v13701_v18 = vld [vmem:[#allocation26 + $0x314] sm:$0xf] }
 0x55d   : > { %8424 = vmatpush.bf16.msrb.mxu3 %v12576_v45  ;;  %v11555_v45 = vld [vmem:[#allocation26 + $0x310] sm:$0xf]  ;;  %v13989_v23 = vld [vmem:[#allocation26 + $0xc14] sm:$0xf] }
 0x55e   : > { %v5098_v12 = vpop.f32.mrf.mxu2  ;;  %v13973_v2 = vld [vmem:[#allocation26 + $0xb8c] sm:$0xf0] }
 0x55f   : > { %8385 = vmatpush.bf16.msrb.mxu0 %v11548_v35  ;;  %v11291_v12 = vld [vmem:[#allocation26 + $0x108] sm:$0xf]  ;;  %v13860_v35 = vld [vmem:[#allocation26 + $0x80c] sm:$0xf] }
 0x560   : > { %8394 = vmatpush.bf16.msrb.mxu1 %v13084_v33  ;;  %v11292_v24 = vor.u32 %v13652_v60, %v11291_v12  ;;  %v13876_v33 = vld [vmem:[#allocation26 + $0x884] sm:$0xf0]  ;;  %v12069_v12 = vld [vmem:[#allocation26 + $0x790] sm:$0xf0] }
 0x561   : > { %8425 = vmatpush.bf16.msrb.mxu3 %v12448_v31  ;;  %v12188_v51 = vor.u32 %v13876_v33, %v12187_v34  ;;  %v12072_v29 = vor.u32 %v13829_v27, %v12069_v12  ;;  %v13093_v31 = vld [vmem:[#allocation26 + $0xf90] sm:$0xf0]  ;;  %v11560_v34 = vor.u32 %v13701_v18, %v11557_v21  ;;  %v12451_v18 = vld [vmem:[#allocation26 + $0xa10] sm:$0xf] }
 0x562   : > { %v13096_v33 = vor.u32 %v14085_v58, %v13093_v31  ;;  %v11301_v27 = vld [vmem:[#allocation26 + $0x190] sm:$0xf0]  ;;  %v13941_v21 = vld [vmem:[#allocation26 + $0xa8c] sm:$0xf0] }
 0x563   : > { %8386 = vmatpush.bf16.msrb.mxu0 %v11420_v41  ;;  %v5167_v41 = vperm.slane %v5165_v19, 0  ;;  %v14021_v12 = vld [vmem:[#allocation26 + $0xd14] sm:$0xf]  ;;  %v11304_v8 = vor.u32 %v13637_v32, %v11301_v27 }
 0x564   : > { %8395 = vmatpush.bf16.msrb.mxu1 %v12956_v57  ;;  %v5175_v57 = vperm.slane %v5173_v42, 0  ;;  %v12965_v42 = vld [vmem:[#allocation26 + $0xe90] sm:$0xf0] }
 0x565   : > { %8426 = vmatpush.bf16.msrb.mxu3 %v12320_v49  ;;  %v13685_v49 = vld [vmem:[#allocation26 + $0x28c] sm:$0xf0]  ;;  %v13925_v31 = vld [vmem:[#allocation26 + $0xa14] sm:$0xf] }
 0x566   : > { %v16505_v61 = vpop.f32.mrf.mxu2  ;;  %v13861_v32 = vld [vmem:[#allocation26 + $0x814] sm:$0xf] }
 0x567   : > { %8387 = vmatpush.bf16.msrb.mxu0 %v11292_v24  ;;  %v5149_v13 = vadd.f32 %v16505_v61, %v16501_v1  ;;  %v13717_v1 = vld [vmem:[#allocation26 + $0x38c] sm:$0xf0]  ;;  %v12197_v27 = vld [vmem:[#allocation26 + $0x890] sm:$0xf0] }
 0x568   : > { %8396 = vmatpush.bf16.msrb.mxu1 %v12828_v62  ;;  %v13091_v61 = vld [vmem:[#allocation26 + $0xf10] sm:$0xf]  ;;  %v11556_v48 = vor.u32 %v13717_v1, %v11555_v45  ;;  %v13798_v45 = vld [vmem:[#allocation26 + $0x61c] sm:$0xf] }
 0x569   : > { %v11949_v1 = vld [vmem:[#allocation26 + $0x698] sm:$0xf0] }
 0x56a   : > { %v11952_v58 = vor.u32 %v13798_v45, %v11949_v1  ;;  %v13654_v1 = vld [vmem:[#allocation26 + $0x194] sm:$0xf0] }
 0x56b   : > { %8388 = vmatpush.bf16.msrb.mxu0 %v11164_v43  ;;  %v5168_v43 = vperm.slane %v5165_v19, 1  ;;  %v14053_v19 = vld [vmem:[#allocation26 + $0xe14] sm:$0xf] }
 0x56c   : > { %8397 = vmatpush.bf16.msrb.mxu1 %v12700_v53  ;;  %v11816_v53 = vor.u32 %v13765_v9, %v11813_v25  ;;  %v12709_v9 = vld [vmem:[#allocation26 + $0xc90] sm:$0xf0]  ;;  %v12075_v25 = vld [vmem:[#allocation26 + $0x718] sm:$0xf] }
 0x56d   : > { %v12712_v7 = vor.u32 %v13989_v23, %v12709_v9 }
 0x56e   : > { %v5150_v0 = vpop.f32.mrf.mxu2 }
 0x56f   : > { %v12192_v0 = vor.u32 %v13860_v35, %v12189_v17  ;;  %v12963_v35 = vld [vmem:[#allocation26 + $0xe10] sm:$0xf]  ;;  %v13669_v17 = vld [vmem:[#allocation26 + $0x214] sm:$0xf] }
 0x570   : > { %8398 = vmatpush.bf16.msrb.mxu1 %v12572_v56  ;;  %v11688_v56 = vor.u32 %v13733_v30, %v11685_v14 }
 0x571   : > { %8427 = vmatpush.bf16.msrb.mxu3 %v12192_v0  ;;  %v11429_v0 = vld [vmem:[#allocation26 + $0x290] sm:$0xf0] }
 0x574   : > { %8399 = vmatpush.bf16.msrb.mxu1 %v12444_v6 }
 0x578   : > { %8400 = vmatpush.bf16.msrb.mxu1 %v12316_v16  ;;  %v13092_v16 = vor.u32 %v14101_v59, %v13091_v61 }
 0x57c   : > { %8401 = vmatpush.bf16.msrb.mxu1 %v12188_v51  ;;  %v14069_v51 = vld [vmem:[#allocation26 + $0xe8c] sm:$0xf0] }
 0x597   : > { %v5109_v55 = vpop.f32.mrf.mxu3 }
 0x598   : > { %v5110_v22 = vadd.f32 %v5109_v55, %v5097_v10  ;;  %v11428_v10 = vor.u32 %v13685_v49, %v11427_v54  ;;  %v11299_v55 = vld [vmem:[#allocation26 + $0x110] sm:$0xf]  ;;  %v13766_v54 = vld [vmem:[#allocation26 + $0x51c] sm:$0xf] }
 0x599   : > { %v11821_v49 = vld [vmem:[#allocation26 + $0x598] sm:$0xf0] }
 0x59a   : > { %v5171_v50 = vmul.f32 %v5167_v41, %v5110_v22  ;;  %v12964_v41 = vor.u32 %v14069_v51, %v12963_v35  ;;  %v13653_v22 = vld [vmem:[#allocation26 + $0x18c] sm:$0xf0] }
 0x59b   : > { %v12323_v35 = vld [vmem:[#allocation26 + $0x910] sm:$0xf] }
 0x59c   : > { %v5179_v63 = vadd.f32 %v5175_v57, %v5171_v50  ;;  %v11432_v57 = vor.u32 %v13669_v17, %v11429_v0  ;;  %v12968_v50 = vor.u32 %v14053_v19, %v12965_v42  ;;  %v13909_v51 = vld [vmem:[#allocation26 + $0x98c] sm:$0xf0]  ;;  %v11824_v0 = vor.u32 %v13766_v54, %v11821_v49  ;;  %v13893_v19 = vld [vmem:[#allocation26 + $0x914] sm:$0xf]  ;;  %v14006_v54 = vld [vmem:[#allocation26 + $0xc94] sm:$0xf0] }
 0x59d   : > { %v12325_v42 = vld [vmem:[#allocation26 + $0x990] sm:$0xf0] }
 0x59e   : > { %v5181_v60 = vmax.f32 %v5179_v63, 0.0  ;;  %v14037_v63 = vld [vmem:[#allocation26 + $0xd8c] sm:$0xf0] }
 0x59f   : > { %v5111_v24 = vpop.f32.mrf.mxu3 }
 0x5a0   : > { %v16509_v62 = vpack.c.bf16 %v5181_v60, %v5181_v60  ;;  %v12837_v60 = vld [vmem:[#allocation26 + $0xd90] sm:$0xf0]  ;;  %v11300_v24 = vor.u32 %v13653_v22, %v11299_v55  ;;  %v13734_v55 = vld [vmem:[#allocation26 + $0x41c] sm:$0xf] }
 0x5a1   : > { %v12840_v37 = vor.u32 %v14021_v12, %v12837_v60  ;;  %v11693_v22 = vld [vmem:[#allocation26 + $0x498] sm:$0xf0] }
 0x5a2   : > { %8337 = vmatmul.bf16.vlgmr.msra.gmra.mxu0 %v16509_v62  ;;  %8363 = vmatmul.bf16.vlgmr.msra.gmra.mxu2 %v16509_v62  ;;  %v11696_v60 = vor.u32 %v13734_v55, %v11693_v22 }
 0x5a3   : > { %8433 = vmatpush.bf16.msra.mxu0 %v12068_v38  ;;  %8459 = vmatpush.bf16.msra.mxu2 %v12072_v29  ;;  %v12836_v38 = vor.u32 %v14037_v63, %v12835_v26  ;;  %v11171_v29 = vld [vmem:[#allocation26 + $0x10] sm:$0xf]  ;;  %v12328_v26 = vor.u32 %v13893_v19, %v12325_v42  ;;  %v13831_v42 = vld [vmem:[#allocation26 + $0x724] sm:$0xf] }
 0x5a4   : > { %v13877_v63 = vld [vmem:[#allocation26 + $0x88c] sm:$0xf0] }
 0x5a7   : > { %8434 = vmatpush.bf16.msra.mxu0 %v11940_v46  ;;  %8460 = vmatpush.bf16.msra.mxu2 %v11944_v39  ;;  %v5161_v36 = vpop.f32.mrf.mxu3  ;;  %v14005_v46 = vld [vmem:[#allocation26 + $0xc8c] sm:$0xf0]  ;;  %v13605_v39 = vld [vmem:[#allocation26 + $0x14] sm:$0xf] }
 0x5a8   : > { %v5162_v5 = vadd.f32 %v5161_v36, %v5149_v13  ;;  %v13846_v13 = vld [vmem:[#allocation26 + $0x794] sm:$0xf0]  ;;  %v12077_v36 = vld [vmem:[#allocation26 + $0x798] sm:$0xf0] }
 0x5a9   : > { %v12076_v30 = vor.u32 %v13846_v13, %v12075_v25  ;;  %v11435_v13 = vld [vmem:[#allocation26 + $0x218] sm:$0xf] }
 0x5aa   : > { %v5172_v40 = vmul.f32 %v5168_v43, %v5162_v5  ;;  %v13830_v43 = vld [vmem:[#allocation26 + $0x71c] sm:$0xf]  ;;  %v12579_v5 = vld [vmem:[#allocation26 + $0xb10] sm:$0xf] }
 0x5ab   : > { %8435 = vmatpush.bf16.msra.mxu0 %v11812_v20  ;;  %8461 = vmatpush.bf16.msra.mxu2 %v11816_v53  ;;  %v12708_v20 = vor.u32 %v14005_v46, %v12707_v52  ;;  %v11176_v53 = vor.u32 %v13605_v39, %v11173_v4  ;;  %v12080_v14 = vor.u32 %v13830_v43, %v12077_v36  ;;  %v13702_v52 = vld [vmem:[#allocation26 + $0x31c] sm:$0xf]  ;;  %v12971_v43 = vld [vmem:[#allocation26 + $0xe18] sm:$0xf] }
 0x5ac   : > { %v5180_v44 = vadd.f32 %v5176_v28, %v5172_v40  ;;  %v11172_v28 = vor.u32 %v13621_v3, %v11171_v29  ;;  %v13957_v40 = vld [vmem:[#allocation26 + $0xb14] sm:$0xf]  ;;  %v12580_v61 = vor.u32 %v13973_v2, %v12579_v5  ;;  %v14102_v29 = vld [vmem:[#allocation26 + $0xf94] sm:$0xf0]  ;;  %v14086_v46 = vld [vmem:[#allocation26 + $0xf1c] sm:$0xf]  ;;  %v12200_v4 = vor.u32 %v13861_v32, %v12197_v27 }
 0x5ad   : > { %v13718_v3 = vld [vmem:[#allocation26 + $0x394] sm:$0xf0]  ;;  %v13101_v39 = vld [vmem:[#allocation26 + $0xf98] sm:$0xf0] }
 0x5ae   : > { %v5182_v6 = vmax.f32 %v5180_v44, 0.0  ;;  %v13814_v44 = vld [vmem:[#allocation26 + $0x694] sm:$0xf0]  ;;  %v14054_v5 = vld [vmem:[#allocation26 + $0xe1c] sm:$0xf] }
 0x5af   : > { %8436 = vmatpush.bf16.msra.mxu0 %v11684_v47  ;;  %8462 = vmatpush.bf16.msra.mxu2 %v11688_v56  ;;  %v5163_v15 = vpop.f32.mrf.mxu3  ;;  %v12581_v47 = vld [vmem:[#allocation26 + $0xb90] sm:$0xf0]  ;;  %v11947_v56 = vld [vmem:[#allocation26 + $0x618] sm:$0xf]  ;;  %v12973_v2 = vld [vmem:[#allocation26 + $0xe98] sm:$0xf0] }
 0x5b0   : > { %v16515_v11 = vpack.c.bf16 %v5182_v6, %v5182_v6  ;;  %v12584_v59 = vor.u32 %v13957_v40, %v12581_v47  ;;  %v11948_v6 = vor.u32 %v13814_v44, %v11947_v56  ;;  %v12453_v15 = vld [vmem:[#allocation26 + $0xa90] sm:$0xf0]  ;;  %v14070_v36 = vld [vmem:[#allocation26 + $0xe94] sm:$0xf0]  ;;  %v12976_v45 = vor.u32 %v14054_v5, %v12973_v2  ;;  %v12589_v27 = vld [vmem:[#allocation26 + $0xb98] sm:$0xf0] }
 0x5b1   : > { %v11307_v47 = vld [vmem:[#allocation26 + $0x118] sm:$0xf]  ;;  %v12333_v2 = vld [vmem:[#allocation26 + $0x998] sm:$0xf0] }
 0x5b2   : > { %8350 = vmatmul.bf16.vlgmr.msra.gmra.mxu1 %v16515_v11  ;;  %8376 = vmatmul.bf16.vlgmr.msra.gmra.mxu3 %v16515_v11  ;;  %v12843_v56 = vld [vmem:[#allocation26 + $0xd18] sm:$0xf] }
 0x5b3   : > { %8389 = vmatmul.bf16.vlgmr.msrb.gmra.mxu0 %v16509_v62  ;;  %8415 = vmatmul.bf16.vlgmr.msrb.gmra.mxu2 %v16509_v62  ;;  %v14038_v44 = vld [vmem:[#allocation26 + $0xd94] sm:$0xf0] }
 0x5b4   : > { %8437 = vmatpush.bf16.msra.mxu0 %v11556_v48  ;;  %8446 = vmatpush.bf16.msra.mxu1 %v13092_v16  ;;  %v11819_v48 = vld [vmem:[#allocation26 + $0x518] sm:$0xf] }
 0x5b5   : > { %8463 = vmatpush.bf16.msra.mxu2 %v11560_v34  ;;  %8472 = vmatpush.bf16.msra.mxu3 %v13096_v33  ;;  %v13782_v16 = vld [vmem:[#allocation26 + $0x594] sm:$0xf0]  ;;  %v12452_v34 = vor.u32 %v13941_v21, %v12451_v18  ;;  %v12456_v33 = vor.u32 %v13925_v31, %v12453_v15  ;;  %v14022_v18 = vld [vmem:[#allocation26 + $0xd1c] sm:$0xf]  ;;  %v11308_v31 = vor.u32 %v13654_v1, %v11307_v47  ;;  %v11701_v47 = vld [vmem:[#allocation26 + $0x4a0] sm:$0xf0] }
 0x5b6   : > { %v11820_v17 = vor.u32 %v13782_v16, %v11819_v48  ;;  %v12845_v21 = vld [vmem:[#allocation26 + $0xd98] sm:$0xf0]  ;;  %v13622_v48 = vld [vmem:[#allocation26 + $0x94] sm:$0xf0] }
 0x5b7   : > { %v12715_v16 = vld [vmem:[#allocation26 + $0xc18] sm:$0xf]  ;;  %v12848_v49 = vor.u32 %v14022_v18, %v12845_v21  ;;  %v12205_v18 = vld [vmem:[#allocation26 + $0x898] sm:$0xf0] }
 0x5b8   : > { %8438 = vmatpush.bf16.msra.mxu0 %v11428_v10  ;;  %8447 = vmatpush.bf16.msra.mxu1 %v12964_v41  ;;  %v11691_v10 = vld [vmem:[#allocation26 + $0x418] sm:$0xf]  ;;  %v12716_v19 = vor.u32 %v14006_v54, %v12715_v16  ;;  %v11573_v16 = vld [vmem:[#allocation26 + $0x3a0] sm:$0xf0] }
 0x5b9   : > { %8464 = vmatpush.bf16.msra.mxu2 %v11432_v57  ;;  %8473 = vmatpush.bf16.msra.mxu3 %v12968_v50  ;;  %v13750_v41 = vld [vmem:[#allocation26 + $0x494] sm:$0xf0]  ;;  %v12324_v57 = vor.u32 %v13909_v51, %v12323_v35  ;;  %v12195_v50 = vld [vmem:[#allocation26 + $0x810] sm:$0xf]  ;;  %v13990_v35 = vld [vmem:[#allocation26 + $0xc1c] sm:$0xf] }
 0x5ba   : > { %v11692_v12 = vor.u32 %v13750_v41, %v11691_v10  ;;  %v12717_v51 = vld [vmem:[#allocation26 + $0xc98] sm:$0xf0]  ;;  %v12085_v10 = vld [vmem:[#allocation26 + $0x7a0] sm:$0xf0] }
 0x5bb   : > { %v12720_v22 = vor.u32 %v13990_v35, %v12717_v51  ;;  %v12088_v32 = vor.u32 %v13831_v42, %v12085_v10  ;;  %v12979_v42 = vld [vmem:[#allocation26 + $0xe20] sm:$0xf] }
 0x5bc   : > { %8439 = vmatpush.bf16.msra.mxu0 %v11300_v24  ;;  %8448 = vmatpush.bf16.msra.mxu1 %v12836_v38  ;;  %v11563_v24 = vld [vmem:[#allocation26 + $0x318] sm:$0xf] }
 0x5bd   : > { %8465 = vmatpush.bf16.msra.mxu2 %v11304_v8  ;;  %8474 = vmatpush.bf16.msra.mxu3 %v12840_v37  ;;  %v13099_v38 = vld [vmem:[#allocation26 + $0xf18] sm:$0xf]  ;;  %v11565_v8 = vld [vmem:[#allocation26 + $0x398] sm:$0xf0]  ;;  %v12196_v37 = vor.u32 %v13877_v63, %v12195_v50  ;;  %v11564_v9 = vor.u32 %v13718_v3, %v11563_v24  ;;  %v13799_v24 = vld [vmem:[#allocation26 + $0x624] sm:$0xf] }
 0x5be   : > { %v13100_v23 = vor.u32 %v14102_v29, %v13099_v38  ;;  %v11568_v25 = vor.u32 %v13702_v52, %v11565_v8  ;;  %v12587_v50 = vld [vmem:[#allocation26 + $0xb18] sm:$0xf]  ;;  %v13958_v63 = vld [vmem:[#allocation26 + $0xb1c] sm:$0xf]  ;;  %v11957_v38 = vld [vmem:[#allocation26 + $0x6a0] sm:$0xf0] }
 0x5bf   : > { %v12592_v3 = vor.u32 %v13958_v63, %v12589_v27  ;;  %v12459_v8 = vld [vmem:[#allocation26 + $0xa18] sm:$0xf]  ;;  %v11315_v27 = vld [vmem:[#allocation26 + $0x120] sm:$0xf] }
 0x5c0   : > { %8440 = vmatpush.bf16.msra.mxu0 %v11172_v28  ;;  %8449 = vmatpush.bf16.msra.mxu1 %v12708_v20  ;;  %v13104_v28 = vor.u32 %v14086_v46, %v13101_v39  ;;  %v13686_v20 = vld [vmem:[#allocation26 + $0x294] sm:$0xf0]  ;;  %v13926_v46 = vld [vmem:[#allocation26 + $0xa1c] sm:$0xf]  ;;  %v11960_v39 = vor.u32 %v13799_v24, %v11957_v38  ;;  %v14039_v38 = vld [vmem:[#allocation26 + $0xd9c] sm:$0xf0] }
 0x5c1   : > { %8466 = vmatpush.bf16.msra.mxu2 %v11176_v53  ;;  %8475 = vmatpush.bf16.msra.mxu3 %v12712_v7  ;;  %v13670_v53 = vld [vmem:[#allocation26 + $0x21c] sm:$0xf] }
 0x5c2   : > { %8402 = vmatmul.bf16.vlgmr.msrb.gmra.mxu1 %v16515_v11  ;;  %8428 = vmatmul.bf16.vlgmr.msrb.gmra.mxu3 %v16515_v11  ;;  %v11437_v7 = vld [vmem:[#allocation26 + $0x298] sm:$0xf0] }
 0x5c3   : > { %8441 = vmatmul.bf16.vlgmr.msra.gmra.mxu0 %v16509_v62  ;;  %v11440_v40 = vor.u32 %v13670_v53, %v11437_v7  ;;  %v13910_v53 = vld [vmem:[#allocation26 + $0x994] sm:$0xf0]  ;;  %v13894_v7 = vld [vmem:[#allocation26 + $0x91c] sm:$0xf] }
 0x5c4   : > { %8485 = vmatpush.bf16.msrb.mxu0 %v12076_v30  ;;  %8450 = vmatpush.bf16.msra.mxu1 %v12580_v61  ;;  %v12972_v30 = vor.u32 %v14070_v36, %v12971_v43  ;;  %v13638_v61 = vld [vmem:[#allocation26 + $0x11c] sm:$0xf] }
 0x5c5   : > { %8511 = vmatpush.bf16.msrb.mxu2 %v12080_v14  ;;  %8476 = vmatpush.bf16.msra.mxu3 %v12584_v59  ;;  %v11436_v14 = vor.u32 %v13686_v20, %v11435_v13  ;;  %v11309_v59 = vld [vmem:[#allocation26 + $0x198] sm:$0xf0]  ;;  %v11829_v13 = vld [vmem:[#allocation26 + $0x5a0] sm:$0xf0]  ;;  %v12331_v20 = vld [vmem:[#allocation26 + $0x918] sm:$0xf] }
 0x5c6   : > { %8467 = vmatmul.bf16.vlgmr.msra.gmra.mxu2 %v16509_v62  ;;  %v11312_v15 = vor.u32 %v13638_v61, %v11309_v59  ;;  %v13878_v61 = vld [vmem:[#allocation26 + $0x894] sm:$0xf0]  ;;  %v13862_v59 = vld [vmem:[#allocation26 + $0x81c] sm:$0xf] }
 0x5c8   : > { %8486 = vmatpush.bf16.msrb.mxu0 %v11948_v6  ;;  %8451 = vmatpush.bf16.msra.mxu1 %v12452_v34  ;;  %v12844_v6 = vor.u32 %v14038_v44, %v12843_v56  ;;  %v13606_v34 = vld [vmem:[#allocation26 + $0x1c] sm:$0xf]  ;;  %v12332_v56 = vor.u32 %v13910_v53, %v12331_v20  ;;  %v12203_v44 = vld [vmem:[#allocation26 + $0x818] sm:$0xf]  ;;  %v12725_v20 = vld [vmem:[#allocation26 + $0xca0] sm:$0xf0] }
 0x5c9   : > { %8512 = vmatpush.bf16.msrb.mxu2 %v11952_v58  ;;  %8477 = vmatpush.bf16.msra.mxu3 %v12456_v33  ;;  %v11179_v58 = vld [vmem:[#allocation26 + $0x18] sm:$0xf]  ;;  %v11181_v33 = vld [vmem:[#allocation26 + $0x98] sm:$0xf0]  ;;  %v12204_v54 = vor.u32 %v13878_v61, %v12203_v44  ;;  %v12091_v53 = vld [vmem:[#allocation26 + $0x728] sm:$0xf] }
 0x5ca   : > { %v11180_v41 = vor.u32 %v13622_v48, %v11179_v58  ;;  %v11184_v55 = vor.u32 %v13606_v34, %v11181_v33  ;;  %v13719_v58 = vld [vmem:[#allocation26 + $0x39c] sm:$0xf0]  ;;  %v13703_v48 = vld [vmem:[#allocation26 + $0x324] sm:$0xf]  ;;  %v12208_v33 = vor.u32 %v13862_v59, %v12205_v18  ;;  %v11963_v18 = vld [vmem:[#allocation26 + $0x628] sm:$0xf] }
 0x5cb   : > { %v13109_v34 = vld [vmem:[#allocation26 + $0xfa0] sm:$0xf0]  ;;  %v12595_v44 = vld [vmem:[#allocation26 + $0xb20] sm:$0xf] }
 0x5cc   : > { %8487 = vmatpush.bf16.msrb.mxu0 %v11820_v17  ;;  %8452 = vmatpush.bf16.msra.mxu1 %v12324_v57  ;;  %v12083_v17 = vld [vmem:[#allocation26 + $0x720] sm:$0xf]  ;;  %v12597_v59 = vld [vmem:[#allocation26 + $0xba0] sm:$0xf0] }
 0x5cd   : > { %8513 = vmatpush.bf16.msrb.mxu2 %v11824_v0  ;;  %8478 = vmatpush.bf16.msra.mxu3 %v12328_v26  ;;  %v13847_v0 = vld [vmem:[#allocation26 + $0x79c] sm:$0xf0]  ;;  %v13974_v26 = vld [vmem:[#allocation26 + $0xb94] sm:$0xf0] }
 0x5ce   : > { %v12084_v57 = vor.u32 %v13847_v0, %v12083_v17  ;;  %v12588_v29 = vor.u32 %v13974_v26, %v12587_v50  ;;  %v11576_v17 = vor.u32 %v13703_v48, %v11573_v16  ;;  %v11443_v0 = vld [vmem:[#allocation26 + $0x220] sm:$0xf]  ;;  %v12981_v50 = vld [vmem:[#allocation26 + $0xea0] sm:$0xf0] }
 0x5cf   : > { %v12467_v16 = vld [vmem:[#allocation26 + $0xa20] sm:$0xf] }
 0x5d0   : > { %8488 = vmatpush.bf16.msrb.mxu0 %v11692_v12  ;;  %8453 = vmatpush.bf16.msra.mxu1 %v12196_v37  ;;  %v11955_v12 = vld [vmem:[#allocation26 + $0x620] sm:$0xf]  ;;  %v13942_v37 = vld [vmem:[#allocation26 + $0xa94] sm:$0xf0] }
 0x5d1   : > { %8514 = vmatpush.bf16.msrb.mxu2 %v11696_v60  ;;  %8479 = vmatpush.bf16.msra.mxu3 %v12200_v4  ;;  %v13815_v60 = vld [vmem:[#allocation26 + $0x69c] sm:$0xf0]  ;;  %v12461_v4 = vld [vmem:[#allocation26 + $0xa98] sm:$0xf0]  ;;  %v12460_v43 = vor.u32 %v13942_v37, %v12459_v8  ;;  %v12853_v8 = vld [vmem:[#allocation26 + $0xda0] sm:$0xf0] }
 0x5d2   : > { %v11956_v52 = vor.u32 %v13815_v60, %v11955_v12  ;;  %v12464_v36 = vor.u32 %v13926_v46, %v12461_v4  ;;  %v13655_v12 = vld [vmem:[#allocation26 + $0x19c] sm:$0xf0] }
 0x5d3   : > { %8454 = vmatmul.bf16.vlgmr.msra.gmra.mxu1 %v16515_v11  ;;  %v12851_v60 = vld [vmem:[#allocation26 + $0xd20] sm:$0xf]  ;;  %v11316_v37 = vor.u32 %v13655_v12, %v11315_v27  ;;  %v11709_v27 = vld [vmem:[#allocation26 + $0x4a8] sm:$0xf0] }
 0x5d4   : > { %8498 = vmatpush.bf16.msrb.mxu1 %v13100_v23  ;;  %8489 = vmatpush.bf16.msrb.mxu0 %v11564_v9  ;;  %v11827_v23 = vld [vmem:[#allocation26 + $0x520] sm:$0xf] }
 0x5d5   : > { %8515 = vmatpush.bf16.msrb.mxu2 %v11568_v25  ;;  %8524 = vmatpush.bf16.msrb.mxu3 %v13104_v28  ;;  %v13783_v9 = vld [vmem:[#allocation26 + $0x59c] sm:$0xf0]  ;;  %v13767_v25 = vld [vmem:[#allocation26 + $0x524] sm:$0xf] }
 0x5d6   : > { %8480 = vmatmul.bf16.vlgmr.msra.gmra.mxu3 %v16515_v11  ;;  %v11828_v28 = vor.u32 %v13783_v9, %v11827_v23  ;;  %v11832_v5 = vor.u32 %v13767_v25, %v11829_v13  ;;  %v11187_v46 = vld [vmem:[#allocation26 + $0x20] sm:$0xf] }
 0x5d7   : > { %v13623_v23 = vld [vmem:[#allocation26 + $0x9c] sm:$0xf0] }
 0x5d8   : > { %8499 = vmatpush.bf16.msrb.mxu1 %v12972_v30  ;;  %8490 = vmatpush.bf16.msrb.mxu0 %v11436_v14  ;;  %v11699_v30 = vld [vmem:[#allocation26 + $0x420] sm:$0xf] }
 0x5d9   : > { %8516 = vmatpush.bf16.msrb.mxu2 %v11440_v40  ;;  %8525 = vmatpush.bf16.msrb.mxu3 %v12976_v45  ;;  %v13751_v14 = vld [vmem:[#allocation26 + $0x49c] sm:$0xf0]  ;;  %v13735_v40 = vld [vmem:[#allocation26 + $0x424] sm:$0xf]  ;;  %v12336_v45 = vor.u32 %v13894_v7, %v12333_v2  ;;  %v13848_v7 = vld [vmem:[#allocation26 + $0x7a4] sm:$0xf0] }
 0x5da   : > { %v11700_v1 = vor.u32 %v13751_v14, %v11699_v30  ;;  %v11704_v21 = vor.u32 %v13735_v40, %v11701_v47  ;;  %v12723_v9 = vld [vmem:[#allocation26 + $0xc20] sm:$0xf]  ;;  %v13832_v2 = vld [vmem:[#allocation26 + $0x72c] sm:$0xf] }
 0x5db   : > { %v14007_v25 = vld [vmem:[#allocation26 + $0xc9c] sm:$0xf0]  ;;  %v12093_v30 = vld [vmem:[#allocation26 + $0x7a8] sm:$0xf0] }
 0x5dc   : > { %8500 = vmatpush.bf16.msrb.mxu1 %v12844_v6  ;;  %8491 = vmatpush.bf16.msrb.mxu0 %v11308_v31  ;;  %v11571_v6 = vld [vmem:[#allocation26 + $0x320] sm:$0xf]  ;;  %v12724_v14 = vor.u32 %v14007_v25, %v12723_v9  ;;  %v12096_v61 = vor.u32 %v13832_v2, %v12093_v30  ;;  %v11581_v9 = vld [vmem:[#allocation26 + $0x3a8] sm:$0xf0]  ;;  %v12987_v2 = vld [vmem:[#allocation26 + $0xe28] sm:$0xf] }
 0x5dd   : > { %8517 = vmatpush.bf16.msrb.mxu2 %v11312_v15  ;;  %8526 = vmatpush.bf16.msrb.mxu3 %v12848_v49  ;;  %v13107_v31 = vld [vmem:[#allocation26 + $0xf20] sm:$0xf]  ;;  %v14087_v49 = vld [vmem:[#allocation26 + $0xf24] sm:$0xf]  ;;  %v11572_v35 = vor.u32 %v13719_v58, %v11571_v6  ;;  %v13800_v6 = vld [vmem:[#allocation26 + $0x62c] sm:$0xf] }
 0x5de   : > { %v14103_v15 = vld [vmem:[#allocation26 + $0xf9c] sm:$0xf0]  ;;  %v13112_v10 = vor.u32 %v14087_v49, %v13109_v34  ;;  %v11965_v58 = vld [vmem:[#allocation26 + $0x6a8] sm:$0xf0]  ;;  %v13927_v49 = vld [vmem:[#allocation26 + $0xa24] sm:$0xf] }
 0x5df   : > { %v13108_v51 = vor.u32 %v14103_v15, %v13107_v31  ;;  %v11968_v34 = vor.u32 %v13800_v6, %v11965_v58  ;;  %v14040_v58 = vld [vmem:[#allocation26 + $0xda4] sm:$0xf0] }
 0x5e0   : > { %8501 = vmatpush.bf16.msrb.mxu1 %v12716_v19  ;;  %8492 = vmatpush.bf16.msrb.mxu0 %v11180_v41  ;;  %v13687_v19 = vld [vmem:[#allocation26 + $0x29c] sm:$0xf0] }
 0x5e1   : > { %8518 = vmatpush.bf16.msrb.mxu2 %v11184_v55  ;;  %8527 = vmatpush.bf16.msrb.mxu3 %v12720_v22  ;;  %v14071_v41 = vld [vmem:[#allocation26 + $0xe9c] sm:$0xf0]  ;;  %v13671_v55 = vld [vmem:[#allocation26 + $0x224] sm:$0xf]  ;;  %v11444_v26 = vor.u32 %v13687_v19, %v11443_v0  ;;  %v11837_v0 = vld [vmem:[#allocation26 + $0x5a8] sm:$0xf0] }
 0x5e2   : > { %v11445_v22 = vld [vmem:[#allocation26 + $0x2a0] sm:$0xf0]  ;;  %v12980_v63 = vor.u32 %v14071_v41, %v12979_v42  ;;  %v12339_v41 = vld [vmem:[#allocation26 + $0x920] sm:$0xf] }
 0x5e3   : > { %8493 = vmatmul.bf16.vlgmr.msrb.gmra.mxu0 %v16509_v62 }
 0x5e4   : > { %8537 = vmatpush.bf16.msra.mxu0 %v12084_v57  ;;  %8519 = vmatmul.bf16.vlgmr.msrb.gmra.mxu2 %v16509_v62  ;;  %v14055_v57 = vld [vmem:[#allocation26 + $0xe24] sm:$0xf] }
 0x5e5   : > { %8563 = vmatpush.bf16.msra.mxu2 %v12088_v32  ;;  %8502 = vmatpush.bf16.msrb.mxu1 %v12588_v29  ;;  %v11448_v32 = vor.u32 %v13671_v55, %v11445_v22  ;;  %v12984_v24 = vor.u32 %v14055_v57, %v12981_v50  ;;  %v13639_v29 = vld [vmem:[#allocation26 + $0x124] sm:$0xf]  ;;  %v13911_v55 = vld [vmem:[#allocation26 + $0x99c] sm:$0xf0] }
 0x5e6   : > { %8528 = vmatpush.bf16.msrb.mxu3 %v12592_v3  ;;  %v11317_v3 = vld [vmem:[#allocation26 + $0x1a0] sm:$0xf0]  ;;  %v12340_v12 = vor.u32 %v13911_v55, %v12339_v41  ;;  %v12733_v41 = vld [vmem:[#allocation26 + $0xca8] sm:$0xf0]  ;;  %v12099_v55 = vld [vmem:[#allocation26 + $0x730] sm:$0xf] }
 0x5e7   : > { %v11320_v4 = vor.u32 %v13639_v29, %v11317_v3  ;;  %v13895_v22 = vld [vmem:[#allocation26 + $0x924] sm:$0xf]  ;;  %v13879_v29 = vld [vmem:[#allocation26 + $0x89c] sm:$0xf0] }
 0x5e8   : > { %8538 = vmatpush.bf16.msra.mxu0 %v11956_v52  ;;  %v14023_v52 = vld [vmem:[#allocation26 + $0xd24] sm:$0xf] }
 0x5e9   : > { %8564 = vmatpush.bf16.msra.mxu2 %v11960_v39  ;;  %8503 = vmatpush.bf16.msrb.mxu1 %v12460_v43  ;;  %v12852_v39 = vor.u32 %v14039_v38, %v12851_v60  ;;  %v12856_v13 = vor.u32 %v14023_v52, %v12853_v8  ;;  %v13607_v43 = vld [vmem:[#allocation26 + $0x24] sm:$0xf]  ;;  %v12211_v60 = vld [vmem:[#allocation26 + $0x820] sm:$0xf] }
 0x5ea   : > { %8529 = vmatpush.bf16.msrb.mxu3 %v12464_v36  ;;  %v11189_v36 = vld [vmem:[#allocation26 + $0xa0] sm:$0xf0]  ;;  %v12212_v25 = vor.u32 %v13879_v29, %v12211_v60  ;;  %v12603_v60 = vld [vmem:[#allocation26 + $0xb28] sm:$0xf] }
 0x5eb   : > { %v11192_v40 = vor.u32 %v13607_v43, %v11189_v36  ;;  %v12341_v50 = vld [vmem:[#allocation26 + $0x9a0] sm:$0xf0]  ;;  %v13117_v43 = vld [vmem:[#allocation26 + $0xfa8] sm:$0xf0] }
 0x5ec   : > { %8539 = vmatpush.bf16.msra.mxu0 %v11828_v28  ;;  %v13991_v28 = vld [vmem:[#allocation26 + $0xc24] sm:$0xf] }
 0x5ed   : > { %8565 = vmatpush.bf16.msra.mxu2 %v11832_v5  ;;  %8504 = vmatpush.bf16.msrb.mxu1 %v12332_v56  ;;  %v11188_v5 = vor.u32 %v13623_v23, %v11187_v46  ;;  %v12728_v47 = vor.u32 %v13991_v28, %v12725_v20  ;;  %v12092_v56 = vor.u32 %v13848_v7, %v12091_v53  ;;  %v13863_v3 = vld [vmem:[#allocation26 + $0x824] sm:$0xf]  ;;  %v13720_v46 = vld [vmem:[#allocation26 + $0x3a4] sm:$0xf0]  ;;  %v13704_v23 = vld [vmem:[#allocation26 + $0x32c] sm:$0xf] }
 0x5ee   : > { %8530 = vmatpush.bf16.msrb.mxu3 %v12336_v45  ;;  %v13975_v45 = vld [vmem:[#allocation26 + $0xb9c] sm:$0xf0]  ;;  %v12213_v52 = vld [vmem:[#allocation26 + $0x8a0] sm:$0xf0]  ;;  %v11584_v53 = vor.u32 %v13704_v23, %v11581_v9  ;;  %v11451_v7 = vld [vmem:[#allocation26 + $0x228] sm:$0xf] }
 0x5ef   : > { %v12596_v31 = vor.u32 %v13975_v45, %v12595_v44  ;;  %v12216_v36 = vor.u32 %v13863_v3, %v12213_v52  ;;  %v12989_v44 = vld [vmem:[#allocation26 + $0xea8] sm:$0xf0]  ;;  %v11971_v52 = vld [vmem:[#allocation26 + $0x630] sm:$0xf]  ;;  %v12475_v9 = vld [vmem:[#allocation26 + $0xa28] sm:$0xf] }
 0x5f0   : > { %8540 = vmatpush.bf16.msra.mxu0 %v11700_v1  ;;  %v13959_v1 = vld [vmem:[#allocation26 + $0xb24] sm:$0xf]  ;;  %v12605_v3 = vld [vmem:[#allocation26 + $0xba8] sm:$0xf0] }
 0x5f1   : > { %8566 = vmatpush.bf16.msra.mxu2 %v11704_v21  ;;  %8505 = vmatpush.bf16.msrb.mxu1 %v12204_v54  ;;  %v13816_v21 = vld [vmem:[#allocation26 + $0x6a4] sm:$0xf0]  ;;  %v12600_v15 = vor.u32 %v13959_v1, %v12597_v59  ;;  %v13943_v54 = vld [vmem:[#allocation26 + $0xa9c] sm:$0xf0] }
 0x5f2   : > { %8531 = vmatpush.bf16.msrb.mxu3 %v12208_v33  ;;  %v11964_v48 = vor.u32 %v13816_v21, %v11963_v18  ;;  %v12469_v33 = vld [vmem:[#allocation26 + $0xaa0] sm:$0xf0]  ;;  %v12468_v19 = vor.u32 %v13943_v54, %v12467_v16  ;;  %v11323_v59 = vld [vmem:[#allocation26 + $0x128] sm:$0xf]  ;;  %v12861_v16 = vld [vmem:[#allocation26 + $0xda8] sm:$0xf0] }
 0x5f3   : > { %v12472_v42 = vor.u32 %v13927_v49, %v12469_v33  ;;  %v13656_v18 = vld [vmem:[#allocation26 + $0x1a4] sm:$0xf0] }
 0x5f4   : > { %8541 = vmatpush.bf16.msra.mxu0 %v11572_v35  ;;  %8506 = vmatmul.bf16.vlgmr.msrb.gmra.mxu1 %v16515_v11  ;;  %v11835_v35 = vld [vmem:[#allocation26 + $0x528] sm:$0xf]  ;;  %v11324_v54 = vor.u32 %v13656_v18, %v11323_v59  ;;  %v13737_v59 = vld [vmem:[#allocation26 + $0x434] sm:$0xf] }
 0x5f5   : > { %8550 = vmatpush.bf16.msra.mxu1 %v13108_v51  ;;  %8567 = vmatpush.bf16.msra.mxu2 %v11576_v17  ;;  %v13784_v51 = vld [vmem:[#allocation26 + $0x5a4] sm:$0xf0]  ;;  %v13768_v17 = vld [vmem:[#allocation26 + $0x52c] sm:$0xf]  ;;  %v11717_v18 = vld [vmem:[#allocation26 + $0x4b0] sm:$0xf0] }
 0x5f6   : > { %8576 = vmatpush.bf16.msra.mxu3 %v13112_v10  ;;  %v11836_v10 = vor.u32 %v13784_v51, %v11835_v35  ;;  %v11840_v57 = vor.u32 %v13768_v17, %v11837_v0  ;;  %v12859_v21 = vld [vmem:[#allocation26 + $0xd28] sm:$0xf] }
 0x5f7   : > { %8532 = vmatmul.bf16.vlgmr.msrb.gmra.mxu3 %v16515_v11  ;;  %v11195_v49 = vld [vmem:[#allocation26 + $0x28] sm:$0xf] }
 0x5f8   : > { %8542 = vmatpush.bf16.msra.mxu0 %v11444_v26  ;;  %v11707_v26 = vld [vmem:[#allocation26 + $0x428] sm:$0xf] }
 0x5f9   : > { %8551 = vmatpush.bf16.msra.mxu1 %v12980_v63  ;;  %8568 = vmatpush.bf16.msra.mxu2 %v11448_v32  ;;  %v13752_v63 = vld [vmem:[#allocation26 + $0x4a4] sm:$0xf0]  ;;  %v13736_v32 = vld [vmem:[#allocation26 + $0x42c] sm:$0xf] }
 0x5fa   : > { %8577 = vmatpush.bf16.msra.mxu3 %v12984_v24  ;;  %v12344_v24 = vor.u32 %v13895_v22, %v12341_v50  ;;  %v11708_v38 = vor.u32 %v13752_v63, %v11707_v26  ;;  %v11712_v8 = vor.u32 %v13736_v32, %v11709_v27  ;;  %v13624_v35 = vld [vmem:[#allocation26 + $0xa4] sm:$0xf0]  ;;  %v13849_v22 = vld [vmem:[#allocation26 + $0x7ac] sm:$0xf0]  ;;  %v13833_v50 = vld [vmem:[#allocation26 + $0x734] sm:$0xf] }
 0x5fb   : > { %v12731_v51 = vld [vmem:[#allocation26 + $0xc28] sm:$0xf]  ;;  %v12101_v26 = vld [vmem:[#allocation26 + $0x7b0] sm:$0xf0] }
 0x5fc   : > { %8543 = vmatpush.bf16.msra.mxu0 %v11316_v37  ;;  %v11579_v37 = vld [vmem:[#allocation26 + $0x328] sm:$0xf]  ;;  %v12104_v29 = vor.u32 %v13833_v50, %v12101_v26 }
 0x5fd   : > { %8552 = vmatpush.bf16.msra.mxu1 %v12852_v39  ;;  %8569 = vmatpush.bf16.msra.mxu2 %v11320_v4  ;;  %v13115_v39 = vld [vmem:[#allocation26 + $0xf28] sm:$0xf]  ;;  %v11580_v28 = vor.u32 %v13720_v46, %v11579_v37  ;;  %v13801_v37 = vld [vmem:[#allocation26 + $0x634] sm:$0xf] }
 0x5fe   : > { %8578 = vmatpush.bf16.msra.mxu3 %v12856_v13  ;;  %v14104_v4 = vld [vmem:[#allocation26 + $0xfa4] sm:$0xf0]  ;;  %v14088_v13 = vld [vmem:[#allocation26 + $0xf2c] sm:$0xf]  ;;  %v11973_v46 = vld [vmem:[#allocation26 + $0x6b0] sm:$0xf0] }
 0x5ff   : > { %v13116_v20 = vor.u32 %v14104_v4, %v13115_v39  ;;  %v13120_v30 = vor.u32 %v14088_v13, %v13117_v43  ;;  %v14008_v17 = vld [vmem:[#allocation26 + $0xca4] sm:$0xf0]  ;;  %v13928_v13 = vld [vmem:[#allocation26 + $0xa2c] sm:$0xf]  ;;  %v11976_v43 = vor.u32 %v13801_v37, %v11973_v46 }
 0x600   : > { %8544 = vmatpush.bf16.msra.mxu0 %v11188_v5  ;;  %v13688_v5 = vld [vmem:[#allocation26 + $0x2a4] sm:$0xf0]  ;;  %v12732_v63 = vor.u32 %v14008_v17, %v12731_v51  ;;  %v14105_v51 = vld [vmem:[#allocation26 + $0xfac] sm:$0xf0]  ;;  %v13705_v17 = vld [vmem:[#allocation26 + $0x334] sm:$0xf] }
 0x601   : > { %8553 = vmatpush.bf16.msra.mxu1 %v12724_v14  ;;  %8570 = vmatpush.bf16.msra.mxu2 %v11192_v40  ;;  %v14072_v14 = vld [vmem:[#allocation26 + $0xea4] sm:$0xf0]  ;;  %v13672_v40 = vld [vmem:[#allocation26 + $0x22c] sm:$0xf]  ;;  %v11452_v45 = vor.u32 %v13688_v5, %v11451_v7  ;;  %v11845_v7 = vld [vmem:[#allocation26 + $0x5b0] sm:$0xf0] }
 0x602   : > { %8579 = vmatpush.bf16.msra.mxu3 %v12728_v47  ;;  %v11453_v47 = vld [vmem:[#allocation26 + $0x2a8] sm:$0xf0]  ;;  %v12988_v1 = vor.u32 %v14072_v14, %v12987_v2 }
 0x603   : > { %8545 = vmatmul.bf16.vlgmr.msra.gmra.mxu0 %v16509_v62 }
 0x604   : > { %8589 = vmatpush.bf16.msrb.mxu0 %v12092_v56  ;;  %8571 = vmatmul.bf16.vlgmr.msra.gmra.mxu2 %v16509_v62  ;;  %v14056_v56 = vld [vmem:[#allocation26 + $0xe2c] sm:$0xf] }
 0x605   : > { %8615 = vmatpush.bf16.msrb.mxu2 %v12096_v61  ;;  %8554 = vmatpush.bf16.msra.mxu1 %v12596_v31  ;;  %v11456_v61 = vor.u32 %v13672_v40, %v11453_v47  ;;  %v12992_v6 = vor.u32 %v14056_v56, %v12989_v44  ;;  %v13640_v31 = vld [vmem:[#allocation26 + $0x12c] sm:$0xf]  ;;  %v12347_v40 = vld [vmem:[#allocation26 + $0x928] sm:$0xf] }
 0x606   : > { %8580 = vmatpush.bf16.msra.mxu3 %v12600_v15  ;;  %v11325_v15 = vld [vmem:[#allocation26 + $0x1a8] sm:$0xf0]  ;;  %v13912_v47 = vld [vmem:[#allocation26 + $0x9a4] sm:$0xf0] }
 0x607   : > { %v11328_v33 = vor.u32 %v13640_v31, %v11325_v15  ;;  %v13896_v56 = vld [vmem:[#allocation26 + $0x92c] sm:$0xf]  ;;  %v13880_v15 = vld [vmem:[#allocation26 + $0x8a4] sm:$0xf0] }
 0x608   : > { %8590 = vmatpush.bf16.msrb.mxu0 %v11964_v48  ;;  %v14024_v48 = vld [vmem:[#allocation26 + $0xd2c] sm:$0xf] }
 0x609   : > { %8616 = vmatpush.bf16.msrb.mxu2 %v11968_v34  ;;  %8555 = vmatpush.bf16.msra.mxu1 %v12468_v19  ;;  %v12860_v34 = vor.u32 %v14040_v58, %v12859_v21  ;;  %v12864_v0 = vor.u32 %v14024_v48, %v12861_v16  ;;  %v13608_v19 = vld [vmem:[#allocation26 + $0x2c] sm:$0xf]  ;;  %v12348_v21 = vor.u32 %v13912_v47, %v12347_v40 }
 0x60a   : > { %8581 = vmatpush.bf16.msra.mxu3 %v12472_v42  ;;  %v11197_v42 = vld [vmem:[#allocation26 + $0xa8] sm:$0xf0] }
 0x60b   : > { %v11200_v32 = vor.u32 %v13608_v19, %v11197_v42  ;;  %v13864_v48 = vld [vmem:[#allocation26 + $0x82c] sm:$0xf]  ;;  %v14089_v42 = vld [vmem:[#allocation26 + $0xf34] sm:$0xf] }
 0x60c   : > { %8591 = vmatpush.bf16.msrb.mxu0 %v11836_v10  ;;  %v13992_v10 = vld [vmem:[#allocation26 + $0xc2c] sm:$0xf] }
 0x60d   : > { %8617 = vmatpush.bf16.msrb.mxu2 %v11840_v57  ;;  %8556 = vmatpush.bf16.msra.mxu1 %v12340_v12  ;;  %v11196_v57 = vor.u32 %v13624_v35, %v11195_v49  ;;  %v12736_v27 = vor.u32 %v13992_v10, %v12733_v41  ;;  %v12100_v12 = vor.u32 %v13849_v22, %v12099_v55  ;;  %v12221_v16 = vld [vmem:[#allocation26 + $0x8a8] sm:$0xf0]  ;;  %v11587_v49 = vld [vmem:[#allocation26 + $0x330] sm:$0xf]  ;;  %v13125_v10 = vld [vmem:[#allocation26 + $0xfb0] sm:$0xf0] }
 0x60e   : > { %8582 = vmatpush.bf16.msra.mxu3 %v12344_v24  ;;  %v13976_v24 = vld [vmem:[#allocation26 + $0xba4] sm:$0xf0]  ;;  %v16541_v41 = vld [vmem:[#allocation28] sm:$0xff]  ;;  %v12224_v55 = vor.u32 %v13864_v48, %v12221_v16  ;;  %v13834_v48 = vld [vmem:[#allocation26 + $0x73c] sm:$0xf] }
 0x60f   : > { %v12604_v39 = vor.u32 %v13976_v24, %v12603_v60  ;;  %v14073_v60 = vld [vmem:[#allocation26 + $0xeac] sm:$0xf0]  ;;  %v13673_v24 = vld [vmem:[#allocation26 + $0x234] sm:$0xf]  ;;  %v12109_v16 = vld [vmem:[#allocation26 + $0x7b8] sm:$0xf0] }
 0x610   : > { %8592 = vmatpush.bf16.msrb.mxu0 %v11708_v38  ;;  %v13960_v38 = vld [vmem:[#allocation26 + $0xb2c] sm:$0xf] }
 0x611   : > { %8618 = vmatpush.bf16.msrb.mxu2 %v11712_v8  ;;  %8557 = vmatpush.bf16.msra.mxu1 %v12212_v25  ;;  %v13817_v8 = vld [vmem:[#allocation26 + $0x6ac] sm:$0xf0]  ;;  %v12608_v4 = vor.u32 %v13960_v38, %v12605_v3  ;;  %v13944_v25 = vld [vmem:[#allocation26 + $0xaa4] sm:$0xf0]  ;;  %v11461_v38 = vld [vmem:[#allocation26 + $0x2b0] sm:$0xf0] }
 0x612   : > { %8583 = vmatpush.bf16.msra.mxu3 %v12216_v36  ;;  %v11972_v23 = vor.u32 %v13817_v8, %v11971_v52  ;;  %v12477_v36 = vld [vmem:[#allocation26 + $0xaa8] sm:$0xf0]  ;;  %v12476_v5 = vor.u32 %v13944_v25, %v12475_v9  ;;  %v14057_v3 = vld [vmem:[#allocation26 + $0xe34] sm:$0xf]  ;;  %v11464_v46 = vor.u32 %v13673_v24, %v11461_v38 }
 0x613   : > { %v12480_v2 = vor.u32 %v13928_v13, %v12477_v36  ;;  %v12997_v52 = vld [vmem:[#allocation26 + $0xeb0] sm:$0xf0]  ;;  %v14041_v13 = vld [vmem:[#allocation26 + $0xdac] sm:$0xf0] }
 0x614   : > { %8593 = vmatpush.bf16.msrb.mxu0 %v11580_v28  ;;  %8558 = vmatmul.bf16.vlgmr.msra.gmra.mxu1 %v16515_v11  ;;  %v11843_v28 = vld [vmem:[#allocation26 + $0x530] sm:$0xf]  ;;  %v13000_v9 = vor.u32 %v14057_v3, %v12997_v52  ;;  %v11333_v36 = vld [vmem:[#allocation26 + $0x1b0] sm:$0xf0] }
 0x615   : > { %8602 = vmatpush.bf16.msrb.mxu1 %v13116_v20  ;;  %8619 = vmatpush.bf16.msrb.mxu2 %v11584_v53  ;;  %v13785_v20 = vld [vmem:[#allocation26 + $0x5ac] sm:$0xf0]  ;;  %v13769_v53 = vld [vmem:[#allocation26 + $0x534] sm:$0xf] }
 0x616   : > { %8628 = vmatpush.bf16.msrb.mxu3 %v13120_v30  ;;  %v11844_v30 = vor.u32 %v13785_v20, %v11843_v28  ;;  %v11848_v44 = vor.u32 %v13769_v53, %v11845_v7  ;;  %v14025_v20 = vld [vmem:[#allocation26 + $0xd34] sm:$0xf]  ;;  %v8266_v7 = vperm.slane %v16541_v41, 1  ;;  %v13945_v3 = vld [vmem:[#allocation26 + $0xaac] sm:$0xf0] }
 0x617   : > { %8584 = vmatmul.bf16.vlgmr.msra.gmra.mxu3 %v16515_v11  ;;  %v12869_v53 = vld [vmem:[#allocation26 + $0xdb0] sm:$0xf0] }
 0x618   : > { %8594 = vmatpush.bf16.msrb.mxu0 %v11452_v45  ;;  %v12349_v45 = vld [vmem:[#allocation26 + $0x9a8] sm:$0xf0]  ;;  %v13929_v52 = vld [vmem:[#allocation26 + $0xa34] sm:$0xf] }
 0x619   : > { %8603 = vmatpush.bf16.msrb.mxu1 %v12988_v1  ;;  %8620 = vmatpush.bf16.msrb.mxu2 %v11456_v61  ;;  %v11715_v1 = vld [vmem:[#allocation26 + $0x430] sm:$0xf]  ;;  %v12352_v58 = vor.u32 %v13896_v56, %v12349_v45 }
 0x61a   : > { %8629 = vmatpush.bf16.msrb.mxu3 %v12992_v6  ;;  %v13753_v61 = vld [vmem:[#allocation26 + $0x4ac] sm:$0xf0]  ;;  %v12219_v6 = vld [vmem:[#allocation26 + $0x828] sm:$0xf] }
 0x61b   : > { %v11716_v31 = vor.u32 %v13753_v61, %v11715_v1  ;;  %v12220_v19 = vor.u32 %v13880_v15, %v12219_v6  ;;  %v13625_v45 = vld [vmem:[#allocation26 + $0xac] sm:$0xf0]  ;;  %v12872_v61 = vor.u32 %v14025_v20, %v12869_v53  ;;  %v12741_v6 = vld [vmem:[#allocation26 + $0xcb0] sm:$0xf0] }
 0x61c   : > { %8595 = vmatpush.bf16.msrb.mxu0 %v11324_v54  ;;  %v11720_v54 = vor.u32 %v13737_v59, %v11717_v18  ;;  %v12739_v1 = vld [vmem:[#allocation26 + $0xc30] sm:$0xf]  ;;  %v13609_v59 = vld [vmem:[#allocation26 + $0x34] sm:$0xf] }
 0x61d   : > { %8604 = vmatpush.bf16.msrb.mxu1 %v12860_v34  ;;  %8621 = vmatpush.bf16.msrb.mxu2 %v11328_v33  ;;  %v13721_v34 = vld [vmem:[#allocation26 + $0x3ac] sm:$0xf0]  ;;  %v11205_v18 = vld [vmem:[#allocation26 + $0xb0] sm:$0xf0] }
 0x61e   : > { %8630 = vmatpush.bf16.msrb.mxu3 %v12864_v0  ;;  %v13123_v33 = vld [vmem:[#allocation26 + $0xf30] sm:$0xf]  ;;  %v11589_v0 = vld [vmem:[#allocation26 + $0x3b0] sm:$0xf0]  ;;  %v11588_v22 = vor.u32 %v13721_v34, %v11587_v49  ;;  %v11208_v34 = vor.u32 %v13609_v59, %v11205_v18 }
 0x61f   : > { %v16537_v14 = vpop.f32.mrf.mxu0  ;;  %v13124_v50 = vor.u32 %v14105_v51, %v13123_v33  ;;  %v11592_v26 = vor.u32 %v13705_v17, %v11589_v0  ;;  %v12611_v0 = vld [vmem:[#allocation26 + $0xb30] sm:$0xf]  ;;  %v13897_v53 = vld [vmem:[#allocation26 + $0x934] sm:$0xf] }
 0x620   : > { %8596 = vmatpush.bf16.msrb.mxu0 %v11196_v57  ;;  %v13913_v20 = vld [vmem:[#allocation26 + $0x9ac] sm:$0xf0] }
 0x621   : > { %8605 = vmatpush.bf16.msrb.mxu1 %v12732_v63  ;;  %8622 = vmatpush.bf16.msrb.mxu2 %v11200_v32  ;;  %v11459_v63 = vld [vmem:[#allocation26 + $0x230] sm:$0xf] }
 0x622   : > { %8631 = vmatpush.bf16.msrb.mxu3 %v12736_v27  ;;  %v13689_v32 = vld [vmem:[#allocation26 + $0x2ac] sm:$0xf0] }
 0x623   : > { %8597 = vmatmul.bf16.vlgmr.msrb.gmra.mxu0 %v16509_v62  ;;  %v12995_v27 = vld [vmem:[#allocation26 + $0xe30] sm:$0xf]  ;;  %v11460_v8 = vor.u32 %v13689_v32, %v11459_v63  ;;  %v13802_v63 = vld [vmem:[#allocation26 + $0x63c] sm:$0xf] }
 0x624   : > { %8641 = vmatpush.bf16.msra.mxu0 %v12100_v12  ;;  %8623 = vmatmul.bf16.vlgmr.msrb.gmra.mxu2 %v16509_v62  ;;  %v13128_v12 = vor.u32 %v14089_v42, %v13125_v10  ;;  %v12996_v37 = vor.u32 %v14073_v60, %v12995_v27  ;;  %v13961_v42 = vld [vmem:[#allocation26 + $0xb34] sm:$0xf]  ;;  %v12112_v10 = vor.u32 %v13834_v48, %v12109_v16  ;;  %v11981_v32 = vld [vmem:[#allocation26 + $0x6b8] sm:$0xf0]  ;;  %v12227_v59 = vld [vmem:[#allocation26 + $0x830] sm:$0xf] }
 0x625   : > { %8667 = vmatpush.bf16.msra.mxu2 %v12104_v29  ;;  %8606 = vmatpush.bf16.msrb.mxu1 %v12604_v39  ;;  %v16539_v35 = vpop.f32.mrf.mxu2  ;;  %v8265_v29 = vperm.slane %v16541_v41, 0  ;;  %v11331_v39 = vld [vmem:[#allocation26 + $0x130] sm:$0xf]  ;;  %v11595_v16 = vld [vmem:[#allocation26 + $0x338] sm:$0xf] }
 0x626   : > { %8632 = vmatpush.bf16.msrb.mxu3 %v12608_v4  ;;  %v13657_v4 = vld [vmem:[#allocation26 + $0x1ac] sm:$0xf0] }
 0x627   : > { %v8340_v57 = vpop.f32.mrf.mxu0  ;;  %v8339_v28 = vadd.f32 %v16537_v14, %v8265_v29  ;;  %v14009_v14 = vld [vmem:[#allocation26 + $0xcac] sm:$0xf0] }
 0x628   : > { %8642 = vmatpush.bf16.msra.mxu0 %v11972_v23  ;;  %v12867_v23 = vld [vmem:[#allocation26 + $0xd30] sm:$0xf]  ;;  %v12740_v49 = vor.u32 %v14009_v14, %v12739_v1  ;;  %v12613_v57 = vld [vmem:[#allocation26 + $0xbb0] sm:$0xf0]  ;;  %v8268_v1 = vperm.slane %v16541_v41, 3 }
 0x629   : > { %8668 = vmatpush.bf16.msra.mxu2 %v11976_v43  ;;  %8607 = vmatpush.bf16.msrb.mxu1 %v12476_v5  ;;  %v13641_v43 = vld [vmem:[#allocation26 + $0x134] sm:$0xf]  ;;  %v11332_v5 = vor.u32 %v13657_v4, %v11331_v39  ;;  %v12868_v40 = vor.u32 %v14041_v13, %v12867_v23  ;;  %v12616_v24 = vor.u32 %v13961_v42, %v12613_v57  ;;  %v12483_v29 = vld [vmem:[#allocation26 + $0xa30] sm:$0xf]  ;;  %v11851_v39 = vld [vmem:[#allocation26 + $0x538] sm:$0xf] }
 0x62a   : > { %8633 = vmatpush.bf16.msrb.mxu3 %v12480_v2  ;;  %v11336_v47 = vor.u32 %v13641_v43, %v11333_v36  ;;  %v13786_v4 = vld [vmem:[#allocation26 + $0x5b4] sm:$0xf0]  ;;  %v13770_v23 = vld [vmem:[#allocation26 + $0x53c] sm:$0xf] }
 0x62b   : > { %v11852_v43 = vor.u32 %v13786_v4, %v11851_v39  ;;  %v14090_v42 = vld [vmem:[#allocation26 + $0xf3c] sm:$0xf] }
 0x62c   : > { %8643 = vmatpush.bf16.msra.mxu0 %v11844_v30  ;;  %v11203_v30 = vld [vmem:[#allocation26 + $0x30] sm:$0xf] }
 0x62d   : > { %8669 = vmatpush.bf16.msra.mxu2 %v11848_v44  ;;  %8608 = vmatpush.bf16.msrb.mxu1 %v12348_v21  ;;  %v8366_v25 = vpop.f32.mrf.mxu2  ;;  %v13993_v21 = vld [vmem:[#allocation26 + $0xc34] sm:$0xf]  ;;  %v11204_v15 = vor.u32 %v13625_v45, %v11203_v30  ;;  %v11723_v30 = vld [vmem:[#allocation26 + $0x438] sm:$0xf]  ;;  %v11725_v45 = vld [vmem:[#allocation26 + $0x4b8] sm:$0xf0] }
 0x62e   : > { %8634 = vmatpush.bf16.msrb.mxu3 %v12352_v58  ;;  %v12107_v58 = vld [vmem:[#allocation26 + $0x738] sm:$0xf]  ;;  %v12744_v33 = vor.u32 %v13993_v21, %v12741_v6  ;;  %v12484_v25 = vor.u32 %v13945_v3, %v12483_v29  ;;  %v11469_v29 = vld [vmem:[#allocation26 + $0x2b8] sm:$0xf0] }
 0x62f   : > { %v8351_v2 = vpop.f32.mrf.mxu1 }
 0x630   : > { %8644 = vmatpush.bf16.msra.mxu0 %v11716_v31  ;;  %v8352_v56 = vadd.f32 %v8351_v2, %v8339_v28  ;;  %v16548_v44 = vpop.f32.mrf.mxu0  ;;  %v13850_v31 = vld [vmem:[#allocation26 + $0x7b4] sm:$0xf0]  ;;  %v12355_v28 = vld [vmem:[#allocation26 + $0x930] sm:$0xf]  ;;  %v12357_v2 = vld [vmem:[#allocation26 + $0x9b0] sm:$0xf0] }
 0x631   : > { %8670 = vmatpush.bf16.msra.mxu2 %v11720_v54  ;;  %8609 = vmatpush.bf16.msrb.mxu1 %v12220_v19  ;;  %v8365_v54 = vadd.f32 %v16539_v35, %v8266_v7  ;;  %v12108_v51 = vor.u32 %v13850_v31, %v12107_v58  ;;  %v13977_v19 = vld [vmem:[#allocation26 + $0xbac] sm:$0xf0]  ;;  %v12356_v14 = vor.u32 %v13913_v20, %v12355_v28  ;;  %v13865_v31 = vld [vmem:[#allocation26 + $0x834] sm:$0xf] }
 0x632   : > { %8635 = vmatpush.bf16.msrb.mxu3 %v12224_v55  ;;  %v12360_v18 = vor.u32 %v13897_v53, %v12357_v2  ;;  %v13881_v58 = vld [vmem:[#allocation26 + $0x8ac] sm:$0xf0]  ;;  %v14042_v53 = vld [vmem:[#allocation26 + $0xdb4] sm:$0xf0] }
 0x634   : > { %8645 = vmatpush.bf16.msra.mxu0 %v11588_v22  ;;  %8610 = vmatmul.bf16.vlgmr.msrb.gmra.mxu1 %v16515_v11 }
 0x635   : > { %8654 = vmatpush.bf16.msra.mxu1 %v13124_v50  ;;  %8671 = vmatpush.bf16.msra.mxu2 %v11592_v26  ;;  %v8377_v17 = vpop.f32.mrf.mxu3  ;;  %v11979_v50 = vld [vmem:[#allocation26 + $0x638] sm:$0xf] }
 0x636   : > { %8680 = vmatpush.bf16.msra.mxu3 %v13128_v12  ;;  %v8378_v55 = vadd.f32 %v8377_v17, %v8365_v54  ;;  %v16551_v22 = vpop.f32.mrf.mxu2  ;;  %v13818_v26 = vld [vmem:[#allocation26 + $0x6b4] sm:$0xf0]  ;;  %v12612_v12 = vor.u32 %v13977_v19, %v12611_v0  ;;  %v11597_v17 = vld [vmem:[#allocation26 + $0x3b8] sm:$0xf0]  ;;  %v12228_v0 = vor.u32 %v13881_v58, %v12227_v59 }
 0x637   : > { %8636 = vmatmul.bf16.vlgmr.msrb.gmra.mxu3 %v16515_v11  ;;  %v8353_v35 = vpop.f32.mrf.mxu1  ;;  %v11980_v38 = vor.u32 %v13818_v26, %v11979_v50  ;;  %v13722_v54 = vld [vmem:[#allocation26 + $0x3b4] sm:$0xf0]  ;;  %v13610_v58 = vld [vmem:[#allocation26 + $0x3c] sm:$0xf] }
 0x638   : > { %8646 = vmatpush.bf16.msra.mxu0 %v11460_v8  ;;  %v9193_v27 = vrot.slane %v8378_v55, 7  ;;  %v8392_v60 = vpop.f32.mrf.mxu0  ;;  %v8417_v55 = vadd.f32 %v16551_v22, %v8268_v1  ;;  %v11596_v50 = vor.u32 %v13722_v54, %v11595_v16  ;;  %v12747_v59 = vld [vmem:[#allocation26 + $0xc38] sm:$0xf]  ;;  %v12749_v16 = vld [vmem:[#allocation26 + $0xcb8] sm:$0xf0] }
 0x639   : > { %8655 = vmatpush.bf16.msra.mxu1 %v12996_v37  ;;  %8672 = vmatpush.bf16.msra.mxu2 %v11464_v46  ;;  %v11984_v37 = vor.u32 %v13802_v63, %v11981_v32  ;;  %v12485_v46 = vld [vmem:[#allocation26 + $0xab0] sm:$0xf0]  ;;  %v11467_v32 = vld [vmem:[#allocation26 + $0x238] sm:$0xf]  ;;  %v12115_v54 = vld [vmem:[#allocation26 + $0x740] sm:$0xf] }
 0x63a   : > { %8681 = vmatpush.bf16.msra.mxu3 %v13000_v9  ;;  %v16554_v8 = vsel %vm2642_vm1, %v8352_v56, %v9193_v27  ;;  %v11853_v9 = vld [vmem:[#allocation26 + $0x5b8] sm:$0xf0]  ;;  %v12488_v13 = vor.u32 %v13929_v52, %v12485_v46  ;;  %v13003_v27 = vld [vmem:[#allocation26 + $0xe38] sm:$0xf] }
 0x63b   : > { %v11856_v7 = vor.u32 %v13770_v23, %v11853_v9  ;;  %v13738_v56 = vld [vmem:[#allocation26 + $0x43c] sm:$0xf] }
 0x63c   : > { %8647 = vmatpush.bf16.msra.mxu0 %v11332_v5  ;;  %v11728_v48 = vor.u32 %v13738_v56, %v11725_v45  ;;  %v14058_v52 = vld [vmem:[#allocation26 + $0xe3c] sm:$0xf]  ;;  %v11211_v56 = vld [vmem:[#allocation26 + $0x38] sm:$0xf] }
 0x63d   : > { %8656 = vmatpush.bf16.msra.mxu1 %v12868_v40  ;;  %8673 = vmatpush.bf16.msra.mxu2 %v11336_v47  ;;  %v8379_v36 = vpop.f32.mrf.mxu3  ;;  %v13754_v40 = vld [vmem:[#allocation26 + $0x4b4] sm:$0xf0]  ;;  %v8267_v47 = vperm.slane %v16541_v41, 2 }
 0x63e   : > { %8682 = vmatpush.bf16.msra.mxu3 %v12872_v61  ;;  %v8418_v5 = vpop.f32.mrf.mxu2  ;;  %v11724_v6 = vor.u32 %v13754_v40, %v11723_v30  ;;  %v12875_v36 = vld [vmem:[#allocation26 + $0xd38] sm:$0xf]  ;;  %v14026_v30 = vld [vmem:[#allocation26 + $0xd3c] sm:$0xf] }
 0x63f   : > { %v8403_v61 = vpop.f32.mrf.mxu1  ;;  %v11341_v5 = vld [vmem:[#allocation26 + $0x1b8] sm:$0xf0]  ;;  %v12876_v45 = vor.u32 %v14042_v53, %v12875_v36  ;;  %v12363_v36 = vld [vmem:[#allocation26 + $0x938] sm:$0xf] }
 0x640   : > { %8648 = vmatpush.bf16.msra.mxu0 %v11204_v15  ;;  %v16560_v21 = vpop.f32.mrf.mxu0  ;;  %v12229_v15 = vld [vmem:[#allocation26 + $0x8b0] sm:$0xf0]  ;;  %v12877_v40 = vld [vmem:[#allocation26 + $0xdb8] sm:$0xf0] }
 0x641   : > { %8657 = vmatpush.bf16.msra.mxu1 %v12740_v49  ;;  %8674 = vmatpush.bf16.msra.mxu2 %v11208_v34  ;;  %v13131_v49 = vld [vmem:[#allocation26 + $0xf38] sm:$0xf]  ;;  %v8391_v34 = vadd.f32 %v16548_v44, %v8267_v47  ;;  %v12232_v19 = vor.u32 %v13865_v31, %v12229_v15  ;;  %v13994_v31 = vld [vmem:[#allocation26 + $0xc3c] sm:$0xf] }
 0x642   : > { %8683 = vmatpush.bf16.msra.mxu3 %v12744_v33  ;;  %v14106_v33 = vld [vmem:[#allocation26 + $0xfb4] sm:$0xf0] }
 0x643   : > { %8649 = vmatmul.bf16.vlgmr.msra.gmra.mxu0 %v16509_v62  ;;  %v8404_v57 = vadd.f32 %v8403_v61, %v8391_v34  ;;  %v13132_v26 = vor.u32 %v14106_v33, %v13131_v49  ;;  %v13690_v44 = vld [vmem:[#allocation26 + $0x2b4] sm:$0xf0]  ;;  %v13851_v49 = vld [vmem:[#allocation26 + $0x7bc] sm:$0xf0]  ;;  %v13835_v33 = vld [vmem:[#allocation26 + $0x744] sm:$0xf] }
 0x644   : > { %8693 = vmatpush.bf16.msrb.mxu0 %v12108_v51  ;;  %8675 = vmatmul.bf16.vlgmr.msra.gmra.mxu2 %v16509_v62  ;;  %v13706_v51 = vld [vmem:[#allocation26 + $0x33c] sm:$0xf]  ;;  %v11468_v23 = vor.u32 %v13690_v44, %v11467_v32  ;;  %v13626_v61 = vld [vmem:[#allocation26 + $0xb4] sm:$0xf0]  ;;  %v13803_v32 = vld [vmem:[#allocation26 + $0x644] sm:$0xf] }
 0x645   : > { %8719 = vmatpush.bf16.msrb.mxu2 %v12112_v10  ;;  %8658 = vmatpush.bf16.msra.mxu1 %v12612_v12  ;;  %v13133_v10 = vld [vmem:[#allocation26 + $0xfb8] sm:$0xf0]  ;;  %v11600_v35 = vor.u32 %v13706_v51, %v11597_v17  ;;  %v8429_v63 = vpop.f32.mrf.mxu3  ;;  %v9194_v46 = vrot.slane %v8404_v57, 6  ;;  %v11212_v34 = vor.u32 %v13626_v61, %v11211_v56  ;;  %v12117_v51 = vld [vmem:[#allocation26 + $0x7c0] sm:$0xf0] }
 0x646   : > { %8684 = vmatpush.bf16.msra.mxu3 %v12616_v24  ;;  %v13136_v12 = vor.u32 %v14090_v42, %v13133_v10  ;;  %v8430_v60 = vadd.f32 %v8429_v63, %v8417_v55  ;;  %v14074_v24 = vld [vmem:[#allocation26 + $0xeb4] sm:$0xf0]  ;;  %v12116_v42 = vor.u32 %v13851_v49, %v12115_v54  ;;  %v13962_v57 = vld [vmem:[#allocation26 + $0xb3c] sm:$0xf]  ;;  %v13819_v63 = vld [vmem:[#allocation26 + $0x6bc] sm:$0xf0] }
 0x647   : > { %v8405_v22 = vpop.f32.mrf.mxu1  ;;  %v13004_v9 = vor.u32 %v14074_v24, %v13003_v27  ;;  %v12619_v10 = vld [vmem:[#allocation26 + $0xb38] sm:$0xf]  ;;  %v11989_v44 = vld [vmem:[#allocation26 + $0x6c0] sm:$0xf0]  ;;  %v14107_v54 = vld [vmem:[#allocation26 + $0xfbc] sm:$0xf0] }
 0x648   : > { %8694 = vmatpush.bf16.msrb.mxu0 %v11980_v38  ;;  %v13674_v38 = vld [vmem:[#allocation26 + $0x23c] sm:$0xf]  ;;  %v9195_v39 = vrot.slane %v8430_v60, 5  ;;  %v8444_v4 = vpop.f32.mrf.mxu0  ;;  %v13978_v55 = vld [vmem:[#allocation26 + $0xbb4] sm:$0xf0] }
 0x649   : > { %8720 = vmatpush.bf16.msrb.mxu2 %v11984_v37  ;;  %8659 = vmatpush.bf16.msra.mxu1 %v12484_v25  ;;  %v16564_v3 = vpop.f32.mrf.mxu2  ;;  %v13005_v37 = vld [vmem:[#allocation26 + $0xeb8] sm:$0xf0]  ;;  %v11472_v25 = vor.u32 %v13674_v38, %v11469_v29  ;;  %v12620_v27 = vor.u32 %v13978_v55, %v12619_v10  ;;  %v12491_v38 = vld [vmem:[#allocation26 + $0xa38] sm:$0xf]  ;;  %v13787_v4 = vld [vmem:[#allocation26 + $0x5bc] sm:$0xf0] }
 0x64a   : > { %8685 = vmatpush.bf16.msra.mxu3 %v12488_v13  ;;  %v11339_v13 = vld [vmem:[#allocation26 + $0x138] sm:$0xf]  ;;  %v9222_v28 = vsel %vm2644_vm2, %v9194_v46, %v9195_v39  ;;  %v13008_v20 = vor.u32 %v14058_v52, %v13005_v37  ;;  %v13930_v22 = vld [vmem:[#allocation26 + $0xa3c] sm:$0xf]  ;;  %v11992_v52 = vor.u32 %v13803_v32, %v11989_v44  ;;  %v11859_v39 = vld [vmem:[#allocation26 + $0x540] sm:$0xf] }
 0x64b   : > { %v16570_v2 = vsel %vm2646_vm3, %v16554_v8, %v9222_v28  ;;  %v11213_v8 = vld [vmem:[#allocation26 + $0xb8] sm:$0xf0]  ;;  %v13946_v29 = vld [vmem:[#allocation26 + $0xab4] sm:$0xf0]  ;;  %v13707_v49 = vld [vmem:[#allocation26 + $0x344] sm:$0xf] }
 0x64c   : > { %8695 = vmatpush.bf16.msrb.mxu0 %v11852_v43  ;;  %v13658_v43 = vld [vmem:[#allocation26 + $0x1b4] sm:$0xf0]  ;;  %v12493_v46 = vld [vmem:[#allocation26 + $0xab8] sm:$0xf0]  ;;  %v13675_v32 = vld [vmem:[#allocation26 + $0x244] sm:$0xf] }
 0x64d   : > { %8721 = vmatpush.bf16.msrb.mxu2 %v11856_v7  ;;  %8660 = vmatpush.bf16.msra.mxu1 %v12356_v14  ;;  %v13642_v7 = vld [vmem:[#allocation26 + $0x13c] sm:$0xf]  ;;  %v11340_v47 = vor.u32 %v13658_v43, %v11339_v13  ;;  %v8431_v14 = vpop.f32.mrf.mxu3  ;;  %v12496_v13 = vor.u32 %v13930_v22, %v12493_v46  ;;  %v11860_v43 = vor.u32 %v13787_v4, %v11859_v39  ;;  %v13914_v28 = vld [vmem:[#allocation26 + $0x9b4] sm:$0xf0]  ;;  %v11477_v44 = vld [vmem:[#allocation26 + $0x2c0] sm:$0xf0] }
 0x64e   : > { %8686 = vmatpush.bf16.msra.mxu3 %v12360_v18  ;;  %v11344_v1 = vor.u32 %v13642_v7, %v11341_v5  ;;  %v14010_v18 = vld [vmem:[#allocation26 + $0xcb4] sm:$0xf0]  ;;  %v12365_v7 = vld [vmem:[#allocation26 + $0x9b8] sm:$0xf0]  ;;  %v11731_v5 = vld [vmem:[#allocation26 + $0x440] sm:$0xf]  ;;  %v11480_v22 = vor.u32 %v13675_v32, %v11477_v44 }
 0x64f   : > { %v12748_v17 = vor.u32 %v14010_v18, %v12747_v59  ;;  %v13882_v18 = vld [vmem:[#allocation26 + $0x8b4] sm:$0xf0]  ;;  %v12883_v46 = vld [vmem:[#allocation26 + $0xd40] sm:$0xf]  ;;  %v11997_v32 = vld [vmem:[#allocation26 + $0x6c8] sm:$0xf0] }
 0x650   : > { %8696 = vmatpush.bf16.msrb.mxu0 %v11724_v6  ;;  %v12880_v6 = vor.u32 %v14026_v30, %v12877_v40  ;;  %v13755_v30 = vld [vmem:[#allocation26 + $0x4bc] sm:$0xf0]  ;;  %v13739_v40 = vld [vmem:[#allocation26 + $0x444] sm:$0xf] }
 0x651   : > { %8722 = vmatpush.bf16.msrb.mxu2 %v11728_v48  ;;  %8661 = vmatpush.bf16.msra.mxu1 %v12228_v0  ;;  %v8470_v15 = vpop.f32.mrf.mxu2  ;;  %v16573_v48 = vpop.f32.mrf.mxu1  ;;  %v11216_v0 = vor.u32 %v13610_v58, %v11213_v8  ;;  %v11732_v61 = vor.u32 %v13755_v30, %v11731_v5  ;;  %v12237_v58 = vld [vmem:[#allocation26 + $0x8b8] sm:$0xf0]  ;;  %v14043_v4 = vld [vmem:[#allocation26 + $0xdbc] sm:$0xf0] }
 0x652   : > { %8687 = vmatpush.bf16.msra.mxu3 %v12232_v19  ;;  %v12752_v19 = vor.u32 %v13994_v31, %v12749_v16  ;;  %v11603_v31 = vld [vmem:[#allocation26 + $0x340] sm:$0xf] }
 0x653   : > { %v13723_v15 = vld [vmem:[#allocation26 + $0x3bc] sm:$0xf0] }
 0x654   : > { %8697 = vmatpush.bf16.msrb.mxu0 %v11596_v50  ;;  %8662 = vmatmul.bf16.vlgmr.msra.gmra.mxu1 %v16515_v11  ;;  %v12120_v50 = vor.u32 %v13835_v33, %v12117_v51  ;;  %v13139_v16 = vld [vmem:[#allocation26 + $0xf40] sm:$0xf]  ;;  %v14091_v51 = vld [vmem:[#allocation26 + $0xf44] sm:$0xf] }
 0x655   : > { %8706 = vmatpush.bf16.msrb.mxu1 %v13132_v26  ;;  %8723 = vmatpush.bf16.msrb.mxu2 %v11600_v35  ;;  %v12621_v26 = vld [vmem:[#allocation26 + $0xbb8] sm:$0xf0]  ;;  %v11987_v35 = vld [vmem:[#allocation26 + $0x640] sm:$0xf] }
 0x656   : > { %8732 = vmatpush.bf16.msrb.mxu3 %v13136_v12  ;;  %v12624_v12 = vor.u32 %v13962_v57, %v12621_v26  ;;  %v11988_v60 = vor.u32 %v13819_v63, %v11987_v35  ;;  %v11475_v57 = vld [vmem:[#allocation26 + $0x240] sm:$0xf] }
 0x657   : > { %8688 = vmatmul.bf16.vlgmr.msra.gmra.mxu3 %v16515_v11  ;;  %v13011_v26 = vld [vmem:[#allocation26 + $0xe40] sm:$0xf] }
 0x658   : > { %8698 = vmatpush.bf16.msrb.mxu0 %v11468_v23  ;;  %v13771_v23 = vld [vmem:[#allocation26 + $0x544] sm:$0xf]  ;;  %v14075_v63 = vld [vmem:[#allocation26 + $0xebc] sm:$0xf0] }
 0x659   : > { %8707 = vmatpush.bf16.msrb.mxu1 %v13004_v9  ;;  %8724 = vmatpush.bf16.msrb.mxu2 %v11472_v25  ;;  %v16575_v24 = vpop.f32.mrf.mxu3  ;;  %v8457_v37 = vpop.f32.mrf.mxu1  ;;  %v11861_v9 = vld [vmem:[#allocation26 + $0x5c0] sm:$0xf0]  ;;  %v12492_v25 = vor.u32 %v13946_v29, %v12491_v38  ;;  %v13012_v29 = vor.u32 %v14075_v63, %v13011_v26  ;;  %v13804_v63 = vld [vmem:[#allocation26 + $0x64c] sm:$0xf] }
 0x65a   : > { %8733 = vmatpush.bf16.msrb.mxu3 %v13008_v20  ;;  %v13898_v20 = vld [vmem:[#allocation26 + $0x93c] sm:$0xf]  ;;  %v11864_v53 = vor.u32 %v13771_v23, %v11861_v9  ;;  %v13659_v37 = vld [vmem:[#allocation26 + $0x1bc] sm:$0xf0]  ;;  %v13643_v23 = vld [vmem:[#allocation26 + $0x144] sm:$0xf] }
 0x65b   : > { %v12368_v14 = vor.u32 %v13898_v20, %v12365_v7  ;;  %v11349_v9 = vld [vmem:[#allocation26 + $0x1c0] sm:$0xf0]  ;;  %v12884_v7 = vor.u32 %v14043_v4, %v12883_v46  ;;  %v13788_v4 = vld [vmem:[#allocation26 + $0x5c4] sm:$0xf0] }
 0x65c   : > { %8699 = vmatpush.bf16.msrb.mxu0 %v11340_v47  ;;  %v11733_v47 = vld [vmem:[#allocation26 + $0x4c0] sm:$0xf0]  ;;  %v11352_v5 = vor.u32 %v13643_v23, %v11349_v9  ;;  %v13772_v23 = vld [vmem:[#allocation26 + $0x54c] sm:$0xf] }
 0x65d   : > { %8708 = vmatpush.bf16.msrb.mxu1 %v12876_v45  ;;  %8725 = vmatpush.bf16.msrb.mxu2 %v11344_v1  ;;  %v12364_v45 = vor.u32 %v13914_v28, %v12363_v36  ;;  %v12235_v1 = vld [vmem:[#allocation26 + $0x838] sm:$0xf]  ;;  %v11736_v8 = vor.u32 %v13739_v40, %v11733_v47  ;;  %v8269_v36 = vperm.slane %v16541_v41, 4  ;;  %v8271_v28 = vperm.slane %v16541_v41, 6  ;;  %v13627_v40 = vld [vmem:[#allocation26 + $0xbc] sm:$0xf0] }
 0x65e   : > { %8734 = vmatpush.bf16.msrb.mxu3 %v12880_v6  ;;  %v13866_v6 = vld [vmem:[#allocation26 + $0x83c] sm:$0xf]  ;;  %v12236_v33 = vor.u32 %v13882_v18, %v12235_v1  ;;  %v12755_v47 = vld [vmem:[#allocation26 + $0xc40] sm:$0xf]  ;;  %v12629_v26 = vld [vmem:[#allocation26 + $0xbc0] sm:$0xf0] }
 0x65f   : > { %v11869_v9 = vld [vmem:[#allocation26 + $0x5c8] sm:$0xf0] }
 0x660   : > { %8700 = vmatpush.bf16.msrb.mxu0 %v11212_v34  ;;  %v16579_v56 = vpop.f32.mrf.mxu0  ;;  %v11605_v34 = vld [vmem:[#allocation26 + $0x3c0] sm:$0xf0] }
 0x661   : > { %8709 = vmatpush.bf16.msrb.mxu1 %v12748_v17  ;;  %8726 = vmatpush.bf16.msrb.mxu2 %v11216_v0  ;;  %v8483_v59 = vpop.f32.mrf.mxu3  ;;  %v13141_v17 = vld [vmem:[#allocation26 + $0xfc0] sm:$0xf0]  ;;  %v12240_v0 = vor.u32 %v13866_v6, %v12237_v58  ;;  %v11608_v10 = vor.u32 %v13707_v49, %v11605_v34  ;;  %v8272_v34 = vperm.slane %v16541_v41, 7 }
 0x662   : > { %8735 = vmatpush.bf16.msrb.mxu3 %v12752_v19  ;;  %v11604_v19 = vor.u32 %v13723_v15, %v11603_v31  ;;  %v13144_v35 = vor.u32 %v14091_v51, %v13141_v17  ;;  %v13995_v59 = vld [vmem:[#allocation26 + $0xc44] sm:$0xf]  ;;  %v13852_v31 = vld [vmem:[#allocation26 + $0x7c4] sm:$0xf0]  ;;  %v8443_v17 = vadd.f32 %v16560_v21, %v8269_v36 }
 0x663   : > { %8701 = vmatmul.bf16.vlgmr.msrb.gmra.mxu0 %v16509_v62  ;;  %v12757_v58 = vld [vmem:[#allocation26 + $0xcc0] sm:$0xf0] }
 0x664   : > { %8745 = vmatpush.bf16.msra.mxu0 %v12116_v42  ;;  %8727 = vmatmul.bf16.vlgmr.msrb.gmra.mxu2 %v16509_v62  ;;  %v13140_v42 = vor.u32 %v14107_v54, %v13139_v16  ;;  %v13836_v16 = vld [vmem:[#allocation26 + $0x74c] sm:$0xf] }
 0x665   : > { %8771 = vmatpush.bf16.msra.mxu2 %v12120_v50  ;;  %8710 = vmatpush.bf16.msrb.mxu1 %v12620_v27  ;;  %v13691_v50 = vld [vmem:[#allocation26 + $0x2bc] sm:$0xf0]  ;;  %v12125_v54 = vld [vmem:[#allocation26 + $0x7c8] sm:$0xf0] }
 0x666   : > { %8736 = vmatpush.bf16.msrb.mxu3 %v12624_v12  ;;  %v14059_v12 = vld [vmem:[#allocation26 + $0xe44] sm:$0xf]  ;;  %v11476_v38 = vor.u32 %v13691_v50, %v11475_v57  ;;  %v8495_v57 = vadd.f32 %v16579_v56, %v8271_v28  ;;  %v12128_v50 = vor.u32 %v13836_v16, %v12125_v54 }
 0x667   : > { %v16581_v55 = vpop.f32.mrf.mxu2 }
 0x668   : > { %8746 = vmatpush.bf16.msra.mxu0 %v11988_v60  ;;  %v8496_v27 = vpop.f32.mrf.mxu0  ;;  %v13013_v60 = vld [vmem:[#allocation26 + $0xec0] sm:$0xf0]  ;;  %v8521_v21 = vadd.f32 %v16581_v55, %v8272_v34  ;;  %v11867_v55 = vld [vmem:[#allocation26 + $0x548] sm:$0xf] }
 0x669   : > { %8772 = vmatpush.bf16.msra.mxu2 %v11992_v52  ;;  %8711 = vmatpush.bf16.msrb.mxu1 %v12492_v25  ;;  %v11347_v52 = vld [vmem:[#allocation26 + $0x140] sm:$0xf]  ;;  %v13016_v39 = vor.u32 %v14059_v12, %v13013_v60  ;;  %v8270_v25 = vperm.slane %v16541_v41, 5  ;;  %v8456_v41 = vadd.f32 %v16573_v48, %v8443_v17  ;;  %v13867_v34 = vld [vmem:[#allocation26 + $0x844] sm:$0xf] }
 0x66a   : > { %8737 = vmatpush.bf16.msrb.mxu3 %v12496_v13  ;;  %v14027_v13 = vld [vmem:[#allocation26 + $0xd44] sm:$0xf]  ;;  %v11348_v20 = vor.u32 %v13659_v37, %v11347_v52  ;;  %v12000_v37 = vor.u32 %v13804_v63, %v11997_v32  ;;  %v11611_v17 = vld [vmem:[#allocation26 + $0x348] sm:$0xf] }
 0x66b   : > { %v8469_v18 = vadd.f32 %v16564_v3, %v8270_v25  ;;  %v12760_v3 = vor.u32 %v13995_v59, %v12757_v58  ;;  %v13931_v52 = vld [vmem:[#allocation26 + $0xa44] sm:$0xf]  ;;  %v9196_v25 = vrot.slane %v8456_v41, 4 }
 0x66c   : > { %8747 = vmatpush.bf16.msra.mxu0 %v11860_v43  ;;  %v12885_v43 = vld [vmem:[#allocation26 + $0xdc0] sm:$0xf0] }
 0x66d   : > { %8773 = vmatpush.bf16.msra.mxu2 %v11864_v53  ;;  %8712 = vmatpush.bf16.msrb.mxu1 %v12364_v45  ;;  %v11219_v53 = vld [vmem:[#allocation26 + $0x40] sm:$0xf]  ;;  %v12888_v1 = vor.u32 %v14027_v13, %v12885_v43  ;;  %v8482_v49 = vadd.f32 %v16575_v24, %v8469_v18  ;;  %v13820_v24 = vld [vmem:[#allocation26 + $0x6c4] sm:$0xf0]  ;;  %v13740_v18 = vld [vmem:[#allocation26 + $0x44c] sm:$0xf] }
 0x66e   : > { %8738 = vmatpush.bf16.msrb.mxu3 %v12368_v14  ;;  %v14011_v45 = vld [vmem:[#allocation26 + $0xcbc] sm:$0xf0]  ;;  %v13611_v14 = vld [vmem:[#allocation26 + $0x44] sm:$0xf]  ;;  %v11220_v15 = vor.u32 %v13627_v40, %v11219_v53 }
 0x66f   : > { %v8522_v30 = vpop.f32.mrf.mxu2  ;;  %v9197_v44 = vrot.slane %v8482_v49, 3  ;;  %v12371_v53 = vld [vmem:[#allocation26 + $0x940] sm:$0xf] }
 0x670   : > { %8748 = vmatpush.bf16.msra.mxu0 %v11732_v61  ;;  %v11221_v61 = vld [vmem:[#allocation26 + $0xc0] sm:$0xf0]  ;;  %v13883_v49 = vld [vmem:[#allocation26 + $0x8bc] sm:$0xf0] }
 0x671   : > { %8774 = vmatpush.bf16.msra.mxu2 %v11736_v8  ;;  %8713 = vmatpush.bf16.msrb.mxu1 %v12236_v33  ;;  %v8507_v6 = vpop.f32.mrf.mxu1  ;;  %v12123_v8 = vld [vmem:[#allocation26 + $0x748] sm:$0xf]  ;;  %v12756_v33 = vor.u32 %v14011_v45, %v12755_v47  ;;  %v11224_v51 = vor.u32 %v13611_v14, %v11221_v61  ;;  %v9224_v30 = vsel %vm2648_vm4, %v9196_v25, %v9197_v44  ;;  %v12373_v45 = vld [vmem:[#allocation26 + $0x9c0] sm:$0xf0] }
 0x672   : > { %8739 = vmatpush.bf16.msrb.mxu3 %v12240_v0  ;;  %v12124_v0 = vor.u32 %v13852_v31, %v12123_v8  ;;  %v8508_v27 = vadd.f32 %v8507_v6, %v8495_v57  ;;  %v11872_v47 = vor.u32 %v13772_v23, %v11869_v9  ;;  %v13756_v14 = vld [vmem:[#allocation26 + $0x4c4] sm:$0xf0]  ;;  %v11741_v6 = vld [vmem:[#allocation26 + $0x4c8] sm:$0xf0]  ;;  %v12243_v31 = vld [vmem:[#allocation26 + $0x840] sm:$0xf] }
 0x673   : > { %v14092_v57 = vld [vmem:[#allocation26 + $0xf4c] sm:$0xf]  ;;  %v11483_v44 = vld [vmem:[#allocation26 + $0x248] sm:$0xf] }
 0x674   : > { %8749 = vmatpush.bf16.msra.mxu0 %v11604_v19  ;;  %8714 = vmatmul.bf16.vlgmr.msrb.gmra.mxu1 %v16515_v11  ;;  %v12627_v19 = vld [vmem:[#allocation26 + $0xb40] sm:$0xf]  ;;  %v9198_v13 = vrot.slane %v8508_v27, 2  ;;  %v13019_v27 = vld [vmem:[#allocation26 + $0xe48] sm:$0xf] }
 0x675   : > { %8758 = vmatpush.bf16.msra.mxu1 %v13140_v42  ;;  %8775 = vmatpush.bf16.msra.mxu2 %v11608_v10  ;;  %v13979_v42 = vld [vmem:[#allocation26 + $0xbbc] sm:$0xf0]  ;;  %v13963_v10 = vld [vmem:[#allocation26 + $0xb44] sm:$0xf]  ;;  %v12891_v23 = vld [vmem:[#allocation26 + $0xd48] sm:$0xf] }
 0x676   : > { %8784 = vmatpush.bf16.msra.mxu3 %v13144_v35  ;;  %v11995_v35 = vld [vmem:[#allocation26 + $0x648] sm:$0xf]  ;;  %v12628_v12 = vor.u32 %v13979_v42, %v12627_v19  ;;  %v12632_v60 = vor.u32 %v13963_v10, %v12629_v26  ;;  %v13708_v42 = vld [vmem:[#allocation26 + $0x34c] sm:$0xf]  ;;  %v12244_v10 = vor.u32 %v13883_v49, %v12243_v31  ;;  %v12131_v31 = vld [vmem:[#allocation26 + $0x750] sm:$0xf] }
 0x677   : > { %8740 = vmatmul.bf16.vlgmr.msrb.gmra.mxu3 %v16515_v11  ;;  %v14108_v19 = vld [vmem:[#allocation26 + $0xfc4] sm:$0xf0]  ;;  %v13837_v49 = vld [vmem:[#allocation26 + $0x754] sm:$0xf] }
 0x678   : > { %8750 = vmatpush.bf16.msra.mxu0 %v11476_v38  ;;  %v11996_v38 = vor.u32 %v13820_v24, %v11995_v35  ;;  %v16605_v26 = vld [vmem:[#allocation28 + $0x8] sm:$0xff] }
 0x679   : > { %8759 = vmatpush.bf16.msra.mxu1 %v13012_v29  ;;  %8776 = vmatpush.bf16.msra.mxu2 %v11480_v22  ;;  %v12499_v29 = vld [vmem:[#allocation26 + $0xa40] sm:$0xf]  ;;  %v8509_v46 = vpop.f32.mrf.mxu1  ;;  %v14044_v25 = vld [vmem:[#allocation26 + $0xdc4] sm:$0xf0] }
 0x67a   : > { %8785 = vmatpush.bf16.msra.mxu3 %v13016_v39  ;;  %v8533_v56 = vpop.f32.mrf.mxu3  ;;  %v13947_v22 = vld [vmem:[#allocation26 + $0xabc] sm:$0xf0]  ;;  %v12501_v39 = vld [vmem:[#allocation26 + $0xac0] sm:$0xf0] }
 0x67b   : > { %v8534_v48 = vadd.f32 %v8533_v56, %v8521_v21  ;;  %v12500_v36 = vor.u32 %v13947_v22, %v12499_v29  ;;  %v12504_v28 = vor.u32 %v13931_v52, %v12501_v39  ;;  %v13692_v21 = vld [vmem:[#allocation26 + $0x2c4] sm:$0xf0]  ;;  %v11485_v29 = vld [vmem:[#allocation26 + $0x2c8] sm:$0xf0] }
 0x67c   : > { %8751 = vmatpush.bf16.msra.mxu0 %v11348_v20  ;;  %v11868_v20 = vor.u32 %v13788_v4, %v11867_v55  ;;  %v14076_v56 = vld [vmem:[#allocation26 + $0xec4] sm:$0xf0]  ;;  %v14060_v22 = vld [vmem:[#allocation26 + $0xe4c] sm:$0xf] }
 0x67d   : > { %8760 = vmatpush.bf16.msra.mxu1 %v12884_v7  ;;  %8777 = vmatpush.bf16.msra.mxu2 %v11352_v5  ;;  %v9199_v43 = vrot.slane %v8534_v48, 1  ;;  %v13915_v7 = vld [vmem:[#allocation26 + $0x9bc] sm:$0xf0]  ;;  %v13899_v5 = vld [vmem:[#allocation26 + $0x944] sm:$0xf]  ;;  %v8273_v48 = vperm.slane %v16605_v26, 0  ;;  %v13020_v46 = vor.u32 %v14076_v56, %v13019_v27 }
 0x67e   : > { %8786 = vmatpush.bf16.msra.mxu3 %v12888_v1  ;;  %v11739_v1 = vld [vmem:[#allocation26 + $0x448] sm:$0xf]  ;;  %v12372_v8 = vor.u32 %v13915_v7, %v12371_v53  ;;  %v13021_v52 = vld [vmem:[#allocation26 + $0xec8] sm:$0xf0]  ;;  %v12892_v7 = vor.u32 %v14044_v25, %v12891_v23 }
 0x67f   : > { %v9225_v40 = vsel %vm2650_vm5, %v9198_v13, %v9199_v43  ;;  %v11740_v54 = vor.u32 %v13756_v14, %v11739_v1  ;;  %v11355_v55 = vld [vmem:[#allocation26 + $0x148] sm:$0xf]  ;;  %v13024_v9 = vor.u32 %v14060_v22, %v13021_v52  ;;  %v13644_v13 = vld [vmem:[#allocation26 + $0x14c] sm:$0xf] }
 0x680   : > { %8752 = vmatpush.bf16.msra.mxu0 %v11220_v15  ;;  %v9226_v61 = vsel %vm2652_vm6, %v9224_v30, %v9225_v40  ;;  %v16600_v59 = vpop.f32.mrf.mxu0  ;;  %v12376_v15 = vor.u32 %v13899_v5, %v12373_v45  ;;  %v13660_v4 = vld [vmem:[#allocation26 + $0x1c4] sm:$0xf0]  ;;  %v11357_v43 = vld [vmem:[#allocation26 + $0x1c8] sm:$0xf0] }
 0x681   : > { %8761 = vmatpush.bf16.msra.mxu1 %v12756_v33  ;;  %8778 = vmatpush.bf16.msra.mxu2 %v11224_v51  ;;  %v9227_v58 = vsel %vm2654_vm7, %v16570_v2, %v9226_v61  ;;  %v12245_v33 = vld [vmem:[#allocation26 + $0x8c0] sm:$0xf0]  ;;  %v11744_v51 = vor.u32 %v13740_v18, %v11741_v6  ;;  %v11613_v2 = vld [vmem:[#allocation26 + $0x3c8] sm:$0xf0]  ;;  %v11227_v53 = vld [vmem:[#allocation26 + $0x48] sm:$0xf]  ;;  %v11360_v5 = vor.u32 %v13644_v13, %v11357_v43 }
 0x682   : > { %8787 = vmatpush.bf16.msra.mxu3 %v12760_v3  ;;  %9253 = vst [vmem:[%s15253_s4] sm:$0xff] %v9227_v58  ;;  %v8535_v16 = vpop.f32.mrf.mxu3  ;;  %v13724_v3 = vld [vmem:[#allocation26 + $0x3c4] sm:$0xf0]  ;;  %v12248_v35 = vor.u32 %v13867_v34, %v12245_v33  ;;  %v11616_v63 = vor.u32 %v13708_v42, %v11613_v2  ;;  %v8547_v1 = vadd.f32 %v16600_v59, %v8273_v48  ;;  %v13612_v61 = vld [vmem:[#allocation26 + $0x4c] sm:$0xf]  ;;  %v12133_v34 = vld [vmem:[#allocation26 + $0x7d0] sm:$0xf0] }
 0x683   : > { %8753 = vmatmul.bf16.vlgmr.msra.gmra.mxu0 %v16509_v62  ;;  %v11612_v24 = vor.u32 %v13724_v3, %v11611_v17  ;;  %v13628_v40 = vld [vmem:[#allocation26 + $0xc4] sm:$0xf0]  ;;  %v11229_v18 = vld [vmem:[#allocation26 + $0xc8] sm:$0xf0]  ;;  %v8274_v33 = vperm.slane %v16605_v26, 1  ;;  %v12136_v2 = vor.u32 %v13837_v49, %v12133_v34 }
 0x684   : > { %8797 = vmatpush.bf16.msrb.mxu0 %v12124_v0  ;;  %8779 = vmatmul.bf16.vlgmr.msra.gmra.mxu2 %v16509_v62  ;;  %v13147_v0 = vld [vmem:[#allocation26 + $0xf48] sm:$0xf]  ;;  %v13996_v6 = vld [vmem:[#allocation26 + $0xc4c] sm:$0xf]  ;;  %v11232_v59 = vor.u32 %v13612_v61, %v11229_v18  ;;  %v11875_v48 = vld [vmem:[#allocation26 + $0x550] sm:$0xf] }
 0x685   : > { %8823 = vmatpush.bf16.msrb.mxu2 %v12128_v50  ;;  %8762 = vmatpush.bf16.msra.mxu1 %v12628_v12  ;;  %v13149_v50 = vld [vmem:[#allocation26 + $0xfc8] sm:$0xf0]  ;;  %v13148_v41 = vor.u32 %v14108_v19, %v13147_v0  ;;  %v14012_v45 = vld [vmem:[#allocation26 + $0xcc4] sm:$0xf0]  ;;  %v11621_v49 = vld [vmem:[#allocation26 + $0x3d0] sm:$0xf0] }
 0x686   : > { %8788 = vmatpush.bf16.msra.mxu3 %v12632_v60  ;;  %v13152_v12 = vor.u32 %v14092_v57, %v13149_v50  ;;  %v12635_v0 = vld [vmem:[#allocation26 + $0xb48] sm:$0xf]  ;;  %v13964_v42 = vld [vmem:[#allocation26 + $0xb4c] sm:$0xf]  ;;  %v12003_v57 = vld [vmem:[#allocation26 + $0x650] sm:$0xf] }
 0x687   : > { %v16607_v32 = vpop.f32.mrf.mxu2  ;;  %v13980_v19 = vld [vmem:[#allocation26 + $0xbc4] sm:$0xf0]  ;;  %v13821_v50 = vld [vmem:[#allocation26 + $0x6cc] sm:$0xf0]  ;;  %v13932_v56 = vld [vmem:[#allocation26 + $0xa4c] sm:$0xf] }
 0x688   : > { %8798 = vmatpush.bf16.msrb.mxu0 %v11996_v38  ;;  %v8548_v60 = vpop.f32.mrf.mxu0  ;;  %v13676_v38 = vld [vmem:[#allocation26 + $0x24c] sm:$0xf]  ;;  %v12004_v27 = vor.u32 %v13821_v50, %v12003_v57  ;;  %v13916_v25 = vld [vmem:[#allocation26 + $0x9c4] sm:$0xf0] }
 0x689   : > { %8824 = vmatpush.bf16.msrb.mxu2 %v12000_v37  ;;  %8763 = vmatpush.bf16.msra.mxu1 %v12500_v36  ;;  %v11484_v37 = vor.u32 %v13692_v21, %v11483_v44  ;;  %v11488_v39 = vor.u32 %v13676_v38, %v11485_v29  ;;  %v14028_v36 = vld [vmem:[#allocation26 + $0xd4c] sm:$0xf]  ;;  %v13948_v60 = vld [vmem:[#allocation26 + $0xac4] sm:$0xf0] }
 0x68a   : > { %8789 = vmatpush.bf16.msra.mxu3 %v12504_v28  ;;  %v12893_v28 = vld [vmem:[#allocation26 + $0xdc8] sm:$0xf0]  ;;  %v13884_v61 = vld [vmem:[#allocation26 + $0x8c4] sm:$0xf0] }
 0x68b   : > { %v12896_v14 = vor.u32 %v14028_v36, %v12893_v28  ;;  %v12509_v52 = vld [vmem:[#allocation26 + $0xac8] sm:$0xf0] }
 0x68c   : > { %8799 = vmatpush.bf16.msrb.mxu0 %v11868_v20  ;;  %v11356_v20 = vor.u32 %v13660_v4, %v11355_v55  ;;  %v12512_v4 = vor.u32 %v13932_v56, %v12509_v52  ;;  %v13900_v13 = vld [vmem:[#allocation26 + $0x94c] sm:$0xf]  ;;  %v11363_v56 = vld [vmem:[#allocation26 + $0x150] sm:$0xf] }
 0x68d   : > { %8825 = vmatpush.bf16.msrb.mxu2 %v11872_v47  ;;  %8764 = vmatpush.bf16.msra.mxu1 %v12372_v8  ;;  %v12763_v47 = vld [vmem:[#allocation26 + $0xc48] sm:$0xf]  ;;  %v12765_v8 = vld [vmem:[#allocation26 + $0xcc8] sm:$0xf0]  ;;  %v14045_v52 = vld [vmem:[#allocation26 + $0xdcc] sm:$0xf0] }
 0x68e   : > { %8790 = vmatpush.bf16.msra.mxu3 %v12376_v15  ;;  %v13853_v15 = vld [vmem:[#allocation26 + $0x7cc] sm:$0xf0]  ;;  %v12768_v17 = vor.u32 %v13996_v6, %v12765_v8  ;;  %v12381_v28 = vld [vmem:[#allocation26 + $0x9c8] sm:$0xf0] }
 0x68f   : > { %v8574_v30 = vpop.f32.mrf.mxu2  ;;  %v12132_v3 = vor.u32 %v13853_v15, %v12131_v31  ;;  %v13868_v18 = vld [vmem:[#allocation26 + $0x84c] sm:$0xf]  ;;  %v11619_v8 = vld [vmem:[#allocation26 + $0x350] sm:$0xf] }
 0x690   : > { %8800 = vmatpush.bf16.msrb.mxu0 %v11740_v54  ;;  %v11228_v54 = vor.u32 %v13628_v40, %v11227_v53  ;;  %v13757_v53 = vld [vmem:[#allocation26 + $0x4cc] sm:$0xf0]  ;;  %v11749_v30 = vld [vmem:[#allocation26 + $0x4d0] sm:$0xf0]  ;;  %v12253_v6 = vld [vmem:[#allocation26 + $0x8c8] sm:$0xf0] }
 0x691   : > { %8826 = vmatpush.bf16.msrb.mxu2 %v11744_v51  ;;  %8765 = vmatpush.bf16.msra.mxu1 %v12244_v10  ;;  %v8559_v58 = vpop.f32.mrf.mxu1  ;;  %v12764_v51 = vor.u32 %v14012_v45, %v12763_v47  ;;  %v12637_v10 = vld [vmem:[#allocation26 + $0xbc8] sm:$0xf0]  ;;  %v12251_v47 = vld [vmem:[#allocation26 + $0x848] sm:$0xf]  ;;  %v12384_v45 = vor.u32 %v13900_v13, %v12381_v28  ;;  %v13725_v31 = vld [vmem:[#allocation26 + $0x3cc] sm:$0xf0] }
 0x692   : > { %8791 = vmatpush.bf16.msra.mxu3 %v12248_v35  ;;  %v8560_v16 = vadd.f32 %v8559_v58, %v8547_v1  ;;  %v13805_v35 = vld [vmem:[#allocation26 + $0x654] sm:$0xf]  ;;  %v12640_v44 = vor.u32 %v13964_v42, %v12637_v10  ;;  %v13155_v15 = vld [vmem:[#allocation26 + $0xf50] sm:$0xf]  ;;  %v12252_v34 = vor.u32 %v13884_v61, %v12251_v47 }
 0x693   : > { %v11491_v42 = vld [vmem:[#allocation26 + $0x250] sm:$0xf]  ;;  %v12773_v47 = vld [vmem:[#allocation26 + $0xcd0] sm:$0xf0] }
 0x694   : > { %8801 = vmatpush.bf16.msrb.mxu0 %v11612_v24  ;;  %8766 = vmatmul.bf16.vlgmr.msra.gmra.mxu1 %v16515_v11  ;;  %v12005_v24 = vld [vmem:[#allocation26 + $0x6d0] sm:$0xf0]  ;;  %v13027_v10 = vld [vmem:[#allocation26 + $0xe50] sm:$0xf] }
 0x695   : > { %8810 = vmatpush.bf16.msrb.mxu1 %v13148_v41  ;;  %8827 = vmatpush.bf16.msrb.mxu2 %v11616_v63  ;;  %v8573_v41 = vadd.f32 %v16607_v32, %v8274_v33  ;;  %v12636_v63 = vor.u32 %v13980_v19, %v12635_v0  ;;  %v12008_v29 = vor.u32 %v13805_v35, %v12005_v24  ;;  %v13789_v32 = vld [vmem:[#allocation26 + $0x5cc] sm:$0xf0]  ;;  %v14093_v33 = vld [vmem:[#allocation26 + $0xf54] sm:$0xf] }
 0x696   : > { %8836 = vmatpush.bf16.msrb.mxu3 %v13152_v12  ;;  %v12507_v12 = vld [vmem:[#allocation26 + $0xa48] sm:$0xf]  ;;  %v11876_v23 = vor.u32 %v13789_v32, %v11875_v48  ;;  %v14077_v35 = vld [vmem:[#allocation26 + $0xecc] sm:$0xf0]  ;;  %v13677_v24 = vld [vmem:[#allocation26 + $0x254] sm:$0xf] }
 0x697   : > { %8792 = vmatmul.bf16.vlgmr.msra.gmra.mxu3 %v16515_v11  ;;  %v12508_v55 = vor.u32 %v13948_v60, %v12507_v12  ;;  %v13028_v12 = vor.u32 %v14077_v35, %v13027_v10  ;;  %v13645_v48 = vld [vmem:[#allocation26 + $0x154] sm:$0xf]  ;;  %v12771_v13 = vld [vmem:[#allocation26 + $0xc50] sm:$0xf] }
 0x698   : > { %8802 = vmatpush.bf16.msrb.mxu0 %v11484_v37  ;;  %v13773_v37 = vld [vmem:[#allocation26 + $0x554] sm:$0xf]  ;;  %v13949_v35 = vld [vmem:[#allocation26 + $0xacc] sm:$0xf0] }
 0x699   : > { %8811 = vmatpush.bf16.msrb.mxu1 %v13020_v46  ;;  %8828 = vmatpush.bf16.msrb.mxu2 %v11488_v39  ;;  %v8561_v22 = vpop.f32.mrf.mxu1  ;;  %v11877_v46 = vld [vmem:[#allocation26 + $0x5d0] sm:$0xf0] }
 0x69a   : > { %8837 = vmatpush.bf16.msrb.mxu3 %v13024_v9  ;;  %v8585_v21 = vpop.f32.mrf.mxu3  ;;  %v12379_v9 = vld [vmem:[#allocation26 + $0x948] sm:$0xf]  ;;  %v11880_v36 = vor.u32 %v13773_v37, %v11877_v46  ;;  %v11365_v32 = vld [vmem:[#allocation26 + $0x1d0] sm:$0xf0] }
 0x69b   : > { %v8586_v38 = vadd.f32 %v8585_v21, %v8573_v41  ;;  %v12380_v40 = vor.u32 %v13916_v25, %v12379_v9  ;;  %v11493_v41 = vld [vmem:[#allocation26 + $0x2d0] sm:$0xf0]  ;;  %v8275_v21 = vperm.slane %v16605_v26, 2  ;;  %v13629_v25 = vld [vmem:[#allocation26 + $0xcc] sm:$0xf0] }
 0x69c   : > { %8803 = vmatpush.bf16.msrb.mxu0 %v11356_v20  ;;  %v11747_v20 = vld [vmem:[#allocation26 + $0x450] sm:$0xf]  ;;  %v11496_v60 = vor.u32 %v13677_v24, %v11493_v41  ;;  %v14029_v37 = vld [vmem:[#allocation26 + $0xd54] sm:$0xf] }
 0x69d   : > { %8812 = vmatpush.bf16.msrb.mxu1 %v12892_v7  ;;  %8829 = vmatpush.bf16.msrb.mxu2 %v11360_v5  ;;  %v9200_v39 = vrot.slane %v8586_v38, 7  ;;  %v13741_v5 = vld [vmem:[#allocation26 + $0x454] sm:$0xf]  ;;  %v13661_v38 = vld [vmem:[#allocation26 + $0x1cc] sm:$0xf0] }
 0x69e   : > { %8838 = vmatpush.bf16.msrb.mxu3 %v12896_v14  ;;  %v11748_v14 = vor.u32 %v13757_v53, %v11747_v20  ;;  %v11752_v58 = vor.u32 %v13741_v5, %v11749_v30  ;;  %v12901_v46 = vld [vmem:[#allocation26 + $0xdd0] sm:$0xf0] }
 0x69f   : > { %v16618_v43 = vsel %vm2642_vm1, %v8560_v16, %v9200_v39  ;;  %v14109_v16 = vld [vmem:[#allocation26 + $0xfcc] sm:$0xf0]  ;;  %v11364_v39 = vor.u32 %v13661_v38, %v11363_v56  ;;  %v12904_v20 = vor.u32 %v14029_v37, %v12901_v46  ;;  %v13613_v53 = vld [vmem:[#allocation26 + $0x54] sm:$0xf] }
 0x6a0   : > { %8804 = vmatpush.bf16.msrb.mxu0 %v11228_v54  ;;  %v16620_v7 = vpop.f32.mrf.mxu0  ;;  %v13709_v54 = vld [vmem:[#allocation26 + $0x354] sm:$0xf] }
 0x6a1   : > { %8813 = vmatpush.bf16.msrb.mxu1 %v12764_v51  ;;  %8830 = vmatpush.bf16.msrb.mxu2 %v11232_v59  ;;  %v13157_v51 = vld [vmem:[#allocation26 + $0xfd0] sm:$0xf0]  ;;  %v12256_v59 = vor.u32 %v13868_v18, %v12253_v6  ;;  %v11624_v0 = vor.u32 %v13709_v54, %v11621_v49  ;;  %v8599_v28 = vadd.f32 %v16620_v7, %v8275_v21  ;;  %v13838_v18 = vld [vmem:[#allocation26 + $0x75c] sm:$0xf]  ;;  %v13981_v54 = vld [vmem:[#allocation26 + $0xbcc] sm:$0xf0] }
 0x6a2   : > { %8839 = vmatpush.bf16.msrb.mxu3 %v12768_v17  ;;  %v8587_v1 = vpop.f32.mrf.mxu3  ;;  %v11620_v17 = vor.u32 %v13725_v31, %v11619_v8  ;;  %v13160_v57 = vor.u32 %v14093_v33, %v13157_v51  ;;  %v11237_v5 = vld [vmem:[#allocation26 + $0xd0] sm:$0xf0]  ;;  %v12141_v6 = vld [vmem:[#allocation26 + $0x7d8] sm:$0xf0]  ;;  %v12011_v51 = vld [vmem:[#allocation26 + $0x658] sm:$0xf] }
 0x6a3   : > { %8805 = vmatmul.bf16.vlgmr.msrb.gmra.mxu0 %v16509_v62  ;;  %v13997_v30 = vld [vmem:[#allocation26 + $0xc54] sm:$0xf]  ;;  %v13854_v1 = vld [vmem:[#allocation26 + $0x7d4] sm:$0xf0]  ;;  %v11240_v7 = vor.u32 %v13613_v53, %v11237_v5 }
 0x6a4   : > { %8849 = vmatpush.bf16.msra.mxu0 %v12132_v3  ;;  %8831 = vmatmul.bf16.vlgmr.msrb.gmra.mxu2 %v16509_v62  ;;  %v13156_v3 = vor.u32 %v14109_v16, %v13155_v15  ;;  %v12776_v31 = vor.u32 %v13997_v30, %v12773_v47  ;;  %v12643_v16 = vld [vmem:[#allocation26 + $0xb50] sm:$0xf]  ;;  %v13965_v49 = vld [vmem:[#allocation26 + $0xb54] sm:$0xf] }
 0x6a5   : > { %8875 = vmatpush.bf16.msra.mxu2 %v12136_v2  ;;  %8814 = vmatpush.bf16.msrb.mxu1 %v12636_v63  ;;  %v13693_v2 = vld [vmem:[#allocation26 + $0x2cc] sm:$0xf0]  ;;  %v14061_v63 = vld [vmem:[#allocation26 + $0xe54] sm:$0xf] }
 0x6a6   : > { %8840 = vmatpush.bf16.msrb.mxu3 %v12640_v44  ;;  %v13029_v44 = vld [vmem:[#allocation26 + $0xed0] sm:$0xf0] }
 0x6a7   : > { %v16622_v19 = vpop.f32.mrf.mxu2  ;;  %v13032_v22 = vor.u32 %v14061_v63, %v13029_v44  ;;  %v12645_v33 = vld [vmem:[#allocation26 + $0xbd0] sm:$0xf0] }
 0x6a8   : > { %8850 = vmatpush.bf16.msra.mxu0 %v12004_v27  ;;  %v8600_v50 = vpop.f32.mrf.mxu0  ;;  %v11492_v27 = vor.u32 %v13693_v2, %v11491_v42  ;;  %v12644_v42 = vor.u32 %v13981_v54, %v12643_v16  ;;  %v12648_v2 = vor.u32 %v13965_v49, %v12645_v33  ;;  %v13933_v24 = vld [vmem:[#allocation26 + $0xa54] sm:$0xf]  ;;  %v11499_v33 = vld [vmem:[#allocation26 + $0x258] sm:$0xf] }
 0x6a9   : > { %8876 = vmatpush.bf16.msra.mxu2 %v12008_v29  ;;  %8815 = vmatpush.bf16.msrb.mxu1 %v12508_v55  ;;  %v12899_v29 = vld [vmem:[#allocation26 + $0xd50] sm:$0xf]  ;;  %v12517_v21 = vld [vmem:[#allocation26 + $0xad0] sm:$0xf0] }
 0x6aa   : > { %8841 = vmatpush.bf16.msrb.mxu3 %v12512_v4  ;;  %v11235_v55 = vld [vmem:[#allocation26 + $0x50] sm:$0xf]  ;;  %v12900_v4 = vor.u32 %v14045_v52, %v12899_v29  ;;  %v13901_v37 = vld [vmem:[#allocation26 + $0x954] sm:$0xf] }
 0x6ab   : > { %v11236_v61 = vor.u32 %v13629_v25, %v11235_v55  ;;  %v12515_v50 = vld [vmem:[#allocation26 + $0xa50] sm:$0xf]  ;;  %v12389_v55 = vld [vmem:[#allocation26 + $0x9d0] sm:$0xf0] }
 0x6ac   : > { %8851 = vmatpush.bf16.msra.mxu0 %v11876_v23  ;;  %v11368_v23 = vor.u32 %v13645_v48, %v11365_v32  ;;  %v12516_v29 = vor.u32 %v13949_v35, %v12515_v50  ;;  %v12387_v48 = vld [vmem:[#allocation26 + $0x950] sm:$0xf]  ;;  %v12392_v53 = vor.u32 %v13901_v37, %v12389_v55  ;;  %v13869_v47 = vld [vmem:[#allocation26 + $0x854] sm:$0xf]  ;;  %v12779_v37 = vld [vmem:[#allocation26 + $0xc58] sm:$0xf] }
 0x6ad   : > { %8877 = vmatpush.bf16.msra.mxu2 %v11880_v36  ;;  %8816 = vmatpush.bf16.msrb.mxu1 %v12380_v40  ;;  %v14013_v36 = vld [vmem:[#allocation26 + $0xccc] sm:$0xf0]  ;;  %v13614_v55 = vld [vmem:[#allocation26 + $0x5c] sm:$0xf] }
 0x6ae   : > { %8842 = vmatpush.bf16.msrb.mxu3 %v12384_v45  ;;  %v12139_v45 = vld [vmem:[#allocation26 + $0x758] sm:$0xf]  ;;  %v12772_v8 = vor.u32 %v14013_v36, %v12771_v13  ;;  %v13917_v32 = vld [vmem:[#allocation26 + $0x9cc] sm:$0xf0]  ;;  %v13742_v13 = vld [vmem:[#allocation26 + $0x45c] sm:$0xf] }
 0x6af   : > { %v8626_v9 = vpop.f32.mrf.mxu2  ;;  %v12140_v15 = vor.u32 %v13854_v1, %v12139_v45  ;;  %v11757_v36 = vld [vmem:[#allocation26 + $0x4d8] sm:$0xf0]  ;;  %v12261_v45 = vld [vmem:[#allocation26 + $0x8d0] sm:$0xf0] }
 0x6b0   : > { %8852 = vmatpush.bf16.msra.mxu0 %v11748_v14  ;;  %v11760_v1 = vor.u32 %v13742_v13, %v11757_v36  ;;  %v12781_v36 = vld [vmem:[#allocation26 + $0xcd8] sm:$0xf0] }
 0x6b1   : > { %8878 = vmatpush.bf16.msra.mxu2 %v11752_v58  ;;  %8817 = vmatpush.bf16.msrb.mxu1 %v12252_v34  ;;  %v8611_v40 = vpop.f32.mrf.mxu1  ;;  %v8276_v58 = vperm.slane %v16605_v26, 3  ;;  %v12144_v34 = vor.u32 %v13838_v18, %v12141_v6  ;;  %v14110_v18 = vld [vmem:[#allocation26 + $0xfd4] sm:$0xf0]  ;;  %v13710_v6 = vld [vmem:[#allocation26 + $0x35c] sm:$0xf] }
 0x6b2   : > { %8843 = vmatpush.bf16.msrb.mxu3 %v12256_v59  ;;  %v8612_v14 = vadd.f32 %v8611_v40, %v8599_v28  ;;  %v13822_v59 = vld [vmem:[#allocation26 + $0x6d4] sm:$0xf0]  ;;  %v12388_v28 = vor.u32 %v13917_v32, %v12387_v48  ;;  %v13885_v40 = vld [vmem:[#allocation26 + $0x8cc] sm:$0xf0] }
 0x6b3   : > { %v13630_v32 = vld [vmem:[#allocation26 + $0xd4] sm:$0xf0] }
 0x6b4   : > { %8853 = vmatpush.bf16.msra.mxu0 %v11620_v17  ;;  %8818 = vmatmul.bf16.vlgmr.msrb.gmra.mxu1 %v16515_v11  ;;  %v13806_v17 = vld [vmem:[#allocation26 + $0x65c] sm:$0xf]  ;;  %v9201_v56 = vrot.slane %v8612_v14, 6  ;;  %v11627_v14 = vld [vmem:[#allocation26 + $0x358] sm:$0xf] }
 0x6b5   : > { %8862 = vmatpush.bf16.msra.mxu1 %v13156_v3  ;;  %8879 = vmatpush.bf16.msra.mxu2 %v11624_v0  ;;  %v12013_v3 = vld [vmem:[#allocation26 + $0x6d8] sm:$0xf0]  ;;  %v8625_v0 = vadd.f32 %v16622_v19, %v8276_v58  ;;  %v13790_v19 = vld [vmem:[#allocation26 + $0x5d4] sm:$0xf0] }
 0x6b6   : > { %8888 = vmatpush.bf16.msra.mxu3 %v13160_v57  ;;  %v12012_v57 = vor.u32 %v13822_v59, %v12011_v51  ;;  %v12016_v63 = vor.u32 %v13806_v17, %v12013_v3  ;;  %v11629_v58 = vld [vmem:[#allocation26 + $0x3d8] sm:$0xf0]  ;;  %v13694_v51 = vld [vmem:[#allocation26 + $0x2d4] sm:$0xf0] }
 0x6b7   : > { %8844 = vmatmul.bf16.vlgmr.msrb.gmra.mxu3 %v16515_v11  ;;  %v11632_v49 = vor.u32 %v13710_v6, %v11629_v58  ;;  %v13035_v59 = vld [vmem:[#allocation26 + $0xe58] sm:$0xf]  ;;  %v11500_v50 = vor.u32 %v13694_v51, %v11499_v33  ;;  %v12653_v6 = vld [vmem:[#allocation26 + $0xbd8] sm:$0xf0]  ;;  %v12019_v58 = vld [vmem:[#allocation26 + $0x660] sm:$0xf] }
 0x6b8   : > { %8854 = vmatpush.bf16.msra.mxu0 %v11492_v27  ;;  %v11883_v27 = vld [vmem:[#allocation26 + $0x558] sm:$0xf] }
 0x6b9   : > { %8863 = vmatpush.bf16.msra.mxu1 %v13028_v12  ;;  %8880 = vmatpush.bf16.msra.mxu2 %v11496_v60  ;;  %v8613_v44 = vpop.f32.mrf.mxu1  ;;  %v13774_v12 = vld [vmem:[#allocation26 + $0x55c] sm:$0xf]  ;;  %v11884_v52 = vor.u32 %v13790_v19, %v11883_v27  ;;  %v14046_v27 = vld [vmem:[#allocation26 + $0xdd4] sm:$0xf0] }
 0x6ba   : > { %8889 = vmatpush.bf16.msra.mxu3 %v13032_v22  ;;  %v8637_v10 = vpop.f32.mrf.mxu3  ;;  %v11885_v60 = vld [vmem:[#allocation26 + $0x5d8] sm:$0xf0]  ;;  %v12520_v22 = vor.u32 %v13933_v24, %v12517_v21  ;;  %v12907_v44 = vld [vmem:[#allocation26 + $0xd58] sm:$0xf] }
 0x6bb   : > { %v8638_v41 = vadd.f32 %v8637_v10, %v8625_v0  ;;  %v14078_v0 = vld [vmem:[#allocation26 + $0xed4] sm:$0xf0]  ;;  %v14062_v10 = vld [vmem:[#allocation26 + $0xe5c] sm:$0xf] }
 0x6bc   : > { %8855 = vmatpush.bf16.msra.mxu0 %v11364_v39  ;;  %v11888_v39 = vor.u32 %v13774_v12, %v11885_v60  ;;  %v13036_v35 = vor.u32 %v14078_v0, %v13035_v59  ;;  %v13646_v19 = vld [vmem:[#allocation26 + $0x15c] sm:$0xf]  ;;  %v12523_v33 = vld [vmem:[#allocation26 + $0xa58] sm:$0xf] }
 0x6bd   : > { %8864 = vmatpush.bf16.msra.mxu1 %v12900_v4  ;;  %8881 = vmatpush.bf16.msra.mxu2 %v11368_v23  ;;  %v9202_v38 = vrot.slane %v8638_v41, 5  ;;  %v11755_v4 = vld [vmem:[#allocation26 + $0x458] sm:$0xf]  ;;  %v11373_v12 = vld [vmem:[#allocation26 + $0x1d8] sm:$0xf0] }
 0x6be   : > { %8890 = vmatpush.bf16.msra.mxu3 %v12904_v20  ;;  %v13758_v23 = vld [vmem:[#allocation26 + $0x4d4] sm:$0xf0]  ;;  %v12259_v20 = vld [vmem:[#allocation26 + $0x850] sm:$0xf]  ;;  %v14030_v60 = vld [vmem:[#allocation26 + $0xd5c] sm:$0xf] }
 0x6bf   : > { %v9229_v46 = vsel %vm2644_vm2, %v9201_v56, %v9202_v38  ;;  %v11756_v30 = vor.u32 %v13758_v23, %v11755_v4  ;;  %v11371_v41 = vld [vmem:[#allocation26 + $0x158] sm:$0xf]  ;;  %v12909_v56 = vld [vmem:[#allocation26 + $0xdd8] sm:$0xf0] }
 0x6c0   : > { %8856 = vmatpush.bf16.msra.mxu0 %v11236_v61  ;;  %v16635_v9 = vsel %vm2646_vm3, %v16618_v43, %v9229_v46  ;;  %v16637_v25 = vpop.f32.mrf.mxu0  ;;  %v13726_v43 = vld [vmem:[#allocation26 + $0x3d4] sm:$0xf0]  ;;  %v11245_v4 = vld [vmem:[#allocation26 + $0xd8] sm:$0xf0] }
 0x6c1   : > { %8865 = vmatpush.bf16.msra.mxu1 %v12772_v8  ;;  %8882 = vmatpush.bf16.msra.mxu2 %v11240_v7  ;;  %v13163_v61 = vld [vmem:[#allocation26 + $0xf58] sm:$0xf]  ;;  %v12260_v8 = vor.u32 %v13885_v40, %v12259_v20  ;;  %v14094_v7 = vld [vmem:[#allocation26 + $0xf5c] sm:$0xf]  ;;  %v11628_v16 = vor.u32 %v13726_v43, %v11627_v14  ;;  %v13855_v20 = vld [vmem:[#allocation26 + $0x7dc] sm:$0xf0] }
 0x6c2   : > { %8891 = vmatpush.bf16.msra.mxu3 %v12776_v31  ;;  %v8639_v5 = vpop.f32.mrf.mxu3  ;;  %v13165_v31 = vld [vmem:[#allocation26 + $0xfd8] sm:$0xf0]  ;;  %v13164_v54 = vor.u32 %v14110_v18, %v13163_v61  ;;  %v14014_v46 = vld [vmem:[#allocation26 + $0xcd4] sm:$0xf0] }
 0x6c3   : > { %8857 = vmatmul.bf16.vlgmr.msra.gmra.mxu0 %v16509_v62  ;;  %v13168_v17 = vor.u32 %v14094_v7, %v13165_v31  ;;  %v13998_v23 = vld [vmem:[#allocation26 + $0xc5c] sm:$0xf]  ;;  %v13839_v5 = vld [vmem:[#allocation26 + $0x764] sm:$0xf]  ;;  %v12780_v40 = vor.u32 %v14014_v46, %v12779_v37  ;;  %v12651_v14 = vld [vmem:[#allocation26 + $0xb58] sm:$0xf] }
 0x6c4   : > { %8901 = vmatpush.bf16.msrb.mxu0 %v12140_v15  ;;  %8883 = vmatmul.bf16.vlgmr.msra.gmra.mxu2 %v16509_v62  ;;  %v12264_v15 = vor.u32 %v13869_v47, %v12261_v45  ;;  %v11248_v47 = vor.u32 %v13614_v55, %v11245_v4  ;;  %v12784_v45 = vor.u32 %v13998_v23, %v12781_v36  ;;  %v13982_v43 = vld [vmem:[#allocation26 + $0xbd4] sm:$0xf0]  ;;  %v13966_v61 = vld [vmem:[#allocation26 + $0xb5c] sm:$0xf]  ;;  %v13807_v7 = vld [vmem:[#allocation26 + $0x664] sm:$0xf] }
 0x6c5   : > { %8927 = vmatpush.bf16.msrb.mxu2 %v12144_v34  ;;  %8866 = vmatpush.bf16.msra.mxu1 %v12644_v42  ;;  %v13678_v42 = vld [vmem:[#allocation26 + $0x25c] sm:$0xf]  ;;  %v12021_v31 = vld [vmem:[#allocation26 + $0x6e0] sm:$0xf0]  ;;  %v13950_v51 = vld [vmem:[#allocation26 + $0xad4] sm:$0xf0] }
 0x6c6   : > { %8892 = vmatpush.bf16.msra.mxu3 %v12648_v2  ;;  %v11501_v2 = vld [vmem:[#allocation26 + $0x2d8] sm:$0xf0]  ;;  %v13886_v37 = vld [vmem:[#allocation26 + $0x8d4] sm:$0xf0]  ;;  %v11635_v4 = vld [vmem:[#allocation26 + $0x360] sm:$0xf] }
 0x6c7   : > { %v16639_v34 = vpop.f32.mrf.mxu2  ;;  %v11504_v24 = vor.u32 %v13678_v42, %v11501_v2  ;;  %v13934_v59 = vld [vmem:[#allocation26 + $0xa5c] sm:$0xf]  ;;  %v11891_v42 = vld [vmem:[#allocation26 + $0x560] sm:$0xf] }
 0x6c8   : > { %8902 = vmatpush.bf16.msrb.mxu0 %v12012_v57  ;;  %v8652_v3 = vpop.f32.mrf.mxu0  ;;  %v13037_v57 = vld [vmem:[#allocation26 + $0xed8] sm:$0xf0]  ;;  %v13791_v2 = vld [vmem:[#allocation26 + $0x5dc] sm:$0xf0] }
 0x6c9   : > { %8928 = vmatpush.bf16.msrb.mxu2 %v12016_v63  ;;  %8867 = vmatpush.bf16.msra.mxu1 %v12516_v29  ;;  %v13662_v63 = vld [vmem:[#allocation26 + $0x1d4] sm:$0xf0]  ;;  %v13040_v21 = vor.u32 %v14062_v10, %v13037_v57  ;;  %v12525_v0 = vld [vmem:[#allocation26 + $0xad8] sm:$0xf0]  ;;  %v13775_v10 = vld [vmem:[#allocation26 + $0x564] sm:$0xf] }
 0x6ca   : > { %8893 = vmatpush.bf16.msra.mxu3 %v12520_v22  ;;  %v11372_v38 = vor.u32 %v13662_v63, %v11371_v41  ;;  %v11243_v29 = vld [vmem:[#allocation26 + $0x58] sm:$0xf]  ;;  %v12908_v22 = vor.u32 %v14046_v27, %v12907_v44  ;;  %v11893_v57 = vld [vmem:[#allocation26 + $0x5e0] sm:$0xf0]  ;;  %v13902_v44 = vld [vmem:[#allocation26 + $0x95c] sm:$0xf] }
 0x6cb   : > { %v12395_v41 = vld [vmem:[#allocation26 + $0x958] sm:$0xf]  ;;  %v12397_v27 = vld [vmem:[#allocation26 + $0x9d8] sm:$0xf0]  ;;  %v13727_v23 = vld [vmem:[#allocation26 + $0x3dc] sm:$0xf0] }
 0x6cc   : > { %8903 = vmatpush.bf16.msrb.mxu0 %v11884_v52  ;;  %v11376_v52 = vor.u32 %v13646_v19, %v11373_v12  ;;  %v13918_v63 = vld [vmem:[#allocation26 + $0x9d4] sm:$0xf0]  ;;  %v11763_v19 = vld [vmem:[#allocation26 + $0x460] sm:$0xf]  ;;  %v13870_v46 = vld [vmem:[#allocation26 + $0x85c] sm:$0xf] }
 0x6cd   : > { %8929 = vmatpush.bf16.msrb.mxu2 %v11888_v39  ;;  %8868 = vmatpush.bf16.msra.mxu1 %v12388_v28  ;;  %v12912_v39 = vor.u32 %v14030_v60, %v12909_v56  ;;  %v12147_v28 = vld [vmem:[#allocation26 + $0x760] sm:$0xf]  ;;  %v13743_v56 = vld [vmem:[#allocation26 + $0x464] sm:$0xf] }
 0x6ce   : > { %8894 = vmatpush.bf16.msra.mxu3 %v12392_v53  ;;  %v11244_v53 = vor.u32 %v13630_v32, %v11243_v29  ;;  %v13759_v12 = vld [vmem:[#allocation26 + $0x4dc] sm:$0xf0]  ;;  %v12396_v29 = vor.u32 %v13918_v63, %v12395_v41  ;;  %v8277_v41 = vperm.slane %v16605_v26, 4  ;;  %v8279_v63 = vperm.slane %v16605_v26, 6 }
 0x6cf   : > { %v8678_v48 = vpop.f32.mrf.mxu2  ;;  %v11764_v32 = vor.u32 %v13759_v12, %v11763_v19  ;;  %v13171_v36 = vld [vmem:[#allocation26 + $0xf60] sm:$0xf] }
 0x6d0   : > { %8904 = vmatpush.bf16.msrb.mxu0 %v11756_v30  ;;  %v12149_v30 = vld [vmem:[#allocation26 + $0x7e0] sm:$0xf0] }
 0x6d1   : > { %8930 = vmatpush.bf16.msrb.mxu2 %v11760_v1  ;;  %8869 = vmatpush.bf16.msra.mxu1 %v12260_v8  ;;  %v16643_v13 = vpop.f32.mrf.mxu1  ;;  %v12148_v1 = vor.u32 %v13855_v20, %v12147_v28  ;;  %v12152_v18 = vor.u32 %v13839_v5, %v12149_v30  ;;  %v13823_v8 = vld [vmem:[#allocation26 + $0x6dc] sm:$0xf0]  ;;  %v13711_v20 = vld [vmem:[#allocation26 + $0x364] sm:$0xf] }
 0x6d2   : > { %8895 = vmatpush.bf16.msra.mxu3 %v12264_v15  ;;  %v12652_v15 = vor.u32 %v13982_v43, %v12651_v14  ;;  %v14111_v28 = vld [vmem:[#allocation26 + $0xfdc] sm:$0xf0]  ;;  %v14095_v30 = vld [vmem:[#allocation26 + $0xf64] sm:$0xf] }
 0x6d4   : > { %8905 = vmatpush.bf16.msrb.mxu0 %v11628_v16  ;;  %8870 = vmatmul.bf16.vlgmr.msra.gmra.mxu1 %v16515_v11  ;;  %v12656_v16 = vor.u32 %v13966_v61, %v12653_v6  ;;  %v11507_v61 = vld [vmem:[#allocation26 + $0x260] sm:$0xf] }
 0x6d5   : > { %8914 = vmatpush.bf16.msrb.mxu1 %v13164_v54  ;;  %8931 = vmatpush.bf16.msrb.mxu2 %v11632_v49  ;;  %v12020_v49 = vor.u32 %v13823_v8, %v12019_v58  ;;  %v13043_v6 = vld [vmem:[#allocation26 + $0xe60] sm:$0xf] }
 0x6d6   : > { %8940 = vmatpush.bf16.msrb.mxu3 %v13168_v17  ;;  %v12024_v17 = vor.u32 %v13807_v7, %v12021_v31  ;;  %v14079_v7 = vld [vmem:[#allocation26 + $0xedc] sm:$0xf0]  ;;  %v13679_v31 = vld [vmem:[#allocation26 + $0x264] sm:$0xf] }
 0x6d7   : > { %8896 = vmatmul.bf16.vlgmr.msra.gmra.mxu3 %v16515_v11 }
 0x6d8   : > { %8906 = vmatpush.bf16.msrb.mxu0 %v11500_v50  ;;  %v12524_v50 = vor.u32 %v13950_v51, %v12523_v33  ;;  %v13044_v51 = vor.u32 %v14079_v7, %v13043_v6  ;;  %v12661_v6 = vld [vmem:[#allocation26 + $0xbe0] sm:$0xf0]  ;;  %v12029_v7 = vld [vmem:[#allocation26 + $0x6e8] sm:$0xf0] }
 0x6d9   : > { %8915 = vmatpush.bf16.msrb.mxu1 %v13036_v35  ;;  %8932 = vmatpush.bf16.msrb.mxu2 %v11504_v24  ;;  %v8665_v3 = vpop.f32.mrf.mxu1  ;;  %v12528_v35 = vor.u32 %v13934_v59, %v12525_v0  ;;  %v11892_v24 = vor.u32 %v13791_v2, %v11891_v42  ;;  %v12915_v0 = vld [vmem:[#allocation26 + $0xd60] sm:$0xf] }
 0x6da   : > { %8941 = vmatpush.bf16.msrb.mxu3 %v13040_v21  ;;  %v16645_v54 = vpop.f32.mrf.mxu3  ;;  %v11896_v21 = vor.u32 %v13775_v10, %v11893_v57  ;;  %v13663_v3 = vld [vmem:[#allocation26 + $0x1dc] sm:$0xf0]  ;;  %v13647_v10 = vld [vmem:[#allocation26 + $0x164] sm:$0xf] }
 0x6db   : > { %v14047_v2 = vld [vmem:[#allocation26 + $0xddc] sm:$0xf0]  ;;  %v11381_v57 = vld [vmem:[#allocation26 + $0x1e0] sm:$0xf0] }
 0x6dc   : > { %8907 = vmatpush.bf16.msrb.mxu0 %v11372_v38  ;;  %v11765_v38 = vld [vmem:[#allocation26 + $0x4e0] sm:$0xf0]  ;;  %v11384_v19 = vor.u32 %v13647_v10, %v11381_v57  ;;  %v13776_v10 = vld [vmem:[#allocation26 + $0x56c] sm:$0xf] }
 0x6dd   : > { %8916 = vmatpush.bf16.msrb.mxu1 %v12908_v22  ;;  %8933 = vmatpush.bf16.msrb.mxu2 %v11376_v52  ;;  %v12267_v22 = vld [vmem:[#allocation26 + $0x858] sm:$0xf]  ;;  %v12400_v52 = vor.u32 %v13902_v44, %v12397_v27  ;;  %v11768_v55 = vor.u32 %v13743_v56, %v11765_v38  ;;  %v12916_v27 = vor.u32 %v14047_v2, %v12915_v0  ;;  %v13631_v56 = vld [vmem:[#allocation26 + $0xdc] sm:$0xf0]  ;;  %v13792_v2 = vld [vmem:[#allocation26 + $0x5e4] sm:$0xf0] }
 0x6de   : > { %8942 = vmatpush.bf16.msrb.mxu3 %v12912_v39  ;;  %v12269_v39 = vld [vmem:[#allocation26 + $0x8d8] sm:$0xf0]  ;;  %v12268_v5 = vor.u32 %v13886_v37, %v12267_v22  ;;  %v12787_v38 = vld [vmem:[#allocation26 + $0xc60] sm:$0xf]  ;;  %v11901_v57 = vld [vmem:[#allocation26 + $0x5e8] sm:$0xf0] }
 0x6e0   : > { %8908 = vmatpush.bf16.msrb.mxu0 %v11244_v53  ;;  %v16649_v60 = vpop.f32.mrf.mxu0  ;;  %v11637_v53 = vld [vmem:[#allocation26 + $0x3e0] sm:$0xf0] }
 0x6e1   : > { %8917 = vmatpush.bf16.msrb.mxu1 %v12780_v40  ;;  %8934 = vmatpush.bf16.msrb.mxu2 %v11248_v47  ;;  %v13173_v40 = vld [vmem:[#allocation26 + $0xfe0] sm:$0xf0]  ;;  %v12272_v47 = vor.u32 %v13870_v46, %v12269_v39  ;;  %v11640_v14 = vor.u32 %v13711_v20, %v11637_v53  ;;  %v8280_v53 = vperm.slane %v16605_v26, 7 }
 0x6e2   : > { %8943 = vmatpush.bf16.msrb.mxu3 %v12784_v45  ;;  %v8691_v48 = vpop.f32.mrf.mxu3  ;;  %v11636_v45 = vor.u32 %v13727_v23, %v11635_v4  ;;  %v13176_v58 = vor.u32 %v14095_v30, %v13173_v40  ;;  %v12789_v39 = vld [vmem:[#allocation26 + $0xce0] sm:$0xf0]  ;;  %v13856_v4 = vld [vmem:[#allocation26 + $0x7e4] sm:$0xf0]  ;;  %v8651_v40 = vadd.f32 %v16637_v25, %v8277_v41 }
 0x6e3   : > { %8909 = vmatmul.bf16.vlgmr.msrb.gmra.mxu0 %v16509_v62  ;;  %v11253_v48 = vld [vmem:[#allocation26 + $0xe0] sm:$0xf0] }
 0x6e4   : > { %8953 = vmatpush.bf16.msra.mxu0 %v12148_v1  ;;  %8935 = vmatmul.bf16.vlgmr.msrb.gmra.mxu2 %v16509_v62  ;;  %v13172_v1 = vor.u32 %v14111_v28, %v13171_v36  ;;  %v13840_v36 = vld [vmem:[#allocation26 + $0x76c] sm:$0xf] }
 0x6e5   : > { %8979 = vmatpush.bf16.msra.mxu2 %v12152_v18  ;;  %8918 = vmatpush.bf16.msrb.mxu1 %v12652_v15  ;;  %v13695_v18 = vld [vmem:[#allocation26 + $0x2dc] sm:$0xf0]  ;;  %v11509_v15 = vld [vmem:[#allocation26 + $0x2e0] sm:$0xf0]  ;;  %v12157_v28 = vld [vmem:[#allocation26 + $0x7e8] sm:$0xf0] }
 0x6e6   : > { %8944 = vmatpush.bf16.msrb.mxu3 %v12656_v16  ;;  %v14063_v16 = vld [vmem:[#allocation26 + $0xe64] sm:$0xf]  ;;  %v11508_v33 = vor.u32 %v13695_v18, %v11507_v61  ;;  %v11512_v59 = vor.u32 %v13679_v31, %v11509_v15  ;;  %v8703_v61 = vadd.f32 %v16649_v60, %v8279_v63  ;;  %v12160_v18 = vor.u32 %v13840_v36, %v12157_v28 }
 0x6e7   : > { %v16651_v43 = vpop.f32.mrf.mxu2 }
 0x6e8   : > { %8954 = vmatpush.bf16.msra.mxu0 %v12020_v49  ;;  %v8704_v8 = vpop.f32.mrf.mxu0  ;;  %v13045_v49 = vld [vmem:[#allocation26 + $0xee0] sm:$0xf0]  ;;  %v8729_v25 = vadd.f32 %v16651_v43, %v8280_v53  ;;  %v11899_v43 = vld [vmem:[#allocation26 + $0x568] sm:$0xf] }
 0x6e9   : > { %8980 = vmatpush.bf16.msra.mxu2 %v12024_v17  ;;  %8919 = vmatpush.bf16.msrb.mxu1 %v12524_v50  ;;  %v11379_v17 = vld [vmem:[#allocation26 + $0x160] sm:$0xf]  ;;  %v13048_v42 = vor.u32 %v14063_v16, %v13045_v49  ;;  %v8278_v50 = vperm.slane %v16605_v26, 5  ;;  %v8664_v26 = vadd.f32 %v16643_v13, %v8651_v40  ;;  %v13808_v8 = vld [vmem:[#allocation26 + $0x66c] sm:$0xf] }
 0x6ea   : > { %8945 = vmatpush.bf16.msrb.mxu3 %v12528_v35  ;;  %v14031_v35 = vld [vmem:[#allocation26 + $0xd64] sm:$0xf]  ;;  %v11380_v44 = vor.u32 %v13663_v3, %v11379_v17  ;;  %v12032_v3 = vor.u32 %v13808_v8, %v12029_v7  ;;  %v11643_v40 = vld [vmem:[#allocation26 + $0x368] sm:$0xf] }
 0x6eb   : > { %v8677_v37 = vadd.f32 %v16639_v34, %v8278_v50  ;;  %v13935_v17 = vld [vmem:[#allocation26 + $0xa64] sm:$0xf]  ;;  %v9203_v50 = vrot.slane %v8664_v26, 4 }
 0x6ec   : > { %8955 = vmatpush.bf16.msra.mxu0 %v11892_v24  ;;  %v12917_v24 = vld [vmem:[#allocation26 + $0xde0] sm:$0xf0] }
 0x6ed   : > { %8981 = vmatpush.bf16.msra.mxu2 %v11896_v21  ;;  %8920 = vmatpush.bf16.msrb.mxu1 %v12396_v29  ;;  %v11251_v21 = vld [vmem:[#allocation26 + $0x60] sm:$0xf]  ;;  %v12920_v22 = vor.u32 %v14031_v35, %v12917_v24  ;;  %v8690_v20 = vadd.f32 %v16645_v54, %v8677_v37  ;;  %v13824_v54 = vld [vmem:[#allocation26 + $0x6e4] sm:$0xf0]  ;;  %v13744_v37 = vld [vmem:[#allocation26 + $0x46c] sm:$0xf] }
 0x6ee   : > { %8946 = vmatpush.bf16.msrb.mxu3 %v12400_v52  ;;  %v14015_v29 = vld [vmem:[#allocation26 + $0xcdc] sm:$0xf0]  ;;  %v13615_v52 = vld [vmem:[#allocation26 + $0x64] sm:$0xf]  ;;  %v11252_v23 = vor.u32 %v13631_v56, %v11251_v21 }
 0x6ef   : > { %v8730_v12 = vpop.f32.mrf.mxu2  ;;  %v11256_v30 = vor.u32 %v13615_v52, %v11253_v48  ;;  %v9204_v31 = vrot.slane %v8690_v20, 3  ;;  %v12403_v21 = vld [vmem:[#allocation26 + $0x960] sm:$0xf]  ;;  %v13760_v52 = vld [vmem:[#allocation26 + $0x4e4] sm:$0xf0] }
 0x6f0   : > { %8956 = vmatpush.bf16.msra.mxu0 %v11764_v32  ;;  %v13999_v32 = vld [vmem:[#allocation26 + $0xc64] sm:$0xf] }
 0x6f1   : > { %8982 = vmatpush.bf16.msra.mxu2 %v11768_v55  ;;  %8921 = vmatpush.bf16.msrb.mxu1 %v12268_v5  ;;  %v8715_v46 = vpop.f32.mrf.mxu1  ;;  %v12155_v55 = vld [vmem:[#allocation26 + $0x768] sm:$0xf]  ;;  %v12788_v5 = vor.u32 %v14015_v29, %v12787_v38  ;;  %v12792_v34 = vor.u32 %v13999_v32, %v12789_v39  ;;  %v9231_v12 = vsel %vm2648_vm4, %v9203_v50, %v9204_v31  ;;  %v12405_v29 = vld [vmem:[#allocation26 + $0x9e0] sm:$0xf0] }
 0x6f2   : > { %8947 = vmatpush.bf16.msrb.mxu3 %v12272_v47  ;;  %v12156_v47 = vor.u32 %v13856_v4, %v12155_v55  ;;  %v8716_v15 = vadd.f32 %v8715_v46, %v8703_v61  ;;  %v11904_v38 = vor.u32 %v13776_v10, %v11901_v57  ;;  %v11773_v46 = vld [vmem:[#allocation26 + $0x4e8] sm:$0xf0]  ;;  %v12275_v4 = vld [vmem:[#allocation26 + $0x860] sm:$0xf]  ;;  %v13871_v53 = vld [vmem:[#allocation26 + $0x864] sm:$0xf] }
 0x6f3   : > { %v14096_v61 = vld [vmem:[#allocation26 + $0xf6c] sm:$0xf]  ;;  %v11515_v31 = vld [vmem:[#allocation26 + $0x268] sm:$0xf] }
 0x6f4   : > { %8957 = vmatpush.bf16.msra.mxu0 %v11636_v45  ;;  %8922 = vmatmul.bf16.vlgmr.msrb.gmra.mxu1 %v16515_v11  ;;  %v12659_v45 = vld [vmem:[#allocation26 + $0xb60] sm:$0xf]  ;;  %v9205_v35 = vrot.slane %v8716_v15, 2  ;;  %v13051_v15 = vld [vmem:[#allocation26 + $0xe68] sm:$0xf] }
 0x6f5   : > { %8966 = vmatpush.bf16.msra.mxu1 %v13172_v1  ;;  %8983 = vmatpush.bf16.msra.mxu2 %v11640_v14  ;;  %v13983_v1 = vld [vmem:[#allocation26 + $0xbdc] sm:$0xf0]  ;;  %v13967_v14 = vld [vmem:[#allocation26 + $0xb64] sm:$0xf]  ;;  %v12923_v10 = vld [vmem:[#allocation26 + $0xd68] sm:$0xf] }
 0x6f6   : > { %8992 = vmatpush.bf16.msra.mxu3 %v13176_v58  ;;  %v12027_v58 = vld [vmem:[#allocation26 + $0x668] sm:$0xf]  ;;  %v12660_v16 = vor.u32 %v13983_v1, %v12659_v45  ;;  %v12664_v49 = vor.u32 %v13967_v14, %v12661_v6  ;;  %v13712_v1 = vld [vmem:[#allocation26 + $0x36c] sm:$0xf]  ;;  %v16675_v6 = vld [vmem:[#allocation28 + $0x10] sm:$0xff] }
 0x6f7   : > { %8948 = vmatmul.bf16.vlgmr.msrb.gmra.mxu3 %v16515_v11  ;;  %v14112_v45 = vld [vmem:[#allocation26 + $0xfe4] sm:$0xf0] }
 0x6f8   : > { %8958 = vmatpush.bf16.msra.mxu0 %v11508_v33  ;;  %v12028_v33 = vor.u32 %v13824_v54, %v12027_v58  ;;  %v14048_v50 = vld [vmem:[#allocation26 + $0xde4] sm:$0xf0] }
 0x6f9   : > { %8967 = vmatpush.bf16.msra.mxu1 %v13044_v51  ;;  %8984 = vmatpush.bf16.msra.mxu2 %v11512_v59  ;;  %v12531_v51 = vld [vmem:[#allocation26 + $0xa60] sm:$0xf]  ;;  %v8717_v0 = vpop.f32.mrf.mxu1 }
 0x6fa   : > { %8993 = vmatpush.bf16.msra.mxu3 %v13048_v42  ;;  %v8741_v60 = vpop.f32.mrf.mxu3  ;;  %v13951_v59 = vld [vmem:[#allocation26 + $0xadc] sm:$0xf0]  ;;  %v12533_v42 = vld [vmem:[#allocation26 + $0xae0] sm:$0xf0] }
 0x6fb   : > { %v8742_v13 = vadd.f32 %v8741_v60, %v8729_v25  ;;  %v12532_v41 = vor.u32 %v13951_v59, %v12531_v51  ;;  %v12536_v63 = vor.u32 %v13935_v17, %v12533_v42  ;;  %v13696_v25 = vld [vmem:[#allocation26 + $0x2e4] sm:$0xf0]  ;;  %v11517_v51 = vld [vmem:[#allocation26 + $0x2e8] sm:$0xf0] }
 0x6fc   : > { %8959 = vmatpush.bf16.msra.mxu0 %v11380_v44  ;;  %v11900_v44 = vor.u32 %v13792_v2, %v11899_v43  ;;  %v14080_v60 = vld [vmem:[#allocation26 + $0xee4] sm:$0xf0]  ;;  %v14064_v59 = vld [vmem:[#allocation26 + $0xe6c] sm:$0xf] }
 0x6fd   : > { %8968 = vmatpush.bf16.msra.mxu1 %v12916_v27  ;;  %8985 = vmatpush.bf16.msra.mxu2 %v11384_v19  ;;  %v9206_v24 = vrot.slane %v8742_v13, 1  ;;  %v13919_v27 = vld [vmem:[#allocation26 + $0x9dc] sm:$0xf0]  ;;  %v13903_v19 = vld [vmem:[#allocation26 + $0x964] sm:$0xf]  ;;  %v8281_v13 = vperm.slane %v16675_v6, 0  ;;  %v13052_v0 = vor.u32 %v14080_v60, %v13051_v15 }
 0x6fe   : > { %8994 = vmatpush.bf16.msra.mxu3 %v12920_v22  ;;  %v11771_v22 = vld [vmem:[#allocation26 + $0x468] sm:$0xf]  ;;  %v12404_v55 = vor.u32 %v13919_v27, %v12403_v21  ;;  %v12408_v36 = vor.u32 %v13903_v19, %v12405_v29  ;;  %v13053_v17 = vld [vmem:[#allocation26 + $0xee8] sm:$0xf0]  ;;  %v12924_v27 = vor.u32 %v14048_v50, %v12923_v10 }
 0x6ff   : > { %v9232_v56 = vsel %vm2650_vm5, %v9205_v35, %v9206_v24  ;;  %v11772_v20 = vor.u32 %v13760_v52, %v11771_v22  ;;  %v11387_v43 = vld [vmem:[#allocation26 + $0x168] sm:$0xf]  ;;  %v13056_v57 = vor.u32 %v14064_v59, %v13053_v17  ;;  %v13648_v35 = vld [vmem:[#allocation26 + $0x16c] sm:$0xf] }
 0x700   : > { %8960 = vmatpush.bf16.msra.mxu0 %v11252_v23  ;;  %v9233_v48 = vsel %vm2652_vm6, %v9231_v12, %v9232_v56  ;;  %v16670_v32 = vpop.f32.mrf.mxu0  ;;  %v13887_v23 = vld [vmem:[#allocation26 + $0x8dc] sm:$0xf0]  ;;  %v13664_v2 = vld [vmem:[#allocation26 + $0x1e4] sm:$0xf0]  ;;  %v11389_v24 = vld [vmem:[#allocation26 + $0x1e8] sm:$0xf0] }
 0x701   : > { %8969 = vmatpush.bf16.msra.mxu1 %v12788_v5  ;;  %8986 = vmatpush.bf16.msra.mxu2 %v11256_v30  ;;  %v9234_v39 = vsel %vm2654_vm7, %v16635_v9, %v9233_v48  ;;  %v12277_v5 = vld [vmem:[#allocation26 + $0x8e0] sm:$0xf0]  ;;  %v11776_v30 = vor.u32 %v13744_v37, %v11773_v46  ;;  %v11645_v9 = vld [vmem:[#allocation26 + $0x3e8] sm:$0xf0]  ;;  %v12276_v14 = vor.u32 %v13887_v23, %v12275_v4  ;;  %v11259_v21 = vld [vmem:[#allocation26 + $0x68] sm:$0xf] }
 0x702   : > { %8995 = vmatpush.bf16.msra.mxu3 %v12792_v34  ;;  %9254 = vst [vmem:[%s15253_s4 + $0x8] sm:$0xff] %v9234_v39  ;;  %v8743_v28 = vpop.f32.mrf.mxu3  ;;  %v13728_v34 = vld [vmem:[#allocation26 + $0x3e4] sm:$0xf0]  ;;  %v12280_v58 = vor.u32 %v13871_v53, %v12277_v5  ;;  %v11648_v8 = vor.u32 %v13712_v1, %v11645_v9  ;;  %v11392_v19 = vor.u32 %v13648_v35, %v11389_v24  ;;  %v13616_v48 = vld [vmem:[#allocation26 + $0x6c] sm:$0xf]  ;;  %v8282_v5 = vperm.slane %v16675_v6, 1 }
 0x703   : > { %8961 = vmatmul.bf16.vlgmr.msra.gmra.mxu0 %v16509_v62  ;;  %v11644_v54 = vor.u32 %v13728_v34, %v11643_v40  ;;  %v13632_v56 = vld [vmem:[#allocation26 + $0xe4] sm:$0xf0]  ;;  %v8755_v22 = vadd.f32 %v16670_v32, %v8281_v13  ;;  %v11261_v37 = vld [vmem:[#allocation26 + $0xe8] sm:$0xf0]  ;;  %v12163_v4 = vld [vmem:[#allocation26 + $0x770] sm:$0xf] }
 0x704   : > { %9005 = vmatpush.bf16.msrb.mxu0 %v12156_v47  ;;  %8987 = vmatmul.bf16.vlgmr.msra.gmra.mxu2 %v16509_v62  ;;  %v13179_v47 = vld [vmem:[#allocation26 + $0xf68] sm:$0xf]  ;;  %v14000_v46 = vld [vmem:[#allocation26 + $0xc6c] sm:$0xf]  ;;  %v13857_v23 = vld [vmem:[#allocation26 + $0x7ec] sm:$0xf0]  ;;  %v11260_v28 = vor.u32 %v13632_v56, %v11259_v21  ;;  %v11264_v32 = vor.u32 %v13616_v48, %v11261_v37 }
 0x705   : > { %9031 = vmatpush.bf16.msrb.mxu2 %v12160_v18  ;;  %8970 = vmatpush.bf16.msra.mxu1 %v12660_v16  ;;  %v13181_v18 = vld [vmem:[#allocation26 + $0xfe8] sm:$0xf0]  ;;  %v13180_v26 = vor.u32 %v14112_v45, %v13179_v47  ;;  %v14016_v29 = vld [vmem:[#allocation26 + $0xce4] sm:$0xf0]  ;;  %v12165_v53 = vld [vmem:[#allocation26 + $0x7f0] sm:$0xf0]  ;;  %v12164_v34 = vor.u32 %v13857_v23, %v12163_v4 }
 0x706   : > { %8996 = vmatpush.bf16.msra.mxu3 %v12664_v49  ;;  %v13184_v16 = vor.u32 %v14096_v61, %v13181_v18  ;;  %v12667_v47 = vld [vmem:[#allocation26 + $0xb68] sm:$0xf]  ;;  %v13968_v1 = vld [vmem:[#allocation26 + $0xb6c] sm:$0xf]  ;;  %v12035_v61 = vld [vmem:[#allocation26 + $0x670] sm:$0xf] }
 0x707   : > { %v16677_v7 = vpop.f32.mrf.mxu2  ;;  %v13984_v45 = vld [vmem:[#allocation26 + $0xbe4] sm:$0xf0]  ;;  %v13825_v18 = vld [vmem:[#allocation26 + $0x6ec] sm:$0xf0]  ;;  %v13936_v60 = vld [vmem:[#allocation26 + $0xa6c] sm:$0xf] }
 0x708   : > { %9006 = vmatpush.bf16.msrb.mxu0 %v12028_v33  ;;  %v8756_v49 = vpop.f32.mrf.mxu0  ;;  %v13680_v33 = vld [vmem:[#allocation26 + $0x26c] sm:$0xf]  ;;  %v12036_v15 = vor.u32 %v13825_v18, %v12035_v61  ;;  %v11907_v13 = vld [vmem:[#allocation26 + $0x570] sm:$0xf]  ;;  %v13920_v50 = vld [vmem:[#allocation26 + $0x9e4] sm:$0xf0] }
 0x709   : > { %9032 = vmatpush.bf16.msrb.mxu2 %v12032_v3  ;;  %8971 = vmatpush.bf16.msra.mxu1 %v12532_v41  ;;  %v11516_v3 = vor.u32 %v13696_v25, %v11515_v31  ;;  %v11520_v42 = vor.u32 %v13680_v33, %v11517_v51  ;;  %v14032_v41 = vld [vmem:[#allocation26 + $0xd6c] sm:$0xf]  ;;  %v13952_v49 = vld [vmem:[#allocation26 + $0xae4] sm:$0xf0]  ;;  %v13761_v21 = vld [vmem:[#allocation26 + $0x4ec] sm:$0xf0] }
 0x70a   : > { %8997 = vmatpush.bf16.msra.mxu3 %v12536_v63  ;;  %v12925_v63 = vld [vmem:[#allocation26 + $0xde8] sm:$0xf0]  ;;  %v13888_v48 = vld [vmem:[#allocation26 + $0x8e4] sm:$0xf0]  ;;  %v13729_v4 = vld [vmem:[#allocation26 + $0x3ec] sm:$0xf0] }
 0x70b   : > { %v12928_v52 = vor.u32 %v14032_v41, %v12925_v63  ;;  %v12541_v17 = vld [vmem:[#allocation26 + $0xae8] sm:$0xf0]  ;;  %v13187_v23 = vld [vmem:[#allocation26 + $0xf70] sm:$0xf] }
 0x70c   : > { %9007 = vmatpush.bf16.msrb.mxu0 %v11900_v44  ;;  %v11388_v44 = vor.u32 %v13664_v2, %v11387_v43  ;;  %v12544_v2 = vor.u32 %v13936_v60, %v12541_v17  ;;  %v13904_v35 = vld [vmem:[#allocation26 + $0x96c] sm:$0xf]  ;;  %v11395_v60 = vld [vmem:[#allocation26 + $0x170] sm:$0xf] }
 0x70d   : > { %9033 = vmatpush.bf16.msrb.mxu2 %v11904_v38  ;;  %8972 = vmatpush.bf16.msra.mxu1 %v12404_v55  ;;  %v12795_v38 = vld [vmem:[#allocation26 + $0xc68] sm:$0xf]  ;;  %v12797_v55 = vld [vmem:[#allocation26 + $0xce8] sm:$0xf0]  ;;  %v14049_v17 = vld [vmem:[#allocation26 + $0xdec] sm:$0xf0] }
 0x70e   : > { %8998 = vmatpush.bf16.msra.mxu3 %v12408_v36  ;;  %v12800_v40 = vor.u32 %v14000_v46, %v12797_v55  ;;  %v12413_v63 = vld [vmem:[#allocation26 + $0x9e8] sm:$0xf0]  ;;  %v11651_v55 = vld [vmem:[#allocation26 + $0x370] sm:$0xf] }
 0x70f   : > { %v8782_v12 = vpop.f32.mrf.mxu2  ;;  %v13872_v37 = vld [vmem:[#allocation26 + $0x86c] sm:$0xf] }
 0x710   : > { %9008 = vmatpush.bf16.msrb.mxu0 %v11772_v20  ;;  %v13841_v20 = vld [vmem:[#allocation26 + $0x774] sm:$0xf]  ;;  %v12285_v46 = vld [vmem:[#allocation26 + $0x8e8] sm:$0xf0] }
 0x711   : > { %9034 = vmatpush.bf16.msrb.mxu2 %v11776_v30  ;;  %8973 = vmatpush.bf16.msra.mxu1 %v12276_v14  ;;  %v8767_v39 = vpop.f32.mrf.mxu1  ;;  %v12796_v30 = vor.u32 %v14016_v29, %v12795_v38  ;;  %v12168_v9 = vor.u32 %v13841_v20, %v12165_v53  ;;  %v12669_v14 = vld [vmem:[#allocation26 + $0xbe8] sm:$0xf0]  ;;  %v11781_v12 = vld [vmem:[#allocation26 + $0x4f0] sm:$0xf0]  ;;  %v12283_v38 = vld [vmem:[#allocation26 + $0x868] sm:$0xf]  ;;  %v12416_v29 = vor.u32 %v13904_v35, %v12413_v63 }
 0x712   : > { %8999 = vmatpush.bf16.msra.mxu3 %v12280_v58  ;;  %v8768_v36 = vadd.f32 %v8767_v39, %v8755_v22  ;;  %v13809_v58 = vld [vmem:[#allocation26 + $0x674] sm:$0xf]  ;;  %v12672_v31 = vor.u32 %v13968_v1, %v12669_v14  ;;  %v12284_v53 = vor.u32 %v13888_v48, %v12283_v38  ;;  %v11523_v1 = vld [vmem:[#allocation26 + $0x270] sm:$0xf] }
 0x713   : > { %v11653_v20 = vld [vmem:[#allocation26 + $0x3f0] sm:$0xf0]  ;;  %v13059_v14 = vld [vmem:[#allocation26 + $0xe70] sm:$0xf] }
 0x714   : > { %9009 = vmatpush.bf16.msrb.mxu0 %v11644_v54  ;;  %8974 = vmatmul.bf16.vlgmr.msra.gmra.mxu1 %v16515_v11  ;;  %v12037_v54 = vld [vmem:[#allocation26 + $0x6f0] sm:$0xf0]  ;;  %v12803_v35 = vld [vmem:[#allocation26 + $0xc70] sm:$0xf] }
 0x715   : > { %9018 = vmatpush.bf16.msrb.mxu1 %v13180_v26  ;;  %9035 = vmatpush.bf16.msrb.mxu2 %v11648_v8  ;;  %v8781_v26 = vadd.f32 %v16677_v7, %v8282_v5  ;;  %v12668_v8 = vor.u32 %v13984_v45, %v12667_v47  ;;  %v12040_v51 = vor.u32 %v13809_v58, %v12037_v54  ;;  %v13793_v7 = vld [vmem:[#allocation26 + $0x5ec] sm:$0xf0]  ;;  %v14097_v5 = vld [vmem:[#allocation26 + $0xf74] sm:$0xf] }
 0x716   : > { %9044 = vmatpush.bf16.msrb.mxu3 %v13184_v16  ;;  %v12539_v16 = vld [vmem:[#allocation26 + $0xa68] sm:$0xf]  ;;  %v11908_v10 = vor.u32 %v13793_v7, %v11907_v13  ;;  %v14081_v58 = vld [vmem:[#allocation26 + $0xeec] sm:$0xf0]  ;;  %v13681_v54 = vld [vmem:[#allocation26 + $0x274] sm:$0xf] }
 0x717   : > { %9000 = vmatmul.bf16.vlgmr.msra.gmra.mxu3 %v16515_v11  ;;  %v12540_v43 = vor.u32 %v13952_v49, %v12539_v16  ;;  %v13060_v16 = vor.u32 %v14081_v58, %v13059_v14  ;;  %v13649_v13 = vld [vmem:[#allocation26 + $0x174] sm:$0xf]  ;;  %v13953_v58 = vld [vmem:[#allocation26 + $0xaec] sm:$0xf0] }
 0x718   : > { %9010 = vmatpush.bf16.msrb.mxu0 %v11516_v3  ;;  %v13777_v3 = vld [vmem:[#allocation26 + $0x574] sm:$0xf] }
 0x719   : > { %9019 = vmatpush.bf16.msrb.mxu1 %v13052_v0  ;;  %9036 = vmatpush.bf16.msrb.mxu2 %v11520_v42  ;;  %v8769_v59 = vpop.f32.mrf.mxu1  ;;  %v11909_v0 = vld [vmem:[#allocation26 + $0x5f0] sm:$0xf0] }
 0x71a   : > { %9045 = vmatpush.bf16.msrb.mxu3 %v13056_v57  ;;  %v8793_v25 = vpop.f32.mrf.mxu3  ;;  %v12411_v57 = vld [vmem:[#allocation26 + $0x968] sm:$0xf]  ;;  %v11912_v41 = vor.u32 %v13777_v3, %v11909_v0  ;;  %v11397_v7 = vld [vmem:[#allocation26 + $0x1f0] sm:$0xf0] }
 0x71b   : > { %v8794_v33 = vadd.f32 %v8793_v25, %v8781_v26  ;;  %v12412_v56 = vor.u32 %v13920_v50, %v12411_v57  ;;  %v11525_v26 = vld [vmem:[#allocation26 + $0x2f0] sm:$0xf0]  ;;  %v8283_v25 = vperm.slane %v16675_v6, 2  ;;  %v13633_v50 = vld [vmem:[#allocation26 + $0xec] sm:$0xf0] }
 0x71c   : > { %9011 = vmatpush.bf16.msrb.mxu0 %v11388_v44  ;;  %v11779_v44 = vld [vmem:[#allocation26 + $0x470] sm:$0xf]  ;;  %v11528_v49 = vor.u32 %v13681_v54, %v11525_v26  ;;  %v14033_v3 = vld [vmem:[#allocation26 + $0xd74] sm:$0xf] }
 0x71d   : > { %9020 = vmatpush.bf16.msrb.mxu1 %v12924_v27  ;;  %9037 = vmatpush.bf16.msrb.mxu2 %v11392_v19  ;;  %v9207_v42 = vrot.slane %v8794_v33, 7  ;;  %v13745_v19 = vld [vmem:[#allocation26 + $0x474] sm:$0xf]  ;;  %v13665_v33 = vld [vmem:[#allocation26 + $0x1ec] sm:$0xf0] }
 0x71e   : > { %9046 = vmatpush.bf16.msrb.mxu3 %v12928_v52  ;;  %v11780_v52 = vor.u32 %v13761_v21, %v11779_v44  ;;  %v11784_v39 = vor.u32 %v13745_v19, %v11781_v12  ;;  %v12933_v0 = vld [vmem:[#allocation26 + $0xdf0] sm:$0xf0] }
 0x71f   : > { %v16688_v24 = vsel %vm2642_vm1, %v8768_v36, %v9207_v42  ;;  %v14113_v36 = vld [vmem:[#allocation26 + $0xfec] sm:$0xf0]  ;;  %v11396_v42 = vor.u32 %v13665_v33, %v11395_v60  ;;  %v12936_v44 = vor.u32 %v14033_v3, %v12933_v0  ;;  %v13617_v21 = vld [vmem:[#allocation26 + $0x74] sm:$0xf] }
 0x720   : > { %9012 = vmatpush.bf16.msrb.mxu0 %v11260_v28  ;;  %v16690_v27 = vpop.f32.mrf.mxu0  ;;  %v13713_v28 = vld [vmem:[#allocation26 + $0x374] sm:$0xf] }
 0x721   : > { %9021 = vmatpush.bf16.msrb.mxu1 %v12796_v30  ;;  %9038 = vmatpush.bf16.msrb.mxu2 %v11264_v32  ;;  %v13189_v30 = vld [vmem:[#allocation26 + $0xff0] sm:$0xf0]  ;;  %v12288_v32 = vor.u32 %v13872_v37, %v12285_v46  ;;  %v11656_v47 = vor.u32 %v13713_v28, %v11653_v20  ;;  %v8807_v63 = vadd.f32 %v16690_v27, %v8283_v25  ;;  %v13842_v37 = vld [vmem:[#allocation26 + $0x77c] sm:$0xf]  ;;  %v13985_v28 = vld [vmem:[#allocation26 + $0xbec] sm:$0xf0] }
 0x722   : > { %9047 = vmatpush.bf16.msrb.mxu3 %v12800_v40  ;;  %v8795_v22 = vpop.f32.mrf.mxu3  ;;  %v11652_v40 = vor.u32 %v13729_v4, %v11651_v55  ;;  %v13192_v61 = vor.u32 %v14097_v5, %v13189_v30  ;;  %v11269_v19 = vld [vmem:[#allocation26 + $0xf0] sm:$0xf0]  ;;  %v12173_v46 = vld [vmem:[#allocation26 + $0x7f8] sm:$0xf0]  ;;  %v12043_v30 = vld [vmem:[#allocation26 + $0x678] sm:$0xf] }
 0x723   : > { %9013 = vmatmul.bf16.vlgmr.msrb.gmra.mxu0 %v16509_v62  ;;  %v14001_v12 = vld [vmem:[#allocation26 + $0xc74] sm:$0xf]  ;;  %v13858_v22 = vld [vmem:[#allocation26 + $0x7f4] sm:$0xf0]  ;;  %v11272_v27 = vor.u32 %v13617_v21, %v11269_v19 }
 0x724   : > { %9057 = vmatpush.bf16.msra.mxu0 %v12164_v34  ;;  %9039 = vmatmul.bf16.vlgmr.msrb.gmra.mxu2 %v16509_v62  ;;  %v13188_v34 = vor.u32 %v14113_v36, %v13187_v23  ;;  %v12805_v38 = vld [vmem:[#allocation26 + $0xcf0] sm:$0xf0]  ;;  %v12675_v36 = vld [vmem:[#allocation26 + $0xb70] sm:$0xf] }
 0x725   : > { %9083 = vmatpush.bf16.msra.mxu2 %v12168_v9  ;;  %9022 = vmatpush.bf16.msrb.mxu1 %v12668_v8  ;;  %v13697_v9 = vld [vmem:[#allocation26 + $0x2ec] sm:$0xf0]  ;;  %v14065_v8 = vld [vmem:[#allocation26 + $0xe74] sm:$0xf]  ;;  %v12808_v4 = vor.u32 %v14001_v12, %v12805_v38 }
 0x726   : > { %9048 = vmatpush.bf16.msrb.mxu3 %v12672_v31  ;;  %v13061_v31 = vld [vmem:[#allocation26 + $0xef0] sm:$0xf0] }
 0x727   : > { %v16692_v45 = vpop.f32.mrf.mxu2  ;;  %v13064_v59 = vor.u32 %v14065_v8, %v13061_v31  ;;  %v13969_v20 = vld [vmem:[#allocation26 + $0xb74] sm:$0xf] }
 0x728   : > { %9058 = vmatpush.bf16.msra.mxu0 %v12036_v15  ;;  %v8808_v18 = vpop.f32.mrf.mxu0  ;;  %v11524_v15 = vor.u32 %v13697_v9, %v11523_v1  ;;  %v12677_v5 = vld [vmem:[#allocation26 + $0xbf0] sm:$0xf0]  ;;  %v12676_v1 = vor.u32 %v13985_v28, %v12675_v36 }
 0x729   : > { %9084 = vmatpush.bf16.msra.mxu2 %v12040_v51  ;;  %9023 = vmatpush.bf16.msrb.mxu1 %v12540_v43  ;;  %v12931_v51 = vld [vmem:[#allocation26 + $0xd70] sm:$0xf]  ;;  %v12680_v9 = vor.u32 %v13969_v20, %v12677_v5  ;;  %v13937_v54 = vld [vmem:[#allocation26 + $0xa74] sm:$0xf]  ;;  %v11531_v5 = vld [vmem:[#allocation26 + $0x278] sm:$0xf] }
 0x72a   : > { %9049 = vmatpush.bf16.msrb.mxu3 %v12544_v2  ;;  %v11267_v43 = vld [vmem:[#allocation26 + $0x70] sm:$0xf]  ;;  %v12932_v2 = vor.u32 %v14049_v17, %v12931_v51  ;;  %v12549_v25 = vld [vmem:[#allocation26 + $0xaf0] sm:$0xf0] }
 0x72b   : > { %v11268_v48 = vor.u32 %v13633_v50, %v11267_v43  ;;  %v12547_v18 = vld [vmem:[#allocation26 + $0xa70] sm:$0xf]  ;;  %v13905_v3 = vld [vmem:[#allocation26 + $0x974] sm:$0xf] }
 0x72c   : > { %9059 = vmatpush.bf16.msra.mxu0 %v11908_v10  ;;  %v11400_v10 = vor.u32 %v13649_v13, %v11397_v7  ;;  %v12548_v51 = vor.u32 %v13953_v58, %v12547_v18  ;;  %v12419_v13 = vld [vmem:[#allocation26 + $0x970] sm:$0xf]  ;;  %v12421_v43 = vld [vmem:[#allocation26 + $0x9f0] sm:$0xf0] }
 0x72d   : > { %9085 = vmatpush.bf16.msra.mxu2 %v11912_v41  ;;  %9024 = vmatpush.bf16.msrb.mxu1 %v12412_v56  ;;  %v14017_v41 = vld [vmem:[#allocation26 + $0xcec] sm:$0xf0]  ;;  %v12424_v21 = vor.u32 %v13905_v3, %v12421_v43  ;;  %v13873_v38 = vld [vmem:[#allocation26 + $0x874] sm:$0xf]  ;;  %v12811_v3 = vld [vmem:[#allocation26 + $0xc78] sm:$0xf] }
 0x72e   : > { %9050 = vmatpush.bf16.msrb.mxu3 %v12416_v29  ;;  %v12171_v29 = vld [vmem:[#allocation26 + $0x778] sm:$0xf]  ;;  %v12804_v55 = vor.u32 %v14017_v41, %v12803_v35  ;;  %v13921_v7 = vld [vmem:[#allocation26 + $0x9ec] sm:$0xf0]  ;;  %v13746_v35 = vld [vmem:[#allocation26 + $0x47c] sm:$0xf] }
 0x72f   : > { %v8834_v57 = vpop.f32.mrf.mxu2  ;;  %v12172_v23 = vor.u32 %v13858_v22, %v12171_v29  ;;  %v11789_v41 = vld [vmem:[#allocation26 + $0x4f8] sm:$0xf0]  ;;  %v12293_v29 = vld [vmem:[#allocation26 + $0x8f0] sm:$0xf0] }
 0x730   : > { %9060 = vmatpush.bf16.msra.mxu0 %v11780_v52  ;;  %v11792_v22 = vor.u32 %v13746_v35, %v11789_v41  ;;  %v13618_v43 = vld [vmem:[#allocation26 + $0x7c] sm:$0xf] }
 0x731   : > { %9086 = vmatpush.bf16.msra.mxu2 %v11784_v39  ;;  %9025 = vmatpush.bf16.msrb.mxu1 %v12284_v53  ;;  %v8819_v56 = vpop.f32.mrf.mxu1  ;;  %v8284_v39 = vperm.slane %v16675_v6, 3  ;;  %v12176_v53 = vor.u32 %v13842_v37, %v12173_v46  ;;  %v14114_v37 = vld [vmem:[#allocation26 + $0xff4] sm:$0xf0]  ;;  %v13714_v46 = vld [vmem:[#allocation26 + $0x37c] sm:$0xf] }
 0x732   : > { %9051 = vmatpush.bf16.msrb.mxu3 %v12288_v32  ;;  %v8820_v52 = vadd.f32 %v8819_v56, %v8807_v63  ;;  %v13826_v32 = vld [vmem:[#allocation26 + $0x6f4] sm:$0xf0]  ;;  %v12420_v63 = vor.u32 %v13921_v7, %v12419_v13  ;;  %v13889_v56 = vld [vmem:[#allocation26 + $0x8ec] sm:$0xf0]  ;;  %v14002_v35 = vld [vmem:[#allocation26 + $0xc7c] sm:$0xf] }
 0x733   : > { %v11275_v13 = vld [vmem:[#allocation26 + $0x78] sm:$0xf]  ;;  %v12813_v41 = vld [vmem:[#allocation26 + $0xcf8] sm:$0xf0] }
 0x734   : > { %9061 = vmatpush.bf16.msra.mxu0 %v11652_v40  ;;  %9026 = vmatmul.bf16.vlgmr.msrb.gmra.mxu1 %v16515_v11  ;;  %v13810_v40 = vld [vmem:[#allocation26 + $0x67c] sm:$0xf]  ;;  %v9208_v60 = vrot.slane %v8820_v52, 6  ;;  %v11659_v52 = vld [vmem:[#allocation26 + $0x378] sm:$0xf] }
 0x735   : > { %9070 = vmatpush.bf16.msra.mxu1 %v13188_v34  ;;  %9087 = vmatpush.bf16.msra.mxu2 %v11656_v47  ;;  %v12045_v34 = vld [vmem:[#allocation26 + $0x6f8] sm:$0xf0]  ;;  %v8833_v47 = vadd.f32 %v16692_v45, %v8284_v39  ;;  %v13794_v45 = vld [vmem:[#allocation26 + $0x5f4] sm:$0xf0] }
 0x736   : > { %9096 = vmatpush.bf16.msra.mxu3 %v13192_v61  ;;  %v12044_v61 = vor.u32 %v13826_v32, %v12043_v30  ;;  %v12048_v8 = vor.u32 %v13810_v40, %v12045_v34  ;;  %v11661_v39 = vld [vmem:[#allocation26 + $0x3f8] sm:$0xf0]  ;;  %v13698_v30 = vld [vmem:[#allocation26 + $0x2f4] sm:$0xf0] }
 0x737   : > { %9052 = vmatmul.bf16.vlgmr.msrb.gmra.mxu3 %v16515_v11  ;;  %v11664_v20 = vor.u32 %v13714_v46, %v11661_v39  ;;  %v13067_v32 = vld [vmem:[#allocation26 + $0xe78] sm:$0xf]  ;;  %v11532_v18 = vor.u32 %v13698_v30, %v11531_v5  ;;  %v13938_v39 = vld [vmem:[#allocation26 + $0xa7c] sm:$0xf] }
 0x738   : > { %9062 = vmatpush.bf16.msra.mxu0 %v11524_v15  ;;  %v11915_v15 = vld [vmem:[#allocation26 + $0x578] sm:$0xf] }
 0x739   : > { %9071 = vmatpush.bf16.msra.mxu1 %v13060_v16  ;;  %9088 = vmatpush.bf16.msra.mxu2 %v11528_v49  ;;  %v8821_v31 = vpop.f32.mrf.mxu1  ;;  %v13778_v16 = vld [vmem:[#allocation26 + $0x57c] sm:$0xf]  ;;  %v11916_v17 = vor.u32 %v13794_v45, %v11915_v15  ;;  %v14050_v15 = vld [vmem:[#allocation26 + $0xdf4] sm:$0xf0] }
 0x73a   : > { %9097 = vmatpush.bf16.msra.mxu3 %v13064_v59  ;;  %v8845_v14 = vpop.f32.mrf.mxu3  ;;  %v11917_v49 = vld [vmem:[#allocation26 + $0x5f8] sm:$0xf0]  ;;  %v12552_v59 = vor.u32 %v13937_v54, %v12549_v25  ;;  %v12939_v31 = vld [vmem:[#allocation26 + $0xd78] sm:$0xf] }
 0x73b   : > { %v8846_v26 = vadd.f32 %v8845_v14, %v8833_v47  ;;  %v14082_v47 = vld [vmem:[#allocation26 + $0xef4] sm:$0xf0]  ;;  %v14066_v14 = vld [vmem:[#allocation26 + $0xe7c] sm:$0xf] }
 0x73c   : > { %9063 = vmatpush.bf16.msra.mxu0 %v11396_v42  ;;  %v11920_v42 = vor.u32 %v13778_v16, %v11917_v49  ;;  %v13068_v58 = vor.u32 %v14082_v47, %v13067_v32  ;;  %v13650_v45 = vld [vmem:[#allocation26 + $0x17c] sm:$0xf]  ;;  %v13634_v7 = vld [vmem:[#allocation26 + $0xf4] sm:$0xf0] }
 0x73d   : > { %9072 = vmatpush.bf16.msra.mxu1 %v12932_v2  ;;  %9089 = vmatpush.bf16.msra.mxu2 %v11400_v10  ;;  %v9209_v33 = vrot.slane %v8846_v26, 5  ;;  %v11787_v2 = vld [vmem:[#allocation26 + $0x478] sm:$0xf]  ;;  %v11405_v16 = vld [vmem:[#allocation26 + $0x1f8] sm:$0xf0] }
 0x73e   : > { %9098 = vmatpush.bf16.msra.mxu3 %v12936_v44  ;;  %v13762_v10 = vld [vmem:[#allocation26 + $0x4f4] sm:$0xf0]  ;;  %v12291_v44 = vld [vmem:[#allocation26 + $0x870] sm:$0xf]  ;;  %v14034_v49 = vld [vmem:[#allocation26 + $0xd7c] sm:$0xf] }
 0x73f   : > { %v9236_v0 = vsel %vm2644_vm2, %v9208_v60, %v9209_v33  ;;  %v11788_v12 = vor.u32 %v13762_v10, %v11787_v2  ;;  %v11403_v26 = vld [vmem:[#allocation26 + $0x178] sm:$0xf]  ;;  %v12941_v60 = vld [vmem:[#allocation26 + $0xdf8] sm:$0xf0] }
 0x740   : > { %9064 = vmatpush.bf16.msra.mxu0 %v11268_v48  ;;  %v16705_v57 = vsel %vm2646_vm3, %v16688_v24, %v9236_v0  ;;  %v16707_v50 = vpop.f32.mrf.mxu0  ;;  %v13730_v24 = vld [vmem:[#allocation26 + $0x3f4] sm:$0xf0]  ;;  %v12944_v0 = vor.u32 %v14034_v49, %v12941_v60  ;;  %v11277_v2 = vld [vmem:[#allocation26 + $0xf8] sm:$0xf0] }
 0x741   : > { %9073 = vmatpush.bf16.msra.mxu1 %v12804_v55  ;;  %9090 = vmatpush.bf16.msra.mxu2 %v11272_v27  ;;  %v13195_v48 = vld [vmem:[#allocation26 + $0xf78] sm:$0xf]  ;;  %v12292_v55 = vor.u32 %v13889_v56, %v12291_v44  ;;  %v14098_v27 = vld [vmem:[#allocation26 + $0xf7c] sm:$0xf]  ;;  %v11660_v36 = vor.u32 %v13730_v24, %v11659_v52 }
 0x742   : > { %9099 = vmatpush.bf16.msra.mxu3 %v12808_v4  ;;  %v8847_v19 = vpop.f32.mrf.mxu3  ;;  %v13197_v4 = vld [vmem:[#allocation26 + $0xff8] sm:$0xf0]  ;;  %v13196_v28 = vor.u32 %v14114_v37, %v13195_v48  ;;  %v13986_v56 = vld [vmem:[#allocation26 + $0xbf4] sm:$0xf0] }
 0x743   : > { %9065 = vmatmul.bf16.vlgmr.msra.gmra.mxu0 %v16509_v62  ;;  %v13200_v40 = vor.u32 %v14098_v27, %v13197_v4  ;;  %v12816_v19 = vor.u32 %v14002_v35, %v12813_v41  ;;  %v12555_v48 = vld [vmem:[#allocation26 + $0xa78] sm:$0xf] }
 0x744   : > { %9109 = vmatpush.bf16.msrb.mxu0 %v12172_v23  ;;  %9091 = vmatmul.bf16.vlgmr.msra.gmra.mxu2 %v16509_v62  ;;  %v12296_v23 = vor.u32 %v13873_v38, %v12293_v29  ;;  %v13970_v38 = vld [vmem:[#allocation26 + $0xb7c] sm:$0xf]  ;;  %v13954_v37 = vld [vmem:[#allocation26 + $0xaf4] sm:$0xf0] }
 0x745   : > { %9135 = vmatpush.bf16.msrb.mxu2 %v12176_v53  ;;  %9074 = vmatpush.bf16.msra.mxu1 %v12676_v1  ;;  %v13682_v1 = vld [vmem:[#allocation26 + $0x27c] sm:$0xf]  ;;  %v12556_v27 = vor.u32 %v13954_v37, %v12555_v48  ;;  %v13890_v47 = vld [vmem:[#allocation26 + $0x8f4] sm:$0xf0] }
 0x746   : > { %9100 = vmatpush.bf16.msra.mxu3 %v12680_v9  ;;  %v11533_v9 = vld [vmem:[#allocation26 + $0x2f8] sm:$0xf0] }
 0x747   : > { %v16709_v53 = vpop.f32.mrf.mxu2  ;;  %v11536_v54 = vor.u32 %v13682_v1, %v11533_v9  ;;  %v12685_v29 = vld [vmem:[#allocation26 + $0xbf8] sm:$0xf0] }
 0x748   : > { %9110 = vmatpush.bf16.msrb.mxu0 %v12044_v61  ;;  %v8860_v34 = vpop.f32.mrf.mxu0  ;;  %v13069_v61 = vld [vmem:[#allocation26 + $0xef8] sm:$0xf0]  ;;  %v12688_v52 = vor.u32 %v13970_v38, %v12685_v29 }
 0x749   : > { %9136 = vmatpush.bf16.msrb.mxu2 %v12048_v8  ;;  %9075 = vmatpush.bf16.msra.mxu1 %v12548_v51  ;;  %v13666_v8 = vld [vmem:[#allocation26 + $0x1f4] sm:$0xf0]  ;;  %v13072_v25 = vor.u32 %v14066_v14, %v13069_v61  ;;  %v12940_v51 = vor.u32 %v14050_v15, %v12939_v31  ;;  %v13874_v1 = vld [vmem:[#allocation26 + $0x87c] sm:$0xf]  ;;  %v8288_v15 = vperm.slane %v16675_v6, 7 }
 0x74a   : > { %9101 = vmatpush.bf16.msra.mxu3 %v12552_v59  ;;  %v11404_v33 = vor.u32 %v13666_v8, %v11403_v26  ;;  %v11408_v59 = vor.u32 %v13650_v45, %v11405_v16  ;;  %v12299_v34 = vld [vmem:[#allocation26 + $0x878] sm:$0xf]  ;;  %v12301_v9 = vld [vmem:[#allocation26 + $0x8f8] sm:$0xf0]  ;;  %v8285_v26 = vperm.slane %v16675_v6, 4  ;;  %v8287_v8 = vperm.slane %v16675_v6, 6 }
 0x74b   : > { %v12304_v14 = vor.u32 %v13874_v1, %v12301_v9  ;;  %v5700_v41 = vld [vmem:[#allocation28 + $0x18] sm:$0xff] }
 0x74c   : > { %9111 = vmatpush.bf16.msrb.mxu0 %v11916_v17  ;;  %v8859_v45 = vadd.f32 %v16707_v50, %v8285_v26 }
 0x74d   : > { %9137 = vmatpush.bf16.msrb.mxu2 %v11920_v42  ;;  %9076 = vmatpush.bf16.msra.mxu1 %v12420_v63  ;;  %v14018_v42 = vld [vmem:[#allocation26 + $0xcf4] sm:$0xf0]  ;;  %v11276_v63 = vor.u32 %v13634_v7, %v11275_v13 }
 0x74e   : > { %9102 = vmatpush.bf16.msra.mxu3 %v12424_v21  ;;  %v12812_v44 = vor.u32 %v14018_v42, %v12811_v3  ;;  %v11280_v21 = vor.u32 %v13618_v43, %v11277_v2 }
 0x74f   : > { %v8886_v17 = vpop.f32.mrf.mxu2 }
 0x750   : > { %9112 = vmatpush.bf16.msrb.mxu0 %v11788_v12  ;;  %v12683_v12 = vld [vmem:[#allocation26 + $0xb78] sm:$0xf] }
 0x751   : > { %9138 = vmatpush.bf16.msrb.mxu2 %v11792_v22  ;;  %9077 = vmatpush.bf16.msra.mxu1 %v12292_v55  ;;  %v16713_v10 = vpop.f32.mrf.mxu1  ;;  %v12684_v22 = vor.u32 %v13986_v56, %v12683_v12  ;;  %v12557_v55 = vld [vmem:[#allocation26 + $0xaf8] sm:$0xf0]  ;;  %v8290_v56 = vperm.slane %v5700_v41, 1 }
 0x752   : > { %9103 = vmatpush.bf16.msra.mxu3 %v12296_v23  ;;  %v12560_v4 = vor.u32 %v13938_v39, %v12557_v55  ;;  %v12427_v23 = vld [vmem:[#allocation26 + $0x978] sm:$0xf]  ;;  %v8872_v60 = vadd.f32 %v16713_v10, %v8859_v45  ;;  %v8291_v55 = vperm.slane %v5700_v41, 2  ;;  %v8294_v45 = vperm.slane %v5700_v41, 5 }
 0x754   : > { %9113 = vmatpush.bf16.msrb.mxu0 %v11660_v36  ;;  %9078 = vmatmul.bf16.vlgmr.msra.gmra.mxu1 %v16515_v11  ;;  %v13922_v36 = vld [vmem:[#allocation26 + $0x9f4] sm:$0xf0]  ;;  %v9210_v7 = vrot.slane %v8872_v60, 4  ;;  %v8295_v60 = vperm.slane %v5700_v41, 6 }
 0x755   : > { %9122 = vmatpush.bf16.msrb.mxu1 %v13196_v28  ;;  %9139 = vmatpush.bf16.msrb.mxu2 %v11664_v20  ;;  %v13906_v28 = vld [vmem:[#allocation26 + $0x97c] sm:$0xf]  ;;  %v12428_v30 = vor.u32 %v13922_v36, %v12427_v23 }
 0x756   : > { %9148 = vmatpush.bf16.msrb.mxu3 %v13200_v40  ;;  %v12429_v20 = vld [vmem:[#allocation26 + $0x9f8] sm:$0xf0] }
 0x757   : > { %9104 = vmatmul.bf16.vlgmr.msra.gmra.mxu3 %v16515_v11  ;;  %v12432_v32 = vor.u32 %v13906_v28, %v12429_v20  ;;  %v8292_v28 = vperm.slane %v5700_v41, 3 }
 0x758   : > { %9114 = vmatpush.bf16.msrb.mxu0 %v11532_v18 }
 0x759   : > { %9123 = vmatpush.bf16.msrb.mxu1 %v13068_v58  ;;  %9140 = vmatpush.bf16.msrb.mxu2 %v11536_v54  ;;  %v8873_v46 = vpop.f32.mrf.mxu1  ;;  %v8286_v58 = vperm.slane %v16675_v6, 5 }
 0x75a   : > { %9149 = vmatpush.bf16.msrb.mxu3 %v13072_v25  ;;  %v8897_v24 = vpop.f32.mrf.mxu3 }
 0x75b   : > { %v8885_v25 = vadd.f32 %v16709_v53, %v8286_v58 }
 0x75c   : > { %9115 = vmatpush.bf16.msrb.mxu0 %v11404_v33 }
 0x75d   : > { %9124 = vmatpush.bf16.msrb.mxu1 %v12940_v51  ;;  %9141 = vmatpush.bf16.msrb.mxu2 %v11408_v59  ;;  %v8898_v16 = vadd.f32 %v8897_v24, %v8885_v25 }
 0x75e   : > { %9150 = vmatpush.bf16.msrb.mxu3 %v12944_v0 }
 0x75f   : > { %v9211_v59 = vrot.slane %v8898_v16, 3 }
 0x760   : > { %9116 = vmatpush.bf16.msrb.mxu0 %v11276_v63  ;;  %v8910_v5 = vpop.f32.mrf.mxu0  ;;  %v8289_v63 = vperm.slane %v5700_v41, 0 }
 0x761   : > { %9125 = vmatpush.bf16.msrb.mxu1 %v12812_v44  ;;  %9142 = vmatpush.bf16.msrb.mxu2 %v11280_v21  ;;  %v8911_v49 = vadd.f32 %v8910_v5, %v8287_v8  ;;  %v9238_v53 = vsel %vm2648_vm4, %v9210_v7, %v9211_v59 }
 0x762   : > { %9151 = vmatpush.bf16.msrb.mxu3 %v12816_v19  ;;  %v8899_v40 = vpop.f32.mrf.mxu3 }
 0x763   : > { %9117 = vmatmul.bf16.vlgmr.msrb.gmra.mxu0 %v16509_v62 }
 0x764   : > { %9143 = vmatmul.bf16.vlgmr.msrb.gmra.mxu2 %v16509_v62  ;;  %v12300_v62 = vor.u32 %v13890_v47, %v12299_v34 }
 0x765   : > { %9126 = vmatpush.bf16.msrb.mxu1 %v12684_v22 }
 0x766   : > { %9152 = vmatpush.bf16.msrb.mxu3 %v12688_v52 }
 0x767   : > { %v8936_v61 = vpop.f32.mrf.mxu2 }
 0x768   : > { %v8912_v18 = vpop.f32.mrf.mxu0 }
 0x769   : > { %9127 = vmatpush.bf16.msrb.mxu1 %v12556_v27 }
 0x76a   : > { %9153 = vmatpush.bf16.msrb.mxu3 %v12560_v4 }
 0x76d   : > { %9128 = vmatpush.bf16.msrb.mxu1 %v12428_v30 }
 0x76e   : > { %9154 = vmatpush.bf16.msrb.mxu3 %v12432_v32 }
 0x76f   : > { %v8938_v54 = vpop.f32.mrf.mxu2 }
 0x771   : > { %9129 = vmatpush.bf16.msrb.mxu1 %v12300_v62  ;;  %v8923_v31 = vpop.f32.mrf.mxu1 }
 0x772   : > { %9155 = vmatpush.bf16.msrb.mxu3 %v12304_v14  ;;  %v8924_v33 = vadd.f32 %v8923_v31, %v8911_v49  ;;  %v8293_v49 = vperm.slane %v5700_v41, 4 }
 0x774   : > { %9130 = vmatmul.bf16.vlgmr.msrb.gmra.mxu1 %v16515_v11  ;;  %v9212_v3 = vrot.slane %v8924_v33, 2 }
 0x775   : > { %9156 = vmatmul.bf16.vlgmr.msrb.gmra.mxu3 %v16515_v11  ;;  %v8937_v11 = vadd.f32 %v8936_v61, %v8288_v15 }
 0x779   : > { %v8925_v13 = vpop.f32.mrf.mxu1 }
 0x77a   : > { %v8949_v51 = vpop.f32.mrf.mxu3 }
 0x77b   : > { %v8950_v17 = vadd.f32 %v8949_v51, %v8937_v11  ;;  %v8296_v51 = vperm.slane %v5700_v41, 7 }
 0x77d   : > { %v9213_v0 = vrot.slane %v8950_v17, 1 }
 0x77f   : > { %v9239_v6 = vsel %vm2650_vm5, %v9212_v3, %v9213_v0 }
 0x780   : > { %v9240_v50 = vsel %vm2652_vm6, %v9238_v53, %v9239_v6  ;;  %v8962_v42 = vpop.f32.mrf.mxu0 }
 0x781   : > { %v9241_v43 = vsel %vm2654_vm7, %v16705_v57, %v9240_v50  ;;  %v8963_v21 = vadd.f32 %v8962_v42, %v8289_v63 }
 0x782   : > { %9255 = vst [vmem:[%s15253_s4 + $0x10] sm:$0xff] %v9241_v43  ;;  %v8951_v2 = vpop.f32.mrf.mxu3 }
 0x787   : > { %v8988_v10 = vpop.f32.mrf.mxu2 }
 0x788   : > { %v8964_v35 = vpop.f32.mrf.mxu0  ;;  %v8989_v38 = vadd.f32 %v8988_v10, %v8290_v56 }
 0x78f   : > { %v8990_v44 = vpop.f32.mrf.mxu2 }
 0x791   : > { %v8975_v19 = vpop.f32.mrf.mxu1 }
 0x792   : > { %v8976_v12 = vadd.f32 %v8975_v19, %v8963_v21 }
 0x799   : > { %v8977_v52 = vpop.f32.mrf.mxu1 }
 0x79a   : > { %v9001_v29 = vpop.f32.mrf.mxu3 }
 0x79b   : > { %v9002_v22 = vadd.f32 %v9001_v29, %v8989_v38 }
 0x79d   : > { %v9214_v24 = vrot.slane %v9002_v22, 7 }
 0x79f   : > { %v9242_v48 = vsel %vm2642_vm1, %v8976_v12, %v9214_v24 }
 0x7a0   : > { %v9014_v37 = vpop.f32.mrf.mxu0 }
 0x7a1   : > { %v9015_v4 = vadd.f32 %v9014_v37, %v8291_v55 }
 0x7a2   : > { %v9003_v57 = vpop.f32.mrf.mxu3 }
 0x7a7   : > { %v9040_v46 = vpop.f32.mrf.mxu2 }
 0x7a8   : > { %v9016_v39 = vpop.f32.mrf.mxu0  ;;  %v9041_v20 = vadd.f32 %v9040_v46, %v8292_v28 }
 0x7af   : > { %v9042_v27 = vpop.f32.mrf.mxu2 }
 0x7b1   : > { %v9027_v23 = vpop.f32.mrf.mxu1 }
 0x7b2   : > { %v9028_v36 = vadd.f32 %v9027_v23, %v9015_v4 }
 0x7b4   : > { %v9215_v40 = vrot.slane %v9028_v36, 6 }
 0x7b9   : > { %v9029_v32 = vpop.f32.mrf.mxu1 }
 0x7ba   : > { %v9053_v5 = vpop.f32.mrf.mxu3 }
 0x7bb   : > { %v9054_v30 = vadd.f32 %v9053_v5, %v9041_v20 }
 0x7bd   : > { %v9216_v34 = vrot.slane %v9054_v30, 5 }
 0x7bf   : > { %v9243_v47 = vsel %vm2644_vm2, %v9215_v40, %v9216_v34 }
 0x7c0   : > { %v9244_v1 = vsel %vm2646_vm3, %v9242_v48, %v9243_v47  ;;  %v9066_v9 = vpop.f32.mrf.mxu0 }
 0x7c1   : > { %v9067_v59 = vadd.f32 %v9066_v9, %v8293_v49 }
 0x7c2   : > { %v9055_v62 = vpop.f32.mrf.mxu3 }
 0x7c7   : > { %v9092_v14 = vpop.f32.mrf.mxu2 }
 0x7c8   : > { %v9068_v61 = vpop.f32.mrf.mxu0  ;;  %v9093_v33 = vadd.f32 %v9092_v14, %v8294_v45 }
 0x7cf   : > { %v9094_v18 = vpop.f32.mrf.mxu2 }
 0x7d1   : > { %v9079_v58 = vpop.f32.mrf.mxu1 }
 0x7d2   : > { %v9080_v7 = vadd.f32 %v9079_v58, %v9067_v59 }
 0x7d4   : > { %v9217_v43 = vrot.slane %v9080_v7, 4 }
 0x7d9   : > { %v9081_v26 = vpop.f32.mrf.mxu1 }
 0x7da   : > { %v9105_v54 = vpop.f32.mrf.mxu3 }
 0x7db   : > { %v9106_v17 = vadd.f32 %v9105_v54, %v9093_v33 }
 0x7dd   : > { %v9218_v6 = vrot.slane %v9106_v17, 3 }
 0x7df   : > { %v9245_v35 = vsel %vm2648_vm4, %v9217_v43, %v9218_v6 }
 0x7e0   : > { %v9118_v8 = vpop.f32.mrf.mxu0 }
 0x7e1   : > { %v9119_v13 = vadd.f32 %v9118_v8, %v8295_v60 }
 0x7e2   : > { %v9107_v31 = vpop.f32.mrf.mxu3 }
 0x7e7   : > { %v9144_v25 = vpop.f32.mrf.mxu2 }
 0x7e8   : > { %v9120_v15 = vpop.f32.mrf.mxu0  ;;  %v9145_v3 = vadd.f32 %v9144_v25, %v8296_v51 }
 0x7ef   : > { %v9146_v16 = vpop.f32.mrf.mxu2 }
 0x7f1   : > { %v9131_v11 = vpop.f32.mrf.mxu1 }
 0x7f2   : > { %v9132_v0 = vadd.f32 %v9131_v11, %v9119_v13 }
 0x7f4   : > { %v9219_v2 = vrot.slane %v9132_v0, 2 }
 0x7f8   : > { %v9157_v53 = vpop.f32.mrf.mxu3 }
 0x7f9   : > { %v9158_v50 = vadd.f32 %v9157_v53, %v9145_v3  ;;  %v9133_v42 = vpop.f32.mrf.mxu1 }
 0x7fb   : > { %v9220_v10 = vrot.slane %v9158_v50, 1 }
 0x7fd   : > { %v9246_v63 = vsel %vm2650_vm5, %v9219_v2, %v9220_v10 }
 0x7fe   : > { %v9247_v41 = vsel %vm2652_vm6, %v9245_v35, %v9246_v63 }
 0x7ff   : > { %v9248_v44 = vsel %vm2654_vm7, %v9244_v1, %v9247_v41 }
 0x800   : > { %9256 = vst [vmem:[%s15253_s4 + $0x18] sm:$0xff] %v9248_v44  ;;  %v9159_v21 = vpop.f32.mrf.mxu3 }
 0x801 PF: > { %s17173_s26 = sld [smem:[#allocation40_spill]]  ;;  %s17174_s27 = smov %s14932_s29 }
 0x802   : > { %s17175_s28 = smov %s14936_s30  ;;  %s17176_s29 = smov %s17179_s22 }
 0x803   : > { %s17177_s30 = smov %s17183_s21 }
 0x807   : > { %s37_s0 = sadd.s32 1, %s17173_s26  }
 0x808   : > { %p34_p12 = scmp.ge.s32.totalorder %s37_s0, 6  }
 0x80a   :  { %36 = sbr.rel (!%p34_p12) target bundleno = 20 (0x14), region = 199 }
 0x80f   :  { %9276 = vsyncpa [#allocation4], 1 }
 0x810   :  { %9278 = vsyncpa [#allocation4 + $0x1], 1 }
 0x811   :  { %9279 = vsyncpa [#allocation6], 1 }
 0x812   :  { %9280 = vsyncpa [#allocation9], 1 }
 0x813   :  { %9281 = vsyncpa [#allocation12], 1 }
 0x814   :  { %9282 = vsyncpa [#allocation15], 1 }
 0x815   :  { %9283 = vsyncpa [#allocation18], 1 }
 0x816   :  { %9284 = vsyncpa [#allocation21], 1 }
 0x817   :  { %9285 = vsyncpa [#allocation24], 1 }
 0x818   :  { %9286 = vsyncpa [#allocation27], 1 }

</bundles_post_ra>
